<compile_context>
chip_gen: v6e
topology: v6e:2x2x1
jax: 0.10.0
libtpu: 0.0.40
codegen_flags: <defaults>
</compile_context>

<pallas_src>
import functools

import numpy as np
import jax
import jax.numpy as jnp
from jax.experimental import pallas as pl
from jax.experimental.pallas import tpu as pltpu


_COMPUTE_DTYPE = jnp.bfloat16     # MXU inputs; accumulation stays f32 in-kernel.
_TM_MAX = 512                     # FC-head row-tile target.


def _cdiv(a, b):
    return -(-a // b)


def _round_up(v, m):
    return ((v + m - 1) // m) * m


def _vmem_limit(block_bytes):
    """Derive the scoped-VMEM limit from the actual block footprint.

    Blocks are double-buffered by the Pallas pipeline; add headroom for
    compiler-internal scratch, floor at 24 MiB (safety), cap at 48 MiB so we
    stay well inside v7x's 64 MiB physical VMEM.
    """
    need = 2 * int(block_bytes) + 4 * 1024 * 1024
    return int(min(48 * 1024 * 1024, max(24 * 1024 * 1024, need)))


def _m_tiling(M):
    """(padded M, row tile) for the FC head: minimal tail padding, and >=2
    blocks whenever M >= 32 so both v7x TensorCores get work."""
    if M < 32:
        Mp = _round_up(M, 8)
        return Mp, Mp
    if M <= _TM_MAX:
        TM = _round_up(_cdiv(M, 2), 16)
        return 2 * TM, TM
    gm = _cdiv(M, _TM_MAX)
    TM = _round_up(_cdiv(M, gm), 16)
    return gm * TM, TM


def _pad_rows(x, Mp):
    M = x.shape[0]
    if Mp == M:
        return x
    return jnp.pad(x, ((0, Mp - M), (0, 0)))


# ----------------------------------------------------------------------------
# Pallas kernel 1: fused conv stack (conv1 -> conv2 -> conv3, all with ReLU).
# One grid step == one batch sample; everything stays in VMEM/vregs.
# ----------------------------------------------------------------------------
def _conv_stack_kernel(x_ref, w1_ref, b1_ref, g2_ref, w2_ref, b2_ref,
                       g3_ref, w3_ref, b3_ref, o_ref):
    f32 = jnp.float32
    bf16 = jnp.bfloat16

    # conv1: pre-built patch columns (400, K1) @ (K1, 32) + bias, ReLU.
    a1 = jnp.dot(x_ref[0], w1_ref[...], preferred_element_type=f32)
    a1 = jnp.maximum(a1 + b1_ref[...], 0.0).astype(bf16)              # (400, 32)

    # conv2 (4x4, stride 2): per kernel position, gather the needed 81 rows of
    # a1 with a one-hot matmul (MXU gather -- exact) and multiply by that
    # position's (ic, oc) weight; accumulate in f32.
    acc2 = jnp.zeros((81, 64), f32)
    for k in range(16):
        rows = jnp.dot(g2_ref[k], a1, preferred_element_type=f32)     # (81, 32)
        acc2 = acc2 + jnp.dot(rows.astype(bf16), w2_ref[k],
                              preferred_element_type=f32)             # (81, 64)
    a2 = jnp.maximum(acc2 + b2_ref[...], 0.0).astype(bf16)            # (81, 64)

    # conv3 (3x3, stride 1): same scheme.
    acc3 = jnp.zeros((49, 64), f32)
    for k in range(9):
        rows = jnp.dot(g3_ref[k], a2, preferred_element_type=f32)     # (49, 64)
        acc3 = acc3 + jnp.dot(rows.astype(bf16), w3_ref[k],
                              preferred_element_type=f32)             # (49, 64)
    a3 = jnp.maximum(acc3 + b3_ref[...], 0.0)                         # (49, 64) f32

    o_ref[0] = a3.astype(o_ref.dtype)


def conv_stack(cols1, w1, b1, g2, w2p, b2, g3, w3p, b3):
    """cols1: (B, 400, K1) bf16 conv1 patch columns -> (B, 49, 64) bf16."""
    B, P1, K1 = cols1.shape

    weights = (w1, b1, g2, w2p, b2, g3, w3p, b3)
    weight_bytes = sum(int(np.prod(a.shape)) * a.dtype.itemsize for a in weights)
    block_bytes = P1 * K1 * 2 + 49 * 64 * 2 + weight_bytes

    flops_per_sample = 2 * (P1 * K1 * 32
                            + 16 * (81 * P1 * 32 + 81 * 32 * 64)
                            + 9 * (49 * 81 * 64 + 49 * 64 * 64))
    cost = pl.CostEstimate(
        flops=B * flops_per_sample,
        transcendentals=0,
        bytes_accessed=B * (P1 * K1 * 2 + 49 * 64 * 2) + weight_bytes)

    return pl.pallas_call(
        _conv_stack_kernel,
        out_shape=jax.ShapeDtypeStruct((B, 49, 64), _COMPUTE_DTYPE),
        grid=(B,),
        in_specs=[
            pl.BlockSpec((1, P1, K1), lambda b: (b, 0, 0)),
            pl.BlockSpec(w1.shape, lambda b: (0, 0)),
            pl.BlockSpec(b1.shape, lambda b: (0, 0)),
            pl.BlockSpec(g2.shape, lambda b: (0, 0, 0)),
            pl.BlockSpec(w2p.shape, lambda b: (0, 0, 0)),
            pl.BlockSpec(b2.shape, lambda b: (0, 0)),
            pl.BlockSpec(g3.shape, lambda b: (0, 0, 0)),
            pl.BlockSpec(w3p.shape, lambda b: (0, 0, 0)),
            pl.BlockSpec(b3.shape, lambda b: (0, 0)),
        ],
        out_specs=pl.BlockSpec((1, 49, 64), lambda b: (b, 0, 0)),
        compiler_params=pltpu.CompilerParams(
            dimension_semantics=("parallel",),
            vmem_limit_bytes=_vmem_limit(block_bytes)),
        cost_estimate=cost,
    )(cols1, w1, b1, g2, w2p, b2, g3, w3p, b3)


# ----------------------------------------------------------------------------
# Pallas kernel 2: fused FC head  out = relu(x @ w1 + b1) @ w2 + b2
# ----------------------------------------------------------------------------
def _mlp_head_kernel(x_ref, w1_ref, b1_ref, w2_ref, b2_ref, o_ref):
    h = jnp.dot(x_ref[...], w1_ref[...], preferred_element_type=jnp.float32)
    h = jnp.maximum(h + b1_ref[...], 0.0)
    o = jnp.dot(h.astype(w2_ref.dtype), w2_ref[...],
                preferred_element_type=jnp.float32)
    o_ref[...] = (o + b2_ref[...]).astype(o_ref.dtype)


def mlp_head(x, w1, b1, w2, b2):
    """x: (M, K1); w1: (K1, H) bf16; w2: (H, N) bf16 -> (M, N) f32."""
    M, K1 = x.shape
    _, H = w1.shape
    _, N = w2.shape
    Mp, TM = _m_tiling(M)
    x_p = _pad_rows(x.astype(w1.dtype), Mp)
    gm = Mp // TM

    weight_bytes = K1 * H * 2 + H * 4 + H * N * 2 + N * 4
    block_bytes = TM * K1 * 2 + TM * N * 4 + weight_bytes
    cost = pl.CostEstimate(
        flops=2 * Mp * (K1 * H + H * N),
        transcendentals=0,
        bytes_accessed=Mp * K1 * 2 + weight_bytes + Mp * N * 4)

    out = pl.pallas_call(
        _mlp_head_kernel,
        out_shape=jax.ShapeDtypeStruct((Mp, N), jnp.float32),
        grid=(gm,),
        in_specs=[
            pl.BlockSpec((TM, K1), lambda i: (i, 0)),
            pl.BlockSpec((K1, H), lambda i: (0, 0)),
            pl.BlockSpec((1, H), lambda i: (0, 0)),
            pl.BlockSpec((H, N), lambda i: (0, 0)),
            pl.BlockSpec((1, N), lambda i: (0, 0)),
        ],
        out_specs=pl.BlockSpec((TM, N), lambda i: (i, 0)),
        compiler_params=pltpu.CompilerParams(
            dimension_semantics=("parallel",),
            vmem_limit_bytes=_vmem_limit(block_bytes)),
        cost_estimate=cost,
    )(x_p, w1, b1, w2, b2)
    return out[:M] if Mp != M else out


# ----------------------------------------------------------------------------
# Host-side helpers (one-time / raw-input only)
# ----------------------------------------------------------------------------
def im2col_nhwc(x, kh, kw, stride):
    """x: (B, H, W, C) -> (B, oh*ow, kh*kw*C), column order (kh, kw, ic)."""
    B, H, W, C = x.shape
    oh = (H - kh) // stride + 1
    ow = (W - kw) // stride + 1
    patches = []
    for i in range(kh):
        for j in range(kw):
            patches.append(
                x[:, i:i + stride * oh:stride, j:j + stride * ow:stride, :])
    cols = jnp.stack(patches, axis=3)                 # (B, oh, ow, kh*kw, C)
    return cols.reshape(B, oh * ow, kh * kw * C), oh, ow


def _gather_matrices(ih, iw, kh, kw, stride, dtype):
    """One-hot row-gather matrices, one per kernel position: (kh*kw, oh*ow, ih*iw)."""
    oh = (ih - kh) // stride + 1
    ow = (iw - kw) // stride + 1
    g = np.zeros((kh * kw, oh * ow, ih * iw), np.float32)
    for i in range(kh):
        for j in range(kw):
            k = i * kw + j
            for oy in range(oh):
                for ox in range(ow):
                    src = (stride * oy + i) * iw + (stride * ox + j)
                    g[k, oy * ow + ox, src] = 1.0
    return jnp.asarray(g, dtype)


# ----------------------------------------------------------------------------
# Parameters
# ----------------------------------------------------------------------------
def init_params(output_dim, key):
    keys = jax.random.split(key, 10)
    scale = 0.05

    def w(k, shape):
        return (scale * jax.random.normal(k, shape)).astype(jnp.float32)

    return {
        "conv1_w": w(keys[0], (32, 4, 8, 8)),
        "conv1_b": w(keys[1], (32,)),
        "conv2_w": w(keys[2], (64, 32, 4, 4)),
        "conv2_b": w(keys[3], (64,)),
        "conv3_w": w(keys[4], (64, 64, 3, 3)),
        "conv3_b": w(keys[5], (64,)),
        "fc1_w": w(keys[6], (512, 3136)),   # PyTorch Linear: (out, in), in = 64*7*7 (c,h,w)
        "fc1_b": w(keys[7], (512,)),
        "fc2_w": w(keys[8], (output_dim, 512)),
        "fc2_b": w(keys[9], (output_dim,)),
    }


def prepare_params(params, compute_dtype=_COMPUTE_DTYPE):
    """One-time packing: (kh,kw,ic)-major conv1 matrix, per-position conv2/3
    weights, one-hot gather matrices, NHWC-permuted + transposed FC weights,
    (1, N) f32 biases, bf16 matmul operands."""

    def conv_w_2d(w):
        oc, ic, kh, kw = w.shape
        return (jnp.transpose(w, (2, 3, 1, 0))
                .reshape(kh * kw * ic, oc).astype(compute_dtype))

    def conv_w_pos(w):
        oc, ic, kh, kw = w.shape
        return (jnp.transpose(w, (2, 3, 1, 0))
                .reshape(kh * kw, ic, oc).astype(compute_dtype))

    def bias(b):
        return b.reshape(1, -1).astype(jnp.float32)

    c3_oc, c3_oh, c3_ow = 64, 7, 7   # pinned by Linear(3136, 512) on 84x84 input
    fc1_w = params["fc1_w"]
    hidden = fc1_w.shape[0]
    fc1_w = (fc1_w.reshape(hidden, c3_oc, c3_oh, c3_ow)
             .transpose(0, 2, 3, 1)                    # (hidden, h, w, c): NHWC flatten order
             .reshape(hidden, c3_oc * c3_oh * c3_ow))

    return {
        # stack_grayscale duplicates the single channel 4x -> equivalent to a
        # 1-channel conv with the in-channel-summed weight (fast path).
        "conv1_w_sum": conv_w_2d(params["conv1_w"].sum(axis=1, keepdims=True)),
        "conv1_w_full": conv_w_2d(params["conv1_w"]),
        "conv1_b": bias(params["conv1_b"]),
        "conv2_w_pos": conv_w_pos(params["conv2_w"]),   # (16, 32, 64)
        "conv2_b": bias(params["conv2_b"]),
        "conv3_w_pos": conv_w_pos(params["conv3_w"]),   # (9, 64, 64)
        "conv3_b": bias(params["conv3_b"]),
        "gather2": _gather_matrices(20, 20, 4, 4, 2, compute_dtype),  # (16, 81, 400)
        "gather3": _gather_matrices(9, 9, 3, 3, 1, compute_dtype),    # (9, 49, 81)
        "fc1_w": fc1_w.T.astype(compute_dtype),            # (3136, 512)
        "fc1_b": bias(params["fc1_b"]),
        "fc2_w": params["fc2_w"].T.astype(compute_dtype),  # (512, out)
        "fc2_b": bias(params["fc2_b"]),
    }


# ----------------------------------------------------------------------------
# MarioNet1 forward
# ----------------------------------------------------------------------------
def mario_net1_forward(prepared, x):
    """x: (B, 1, 84, 84) or (B, 4, 84, 84) NCHW f32 (3-D / 5-D accepted like the module)."""
    if x.ndim == 3:
        x = x[None]
    elif x.ndim == 5:
        x = jnp.squeeze(x, axis=1)
    B, C, H, W = x.shape
    if C not in (1, 4):
        raise ValueError(f"stack_grayscale expects 1 or 4 input channels, got {C}")
    if (H, W) != (84, 84):
        raise ValueError("MarioNet1's Linear(3136, 512) pins the input to 84x84")

    x = jnp.transpose(x, (0, 2, 3, 1)).astype(_COMPUTE_DTYPE)      # NHWC, bf16

    if C == 1:
        w1 = prepared["conv1_w_sum"]     # folded duplicated-channel conv1 (ic=1)
    else:
        w1 = prepared["conv1_w_full"]    # C == 4: expand() is a no-op in PyTorch

    # TODO(synk): conv1's patch columns are still built by XLA (raw input only,
    # ~3.6x read amplification of a 14 KiB/sample tensor); they could also be
    # gathered in-kernel from a space-to-depth input if that ever matters.
    cols1, oh, ow = im2col_nhwc(x, 8, 8, 4)                        # (B, 400, 64*C)
    assert (oh, ow) == (20, 20)

    conv_out = conv_stack(
        cols1, w1, prepared["conv1_b"],
        prepared["gather2"], prepared["conv2_w_pos"], prepared["conv2_b"],
        prepared["gather3"], prepared["conv3_w_pos"], prepared["conv3_b"])   # (B, 49, 64)

    feats = conv_out.reshape(B, 49 * 64)     # row-major (h, w, c); fc1_w pre-permuted to match
    return mlp_head(feats, prepared["fc1_w"], prepared["fc1_b"],
                    prepared["fc2_w"], prepared["fc2_b"])                    # (B, out) f32


if __name__ == "__main__":
    key = jax.random.PRNGKey(0)
    k_params, k_input = jax.random.split(key)

    output_dim = 12
    prepared = prepare_params(init_params(output_dim, k_params))

    # Spatial size must be 84x84 so the flatten produces 3136 features
    # (Linear(3136, 512) in the module pins this).
    batch = 2
    x = jax.random.uniform(k_input, (batch, 1, 84, 84), dtype=jnp.float32)

    fwd = jax.jit(mario_net1_forward)
    out = jax.block_until_ready(fwd(prepared, x))
    assert out.shape == (batch, output_dim), out.shape
    assert jnp.all(jnp.isfinite(out))
    print("KERNEL_OK")
</pallas_src>

<mosaic_0001>
module attributes {stable_mosaic.version = 11 : i64} {
  func.func @_conv_stack_kernel(%arg0: i32, %arg1: memref<1x400x64xbf16, #tpu.memory_space<vmem>>, %arg2: memref<64x32xbf16, #tpu.memory_space<vmem>>, %arg3: memref<1x32xf32, #tpu.memory_space<vmem>>, %arg4: memref<16x81x400xbf16, #tpu.memory_space<vmem>>, %arg5: memref<16x32x64xbf16, #tpu.memory_space<vmem>>, %arg6: memref<1x64xf32, #tpu.memory_space<vmem>>, %arg7: memref<9x49x81xbf16, #tpu.memory_space<vmem>>, %arg8: memref<9x64x64xbf16, #tpu.memory_space<vmem>>, %arg9: memref<1x64xf32, #tpu.memory_space<vmem>>, %arg10: memref<1x49x64xbf16, #tpu.memory_space<vmem>>) attributes {dimension_semantics = [#tpu.dimension_semantics<parallel>], iteration_bounds = array<i64: 2>, scalar_prefetch = 0 : i64, scratch_operands = 0 : i64, tpu.core_type = #tpu.core_type<tc>, window_params = [{transform_indices = @transform_0, window_bounds = array<i64: 1, 400, 64>}, {pipeline_mode = #tpu.pipeline_mode<synchronous>, transform_indices = @transform_1, window_bounds = array<i64: 64, 32>}, {pipeline_mode = #tpu.pipeline_mode<synchronous>, transform_indices = @transform_2, window_bounds = array<i64: 1, 32>}, {pipeline_mode = #tpu.pipeline_mode<synchronous>, transform_indices = @transform_3, window_bounds = array<i64: 16, 81, 400>}, {pipeline_mode = #tpu.pipeline_mode<synchronous>, transform_indices = @transform_4, window_bounds = array<i64: 16, 32, 64>}, {pipeline_mode = #tpu.pipeline_mode<synchronous>, transform_indices = @transform_5, window_bounds = array<i64: 1, 64>}, {pipeline_mode = #tpu.pipeline_mode<synchronous>, transform_indices = @transform_6, window_bounds = array<i64: 9, 49, 81>}, {pipeline_mode = #tpu.pipeline_mode<synchronous>, transform_indices = @transform_7, window_bounds = array<i64: 9, 64, 64>}, {pipeline_mode = #tpu.pipeline_mode<synchronous>, transform_indices = @transform_8, window_bounds = array<i64: 1, 64>}, {transform_indices = @transform_9, window_bounds = array<i64: 1, 49, 64>}]} {
    %c0 = arith.constant 0 : index
    %c0_0 = arith.constant 0 : index
    %c0_1 = arith.constant 0 : index
    %0 = vector.load %arg1[%c0, %c0_0, %c0_1] : memref<1x400x64xbf16, #tpu.memory_space<vmem>>, vector<1x400x64xbf16>
    %1 = vector.shape_cast %0 : vector<1x400x64xbf16> to vector<400x64xbf16>
    %c0_2 = arith.constant 0 : index
    %c0_3 = arith.constant 0 : index
    %2 = vector.load %arg2[%c0_2, %c0_3] : memref<64x32xbf16, #tpu.memory_space<vmem>>, vector<64x32xbf16>
    %cst = arith.constant dense<0.000000e+00> : vector<400x32xf32>
    %3 = tpu.matmul %1, %2, %cst {dimension_numbers = #tpu.dot_dimension_numbers<[1], [0], [0], [1], [0, 0, 1, 1], [], []>} : vector<400x64xbf16>, vector<64x32xbf16>, vector<400x32xf32> -> vector<400x32xf32>
    %c0_4 = arith.constant 0 : index
    %c0_5 = arith.constant 0 : index
    %4 = vector.load %arg3[%c0_4, %c0_5] : memref<1x32xf32, #tpu.memory_space<vmem>>, vector<1x32xf32>
    %5 = vector.broadcast %4 : vector<1x32xf32> to vector<400x32xf32>
    %6 = arith.addf %3, %5 : vector<400x32xf32>
    %cst_6 = arith.constant 0.000000e+00 : f32
    %7 = vector.broadcast %cst_6 : f32 to vector<400x32xf32>
    %8 = arith.maximumf %6, %7 : vector<400x32xf32>
    %9 = arith.truncf %8 : vector<400x32xf32> to vector<400x32xbf16>
    %cst_7 = arith.constant 0.000000e+00 : f32
    %10 = vector.broadcast %cst_7 : f32 to vector<81x64xf32>
    %c0_8 = arith.constant 0 : index
    %c0_9 = arith.constant 0 : index
    %c0_10 = arith.constant 0 : index
    %11 = vector.load %arg4[%c0_8, %c0_9, %c0_10] : memref<16x81x400xbf16, #tpu.memory_space<vmem>>, vector<1x81x400xbf16>
    %12 = vector.shape_cast %11 : vector<1x81x400xbf16> to vector<81x400xbf16>
    %cst_11 = arith.constant dense<0.000000e+00> : vector<81x32xf32>
    %13 = tpu.matmul %12, %9, %cst_11 {dimension_numbers = #tpu.dot_dimension_numbers<[1], [0], [0], [1], [0, 0, 1, 1], [], []>} : vector<81x400xbf16>, vector<400x32xbf16>, vector<81x32xf32> -> vector<81x32xf32>
    %14 = arith.truncf %13 : vector<81x32xf32> to vector<81x32xbf16>
    %c0_12 = arith.constant 0 : index
    %c0_13 = arith.constant 0 : index
    %c0_14 = arith.constant 0 : index
    %15 = vector.load %arg5[%c0_12, %c0_13, %c0_14] : memref<16x32x64xbf16, #tpu.memory_space<vmem>>, vector<1x32x64xbf16>
    %16 = vector.shape_cast %15 : vector<1x32x64xbf16> to vector<32x64xbf16>
    %cst_15 = arith.constant dense<0.000000e+00> : vector<81x64xf32>
    %17 = tpu.matmul %14, %16, %cst_15 {dimension_numbers = #tpu.dot_dimension_numbers<[1], [0], [0], [1], [0, 0, 1, 1], [], []>} : vector<81x32xbf16>, vector<32x64xbf16>, vector<81x64xf32> -> vector<81x64xf32>
    %18 = arith.addf %10, %17 : vector<81x64xf32>
    %c1 = arith.constant 1 : index
    %c0_16 = arith.constant 0 : index
    %c0_17 = arith.constant 0 : index
    %19 = vector.load %arg4[%c1, %c0_16, %c0_17] : memref<16x81x400xbf16, #tpu.memory_space<vmem>>, vector<1x81x400xbf16>
    %20 = vector.shape_cast %19 : vector<1x81x400xbf16> to vector<81x400xbf16>
    %cst_18 = arith.constant dense<0.000000e+00> : vector<81x32xf32>
    %21 = tpu.matmul %20, %9, %cst_18 {dimension_numbers = #tpu.dot_dimension_numbers<[1], [0], [0], [1], [0, 0, 1, 1], [], []>} : vector<81x400xbf16>, vector<400x32xbf16>, vector<81x32xf32> -> vector<81x32xf32>
    %22 = arith.truncf %21 : vector<81x32xf32> to vector<81x32xbf16>
    %c1_19 = arith.constant 1 : index
    %c0_20 = arith.constant 0 : index
    %c0_21 = arith.constant 0 : index
    %23 = vector.load %arg5[%c1_19, %c0_20, %c0_21] : memref<16x32x64xbf16, #tpu.memory_space<vmem>>, vector<1x32x64xbf16>
    %24 = vector.shape_cast %23 : vector<1x32x64xbf16> to vector<32x64xbf16>
    %cst_22 = arith.constant dense<0.000000e+00> : vector<81x64xf32>
    %25 = tpu.matmul %22, %24, %cst_22 {dimension_numbers = #tpu.dot_dimension_numbers<[1], [0], [0], [1], [0, 0, 1, 1], [], []>} : vector<81x32xbf16>, vector<32x64xbf16>, vector<81x64xf32> -> vector<81x64xf32>
    %26 = arith.addf %18, %25 : vector<81x64xf32>
    %c2 = arith.constant 2 : index
    %c0_23 = arith.constant 0 : index
    %c0_24 = arith.constant 0 : index
    %27 = vector.load %arg4[%c2, %c0_23, %c0_24] : memref<16x81x400xbf16, #tpu.memory_space<vmem>>, vector<1x81x400xbf16>
    %28 = vector.shape_cast %27 : vector<1x81x400xbf16> to vector<81x400xbf16>
    %cst_25 = arith.constant dense<0.000000e+00> : vector<81x32xf32>
    %29 = tpu.matmul %28, %9, %cst_25 {dimension_numbers = #tpu.dot_dimension_numbers<[1], [0], [0], [1], [0, 0, 1, 1], [], []>} : vector<81x400xbf16>, vector<400x32xbf16>, vector<81x32xf32> -> vector<81x32xf32>
    %30 = arith.truncf %29 : vector<81x32xf32> to vector<81x32xbf16>
    %c2_26 = arith.constant 2 : index
    %c0_27 = arith.constant 0 : index
    %c0_28 = arith.constant 0 : index
    %31 = vector.load %arg5[%c2_26, %c0_27, %c0_28] : memref<16x32x64xbf16, #tpu.memory_space<vmem>>, vector<1x32x64xbf16>
    %32 = vector.shape_cast %31 : vector<1x32x64xbf16> to vector<32x64xbf16>
    %cst_29 = arith.constant dense<0.000000e+00> : vector<81x64xf32>
    %33 = tpu.matmul %30, %32, %cst_29 {dimension_numbers = #tpu.dot_dimension_numbers<[1], [0], [0], [1], [0, 0, 1, 1], [], []>} : vector<81x32xbf16>, vector<32x64xbf16>, vector<81x64xf32> -> vector<81x64xf32>
    %34 = arith.addf %26, %33 : vector<81x64xf32>
    %c3 = arith.constant 3 : index
    %c0_30 = arith.constant 0 : index
    %c0_31 = arith.constant 0 : index
    %35 = vector.load %arg4[%c3, %c0_30, %c0_31] : memref<16x81x400xbf16, #tpu.memory_space<vmem>>, vector<1x81x400xbf16>
    %36 = vector.shape_cast %35 : vector<1x81x400xbf16> to vector<81x400xbf16>
    %cst_32 = arith.constant dense<0.000000e+00> : vector<81x32xf32>
    %37 = tpu.matmul %36, %9, %cst_32 {dimension_numbers = #tpu.dot_dimension_numbers<[1], [0], [0], [1], [0, 0, 1, 1], [], []>} : vector<81x400xbf16>, vector<400x32xbf16>, vector<81x32xf32> -> vector<81x32xf32>
    %38 = arith.truncf %37 : vector<81x32xf32> to vector<81x32xbf16>
    %c3_33 = arith.constant 3 : index
    %c0_34 = arith.constant 0 : index
    %c0_35 = arith.constant 0 : index
    %39 = vector.load %arg5[%c3_33, %c0_34, %c0_35] : memref<16x32x64xbf16, #tpu.memory_space<vmem>>, vector<1x32x64xbf16>
    %40 = vector.shape_cast %39 : vector<1x32x64xbf16> to vector<32x64xbf16>
    %cst_36 = arith.constant dense<0.000000e+00> : vector<81x64xf32>
    %41 = tpu.matmul %38, %40, %cst_36 {dimension_numbers = #tpu.dot_dimension_numbers<[1], [0], [0], [1], [0, 0, 1, 1], [], []>} : vector<81x32xbf16>, vector<32x64xbf16>, vector<81x64xf32> -> vector<81x64xf32>
    %42 = arith.addf %34, %41 : vector<81x64xf32>
    %c4 = arith.constant 4 : index
    %c0_37 = arith.constant 0 : index
    %c0_38 = arith.constant 0 : index
    %43 = vector.load %arg4[%c4, %c0_37, %c0_38] : memref<16x81x400xbf16, #tpu.memory_space<vmem>>, vector<1x81x400xbf16>
    %44 = vector.shape_cast %43 : vector<1x81x400xbf16> to vector<81x400xbf16>
    %cst_39 = arith.constant dense<0.000000e+00> : vector<81x32xf32>
    %45 = tpu.matmul %44, %9, %cst_39 {dimension_numbers = #tpu.dot_dimension_numbers<[1], [0], [0], [1], [0, 0, 1, 1], [], []>} : vector<81x400xbf16>, vector<400x32xbf16>, vector<81x32xf32> -> vector<81x32xf32>
    %46 = arith.truncf %45 : vector<81x32xf32> to vector<81x32xbf16>
    %c4_40 = arith.constant 4 : index
    %c0_41 = arith.constant 0 : index
    %c0_42 = arith.constant 0 : index
    %47 = vector.load %arg5[%c4_40, %c0_41, %c0_42] : memref<16x32x64xbf16, #tpu.memory_space<vmem>>, vector<1x32x64xbf16>
    %48 = vector.shape_cast %47 : vector<1x32x64xbf16> to vector<32x64xbf16>
    %cst_43 = arith.constant dense<0.000000e+00> : vector<81x64xf32>
    %49 = tpu.matmul %46, %48, %cst_43 {dimension_numbers = #tpu.dot_dimension_numbers<[1], [0], [0], [1], [0, 0, 1, 1], [], []>} : vector<81x32xbf16>, vector<32x64xbf16>, vector<81x64xf32> -> vector<81x64xf32>
    %50 = arith.addf %42, %49 : vector<81x64xf32>
    %c5 = arith.constant 5 : index
    %c0_44 = arith.constant 0 : index
    %c0_45 = arith.constant 0 : index
    %51 = vector.load %arg4[%c5, %c0_44, %c0_45] : memref<16x81x400xbf16, #tpu.memory_space<vmem>>, vector<1x81x400xbf16>
    %52 = vector.shape_cast %51 : vector<1x81x400xbf16> to vector<81x400xbf16>
    %cst_46 = arith.constant dense<0.000000e+00> : vector<81x32xf32>
    %53 = tpu.matmul %52, %9, %cst_46 {dimension_numbers = #tpu.dot_dimension_numbers<[1], [0], [0], [1], [0, 0, 1, 1], [], []>} : vector<81x400xbf16>, vector<400x32xbf16>, vector<81x32xf32> -> vector<81x32xf32>
    %54 = arith.truncf %53 : vector<81x32xf32> to vector<81x32xbf16>
    %c5_47 = arith.constant 5 : index
    %c0_48 = arith.constant 0 : index
    %c0_49 = arith.constant 0 : index
    %55 = vector.load %arg5[%c5_47, %c0_48, %c0_49] : memref<16x32x64xbf16, #tpu.memory_space<vmem>>, vector<1x32x64xbf16>
    %56 = vector.shape_cast %55 : vector<1x32x64xbf16> to vector<32x64xbf16>
    %cst_50 = arith.constant dense<0.000000e+00> : vector<81x64xf32>
    %57 = tpu.matmul %54, %56, %cst_50 {dimension_numbers = #tpu.dot_dimension_numbers<[1], [0], [0], [1], [0, 0, 1, 1], [], []>} : vector<81x32xbf16>, vector<32x64xbf16>, vector<81x64xf32> -> vector<81x64xf32>
    %58 = arith.addf %50, %57 : vector<81x64xf32>
    %c6 = arith.constant 6 : index
    %c0_51 = arith.constant 0 : index
    %c0_52 = arith.constant 0 : index
    %59 = vector.load %arg4[%c6, %c0_51, %c0_52] : memref<16x81x400xbf16, #tpu.memory_space<vmem>>, vector<1x81x400xbf16>
    %60 = vector.shape_cast %59 : vector<1x81x400xbf16> to vector<81x400xbf16>
    %cst_53 = arith.constant dense<0.000000e+00> : vector<81x32xf32>
    %61 = tpu.matmul %60, %9, %cst_53 {dimension_numbers = #tpu.dot_dimension_numbers<[1], [0], [0], [1], [0, 0, 1, 1], [], []>} : vector<81x400xbf16>, vector<400x32xbf16>, vector<81x32xf32> -> vector<81x32xf32>
    %62 = arith.truncf %61 : vector<81x32xf32> to vector<81x32xbf16>
    %c6_54 = arith.constant 6 : index
    %c0_55 = arith.constant 0 : index
    %c0_56 = arith.constant 0 : index
    %63 = vector.load %arg5[%c6_54, %c0_55, %c0_56] : memref<16x32x64xbf16, #tpu.memory_space<vmem>>, vector<1x32x64xbf16>
    %64 = vector.shape_cast %63 : vector<1x32x64xbf16> to vector<32x64xbf16>
    %cst_57 = arith.constant dense<0.000000e+00> : vector<81x64xf32>
    %65 = tpu.matmul %62, %64, %cst_57 {dimension_numbers = #tpu.dot_dimension_numbers<[1], [0], [0], [1], [0, 0, 1, 1], [], []>} : vector<81x32xbf16>, vector<32x64xbf16>, vector<81x64xf32> -> vector<81x64xf32>
    %66 = arith.addf %58, %65 : vector<81x64xf32>
    %c7 = arith.constant 7 : index
    %c0_58 = arith.constant 0 : index
    %c0_59 = arith.constant 0 : index
    %67 = vector.load %arg4[%c7, %c0_58, %c0_59] : memref<16x81x400xbf16, #tpu.memory_space<vmem>>, vector<1x81x400xbf16>
    %68 = vector.shape_cast %67 : vector<1x81x400xbf16> to vector<81x400xbf16>
    %cst_60 = arith.constant dense<0.000000e+00> : vector<81x32xf32>
    %69 = tpu.matmul %68, %9, %cst_60 {dimension_numbers = #tpu.dot_dimension_numbers<[1], [0], [0], [1], [0, 0, 1, 1], [], []>} : vector<81x400xbf16>, vector<400x32xbf16>, vector<81x32xf32> -> vector<81x32xf32>
    %70 = arith.truncf %69 : vector<81x32xf32> to vector<81x32xbf16>
    %c7_61 = arith.constant 7 : index
    %c0_62 = arith.constant 0 : index
    %c0_63 = arith.constant 0 : index
    %71 = vector.load %arg5[%c7_61, %c0_62, %c0_63] : memref<16x32x64xbf16, #tpu.memory_space<vmem>>, vector<1x32x64xbf16>
    %72 = vector.shape_cast %71 : vector<1x32x64xbf16> to vector<32x64xbf16>
    %cst_64 = arith.constant dense<0.000000e+00> : vector<81x64xf32>
    %73 = tpu.matmul %70, %72, %cst_64 {dimension_numbers = #tpu.dot_dimension_numbers<[1], [0], [0], [1], [0, 0, 1, 1], [], []>} : vector<81x32xbf16>, vector<32x64xbf16>, vector<81x64xf32> -> vector<81x64xf32>
    %74 = arith.addf %66, %73 : vector<81x64xf32>
    %c8 = arith.constant 8 : index
    %c0_65 = arith.constant 0 : index
    %c0_66 = arith.constant 0 : index
    %75 = vector.load %arg4[%c8, %c0_65, %c0_66] : memref<16x81x400xbf16, #tpu.memory_space<vmem>>, vector<1x81x400xbf16>
    %76 = vector.shape_cast %75 : vector<1x81x400xbf16> to vector<81x400xbf16>
    %cst_67 = arith.constant dense<0.000000e+00> : vector<81x32xf32>
    %77 = tpu.matmul %76, %9, %cst_67 {dimension_numbers = #tpu.dot_dimension_numbers<[1], [0], [0], [1], [0, 0, 1, 1], [], []>} : vector<81x400xbf16>, vector<400x32xbf16>, vector<81x32xf32> -> vector<81x32xf32>
    %78 = arith.truncf %77 : vector<81x32xf32> to vector<81x32xbf16>
    %c8_68 = arith.constant 8 : index
    %c0_69 = arith.constant 0 : index
    %c0_70 = arith.constant 0 : index
    %79 = vector.load %arg5[%c8_68, %c0_69, %c0_70] : memref<16x32x64xbf16, #tpu.memory_space<vmem>>, vector<1x32x64xbf16>
    %80 = vector.shape_cast %79 : vector<1x32x64xbf16> to vector<32x64xbf16>
    %cst_71 = arith.constant dense<0.000000e+00> : vector<81x64xf32>
    %81 = tpu.matmul %78, %80, %cst_71 {dimension_numbers = #tpu.dot_dimension_numbers<[1], [0], [0], [1], [0, 0, 1, 1], [], []>} : vector<81x32xbf16>, vector<32x64xbf16>, vector<81x64xf32> -> vector<81x64xf32>
    %82 = arith.addf %74, %81 : vector<81x64xf32>
    %c9 = arith.constant 9 : index
    %c0_72 = arith.constant 0 : index
    %c0_73 = arith.constant 0 : index
    %83 = vector.load %arg4[%c9, %c0_72, %c0_73] : memref<16x81x400xbf16, #tpu.memory_space<vmem>>, vector<1x81x400xbf16>
    %84 = vector.shape_cast %83 : vector<1x81x400xbf16> to vector<81x400xbf16>
    %cst_74 = arith.constant dense<0.000000e+00> : vector<81x32xf32>
    %85 = tpu.matmul %84, %9, %cst_74 {dimension_numbers = #tpu.dot_dimension_numbers<[1], [0], [0], [1], [0, 0, 1, 1], [], []>} : vector<81x400xbf16>, vector<400x32xbf16>, vector<81x32xf32> -> vector<81x32xf32>
    %86 = arith.truncf %85 : vector<81x32xf32> to vector<81x32xbf16>
    %c9_75 = arith.constant 9 : index
    %c0_76 = arith.constant 0 : index
    %c0_77 = arith.constant 0 : index
    %87 = vector.load %arg5[%c9_75, %c0_76, %c0_77] : memref<16x32x64xbf16, #tpu.memory_space<vmem>>, vector<1x32x64xbf16>
    %88 = vector.shape_cast %87 : vector<1x32x64xbf16> to vector<32x64xbf16>
    %cst_78 = arith.constant dense<0.000000e+00> : vector<81x64xf32>
    %89 = tpu.matmul %86, %88, %cst_78 {dimension_numbers = #tpu.dot_dimension_numbers<[1], [0], [0], [1], [0, 0, 1, 1], [], []>} : vector<81x32xbf16>, vector<32x64xbf16>, vector<81x64xf32> -> vector<81x64xf32>
    %90 = arith.addf %82, %89 : vector<81x64xf32>
    %c10 = arith.constant 10 : index
    %c0_79 = arith.constant 0 : index
    %c0_80 = arith.constant 0 : index
    %91 = vector.load %arg4[%c10, %c0_79, %c0_80] : memref<16x81x400xbf16, #tpu.memory_space<vmem>>, vector<1x81x400xbf16>
    %92 = vector.shape_cast %91 : vector<1x81x400xbf16> to vector<81x400xbf16>
    %cst_81 = arith.constant dense<0.000000e+00> : vector<81x32xf32>
    %93 = tpu.matmul %92, %9, %cst_81 {dimension_numbers = #tpu.dot_dimension_numbers<[1], [0], [0], [1], [0, 0, 1, 1], [], []>} : vector<81x400xbf16>, vector<400x32xbf16>, vector<81x32xf32> -> vector<81x32xf32>
    %94 = arith.truncf %93 : vector<81x32xf32> to vector<81x32xbf16>
    %c10_82 = arith.constant 10 : index
    %c0_83 = arith.constant 0 : index
    %c0_84 = arith.constant 0 : index
    %95 = vector.load %arg5[%c10_82, %c0_83, %c0_84] : memref<16x32x64xbf16, #tpu.memory_space<vmem>>, vector<1x32x64xbf16>
    %96 = vector.shape_cast %95 : vector<1x32x64xbf16> to vector<32x64xbf16>
    %cst_85 = arith.constant dense<0.000000e+00> : vector<81x64xf32>
    %97 = tpu.matmul %94, %96, %cst_85 {dimension_numbers = #tpu.dot_dimension_numbers<[1], [0], [0], [1], [0, 0, 1, 1], [], []>} : vector<81x32xbf16>, vector<32x64xbf16>, vector<81x64xf32> -> vector<81x64xf32>
    %98 = arith.addf %90, %97 : vector<81x64xf32>
    %c11 = arith.constant 11 : index
    %c0_86 = arith.constant 0 : index
    %c0_87 = arith.constant 0 : index
    %99 = vector.load %arg4[%c11, %c0_86, %c0_87] : memref<16x81x400xbf16, #tpu.memory_space<vmem>>, vector<1x81x400xbf16>
    %100 = vector.shape_cast %99 : vector<1x81x400xbf16> to vector<81x400xbf16>
    %cst_88 = arith.constant dense<0.000000e+00> : vector<81x32xf32>
    %101 = tpu.matmul %100, %9, %cst_88 {dimension_numbers = #tpu.dot_dimension_numbers<[1], [0], [0], [1], [0, 0, 1, 1], [], []>} : vector<81x400xbf16>, vector<400x32xbf16>, vector<81x32xf32> -> vector<81x32xf32>
    %102 = arith.truncf %101 : vector<81x32xf32> to vector<81x32xbf16>
    %c11_89 = arith.constant 11 : index
    %c0_90 = arith.constant 0 : index
    %c0_91 = arith.constant 0 : index
    %103 = vector.load %arg5[%c11_89, %c0_90, %c0_91] : memref<16x32x64xbf16, #tpu.memory_space<vmem>>, vector<1x32x64xbf16>
    %104 = vector.shape_cast %103 : vector<1x32x64xbf16> to vector<32x64xbf16>
    %cst_92 = arith.constant dense<0.000000e+00> : vector<81x64xf32>
    %105 = tpu.matmul %102, %104, %cst_92 {dimension_numbers = #tpu.dot_dimension_numbers<[1], [0], [0], [1], [0, 0, 1, 1], [], []>} : vector<81x32xbf16>, vector<32x64xbf16>, vector<81x64xf32> -> vector<81x64xf32>
    %106 = arith.addf %98, %105 : vector<81x64xf32>
    %c12 = arith.constant 12 : index
    %c0_93 = arith.constant 0 : index
    %c0_94 = arith.constant 0 : index
    %107 = vector.load %arg4[%c12, %c0_93, %c0_94] : memref<16x81x400xbf16, #tpu.memory_space<vmem>>, vector<1x81x400xbf16>
    %108 = vector.shape_cast %107 : vector<1x81x400xbf16> to vector<81x400xbf16>
    %cst_95 = arith.constant dense<0.000000e+00> : vector<81x32xf32>
    %109 = tpu.matmul %108, %9, %cst_95 {dimension_numbers = #tpu.dot_dimension_numbers<[1], [0], [0], [1], [0, 0, 1, 1], [], []>} : vector<81x400xbf16>, vector<400x32xbf16>, vector<81x32xf32> -> vector<81x32xf32>
    %110 = arith.truncf %109 : vector<81x32xf32> to vector<81x32xbf16>
    %c12_96 = arith.constant 12 : index
    %c0_97 = arith.constant 0 : index
    %c0_98 = arith.constant 0 : index
    %111 = vector.load %arg5[%c12_96, %c0_97, %c0_98] : memref<16x32x64xbf16, #tpu.memory_space<vmem>>, vector<1x32x64xbf16>
    %112 = vector.shape_cast %111 : vector<1x32x64xbf16> to vector<32x64xbf16>
    %cst_99 = arith.constant dense<0.000000e+00> : vector<81x64xf32>
    %113 = tpu.matmul %110, %112, %cst_99 {dimension_numbers = #tpu.dot_dimension_numbers<[1], [0], [0], [1], [0, 0, 1, 1], [], []>} : vector<81x32xbf16>, vector<32x64xbf16>, vector<81x64xf32> -> vector<81x64xf32>
    %114 = arith.addf %106, %113 : vector<81x64xf32>
    %c13 = arith.constant 13 : index
    %c0_100 = arith.constant 0 : index
    %c0_101 = arith.constant 0 : index
    %115 = vector.load %arg4[%c13, %c0_100, %c0_101] : memref<16x81x400xbf16, #tpu.memory_space<vmem>>, vector<1x81x400xbf16>
    %116 = vector.shape_cast %115 : vector<1x81x400xbf16> to vector<81x400xbf16>
    %cst_102 = arith.constant dense<0.000000e+00> : vector<81x32xf32>
    %117 = tpu.matmul %116, %9, %cst_102 {dimension_numbers = #tpu.dot_dimension_numbers<[1], [0], [0], [1], [0, 0, 1, 1], [], []>} : vector<81x400xbf16>, vector<400x32xbf16>, vector<81x32xf32> -> vector<81x32xf32>
    %118 = arith.truncf %117 : vector<81x32xf32> to vector<81x32xbf16>
    %c13_103 = arith.constant 13 : index
    %c0_104 = arith.constant 0 : index
    %c0_105 = arith.constant 0 : index
    %119 = vector.load %arg5[%c13_103, %c0_104, %c0_105] : memref<16x32x64xbf16, #tpu.memory_space<vmem>>, vector<1x32x64xbf16>
    %120 = vector.shape_cast %119 : vector<1x32x64xbf16> to vector<32x64xbf16>
    %cst_106 = arith.constant dense<0.000000e+00> : vector<81x64xf32>
    %121 = tpu.matmul %118, %120, %cst_106 {dimension_numbers = #tpu.dot_dimension_numbers<[1], [0], [0], [1], [0, 0, 1, 1], [], []>} : vector<81x32xbf16>, vector<32x64xbf16>, vector<81x64xf32> -> vector<81x64xf32>
    %122 = arith.addf %114, %121 : vector<81x64xf32>
    %c14 = arith.constant 14 : index
    %c0_107 = arith.constant 0 : index
    %c0_108 = arith.constant 0 : index
    %123 = vector.load %arg4[%c14, %c0_107, %c0_108] : memref<16x81x400xbf16, #tpu.memory_space<vmem>>, vector<1x81x400xbf16>
    %124 = vector.shape_cast %123 : vector<1x81x400xbf16> to vector<81x400xbf16>
    %cst_109 = arith.constant dense<0.000000e+00> : vector<81x32xf32>
    %125 = tpu.matmul %124, %9, %cst_109 {dimension_numbers = #tpu.dot_dimension_numbers<[1], [0], [0], [1], [0, 0, 1, 1], [], []>} : vector<81x400xbf16>, vector<400x32xbf16>, vector<81x32xf32> -> vector<81x32xf32>
    %126 = arith.truncf %125 : vector<81x32xf32> to vector<81x32xbf16>
    %c14_110 = arith.constant 14 : index
    %c0_111 = arith.constant 0 : index
    %c0_112 = arith.constant 0 : index
    %127 = vector.load %arg5[%c14_110, %c0_111, %c0_112] : memref<16x32x64xbf16, #tpu.memory_space<vmem>>, vector<1x32x64xbf16>
    %128 = vector.shape_cast %127 : vector<1x32x64xbf16> to vector<32x64xbf16>
    %cst_113 = arith.constant dense<0.000000e+00> : vector<81x64xf32>
    %129 = tpu.matmul %126, %128, %cst_113 {dimension_numbers = #tpu.dot_dimension_numbers<[1], [0], [0], [1], [0, 0, 1, 1], [], []>} : vector<81x32xbf16>, vector<32x64xbf16>, vector<81x64xf32> -> vector<81x64xf32>
    %130 = arith.addf %122, %129 : vector<81x64xf32>
    %c15 = arith.constant 15 : index
    %c0_114 = arith.constant 0 : index
    %c0_115 = arith.constant 0 : index
    %131 = vector.load %arg4[%c15, %c0_114, %c0_115] : memref<16x81x400xbf16, #tpu.memory_space<vmem>>, vector<1x81x400xbf16>
    %132 = vector.shape_cast %131 : vector<1x81x400xbf16> to vector<81x400xbf16>
    %cst_116 = arith.constant dense<0.000000e+00> : vector<81x32xf32>
    %133 = tpu.matmul %132, %9, %cst_116 {dimension_numbers = #tpu.dot_dimension_numbers<[1], [0], [0], [1], [0, 0, 1, 1], [], []>} : vector<81x400xbf16>, vector<400x32xbf16>, vector<81x32xf32> -> vector<81x32xf32>
    %134 = arith.truncf %133 : vector<81x32xf32> to vector<81x32xbf16>
    %c15_117 = arith.constant 15 : index
    %c0_118 = arith.constant 0 : index
    %c0_119 = arith.constant 0 : index
    %135 = vector.load %arg5[%c15_117, %c0_118, %c0_119] : memref<16x32x64xbf16, #tpu.memory_space<vmem>>, vector<1x32x64xbf16>
    %136 = vector.shape_cast %135 : vector<1x32x64xbf16> to vector<32x64xbf16>
    %cst_120 = arith.constant dense<0.000000e+00> : vector<81x64xf32>
    %137 = tpu.matmul %134, %136, %cst_120 {dimension_numbers = #tpu.dot_dimension_numbers<[1], [0], [0], [1], [0, 0, 1, 1], [], []>} : vector<81x32xbf16>, vector<32x64xbf16>, vector<81x64xf32> -> vector<81x64xf32>
    %138 = arith.addf %130, %137 : vector<81x64xf32>
    %c0_121 = arith.constant 0 : index
    %c0_122 = arith.constant 0 : index
    %139 = vector.load %arg6[%c0_121, %c0_122] : memref<1x64xf32, #tpu.memory_space<vmem>>, vector<1x64xf32>
    %140 = vector.broadcast %139 : vector<1x64xf32> to vector<81x64xf32>
    %141 = arith.addf %138, %140 : vector<81x64xf32>
    %cst_123 = arith.constant 0.000000e+00 : f32
    %142 = vector.broadcast %cst_123 : f32 to vector<81x64xf32>
    %143 = arith.maximumf %141, %142 : vector<81x64xf32>
    %144 = arith.truncf %143 : vector<81x64xf32> to vector<81x64xbf16>
    %cst_124 = arith.constant 0.000000e+00 : f32
    %145 = vector.broadcast %cst_124 : f32 to vector<49x64xf32>
    %c0_125 = arith.constant 0 : index
    %c0_126 = arith.constant 0 : index
    %c0_127 = arith.constant 0 : index
    %146 = vector.load %arg7[%c0_125, %c0_126, %c0_127] : memref<9x49x81xbf16, #tpu.memory_space<vmem>>, vector<1x49x81xbf16>
    %147 = vector.shape_cast %146 : vector<1x49x81xbf16> to vector<49x81xbf16>
    %cst_128 = arith.constant dense<0.000000e+00> : vector<49x64xf32>
    %148 = tpu.matmul %147, %144, %cst_128 {dimension_numbers = #tpu.dot_dimension_numbers<[1], [0], [0], [1], [0, 0, 1, 1], [], []>} : vector<49x81xbf16>, vector<81x64xbf16>, vector<49x64xf32> -> vector<49x64xf32>
    %149 = arith.truncf %148 : vector<49x64xf32> to vector<49x64xbf16>
    %c0_129 = arith.constant 0 : index
    %c0_130 = arith.constant 0 : index
    %c0_131 = arith.constant 0 : index
    %150 = vector.load %arg8[%c0_129, %c0_130, %c0_131] : memref<9x64x64xbf16, #tpu.memory_space<vmem>>, vector<1x64x64xbf16>
    %151 = vector.shape_cast %150 : vector<1x64x64xbf16> to vector<64x64xbf16>
    %cst_132 = arith.constant dense<0.000000e+00> : vector<49x64xf32>
    %152 = tpu.matmul %149, %151, %cst_132 {dimension_numbers = #tpu.dot_dimension_numbers<[1], [0], [0], [1], [0, 0, 1, 1], [], []>} : vector<49x64xbf16>, vector<64x64xbf16>, vector<49x64xf32> -> vector<49x64xf32>
    %153 = arith.addf %145, %152 : vector<49x64xf32>
    %c1_133 = arith.constant 1 : index
    %c0_134 = arith.constant 0 : index
    %c0_135 = arith.constant 0 : index
    %154 = vector.load %arg7[%c1_133, %c0_134, %c0_135] : memref<9x49x81xbf16, #tpu.memory_space<vmem>>, vector<1x49x81xbf16>
    %155 = vector.shape_cast %154 : vector<1x49x81xbf16> to vector<49x81xbf16>
    %cst_136 = arith.constant dense<0.000000e+00> : vector<49x64xf32>
    %156 = tpu.matmul %155, %144, %cst_136 {dimension_numbers = #tpu.dot_dimension_numbers<[1], [0], [0], [1], [0, 0, 1, 1], [], []>} : vector<49x81xbf16>, vector<81x64xbf16>, vector<49x64xf32> -> vector<49x64xf32>
    %157 = arith.truncf %156 : vector<49x64xf32> to vector<49x64xbf16>
    %c1_137 = arith.constant 1 : index
    %c0_138 = arith.constant 0 : index
    %c0_139 = arith.constant 0 : index
    %158 = vector.load %arg8[%c1_137, %c0_138, %c0_139] : memref<9x64x64xbf16, #tpu.memory_space<vmem>>, vector<1x64x64xbf16>
    %159 = vector.shape_cast %158 : vector<1x64x64xbf16> to vector<64x64xbf16>
    %cst_140 = arith.constant dense<0.000000e+00> : vector<49x64xf32>
    %160 = tpu.matmul %157, %159, %cst_140 {dimension_numbers = #tpu.dot_dimension_numbers<[1], [0], [0], [1], [0, 0, 1, 1], [], []>} : vector<49x64xbf16>, vector<64x64xbf16>, vector<49x64xf32> -> vector<49x64xf32>
    %161 = arith.addf %153, %160 : vector<49x64xf32>
    %c2_141 = arith.constant 2 : index
    %c0_142 = arith.constant 0 : index
    %c0_143 = arith.constant 0 : index
    %162 = vector.load %arg7[%c2_141, %c0_142, %c0_143] : memref<9x49x81xbf16, #tpu.memory_space<vmem>>, vector<1x49x81xbf16>
    %163 = vector.shape_cast %162 : vector<1x49x81xbf16> to vector<49x81xbf16>
    %cst_144 = arith.constant dense<0.000000e+00> : vector<49x64xf32>
    %164 = tpu.matmul %163, %144, %cst_144 {dimension_numbers = #tpu.dot_dimension_numbers<[1], [0], [0], [1], [0, 0, 1, 1], [], []>} : vector<49x81xbf16>, vector<81x64xbf16>, vector<49x64xf32> -> vector<49x64xf32>
    %165 = arith.truncf %164 : vector<49x64xf32> to vector<49x64xbf16>
    %c2_145 = arith.constant 2 : index
    %c0_146 = arith.constant 0 : index
    %c0_147 = arith.constant 0 : index
    %166 = vector.load %arg8[%c2_145, %c0_146, %c0_147] : memref<9x64x64xbf16, #tpu.memory_space<vmem>>, vector<1x64x64xbf16>
    %167 = vector.shape_cast %166 : vector<1x64x64xbf16> to vector<64x64xbf16>
    %cst_148 = arith.constant dense<0.000000e+00> : vector<49x64xf32>
    %168 = tpu.matmul %165, %167, %cst_148 {dimension_numbers = #tpu.dot_dimension_numbers<[1], [0], [0], [1], [0, 0, 1, 1], [], []>} : vector<49x64xbf16>, vector<64x64xbf16>, vector<49x64xf32> -> vector<49x64xf32>
    %169 = arith.addf %161, %168 : vector<49x64xf32>
    %c3_149 = arith.constant 3 : index
    %c0_150 = arith.constant 0 : index
    %c0_151 = arith.constant 0 : index
    %170 = vector.load %arg7[%c3_149, %c0_150, %c0_151] : memref<9x49x81xbf16, #tpu.memory_space<vmem>>, vector<1x49x81xbf16>
    %171 = vector.shape_cast %170 : vector<1x49x81xbf16> to vector<49x81xbf16>
    %cst_152 = arith.constant dense<0.000000e+00> : vector<49x64xf32>
    %172 = tpu.matmul %171, %144, %cst_152 {dimension_numbers = #tpu.dot_dimension_numbers<[1], [0], [0], [1], [0, 0, 1, 1], [], []>} : vector<49x81xbf16>, vector<81x64xbf16>, vector<49x64xf32> -> vector<49x64xf32>
    %173 = arith.truncf %172 : vector<49x64xf32> to vector<49x64xbf16>
    %c3_153 = arith.constant 3 : index
    %c0_154 = arith.constant 0 : index
    %c0_155 = arith.constant 0 : index
    %174 = vector.load %arg8[%c3_153, %c0_154, %c0_155] : memref<9x64x64xbf16, #tpu.memory_space<vmem>>, vector<1x64x64xbf16>
    %175 = vector.shape_cast %174 : vector<1x64x64xbf16> to vector<64x64xbf16>
    %cst_156 = arith.constant dense<0.000000e+00> : vector<49x64xf32>
    %176 = tpu.matmul %173, %175, %cst_156 {dimension_numbers = #tpu.dot_dimension_numbers<[1], [0], [0], [1], [0, 0, 1, 1], [], []>} : vector<49x64xbf16>, vector<64x64xbf16>, vector<49x64xf32> -> vector<49x64xf32>
    %177 = arith.addf %169, %176 : vector<49x64xf32>
    %c4_157 = arith.constant 4 : index
    %c0_158 = arith.constant 0 : index
    %c0_159 = arith.constant 0 : index
    %178 = vector.load %arg7[%c4_157, %c0_158, %c0_159] : memref<9x49x81xbf16, #tpu.memory_space<vmem>>, vector<1x49x81xbf16>
    %179 = vector.shape_cast %178 : vector<1x49x81xbf16> to vector<49x81xbf16>
    %cst_160 = arith.constant dense<0.000000e+00> : vector<49x64xf32>
    %180 = tpu.matmul %179, %144, %cst_160 {dimension_numbers = #tpu.dot_dimension_numbers<[1], [0], [0], [1], [0, 0, 1, 1], [], []>} : vector<49x81xbf16>, vector<81x64xbf16>, vector<49x64xf32> -> vector<49x64xf32>
    %181 = arith.truncf %180 : vector<49x64xf32> to vector<49x64xbf16>
    %c4_161 = arith.constant 4 : index
    %c0_162 = arith.constant 0 : index
    %c0_163 = arith.constant 0 : index
    %182 = vector.load %arg8[%c4_161, %c0_162, %c0_163] : memref<9x64x64xbf16, #tpu.memory_space<vmem>>, vector<1x64x64xbf16>
    %183 = vector.shape_cast %182 : vector<1x64x64xbf16> to vector<64x64xbf16>
    %cst_164 = arith.constant dense<0.000000e+00> : vector<49x64xf32>
    %184 = tpu.matmul %181, %183, %cst_164 {dimension_numbers = #tpu.dot_dimension_numbers<[1], [0], [0], [1], [0, 0, 1, 1], [], []>} : vector<49x64xbf16>, vector<64x64xbf16>, vector<49x64xf32> -> vector<49x64xf32>
    %185 = arith.addf %177, %184 : vector<49x64xf32>
    %c5_165 = arith.constant 5 : index
    %c0_166 = arith.constant 0 : index
    %c0_167 = arith.constant 0 : index
    %186 = vector.load %arg7[%c5_165, %c0_166, %c0_167] : memref<9x49x81xbf16, #tpu.memory_space<vmem>>, vector<1x49x81xbf16>
    %187 = vector.shape_cast %186 : vector<1x49x81xbf16> to vector<49x81xbf16>
    %cst_168 = arith.constant dense<0.000000e+00> : vector<49x64xf32>
    %188 = tpu.matmul %187, %144, %cst_168 {dimension_numbers = #tpu.dot_dimension_numbers<[1], [0], [0], [1], [0, 0, 1, 1], [], []>} : vector<49x81xbf16>, vector<81x64xbf16>, vector<49x64xf32> -> vector<49x64xf32>
    %189 = arith.truncf %188 : vector<49x64xf32> to vector<49x64xbf16>
    %c5_169 = arith.constant 5 : index
    %c0_170 = arith.constant 0 : index
    %c0_171 = arith.constant 0 : index
    %190 = vector.load %arg8[%c5_169, %c0_170, %c0_171] : memref<9x64x64xbf16, #tpu.memory_space<vmem>>, vector<1x64x64xbf16>
    %191 = vector.shape_cast %190 : vector<1x64x64xbf16> to vector<64x64xbf16>
    %cst_172 = arith.constant dense<0.000000e+00> : vector<49x64xf32>
    %192 = tpu.matmul %189, %191, %cst_172 {dimension_numbers = #tpu.dot_dimension_numbers<[1], [0], [0], [1], [0, 0, 1, 1], [], []>} : vector<49x64xbf16>, vector<64x64xbf16>, vector<49x64xf32> -> vector<49x64xf32>
    %193 = arith.addf %185, %192 : vector<49x64xf32>
    %c6_173 = arith.constant 6 : index
    %c0_174 = arith.constant 0 : index
    %c0_175 = arith.constant 0 : index
    %194 = vector.load %arg7[%c6_173, %c0_174, %c0_175] : memref<9x49x81xbf16, #tpu.memory_space<vmem>>, vector<1x49x81xbf16>
    %195 = vector.shape_cast %194 : vector<1x49x81xbf16> to vector<49x81xbf16>
    %cst_176 = arith.constant dense<0.000000e+00> : vector<49x64xf32>
    %196 = tpu.matmul %195, %144, %cst_176 {dimension_numbers = #tpu.dot_dimension_numbers<[1], [0], [0], [1], [0, 0, 1, 1], [], []>} : vector<49x81xbf16>, vector<81x64xbf16>, vector<49x64xf32> -> vector<49x64xf32>
    %197 = arith.truncf %196 : vector<49x64xf32> to vector<49x64xbf16>
    %c6_177 = arith.constant 6 : index
    %c0_178 = arith.constant 0 : index
    %c0_179 = arith.constant 0 : index
    %198 = vector.load %arg8[%c6_177, %c0_178, %c0_179] : memref<9x64x64xbf16, #tpu.memory_space<vmem>>, vector<1x64x64xbf16>
    %199 = vector.shape_cast %198 : vector<1x64x64xbf16> to vector<64x64xbf16>
    %cst_180 = arith.constant dense<0.000000e+00> : vector<49x64xf32>
    %200 = tpu.matmul %197, %199, %cst_180 {dimension_numbers = #tpu.dot_dimension_numbers<[1], [0], [0], [1], [0, 0, 1, 1], [], []>} : vector<49x64xbf16>, vector<64x64xbf16>, vector<49x64xf32> -> vector<49x64xf32>
    %201 = arith.addf %193, %200 : vector<49x64xf32>
    %c7_181 = arith.constant 7 : index
    %c0_182 = arith.constant 0 : index
    %c0_183 = arith.constant 0 : index
    %202 = vector.load %arg7[%c7_181, %c0_182, %c0_183] : memref<9x49x81xbf16, #tpu.memory_space<vmem>>, vector<1x49x81xbf16>
    %203 = vector.shape_cast %202 : vector<1x49x81xbf16> to vector<49x81xbf16>
    %cst_184 = arith.constant dense<0.000000e+00> : vector<49x64xf32>
    %204 = tpu.matmul %203, %144, %cst_184 {dimension_numbers = #tpu.dot_dimension_numbers<[1], [0], [0], [1], [0, 0, 1, 1], [], []>} : vector<49x81xbf16>, vector<81x64xbf16>, vector<49x64xf32> -> vector<49x64xf32>
    %205 = arith.truncf %204 : vector<49x64xf32> to vector<49x64xbf16>
    %c7_185 = arith.constant 7 : index
    %c0_186 = arith.constant 0 : index
    %c0_187 = arith.constant 0 : index
    %206 = vector.load %arg8[%c7_185, %c0_186, %c0_187] : memref<9x64x64xbf16, #tpu.memory_space<vmem>>, vector<1x64x64xbf16>
    %207 = vector.shape_cast %206 : vector<1x64x64xbf16> to vector<64x64xbf16>
    %cst_188 = arith.constant dense<0.000000e+00> : vector<49x64xf32>
    %208 = tpu.matmul %205, %207, %cst_188 {dimension_numbers = #tpu.dot_dimension_numbers<[1], [0], [0], [1], [0, 0, 1, 1], [], []>} : vector<49x64xbf16>, vector<64x64xbf16>, vector<49x64xf32> -> vector<49x64xf32>
    %209 = arith.addf %201, %208 : vector<49x64xf32>
    %c8_189 = arith.constant 8 : index
    %c0_190 = arith.constant 0 : index
    %c0_191 = arith.constant 0 : index
    %210 = vector.load %arg7[%c8_189, %c0_190, %c0_191] : memref<9x49x81xbf16, #tpu.memory_space<vmem>>, vector<1x49x81xbf16>
    %211 = vector.shape_cast %210 : vector<1x49x81xbf16> to vector<49x81xbf16>
    %cst_192 = arith.constant dense<0.000000e+00> : vector<49x64xf32>
    %212 = tpu.matmul %211, %144, %cst_192 {dimension_numbers = #tpu.dot_dimension_numbers<[1], [0], [0], [1], [0, 0, 1, 1], [], []>} : vector<49x81xbf16>, vector<81x64xbf16>, vector<49x64xf32> -> vector<49x64xf32>
    %213 = arith.truncf %212 : vector<49x64xf32> to vector<49x64xbf16>
    %c8_193 = arith.constant 8 : index
    %c0_194 = arith.constant 0 : index
    %c0_195 = arith.constant 0 : index
    %214 = vector.load %arg8[%c8_193, %c0_194, %c0_195] : memref<9x64x64xbf16, #tpu.memory_space<vmem>>, vector<1x64x64xbf16>
    %215 = vector.shape_cast %214 : vector<1x64x64xbf16> to vector<64x64xbf16>
    %cst_196 = arith.constant dense<0.000000e+00> : vector<49x64xf32>
    %216 = tpu.matmul %213, %215, %cst_196 {dimension_numbers = #tpu.dot_dimension_numbers<[1], [0], [0], [1], [0, 0, 1, 1], [], []>} : vector<49x64xbf16>, vector<64x64xbf16>, vector<49x64xf32> -> vector<49x64xf32>
    %217 = arith.addf %209, %216 : vector<49x64xf32>
    %c0_197 = arith.constant 0 : index
    %c0_198 = arith.constant 0 : index
    %218 = vector.load %arg9[%c0_197, %c0_198] : memref<1x64xf32, #tpu.memory_space<vmem>>, vector<1x64xf32>
    %219 = vector.broadcast %218 : vector<1x64xf32> to vector<49x64xf32>
    %220 = arith.addf %217, %219 : vector<49x64xf32>
    %cst_199 = arith.constant 0.000000e+00 : f32
    %221 = vector.broadcast %cst_199 : f32 to vector<49x64xf32>
    %222 = arith.maximumf %220, %221 : vector<49x64xf32>
    %223 = arith.truncf %222 : vector<49x64xf32> to vector<49x64xbf16>
    %c0_200 = arith.constant 0 : index
    %c0_201 = arith.constant 0 : index
    %c0_202 = arith.constant 0 : index
    %224 = vector.load %arg10[%c0_200, %c0_201, %c0_202] : memref<1x49x64xbf16, #tpu.memory_space<vmem>>, vector<1x49x64xbf16>
    %225 = vector.shape_cast %224 : vector<1x49x64xbf16> to vector<49x64xbf16>
    %226 = vector.shape_cast %223 : vector<49x64xbf16> to vector<1x49x64xbf16>
    tpu.vector_store %arg10[%c0_200, %c0_201, %c0_202], %226 {strides = array<i32>} : memref<1x49x64xbf16, #tpu.memory_space<vmem>>, vector<1x49x64xbf16>,
    return
  }
  func.func @transform_0(%arg0: i32) -> (i32, i32, i32) {
    %c0_i32 = arith.constant 0 : i32
    %c0_i32_0 = arith.constant 0 : i32
    %c0_i32_1 = arith.constant 0 : i32
    return %arg0, %c0_i32, %c0_i32_0 : i32, i32, i32
  }
  func.func @transform_1(%arg0: i32) -> (i32, i32) {
    %c0_i32 = arith.constant 0 : i32
    %c0_i32_0 = arith.constant 0 : i32
    %c0_i32_1 = arith.constant 0 : i32
    return %c0_i32, %c0_i32_0 : i32, i32
  }
  func.func @transform_2(%arg0: i32) -> (i32, i32) {
    %c0_i32 = arith.constant 0 : i32
    %c0_i32_0 = arith.constant 0 : i32
    %c0_i32_1 = arith.constant 0 : i32
    return %c0_i32, %c0_i32_0 : i32, i32
  }
  func.func @transform_3(%arg0: i32) -> (i32, i32, i32) {
    %c0_i32 = arith.constant 0 : i32
    %c0_i32_0 = arith.constant 0 : i32
    %c0_i32_1 = arith.constant 0 : i32
    %c0_i32_2 = arith.constant 0 : i32
    return %c0_i32, %c0_i32_0, %c0_i32_1 : i32, i32, i32
  }
  func.func @transform_4(%arg0: i32) -> (i32, i32, i32) {
    %c0_i32 = arith.constant 0 : i32
    %c0_i32_0 = arith.constant 0 : i32
    %c0_i32_1 = arith.constant 0 : i32
    %c0_i32_2 = arith.constant 0 : i32
    return %c0_i32, %c0_i32_0, %c0_i32_1 : i32, i32, i32
  }
  func.func @transform_5(%arg0: i32) -> (i32, i32) {
    %c0_i32 = arith.constant 0 : i32
    %c0_i32_0 = arith.constant 0 : i32
    %c0_i32_1 = arith.constant 0 : i32
    return %c0_i32, %c0_i32_0 : i32, i32
  }
  func.func @transform_6(%arg0: i32) -> (i32, i32, i32) {
    %c0_i32 = arith.constant 0 : i32
    %c0_i32_0 = arith.constant 0 : i32
    %c0_i32_1 = arith.constant 0 : i32
    %c0_i32_2 = arith.constant 0 : i32
    return %c0_i32, %c0_i32_0, %c0_i32_1 : i32, i32, i32
  }
  func.func @transform_7(%arg0: i32) -> (i32, i32, i32) {
    %c0_i32 = arith.constant 0 : i32
    %c0_i32_0 = arith.constant 0 : i32
    %c0_i32_1 = arith.constant 0 : i32
    %c0_i32_2 = arith.constant 0 : i32
    return %c0_i32, %c0_i32_0, %c0_i32_1 : i32, i32, i32
  }
  func.func @transform_8(%arg0: i32) -> (i32, i32) {
    %c0_i32 = arith.constant 0 : i32
    %c0_i32_0 = arith.constant 0 : i32
    %c0_i32_1 = arith.constant 0 : i32
    return %c0_i32, %c0_i32_0 : i32, i32
  }
  func.func @transform_9(%arg0: i32) -> (i32, i32, i32) {
    %c0_i32 = arith.constant 0 : i32
    %c0_i32_0 = arith.constant 0 : i32
    %c0_i32_1 = arith.constant 0 : i32
    return %arg0, %c0_i32, %c0_i32_0 : i32, i32, i32
  }
}

module attributes {stable_mosaic.version = 11 : i64} {
  func.func @_mlp_head_kernel(%arg0: i32, %arg1: memref<8x3136xbf16, #tpu.memory_space<vmem>>, %arg2: memref<3136x512xbf16, #tpu.memory_space<vmem>>, %arg3: memref<1x512xf32, #tpu.memory_space<vmem>>, %arg4: memref<512x12xbf16, #tpu.memory_space<vmem>>, %arg5: memref<1x12xf32, #tpu.memory_space<vmem>>, %arg6: memref<8x12xf32, #tpu.memory_space<vmem>>) attributes {dimension_semantics = [#tpu.dimension_semantics<parallel>], iteration_bounds = array<i64: 1>, scalar_prefetch = 0 : i64, scratch_operands = 0 : i64, tpu.core_type = #tpu.core_type<tc>, window_params = [{transform_indices = @transform_0, window_bounds = array<i64: 8, 3136>}, {pipeline_mode = #tpu.pipeline_mode<synchronous>, transform_indices = @transform_1, window_bounds = array<i64: 3136, 512>}, {pipeline_mode = #tpu.pipeline_mode<synchronous>, transform_indices = @transform_2, window_bounds = array<i64: 1, 512>}, {pipeline_mode = #tpu.pipeline_mode<synchronous>, transform_indices = @transform_3, window_bounds = array<i64: 512, 12>}, {pipeline_mode = #tpu.pipeline_mode<synchronous>, transform_indices = @transform_4, window_bounds = array<i64: 1, 12>}, {transform_indices = @transform_5, window_bounds = array<i64: 8, 12>}]} {
    %c0 = arith.constant 0 : index
    %c0_0 = arith.constant 0 : index
    %0 = vector.load %arg1[%c0, %c0_0] : memref<8x3136xbf16, #tpu.memory_space<vmem>>, vector<8x3136xbf16>
    %c0_1 = arith.constant 0 : index
    %c0_2 = arith.constant 0 : index
    %1 = vector.load %arg2[%c0_1, %c0_2] : memref<3136x512xbf16, #tpu.memory_space<vmem>>, vector<3136x512xbf16>
    %cst = arith.constant dense<0.000000e+00> : vector<8x512xf32>
    %2 = tpu.matmul %0, %1, %cst {dimension_numbers = #tpu.dot_dimension_numbers<[1], [0], [0], [1], [0, 0, 1, 1], [], []>} : vector<8x3136xbf16>, vector<3136x512xbf16>, vector<8x512xf32> -> vector<8x512xf32>
    %c0_3 = arith.constant 0 : index
    %c0_4 = arith.constant 0 : index
    %3 = vector.load %arg3[%c0_3, %c0_4] : memref<1x512xf32, #tpu.memory_space<vmem>>, vector<1x512xf32>
    %4 = vector.broadcast %3 : vector<1x512xf32> to vector<8x512xf32>
    %5 = arith.addf %2, %4 : vector<8x512xf32>
    %cst_5 = arith.constant 0.000000e+00 : f32
    %6 = vector.broadcast %cst_5 : f32 to vector<8x512xf32>
    %7 = arith.maximumf %5, %6 : vector<8x512xf32>
    %8 = arith.truncf %7 : vector<8x512xf32> to vector<8x512xbf16>
    %c0_6 = arith.constant 0 : index
    %c0_7 = arith.constant 0 : index
    %9 = vector.load %arg4[%c0_6, %c0_7] : memref<512x12xbf16, #tpu.memory_space<vmem>>, vector<512x12xbf16>
    %cst_8 = arith.constant dense<0.000000e+00> : vector<8x12xf32>
    %10 = tpu.matmul %8, %9, %cst_8 {dimension_numbers = #tpu.dot_dimension_numbers<[1], [0], [0], [1], [0, 0, 1, 1], [], []>} : vector<8x512xbf16>, vector<512x12xbf16>, vector<8x12xf32> -> vector<8x12xf32>
    %c0_9 = arith.constant 0 : index
    %c0_10 = arith.constant 0 : index
    %11 = vector.load %arg5[%c0_9, %c0_10] : memref<1x12xf32, #tpu.memory_space<vmem>>, vector<1x12xf32>
    %12 = vector.broadcast %11 : vector<1x12xf32> to vector<8x12xf32>
    %13 = arith.addf %10, %12 : vector<8x12xf32>
    %c0_11 = arith.constant 0 : index
    %c0_12 = arith.constant 0 : index
    %14 = vector.load %arg6[%c0_11, %c0_12] : memref<8x12xf32, #tpu.memory_space<vmem>>, vector<8x12xf32>
    tpu.vector_store %arg6[%c0_11, %c0_12], %13 {strides = array<i32>} : memref<8x12xf32, #tpu.memory_space<vmem>>, vector<8x12xf32>,
    return
  }
  func.func @transform_0(%arg0: i32) -> (i32, i32) {
    %c0_i32 = arith.constant 0 : i32
    %c0_i32_0 = arith.constant 0 : i32
    return %arg0, %c0_i32 : i32, i32
  }
  func.func @transform_1(%arg0: i32) -> (i32, i32) {
    %c0_i32 = arith.constant 0 : i32
    %c0_i32_0 = arith.constant 0 : i32
    %c0_i32_1 = arith.constant 0 : i32
    return %c0_i32, %c0_i32_0 : i32, i32
  }
  func.func @transform_2(%arg0: i32) -> (i32, i32) {
    %c0_i32 = arith.constant 0 : i32
    %c0_i32_0 = arith.constant 0 : i32
    %c0_i32_1 = arith.constant 0 : i32
    return %c0_i32, %c0_i32_0 : i32, i32
  }
  func.func @transform_3(%arg0: i32) -> (i32, i32) {
    %c0_i32 = arith.constant 0 : i32
    %c0_i32_0 = arith.constant 0 : i32
    %c0_i32_1 = arith.constant 0 : i32
    return %c0_i32, %c0_i32_0 : i32, i32
  }
  func.func @transform_4(%arg0: i32) -> (i32, i32) {
    %c0_i32 = arith.constant 0 : i32
    %c0_i32_0 = arith.constant 0 : i32
    %c0_i32_1 = arith.constant 0 : i32
    return %c0_i32, %c0_i32_0 : i32, i32
  }
  func.func @transform_5(%arg0: i32) -> (i32, i32) {
    %c0_i32 = arith.constant 0 : i32
    %c0_i32_0 = arith.constant 0 : i32
    return %arg0, %c0_i32 : i32, i32
  }
}

</mosaic_0001>

<bundles_post_ra>
// kernel: mario_net1_forward.3
= control target key start
LH: loop header
LB: loop body
LE: loop exit
PB: predicated region body
PF: predicated region fallthrough
CT: control target
= control target key end

     0   :  { %vm4847_vm0 = vcmask 523264   ;;  %vm6268_vm1 = vcmask 97280   ;;  %s11145_s1 = inlined_call_operand.vmem [shape: bf16[3136,512], index: 1, kind: input, shape index: {}]   ;;  %s11146_s0 = inlined_call_operand.vmem [shape: bf16[8,3136], index: 0, kind: input, shape index: {}]   ;;  %s11147_s2 = inlined_call_operand.vmem [shape: f32[1,512], index: 2, kind: input, shape index: {}]   ;;  %s11148_s3 = inlined_call_operand.vmem [shape: bf16[512,12], index: 3, kind: input, shape index: {}]   ;;  %s11149_s4 = inlined_call_operand.vmem [shape: f32[1,12], index: 4, kind: input, shape index: {}]   ;;  %s11150_s5 = inlined_call_operand.vmem [shape: f32[8,12], index: 5, kind: output, shape index: {}]  }
   0x1   :  { %v7163_v0 = vld [vmem:[%s11145_s1 + $0xe4] ss:$16 sps:$4 sm:$0xff]   ;;  %v7167_v2 = vld [vmem:[%s11145_s1 + $0xe0] ss:$16 sps:$4 sm:$0xff]   ;;  %v22_v48 = vld [vmem:[%s11146_s0 + $0x8] sm:$0xff] }
   0x2   :  { %v7165_v1 = vld [vmem:[%s11145_s1 + $0x2e4] ss:$16 sps:$4 sm:$0xff]   ;;  %4851 = vmatprep.subr.bf16.mxu0 %v7163_v0  ;;  %v7168_v3 = vld [vmem:[%s11145_s1 + $0x2e0] ss:$16 sps:$4 sm:$0xff]   ;;  %v8581_v51 = vcombine.high %v22_v48, %v22_v48 }
   0x3   :  { %4892 = vmatprep.subr.bf16.mxu1 %v7165_v1  ;;  %v7169_v4 = vld [vmem:[%s11145_s1 + $0xc4] ss:$16 sps:$4 sm:$0xff]   ;;  %4852 = vmatpush1.bf16.msra.mxu0 %v7167_v2  ;;  %v7173_v6 = vld [vmem:[%s11145_s1 + $0xc0] ss:$16 sps:$4 sm:$0xff]  }
   0x4   :  { %4893 = vmatpush1.bf16.msra.mxu1 %v7168_v3  ;;  %v7171_v5 = vld [vmem:[%s11145_s1 + $0x2c4] ss:$16 sps:$4 sm:$0xff]   ;;  %4853 = vmatprep.subr.bf16.mxu0 %v7169_v4  ;;  %v7174_v7 = vld [vmem:[%s11145_s1 + $0x2c0] ss:$16 sps:$4 sm:$0xff]  }
   0x5   :  { %4894 = vmatprep.subr.bf16.mxu1 %v7171_v5  ;;  %v7175_v8 = vld [vmem:[%s11145_s1 + $0xa4] ss:$16 sps:$4 sm:$0xff]   ;;  %v7179_v10 = vld [vmem:[%s11145_s1 + $0xa0] ss:$16 sps:$4 sm:$0xff]   ;;  %4924 = vmatprep.mubr.bf16.mxu1 %v8581_v51 }
   0x6   :  { %v7177_v9 = vld [vmem:[%s11145_s1 + $0x2a4] ss:$16 sps:$4 sm:$0xff]   ;;  %v7180_v11 = vld [vmem:[%s11145_s1 + $0x2a0] ss:$16 sps:$4 sm:$0xff]  }
   0x7   :  { %4854 = vmatpush1.bf16.msra.mxu0 %v7173_v6  ;;  %v7181_v12 = vld [vmem:[%s11145_s1 + $0x84] ss:$16 sps:$4 sm:$0xff]   ;;  %v7185_v14 = vld [vmem:[%s11145_s1 + $0x80] ss:$16 sps:$4 sm:$0xff]  }
   0x8   :  { %4895 = vmatpush1.bf16.msra.mxu1 %v7174_v7  ;;  %4855 = vmatprep.subr.bf16.mxu0 %v7175_v8  ;;  %v7183_v13 = vld [vmem:[%s11145_s1 + $0x284] ss:$16 sps:$4 sm:$0xff]   ;;  %v7186_v15 = vld [vmem:[%s11145_s1 + $0x280] ss:$16 sps:$4 sm:$0xff]   ;;  %v8641_v7 = vcombine.low %v22_v48, %v22_v48 }
   0x9   :  { %4896 = vmatprep.subr.bf16.mxu1 %v7177_v9  ;;  %v7187_v16 = vld [vmem:[%s11145_s1 + $0x64] ss:$16 sps:$4 sm:$0xff]   ;;  %v7191_v18 = vld [vmem:[%s11145_s1 + $0x60] ss:$16 sps:$4 sm:$0xff]  }
   0xa   :  { %v7189_v17 = vld [vmem:[%s11145_s1 + $0x264] ss:$16 sps:$4 sm:$0xff]   ;;  %v7192_v19 = vld [vmem:[%s11145_s1 + $0x260] ss:$16 sps:$4 sm:$0xff]  }
   0xb   :  { %4856 = vmatpush1.bf16.msra.mxu0 %v7179_v10  ;;  %v7193_v20 = vld [vmem:[%s11145_s1 + $0x44] ss:$16 sps:$4 sm:$0xff]   ;;  %v7197_v22 = vld [vmem:[%s11145_s1 + $0x40] ss:$16 sps:$4 sm:$0xff]  }
   0xc   :  { %4897 = vmatpush1.bf16.msra.mxu1 %v7180_v11  ;;  %4857 = vmatprep.subr.bf16.mxu0 %v7181_v12  ;;  %v7195_v21 = vld [vmem:[%s11145_s1 + $0x244] ss:$16 sps:$4 sm:$0xff]   ;;  %v7198_v23 = vld [vmem:[%s11145_s1 + $0x240] ss:$16 sps:$4 sm:$0xff]  }
   0xd   :  { %4898 = vmatprep.subr.bf16.mxu1 %v7183_v13  ;;  %v7199_v24 = vld [vmem:[%s11145_s1 + $0x24] ss:$16 sps:$4 sm:$0xff]   ;;  %v7203_v26 = vld [vmem:[%s11145_s1 + $0x20] ss:$16 sps:$4 sm:$0xff]  }
   0xe   :  { %v7201_v25 = vld [vmem:[%s11145_s1 + $0x224] ss:$16 sps:$4 sm:$0xff]   ;;  %v7204_v27 = vld [vmem:[%s11145_s1 + $0x220] ss:$16 sps:$4 sm:$0xff]  }
   0xf   :  { %4858 = vmatpush1.bf16.msra.mxu0 %v7185_v14  ;;  %v7205_v28 = vld [vmem:[%s11145_s1 + $0x4] ss:$16 sps:$4 sm:$0xff]   ;;  %v7209_v30 = vld [vmem:[%s11145_s1] ss:$16 sps:$4 sm:$0xff]  }
  0x10   :  { %4899 = vmatpush1.bf16.msra.mxu1 %v7186_v15  ;;  %4859 = vmatprep.subr.bf16.mxu0 %v7187_v16  ;;  %v7207_v29 = vld [vmem:[%s11145_s1 + $0x204] ss:$16 sps:$4 sm:$0xff]   ;;  %v7210_v31 = vld [vmem:[%s11145_s1 + $0x200] ss:$16 sps:$4 sm:$0xff]  }
  0x11   :  { %4900 = vmatprep.subr.bf16.mxu1 %v7189_v17  ;;  %v7211_v32 = vld [vmem:[%s11145_s1 + $0x1e4] ss:$16 sps:$4 sm:$0xff]   ;;  %v7215_v34 = vld [vmem:[%s11145_s1 + $0x1e0] ss:$16 sps:$4 sm:$0xff]  }
  0x12   :  { %v7213_v33 = vld [vmem:[%s11145_s1 + $0x3e4] ss:$16 sps:$4 sm:$0xff]   ;;  %v7216_v35 = vld [vmem:[%s11145_s1 + $0x3e0] ss:$16 sps:$4 sm:$0xff]  }
  0x13   :  { %4860 = vmatpush1.bf16.msra.mxu0 %v7191_v18  ;;  %v7217_v36 = vld [vmem:[%s11145_s1 + $0x1c4] ss:$16 sps:$4 sm:$0xff]   ;;  %v7221_v38 = vld [vmem:[%s11145_s1 + $0x1c0] ss:$16 sps:$4 sm:$0xff]  }
  0x14   :  { %4901 = vmatpush1.bf16.msra.mxu1 %v7192_v19  ;;  %4861 = vmatprep.subr.bf16.mxu0 %v7193_v20  ;;  %v7219_v37 = vld [vmem:[%s11145_s1 + $0x3c4] ss:$16 sps:$4 sm:$0xff]   ;;  %v7222_v39 = vld [vmem:[%s11145_s1 + $0x3c0] ss:$16 sps:$4 sm:$0xff]  }
  0x15   :  { %4902 = vmatprep.subr.bf16.mxu1 %v7195_v21  ;;  %v7223_v40 = vld [vmem:[%s11145_s1 + $0x1a4] ss:$16 sps:$4 sm:$0xff]   ;;  %v7227_v42 = vld [vmem:[%s11145_s1 + $0x1a0] ss:$16 sps:$4 sm:$0xff]  }
  0x16   :  { %v7225_v41 = vld [vmem:[%s11145_s1 + $0x3a4] ss:$16 sps:$4 sm:$0xff]   ;;  %v7228_v43 = vld [vmem:[%s11145_s1 + $0x3a0] ss:$16 sps:$4 sm:$0xff]  }
  0x17   :  { %4862 = vmatpush1.bf16.msra.mxu0 %v7197_v22  ;;  %v7229_v44 = vld [vmem:[%s11145_s1 + $0x184] ss:$16 sps:$4 sm:$0xff]   ;;  %v7233_v49 = vld [vmem:[%s11145_s1 + $0x180] ss:$16 sps:$4 sm:$0xff]  }
  0x18   :  { %4903 = vmatpush1.bf16.msra.mxu1 %v7198_v23  ;;  %4863 = vmatprep.subr.bf16.mxu0 %v7199_v24  ;;  %v7231_v45 = vld [vmem:[%s11145_s1 + $0x384] ss:$16 sps:$4 sm:$0xff]   ;;  %v7234_v50 = vld [vmem:[%s11145_s1 + $0x380] ss:$16 sps:$4 sm:$0xff]  }
  0x19   :  { %4904 = vmatprep.subr.bf16.mxu1 %v7201_v25  ;;  %v21_v46 = vld [vmem:[%s11146_s0] sm:$0xff] }
  0x1a   :  { %v8570_v47 = vcombine.high %v21_v46, %v21_v46  ;;  %v7235_v52 = vld [vmem:[%s11145_s1 + $0x164] ss:$16 sps:$4 sm:$0xff]   ;;  %v7239_v54 = vld [vmem:[%s11145_s1 + $0x160] ss:$16 sps:$4 sm:$0xff]   ;;  %v8639_v6 = vcombine.low %v21_v46, %v21_v46 }
  0x1b   :  { %4864 = vmatpush1.bf16.msra.mxu0 %v7203_v26  ;;  %v7237_v53 = vld [vmem:[%s11145_s1 + $0x364] ss:$16 sps:$4 sm:$0xff]   ;;  %v7240_v55 = vld [vmem:[%s11145_s1 + $0x360] ss:$16 sps:$4 sm:$0xff]  }
  0x1c   :  { %4905 = vmatpush1.bf16.msra.mxu1 %v7204_v27  ;;  %4865 = vmatprep.subr.bf16.mxu0 %v7205_v28  ;;  %v7241_v56 = vld [vmem:[%s11145_s1 + $0x144] ss:$16 sps:$4 sm:$0xff]   ;;  %v7245_v58 = vld [vmem:[%s11145_s1 + $0x140] ss:$16 sps:$4 sm:$0xff]  }
  0x1d   :  { %4906 = vmatprep.subr.bf16.mxu1 %v7207_v29  ;;  %4883 = vmatprep.mubr.bf16.mxu0 %v8570_v47  ;;  %v7243_v57 = vld [vmem:[%s11145_s1 + $0x344] ss:$16 sps:$4 sm:$0xff]   ;;  %v7246_v59 = vld [vmem:[%s11145_s1 + $0x340] ss:$16 sps:$4 sm:$0xff]  }
  0x1e   :  { %v7247_v60 = vld [vmem:[%s11145_s1 + $0x124] ss:$16 sps:$4 sm:$0xff]   ;;  %v7251_v62 = vld [vmem:[%s11145_s1 + $0x120] ss:$16 sps:$4 sm:$0xff]  }
  0x1f   :  { %4866 = vmatpush1.bf16.msra.mxu0 %v7209_v30  ;;  %v7249_v61 = vld [vmem:[%s11145_s1 + $0x324] ss:$16 sps:$4 sm:$0xff]   ;;  %v7252_v63 = vld [vmem:[%s11145_s1 + $0x320] ss:$16 sps:$4 sm:$0xff]  }
  0x20   :  { %4907 = vmatpush1.bf16.msra.mxu1 %v7210_v31  ;;  %4867 = vmatprep.subr.bf16.mxu0 %v7211_v32  ;;  %v7253_v0 = vld [vmem:[%s11145_s1 + $0x104] ss:$16 sps:$4 sm:$0xff]   ;;  %v7257_v2 = vld [vmem:[%s11145_s1 + $0x100] ss:$16 sps:$4 sm:$0xff]  }
  0x21   :  { %4908 = vmatprep.subr.bf16.mxu1 %v7213_v33  ;;  %v7255_v1 = vld [vmem:[%s11145_s1 + $0x304] ss:$16 sps:$4 sm:$0xff]   ;;  %v7258_v3 = vld [vmem:[%s11145_s1 + $0x300] ss:$16 sps:$4 sm:$0xff]   ;;  %v8725_v33 = vld [vmem:[%s11146_s0 + $0x18] sm:$0xff] }
  0x22   :  { %v7265_v4 = vld [vmem:[%s11145_s1 + $0x4e4] ss:$16 sps:$4 sm:$0xff]   ;;  %v7263_v8 = vld [vmem:[%s11145_s1 + $0x4e0] ss:$16 sps:$4 sm:$0xff]  }
  0x23   :  { %4868 = vmatpush2.bf16.msra.mxu0 %v7215_v34  ;;  %v7268_v5 = vld [vmem:[%s11145_s1 + $0x6e4] ss:$16 sps:$4 sm:$0xff]   ;;  %v7266_v9 = vld [vmem:[%s11145_s1 + $0x6e0] ss:$16 sps:$4 sm:$0xff]  }
  0x24   :  { %4909 = vmatpush2.bf16.msra.mxu1 %v7216_v35  ;;  %4869 = vmatprep.subr.bf16.mxu0 %v7217_v36  ;;  %v7271_v10 = vld [vmem:[%s11145_s1 + $0x4c4] ss:$16 sps:$4 sm:$0xff]   ;;  %v7269_v12 = vld [vmem:[%s11145_s1 + $0x4c0] ss:$16 sps:$4 sm:$0xff]  }
  0x25   :  { %4910 = vmatprep.subr.bf16.mxu1 %v7219_v37  ;;  %v7274_v11 = vld [vmem:[%s11145_s1 + $0x6c4] ss:$16 sps:$4 sm:$0xff]   ;;  %v7272_v13 = vld [vmem:[%s11145_s1 + $0x6c0] ss:$16 sps:$4 sm:$0xff]   ;;  %v8739_v37 = vcombine.high %v8725_v33, %v8725_v33 }
  0x26   :  { %v7277_v14 = vld [vmem:[%s11145_s1 + $0x4a4] ss:$16 sps:$4 sm:$0xff]   ;;  %v7275_v16 = vld [vmem:[%s11145_s1 + $0x4a0] ss:$16 sps:$4 sm:$0xff]  }
  0x27   :  { %4870 = vmatpush2.bf16.msra.mxu0 %v7221_v38  ;;  %v7280_v15 = vld [vmem:[%s11145_s1 + $0x6a4] ss:$16 sps:$4 sm:$0xff]   ;;  %v7278_v17 = vld [vmem:[%s11145_s1 + $0x6a0] ss:$16 sps:$4 sm:$0xff]  }
  0x28   :  { %4911 = vmatpush2.bf16.msra.mxu1 %v7222_v39  ;;  %4871 = vmatprep.subr.bf16.mxu0 %v7223_v40  ;;  %v7283_v18 = vld [vmem:[%s11145_s1 + $0x484] ss:$16 sps:$4 sm:$0xff]   ;;  %v7281_v20 = vld [vmem:[%s11145_s1 + $0x480] ss:$16 sps:$4 sm:$0xff]  }
  0x29   :  { %4912 = vmatprep.subr.bf16.mxu1 %v7225_v41  ;;  %v7286_v19 = vld [vmem:[%s11145_s1 + $0x684] ss:$16 sps:$4 sm:$0xff]   ;;  %v7284_v21 = vld [vmem:[%s11145_s1 + $0x680] ss:$16 sps:$4 sm:$0xff]  }
  0x2a   :  { %v7289_v22 = vld [vmem:[%s11145_s1 + $0x464] ss:$16 sps:$4 sm:$0xff]   ;;  %v7287_v24 = vld [vmem:[%s11145_s1 + $0x460] ss:$16 sps:$4 sm:$0xff]  }
  0x2b   :  { %4872 = vmatpush2.bf16.msra.mxu0 %v7227_v42  ;;  %v7292_v23 = vld [vmem:[%s11145_s1 + $0x664] ss:$16 sps:$4 sm:$0xff]   ;;  %v7290_v25 = vld [vmem:[%s11145_s1 + $0x660] ss:$16 sps:$4 sm:$0xff]  }
  0x2c   :  { %4913 = vmatpush2.bf16.msra.mxu1 %v7228_v43  ;;  %4873 = vmatprep.subr.bf16.mxu0 %v7229_v44  ;;  %v7295_v26 = vld [vmem:[%s11145_s1 + $0x444] ss:$16 sps:$4 sm:$0xff]   ;;  %v7293_v28 = vld [vmem:[%s11145_s1 + $0x440] ss:$16 sps:$4 sm:$0xff]  }
  0x2d   :  { %4914 = vmatprep.subr.bf16.mxu1 %v7231_v45  ;;  %v7298_v27 = vld [vmem:[%s11145_s1 + $0x644] ss:$16 sps:$4 sm:$0xff]   ;;  %v7296_v29 = vld [vmem:[%s11145_s1 + $0x640] ss:$16 sps:$4 sm:$0xff]  }
  0x2e   :  { %v7301_v30 = vld [vmem:[%s11145_s1 + $0x424] ss:$16 sps:$4 sm:$0xff]   ;;  %v7299_v34 = vld [vmem:[%s11145_s1 + $0x420] ss:$16 sps:$4 sm:$0xff]  }
  0x2f   :  { %4874 = vmatpush2.bf16.msra.mxu0 %v7233_v49  ;;  %v7304_v31 = vld [vmem:[%s11145_s1 + $0x624] ss:$16 sps:$4 sm:$0xff]   ;;  %v7302_v35 = vld [vmem:[%s11145_s1 + $0x620] ss:$16 sps:$4 sm:$0xff]  }
  0x30   :  { %4915 = vmatpush2.bf16.msra.mxu1 %v7234_v50  ;;  %4875 = vmatprep.subr.bf16.mxu0 %v7235_v52  ;;  %v8720_v32 = vld [vmem:[%s11146_s0 + $0x10] sm:$0xff] }
  0x31   :  { %4916 = vmatprep.subr.bf16.mxu1 %v7237_v53  ;;  %v8735_v36 = vcombine.high %v8720_v32, %v8720_v32  ;;  %v7307_v38 = vld [vmem:[%s11145_s1 + $0x404] ss:$16 sps:$4 sm:$0xff]   ;;  %v7305_v40 = vld [vmem:[%s11145_s1 + $0x400] ss:$16 sps:$4 sm:$0xff]  }
  0x32   :  { %v7310_v39 = vld [vmem:[%s11145_s1 + $0x604] ss:$16 sps:$4 sm:$0xff]   ;;  %v7308_v41 = vld [vmem:[%s11145_s1 + $0x600] ss:$16 sps:$4 sm:$0xff]  }
  0x33   :  { %4876 = vmatpush2.bf16.msra.mxu0 %v7239_v54  ;;  %v7313_v42 = vld [vmem:[%s11145_s1 + $0x5e4] ss:$16 sps:$4 sm:$0xff]   ;;  %v7311_v44 = vld [vmem:[%s11145_s1 + $0x5e0] ss:$16 sps:$4 sm:$0xff]  }
  0x34   :  { %4917 = vmatpush2.bf16.msra.mxu1 %v7240_v55  ;;  %4877 = vmatprep.subr.bf16.mxu0 %v7241_v56  ;;  %v7316_v43 = vld [vmem:[%s11145_s1 + $0x7e4] ss:$16 sps:$4 sm:$0xff]   ;;  %v7314_v45 = vld [vmem:[%s11145_s1 + $0x7e0] ss:$16 sps:$4 sm:$0xff]  }
  0x35   :  { %4918 = vmatprep.subr.bf16.mxu1 %v7243_v57  ;;  %v7319_v46 = vld [vmem:[%s11145_s1 + $0x5c4] ss:$16 sps:$4 sm:$0xff]   ;;  %v7317_v49 = vld [vmem:[%s11145_s1 + $0x5c0] ss:$16 sps:$4 sm:$0xff]  }
  0x36   :  { %v7322_v48 = vld [vmem:[%s11145_s1 + $0x7c4] ss:$16 sps:$4 sm:$0xff]   ;;  %v7320_v50 = vld [vmem:[%s11145_s1 + $0x7c0] ss:$16 sps:$4 sm:$0xff]  }
  0x37   :  { %4878 = vmatpush2.bf16.msra.mxu0 %v7245_v58  ;;  %v7325_v52 = vld [vmem:[%s11145_s1 + $0x5a4] ss:$16 sps:$4 sm:$0xff]   ;;  %v7323_v54 = vld [vmem:[%s11145_s1 + $0x5a0] ss:$16 sps:$4 sm:$0xff]  }
  0x38   :  { %4919 = vmatpush2.bf16.msra.mxu1 %v7246_v59  ;;  %4879 = vmatprep.subr.bf16.mxu0 %v7247_v60  ;;  %v7328_v53 = vld [vmem:[%s11145_s1 + $0x7a4] ss:$16 sps:$4 sm:$0xff]   ;;  %v7326_v55 = vld [vmem:[%s11145_s1 + $0x7a0] ss:$16 sps:$4 sm:$0xff]  }
  0x39   :  { %4920 = vmatprep.subr.bf16.mxu1 %v7249_v61  ;;  %v7331_v56 = vld [vmem:[%s11145_s1 + $0x584] ss:$16 sps:$4 sm:$0xff]   ;;  %v7329_v58 = vld [vmem:[%s11145_s1 + $0x580] ss:$16 sps:$4 sm:$0xff]  }
  0x3a   :  { %v7334_v57 = vld [vmem:[%s11145_s1 + $0x784] ss:$16 sps:$4 sm:$0xff]   ;;  %v7332_v59 = vld [vmem:[%s11145_s1 + $0x780] ss:$16 sps:$4 sm:$0xff]  }
  0x3b   :  { %4880 = vmatpush2.bf16.msra.mxu0 %v7251_v62  ;;  %v7337_v60 = vld [vmem:[%s11145_s1 + $0x564] ss:$16 sps:$4 sm:$0xff]   ;;  %v7335_v62 = vld [vmem:[%s11145_s1 + $0x560] ss:$16 sps:$4 sm:$0xff]  }
  0x3c   :  { %4921 = vmatpush2.bf16.msra.mxu1 %v7252_v63  ;;  %4881 = vmatprep.subr.bf16.mxu0 %v7253_v0  ;;  %v7340_v61 = vld [vmem:[%s11145_s1 + $0x764] ss:$16 sps:$4 sm:$0xff]   ;;  %v7338_v63 = vld [vmem:[%s11145_s1 + $0x760] ss:$16 sps:$4 sm:$0xff]  }
  0x3d   :  { %4922 = vmatprep.subr.bf16.mxu1 %v7255_v1  ;;  %v7343_v0 = vld [vmem:[%s11145_s1 + $0x544] ss:$16 sps:$4 sm:$0xff]  }
  0x3e   :  { %v7346_v1 = vld [vmem:[%s11145_s1 + $0x744] ss:$16 sps:$4 sm:$0xff]  }
  0x3f   :  { %4882 = vmatpush2.bf16.msra.mxu0 %v7257_v2  ;;  %v7341_v2 = vld [vmem:[%s11145_s1 + $0x540] ss:$16 sps:$4 sm:$0xff]  }
  0x40   :  { %4923 = vmatpush2.bf16.msra.mxu1 %v7258_v3  ;;  %4933 = vmatprep.subr.bf16.mxu0 %v7265_v4  ;;  %v7344_v3 = vld [vmem:[%s11145_s1 + $0x740] ss:$16 sps:$4 sm:$0xff]   ;;  %v7349_v4 = vld [vmem:[%s11145_s1 + $0x524] ss:$16 sps:$4 sm:$0xff]  }
  0x41   :  { %4974 = vmatprep.subr.bf16.mxu1 %v7268_v5  ;;  %v7352_v5 = vld [vmem:[%s11145_s1 + $0x724] ss:$16 sps:$4 sm:$0xff]  }
  0x42   :  { %4884 = vmatmul.mubr.bf16.vlgmr.msra.gmra.mxu0 %v8639_v6 }
  0x43   :  { %4925 = vmatmul.mubr.bf16.vlgmr.msra.gmra.mxu1 %v8641_v7  ;;  %4934 = vmatpush1.bf16.msra.mxu0 %v7263_v8  ;;  %v7347_v8 = vld [vmem:[%s11145_s1 + $0x520] ss:$16 sps:$4 sm:$0xff]  }
  0x44   :  { %4975 = vmatpush1.bf16.msra.mxu1 %v7266_v9  ;;  %4935 = vmatprep.subr.bf16.mxu0 %v7271_v10  ;;  %v7350_v9 = vld [vmem:[%s11145_s1 + $0x720] ss:$16 sps:$4 sm:$0xff]   ;;  %v7355_v10 = vld [vmem:[%s11145_s1 + $0x504] ss:$16 sps:$4 sm:$0xff]  }
  0x45   :  { %4976 = vmatprep.subr.bf16.mxu1 %v7274_v11  ;;  %4965 = vmatprep.mubr.bf16.mxu0 %v8735_v36  ;;  %v7358_v11 = vld [vmem:[%s11145_s1 + $0x704] ss:$16 sps:$4 sm:$0xff]  }
  0x46   :  { %5006 = vmatprep.mubr.bf16.mxu1 %v8739_v37 }
  0x47   :  { %4936 = vmatpush1.bf16.msra.mxu0 %v7269_v12  ;;  %v7353_v12 = vld [vmem:[%s11145_s1 + $0x500] ss:$16 sps:$4 sm:$0xff]  }
  0x48   :  { %4977 = vmatpush1.bf16.msra.mxu1 %v7272_v13  ;;  %4937 = vmatprep.subr.bf16.mxu0 %v7277_v14  ;;  %v7356_v13 = vld [vmem:[%s11145_s1 + $0x700] ss:$16 sps:$4 sm:$0xff]   ;;  %v7365_v14 = vld [vmem:[%s11145_s1 + $0x8e4] ss:$16 sps:$4 sm:$0xff]  }
  0x49   :  { %4978 = vmatprep.subr.bf16.mxu1 %v7280_v15  ;;  %v7368_v15 = vld [vmem:[%s11145_s1 + $0xae4] ss:$16 sps:$4 sm:$0xff]  }
  0x4b   :  { %4938 = vmatpush1.bf16.msra.mxu0 %v7275_v16  ;;  %v8859_v16 = vcombine.low %v8720_v32, %v8720_v32  ;;  %v7383_v32 = vld [vmem:[%s11145_s1 + $0x884] ss:$16 sps:$4 sm:$0xff]  }
  0x4c   :  { %4979 = vmatpush1.bf16.msra.mxu1 %v7278_v17  ;;  %4939 = vmatprep.subr.bf16.mxu0 %v7283_v18  ;;  %v8863_v17 = vcombine.low %v8725_v33, %v8725_v33  ;;  %v7363_v18 = vld [vmem:[%s11145_s1 + $0x8e0] ss:$16 sps:$4 sm:$0xff]   ;;  %v7386_v33 = vld [vmem:[%s11145_s1 + $0xa84] ss:$16 sps:$4 sm:$0xff]  }
  0x4d   :  { %4980 = vmatprep.subr.bf16.mxu1 %v7286_v19  ;;  %v7366_v19 = vld [vmem:[%s11145_s1 + $0xae0] ss:$16 sps:$4 sm:$0xff]  }
  0x4f   :  { %4940 = vmatpush1.bf16.msra.mxu0 %v7281_v20  ;;  %v7371_v20 = vld [vmem:[%s11145_s1 + $0x8c4] ss:$16 sps:$4 sm:$0xff]  }
  0x50   :  { %4981 = vmatpush1.bf16.msra.mxu1 %v7284_v21  ;;  %4941 = vmatprep.subr.bf16.mxu0 %v7289_v22  ;;  %v7374_v21 = vld [vmem:[%s11145_s1 + $0xac4] ss:$16 sps:$4 sm:$0xff]  }
  0x51   :  { %4982 = vmatprep.subr.bf16.mxu1 %v7292_v23  ;;  %v8880_v22 = vld [vmem:[%s11146_s0 + $0x20] sm:$0xff]  ;;  %v8885_v23 = vld [vmem:[%s11146_s0 + $0x28] sm:$0xff] }
  0x53   :  { %4942 = vmatpush1.bf16.msra.mxu0 %v7287_v24  ;;  %v8889_v24 = vcombine.high %v8880_v22, %v8880_v22 }
  0x54   :  { %4983 = vmatpush1.bf16.msra.mxu1 %v7290_v25  ;;  %4943 = vmatprep.subr.bf16.mxu0 %v7295_v26  ;;  %v8893_v25 = vcombine.high %v8885_v23, %v8885_v23  ;;  %v7369_v26 = vld [vmem:[%s11145_s1 + $0x8c0] ss:$16 sps:$4 sm:$0xff]  }
  0x55   :  { %4984 = vmatprep.subr.bf16.mxu1 %v7298_v27  ;;  %v7372_v27 = vld [vmem:[%s11145_s1 + $0xac0] ss:$16 sps:$4 sm:$0xff]  }
  0x57   :  { %4944 = vmatpush1.bf16.msra.mxu0 %v7293_v28  ;;  %v7377_v28 = vld [vmem:[%s11145_s1 + $0x8a4] ss:$16 sps:$4 sm:$0xff]  }
  0x58   :  { %4985 = vmatpush1.bf16.msra.mxu1 %v7296_v29  ;;  %4945 = vmatprep.subr.bf16.mxu0 %v7301_v30  ;;  %v7380_v29 = vld [vmem:[%s11145_s1 + $0xaa4] ss:$16 sps:$4 sm:$0xff]   ;;  %v7375_v30 = vld [vmem:[%s11145_s1 + $0x8a0] ss:$16 sps:$4 sm:$0xff]  }
  0x59   :  { %4986 = vmatprep.subr.bf16.mxu1 %v7304_v31  ;;  %v7378_v31 = vld [vmem:[%s11145_s1 + $0xaa0] ss:$16 sps:$4 sm:$0xff]  }
  0x5b   :  { %4946 = vmatpush1.bf16.msra.mxu0 %v7299_v34  ;;  %v7381_v34 = vld [vmem:[%s11145_s1 + $0x880] ss:$16 sps:$4 sm:$0xff]  }
  0x5c   :  { %4987 = vmatpush1.bf16.msra.mxu1 %v7302_v35  ;;  %4947 = vmatprep.subr.bf16.mxu0 %v7307_v38  ;;  %v7384_v35 = vld [vmem:[%s11145_s1 + $0xa80] ss:$16 sps:$4 sm:$0xff]   ;;  %v7389_v38 = vld [vmem:[%s11145_s1 + $0x864] ss:$16 sps:$4 sm:$0xff]  }
  0x5d   :  { %4988 = vmatprep.subr.bf16.mxu1 %v7310_v39  ;;  %v7392_v39 = vld [vmem:[%s11145_s1 + $0xa64] ss:$16 sps:$4 sm:$0xff]  }
  0x5f   :  { %4948 = vmatpush1.bf16.msra.mxu0 %v7305_v40  ;;  %v7387_v40 = vld [vmem:[%s11145_s1 + $0x860] ss:$16 sps:$4 sm:$0xff]  }
  0x60   :  { %4989 = vmatpush1.bf16.msra.mxu1 %v7308_v41  ;;  %4949 = vmatprep.subr.bf16.mxu0 %v7313_v42  ;;  %v7390_v41 = vld [vmem:[%s11145_s1 + $0xa60] ss:$16 sps:$4 sm:$0xff]   ;;  %v7395_v42 = vld [vmem:[%s11145_s1 + $0x844] ss:$16 sps:$4 sm:$0xff]  }
  0x61   :  { %4990 = vmatprep.subr.bf16.mxu1 %v7316_v43  ;;  %v7398_v43 = vld [vmem:[%s11145_s1 + $0xa44] ss:$16 sps:$4 sm:$0xff]  }
  0x63   :  { %4950 = vmatpush2.bf16.msra.mxu0 %v7311_v44  ;;  %v7393_v44 = vld [vmem:[%s11145_s1 + $0x840] ss:$16 sps:$4 sm:$0xff]  }
  0x64   :  { %4991 = vmatpush2.bf16.msra.mxu1 %v7314_v45  ;;  %4951 = vmatprep.subr.bf16.mxu0 %v7319_v46  ;;  %v7396_v45 = vld [vmem:[%s11145_s1 + $0xa40] ss:$16 sps:$4 sm:$0xff]   ;;  %v7401_v46 = vld [vmem:[%s11145_s1 + $0x824] ss:$16 sps:$4 sm:$0xff]  }
  0x65   :  { %4992 = vmatprep.subr.bf16.mxu1 %v7322_v48  ;;  %v7404_v48 = vld [vmem:[%s11145_s1 + $0xa24] ss:$16 sps:$4 sm:$0xff]  }
  0x67   :  { %4952 = vmatpush2.bf16.msra.mxu0 %v7317_v49  ;;  %v7399_v49 = vld [vmem:[%s11145_s1 + $0x820] ss:$16 sps:$4 sm:$0xff]  }
  0x68   :  { %4993 = vmatpush2.bf16.msra.mxu1 %v7320_v50  ;;  %4953 = vmatprep.subr.bf16.mxu0 %v7325_v52  ;;  %v7402_v50 = vld [vmem:[%s11145_s1 + $0xa20] ss:$16 sps:$4 sm:$0xff]   ;;  %v7407_v52 = vld [vmem:[%s11145_s1 + $0x804] ss:$16 sps:$4 sm:$0xff]  }
  0x69   :  { %4994 = vmatprep.subr.bf16.mxu1 %v7328_v53  ;;  %v7410_v53 = vld [vmem:[%s11145_s1 + $0xa04] ss:$16 sps:$4 sm:$0xff]  }
  0x6b   :  { %4954 = vmatpush2.bf16.msra.mxu0 %v7323_v54  ;;  %v7405_v54 = vld [vmem:[%s11145_s1 + $0x800] ss:$16 sps:$4 sm:$0xff]  }
  0x6c   :  { %4995 = vmatpush2.bf16.msra.mxu1 %v7326_v55  ;;  %4955 = vmatprep.subr.bf16.mxu0 %v7331_v56  ;;  %v7408_v55 = vld [vmem:[%s11145_s1 + $0xa00] ss:$16 sps:$4 sm:$0xff]   ;;  %v7413_v56 = vld [vmem:[%s11145_s1 + $0x9e4] ss:$16 sps:$4 sm:$0xff]  }
  0x6d   :  { %4996 = vmatprep.subr.bf16.mxu1 %v7334_v57  ;;  %v7416_v57 = vld [vmem:[%s11145_s1 + $0xbe4] ss:$16 sps:$4 sm:$0xff]  }
  0x6f   :  { %4956 = vmatpush2.bf16.msra.mxu0 %v7329_v58  ;;  %v7411_v58 = vld [vmem:[%s11145_s1 + $0x9e0] ss:$16 sps:$4 sm:$0xff]  }
  0x70   :  { %4997 = vmatpush2.bf16.msra.mxu1 %v7332_v59  ;;  %4957 = vmatprep.subr.bf16.mxu0 %v7337_v60  ;;  %v7414_v59 = vld [vmem:[%s11145_s1 + $0xbe0] ss:$16 sps:$4 sm:$0xff]   ;;  %v7419_v60 = vld [vmem:[%s11145_s1 + $0x9c4] ss:$16 sps:$4 sm:$0xff]  }
  0x71   :  { %4998 = vmatprep.subr.bf16.mxu1 %v7340_v61  ;;  %v7422_v61 = vld [vmem:[%s11145_s1 + $0xbc4] ss:$16 sps:$4 sm:$0xff]  }
  0x73   :  { %4958 = vmatpush2.bf16.msra.mxu0 %v7335_v62  ;;  %v7417_v62 = vld [vmem:[%s11145_s1 + $0x9c0] ss:$16 sps:$4 sm:$0xff]  }
  0x74   :  { %4999 = vmatpush2.bf16.msra.mxu1 %v7338_v63  ;;  %4959 = vmatprep.subr.bf16.mxu0 %v7343_v0  ;;  %v7420_v63 = vld [vmem:[%s11145_s1 + $0xbc0] ss:$16 sps:$4 sm:$0xff]   ;;  %v7425_v0 = vld [vmem:[%s11145_s1 + $0x9a4] ss:$16 sps:$4 sm:$0xff]  }
  0x75   :  { %5000 = vmatprep.subr.bf16.mxu1 %v7346_v1  ;;  %v7428_v1 = vld [vmem:[%s11145_s1 + $0xba4] ss:$16 sps:$4 sm:$0xff]  }
  0x77   :  { %4960 = vmatpush2.bf16.msra.mxu0 %v7341_v2  ;;  %v7423_v2 = vld [vmem:[%s11145_s1 + $0x9a0] ss:$16 sps:$4 sm:$0xff]  }
  0x78   :  { %5001 = vmatpush2.bf16.msra.mxu1 %v7344_v3  ;;  %4961 = vmatprep.subr.bf16.mxu0 %v7349_v4  ;;  %v7426_v3 = vld [vmem:[%s11145_s1 + $0xba0] ss:$16 sps:$4 sm:$0xff]   ;;  %v7431_v4 = vld [vmem:[%s11145_s1 + $0x984] ss:$16 sps:$4 sm:$0xff]  }
  0x79   :  { %5002 = vmatprep.subr.bf16.mxu1 %v7352_v5  ;;  %v7434_v5 = vld [vmem:[%s11145_s1 + $0xb84] ss:$16 sps:$4 sm:$0xff]  }
  0x7b   :  { %4962 = vmatpush2.bf16.msra.mxu0 %v7347_v8  ;;  %v7429_v8 = vld [vmem:[%s11145_s1 + $0x980] ss:$16 sps:$4 sm:$0xff]  }
  0x7c   :  { %5003 = vmatpush2.bf16.msra.mxu1 %v7350_v9  ;;  %4963 = vmatprep.subr.bf16.mxu0 %v7355_v10  ;;  %v7432_v9 = vld [vmem:[%s11145_s1 + $0xb80] ss:$16 sps:$4 sm:$0xff]   ;;  %v7437_v10 = vld [vmem:[%s11145_s1 + $0x964] ss:$16 sps:$4 sm:$0xff]  }
  0x7d   :  { %5004 = vmatprep.subr.bf16.mxu1 %v7358_v11  ;;  %v7440_v11 = vld [vmem:[%s11145_s1 + $0xb64] ss:$16 sps:$4 sm:$0xff]  }
  0x7f   :  { %4964 = vmatpush2.bf16.msra.mxu0 %v7353_v12  ;;  %v7435_v12 = vld [vmem:[%s11145_s1 + $0x960] ss:$16 sps:$4 sm:$0xff]  }
  0x80   :  { %5005 = vmatpush2.bf16.msra.mxu1 %v7356_v13  ;;  %5015 = vmatprep.subr.bf16.mxu0 %v7365_v14  ;;  %v7438_v13 = vld [vmem:[%s11145_s1 + $0xb60] ss:$16 sps:$4 sm:$0xff]   ;;  %v7443_v14 = vld [vmem:[%s11145_s1 + $0x944] ss:$16 sps:$4 sm:$0xff]  }
  0x81   :  { %5056 = vmatprep.subr.bf16.mxu1 %v7368_v15  ;;  %v7446_v15 = vld [vmem:[%s11145_s1 + $0xb44] ss:$16 sps:$4 sm:$0xff]  }
  0x82   :  { %4966 = vmatmul.mubr.bf16.vlgmr.msra.gmra.mxu0 %v8859_v16 }
  0x83   :  { %5007 = vmatmul.mubr.bf16.vlgmr.msra.gmra.mxu1 %v8863_v17  ;;  %5016 = vmatpush1.bf16.msra.mxu0 %v7363_v18  ;;  %v7441_v18 = vld [vmem:[%s11145_s1 + $0x940] ss:$16 sps:$4 sm:$0xff]  }
  0x84   :  { %5057 = vmatpush1.bf16.msra.mxu1 %v7366_v19  ;;  %5017 = vmatprep.subr.bf16.mxu0 %v7371_v20  ;;  %v7444_v19 = vld [vmem:[%s11145_s1 + $0xb40] ss:$16 sps:$4 sm:$0xff]   ;;  %v7449_v20 = vld [vmem:[%s11145_s1 + $0x924] ss:$16 sps:$4 sm:$0xff]  }
  0x85   :  { %5058 = vmatprep.subr.bf16.mxu1 %v7374_v21  ;;  %5047 = vmatprep.mubr.bf16.mxu0 %v8889_v24  ;;  %v7452_v21 = vld [vmem:[%s11145_s1 + $0xb24] ss:$16 sps:$4 sm:$0xff]  }
  0x86   :  { %5088 = vmatprep.mubr.bf16.mxu1 %v8893_v25 }
  0x87   :  { %5018 = vmatpush1.bf16.msra.mxu0 %v7369_v26  ;;  %v7447_v26 = vld [vmem:[%s11145_s1 + $0x920] ss:$16 sps:$4 sm:$0xff]  }
  0x88   :  { %5059 = vmatpush1.bf16.msra.mxu1 %v7372_v27  ;;  %5019 = vmatprep.subr.bf16.mxu0 %v7377_v28  ;;  %v7450_v27 = vld [vmem:[%s11145_s1 + $0xb20] ss:$16 sps:$4 sm:$0xff]   ;;  %v7455_v28 = vld [vmem:[%s11145_s1 + $0x904] ss:$16 sps:$4 sm:$0xff]  }
  0x89   :  { %5060 = vmatprep.subr.bf16.mxu1 %v7380_v29  ;;  %v7458_v29 = vld [vmem:[%s11145_s1 + $0xb04] ss:$16 sps:$4 sm:$0xff]  }
  0x8b   :  { %5020 = vmatpush1.bf16.msra.mxu0 %v7375_v30  ;;  %v7453_v30 = vld [vmem:[%s11145_s1 + $0x900] ss:$16 sps:$4 sm:$0xff]  }
  0x8c   :  { %5061 = vmatpush1.bf16.msra.mxu1 %v7378_v31  ;;  %5021 = vmatprep.subr.bf16.mxu0 %v7383_v32  ;;  %v7456_v31 = vld [vmem:[%s11145_s1 + $0xb00] ss:$16 sps:$4 sm:$0xff]   ;;  %v7465_v32 = vld [vmem:[%s11145_s1 + $0xce4] ss:$16 sps:$4 sm:$0xff]  }
  0x8d   :  { %5062 = vmatprep.subr.bf16.mxu1 %v7386_v33  ;;  %v7468_v33 = vld [vmem:[%s11145_s1 + $0xee4] ss:$16 sps:$4 sm:$0xff]  }
  0x8f   :  { %5022 = vmatpush1.bf16.msra.mxu0 %v7381_v34  ;;  %v7463_v34 = vld [vmem:[%s11145_s1 + $0xce0] ss:$16 sps:$4 sm:$0xff]  }
  0x90   :  { %5063 = vmatpush1.bf16.msra.mxu1 %v7384_v35  ;;  %5023 = vmatprep.subr.bf16.mxu0 %v7389_v38  ;;  %v9085_v35 = vld [vmem:[%s11146_s0 + $0x30] sm:$0xff]  ;;  %v9089_v38 = vcombine.low %v8880_v22, %v8880_v22 }
  0x91   :  { %5064 = vmatprep.subr.bf16.mxu1 %v7392_v39  ;;  %v9093_v39 = vcombine.low %v8885_v23, %v8885_v23  ;;  %v7471_v22 = vld [vmem:[%s11145_s1 + $0xcc4] ss:$16 sps:$4 sm:$0xff]  }
  0x92   :  { %v7474_v23 = vld [vmem:[%s11145_s1 + $0xec4] ss:$16 sps:$4 sm:$0xff]  }
  0x93   :  { %5024 = vmatpush1.bf16.msra.mxu0 %v7387_v40  ;;  %v9098_v40 = vld [vmem:[%s11146_s0 + $0x38] sm:$0xff] }
  0x94   :  { %5065 = vmatpush1.bf16.msra.mxu1 %v7390_v41  ;;  %5025 = vmatprep.subr.bf16.mxu0 %v7395_v42  ;;  %v7466_v41 = vld [vmem:[%s11145_s1 + $0xee0] ss:$16 sps:$4 sm:$0xff]   ;;  %v9111_v42 = vcombine.high %v9085_v35, %v9085_v35 }
  0x95   :  { %5066 = vmatprep.subr.bf16.mxu1 %v7398_v43  ;;  %v9115_v43 = vcombine.high %v9098_v40, %v9098_v40 }
  0x97   :  { %5026 = vmatpush1.bf16.msra.mxu0 %v7393_v44  ;;  %v7469_v44 = vld [vmem:[%s11145_s1 + $0xcc0] ss:$16 sps:$4 sm:$0xff]  }
  0x98   :  { %5067 = vmatpush1.bf16.msra.mxu1 %v7396_v45  ;;  %5027 = vmatprep.subr.bf16.mxu0 %v7401_v46  ;;  %v7472_v45 = vld [vmem:[%s11145_s1 + $0xec0] ss:$16 sps:$4 sm:$0xff]   ;;  %v7477_v46 = vld [vmem:[%s11145_s1 + $0xca4] ss:$16 sps:$4 sm:$0xff]  }
  0x99   :  { %5068 = vmatprep.subr.bf16.mxu1 %v7404_v48  ;;  %v7480_v48 = vld [vmem:[%s11145_s1 + $0xea4] ss:$16 sps:$4 sm:$0xff]  }
  0x9b   :  { %5028 = vmatpush1.bf16.msra.mxu0 %v7399_v49  ;;  %v7475_v49 = vld [vmem:[%s11145_s1 + $0xca0] ss:$16 sps:$4 sm:$0xff]  }
  0x9c   :  { %5069 = vmatpush1.bf16.msra.mxu1 %v7402_v50  ;;  %5029 = vmatprep.subr.bf16.mxu0 %v7407_v52  ;;  %v7478_v50 = vld [vmem:[%s11145_s1 + $0xea0] ss:$16 sps:$4 sm:$0xff]   ;;  %v7483_v52 = vld [vmem:[%s11145_s1 + $0xc84] ss:$16 sps:$4 sm:$0xff]  }
  0x9d   :  { %5070 = vmatprep.subr.bf16.mxu1 %v7410_v53  ;;  %v7486_v53 = vld [vmem:[%s11145_s1 + $0xe84] ss:$16 sps:$4 sm:$0xff]  }
  0x9f   :  { %5030 = vmatpush1.bf16.msra.mxu0 %v7405_v54  ;;  %v7481_v54 = vld [vmem:[%s11145_s1 + $0xc80] ss:$16 sps:$4 sm:$0xff]  }
  0xa0   :  { %5071 = vmatpush1.bf16.msra.mxu1 %v7408_v55  ;;  %5031 = vmatprep.subr.bf16.mxu0 %v7413_v56  ;;  %v7484_v55 = vld [vmem:[%s11145_s1 + $0xe80] ss:$16 sps:$4 sm:$0xff]   ;;  %v7489_v56 = vld [vmem:[%s11145_s1 + $0xc64] ss:$16 sps:$4 sm:$0xff]  }
  0xa1   :  { %5072 = vmatprep.subr.bf16.mxu1 %v7416_v57  ;;  %v7492_v57 = vld [vmem:[%s11145_s1 + $0xe64] ss:$16 sps:$4 sm:$0xff]  }
  0xa3   :  { %5032 = vmatpush2.bf16.msra.mxu0 %v7411_v58  ;;  %v7487_v58 = vld [vmem:[%s11145_s1 + $0xc60] ss:$16 sps:$4 sm:$0xff]  }
  0xa4   :  { %5073 = vmatpush2.bf16.msra.mxu1 %v7414_v59  ;;  %5033 = vmatprep.subr.bf16.mxu0 %v7419_v60  ;;  %v7490_v59 = vld [vmem:[%s11145_s1 + $0xe60] ss:$16 sps:$4 sm:$0xff]   ;;  %v7495_v60 = vld [vmem:[%s11145_s1 + $0xc44] ss:$16 sps:$4 sm:$0xff]  }
  0xa5   :  { %5074 = vmatprep.subr.bf16.mxu1 %v7422_v61  ;;  %v7498_v61 = vld [vmem:[%s11145_s1 + $0xe44] ss:$16 sps:$4 sm:$0xff]  }
  0xa7   :  { %5034 = vmatpush2.bf16.msra.mxu0 %v7417_v62  ;;  %v7493_v62 = vld [vmem:[%s11145_s1 + $0xc40] ss:$16 sps:$4 sm:$0xff]  }
  0xa8   :  { %5075 = vmatpush2.bf16.msra.mxu1 %v7420_v63  ;;  %5035 = vmatprep.subr.bf16.mxu0 %v7425_v0  ;;  %v7496_v63 = vld [vmem:[%s11145_s1 + $0xe40] ss:$16 sps:$4 sm:$0xff]   ;;  %v7501_v0 = vld [vmem:[%s11145_s1 + $0xc24] ss:$16 sps:$4 sm:$0xff]  }
  0xa9   :  { %5076 = vmatprep.subr.bf16.mxu1 %v7428_v1  ;;  %v7504_v1 = vld [vmem:[%s11145_s1 + $0xe24] ss:$16 sps:$4 sm:$0xff]  }
  0xab   :  { %5036 = vmatpush2.bf16.msra.mxu0 %v7423_v2  ;;  %v7499_v2 = vld [vmem:[%s11145_s1 + $0xc20] ss:$16 sps:$4 sm:$0xff]  }
  0xac   :  { %5077 = vmatpush2.bf16.msra.mxu1 %v7426_v3  ;;  %5037 = vmatprep.subr.bf16.mxu0 %v7431_v4  ;;  %v7502_v3 = vld [vmem:[%s11145_s1 + $0xe20] ss:$16 sps:$4 sm:$0xff]   ;;  %v7507_v4 = vld [vmem:[%s11145_s1 + $0xc04] ss:$16 sps:$4 sm:$0xff]  }
  0xad   :  { %5078 = vmatprep.subr.bf16.mxu1 %v7434_v5  ;;  %v7510_v5 = vld [vmem:[%s11145_s1 + $0xe04] ss:$16 sps:$4 sm:$0xff]  }
  0xaf   :  { %5038 = vmatpush2.bf16.msra.mxu0 %v7429_v8  ;;  %v7505_v8 = vld [vmem:[%s11145_s1 + $0xc00] ss:$16 sps:$4 sm:$0xff]  }
  0xb0   :  { %5079 = vmatpush2.bf16.msra.mxu1 %v7432_v9  ;;  %5039 = vmatprep.subr.bf16.mxu0 %v7437_v10  ;;  %v7508_v9 = vld [vmem:[%s11145_s1 + $0xe00] ss:$16 sps:$4 sm:$0xff]   ;;  %v7513_v10 = vld [vmem:[%s11145_s1 + $0xde4] ss:$16 sps:$4 sm:$0xff]  }
  0xb1   :  { %5080 = vmatprep.subr.bf16.mxu1 %v7440_v11  ;;  %v7516_v11 = vld [vmem:[%s11145_s1 + $0xfe4] ss:$16 sps:$4 sm:$0xff]  }
  0xb3   :  { %5040 = vmatpush2.bf16.msra.mxu0 %v7435_v12  ;;  %v7511_v12 = vld [vmem:[%s11145_s1 + $0xde0] ss:$16 sps:$4 sm:$0xff]  }
  0xb4   :  { %5081 = vmatpush2.bf16.msra.mxu1 %v7438_v13  ;;  %5041 = vmatprep.subr.bf16.mxu0 %v7443_v14  ;;  %v7514_v13 = vld [vmem:[%s11145_s1 + $0xfe0] ss:$16 sps:$4 sm:$0xff]   ;;  %v7519_v14 = vld [vmem:[%s11145_s1 + $0xdc4] ss:$16 sps:$4 sm:$0xff]  }
  0xb5   :  { %5082 = vmatprep.subr.bf16.mxu1 %v7446_v15  ;;  %v7522_v15 = vld [vmem:[%s11145_s1 + $0xfc4] ss:$16 sps:$4 sm:$0xff]  }
  0xb7   :  { %5042 = vmatpush2.bf16.msra.mxu0 %v7441_v18  ;;  %v7517_v18 = vld [vmem:[%s11145_s1 + $0xdc0] ss:$16 sps:$4 sm:$0xff]  }
  0xb8   :  { %5083 = vmatpush2.bf16.msra.mxu1 %v7444_v19  ;;  %5043 = vmatprep.subr.bf16.mxu0 %v7449_v20  ;;  %v7520_v19 = vld [vmem:[%s11145_s1 + $0xfc0] ss:$16 sps:$4 sm:$0xff]   ;;  %v7525_v20 = vld [vmem:[%s11145_s1 + $0xda4] ss:$16 sps:$4 sm:$0xff]  }
  0xb9   :  { %5084 = vmatprep.subr.bf16.mxu1 %v7452_v21  ;;  %v7528_v21 = vld [vmem:[%s11145_s1 + $0xfa4] ss:$16 sps:$4 sm:$0xff]  }
  0xbb   :  { %5044 = vmatpush2.bf16.msra.mxu0 %v7447_v26  ;;  %v7523_v26 = vld [vmem:[%s11145_s1 + $0xda0] ss:$16 sps:$4 sm:$0xff]  }
  0xbc   :  { %5085 = vmatpush2.bf16.msra.mxu1 %v7450_v27  ;;  %5045 = vmatprep.subr.bf16.mxu0 %v7455_v28  ;;  %v7526_v27 = vld [vmem:[%s11145_s1 + $0xfa0] ss:$16 sps:$4 sm:$0xff]   ;;  %v7531_v28 = vld [vmem:[%s11145_s1 + $0xd84] ss:$16 sps:$4 sm:$0xff]  }
  0xbd   :  { %5086 = vmatprep.subr.bf16.mxu1 %v7458_v29  ;;  %v7534_v29 = vld [vmem:[%s11145_s1 + $0xf84] ss:$16 sps:$4 sm:$0xff]  }
  0xbf   :  { %5046 = vmatpush2.bf16.msra.mxu0 %v7453_v30  ;;  %v7529_v30 = vld [vmem:[%s11145_s1 + $0xd80] ss:$16 sps:$4 sm:$0xff]  }
  0xc0   :  { %5087 = vmatpush2.bf16.msra.mxu1 %v7456_v31  ;;  %5097 = vmatprep.subr.bf16.mxu0 %v7465_v32  ;;  %v7532_v31 = vld [vmem:[%s11145_s1 + $0xf80] ss:$16 sps:$4 sm:$0xff]   ;;  %v7537_v32 = vld [vmem:[%s11145_s1 + $0xd64] ss:$16 sps:$4 sm:$0xff]  }
  0xc1   :  { %5138 = vmatprep.subr.bf16.mxu1 %v7468_v33  ;;  %v7540_v33 = vld [vmem:[%s11145_s1 + $0xf64] ss:$16 sps:$4 sm:$0xff]  }
  0xc2   :  { %5048 = vmatmul.mubr.bf16.vlgmr.msra.gmra.mxu0 %v9089_v38 }
  0xc3   :  { %5089 = vmatmul.mubr.bf16.vlgmr.msra.gmra.mxu1 %v9093_v39  ;;  %5098 = vmatpush1.bf16.msra.mxu0 %v7463_v34  ;;  %v7535_v34 = vld [vmem:[%s11145_s1 + $0xd60] ss:$16 sps:$4 sm:$0xff]  }
  0xc4   :  { %5139 = vmatpush1.bf16.msra.mxu1 %v7466_v41  ;;  %5099 = vmatprep.subr.bf16.mxu0 %v7471_v22  ;;  %v7538_v41 = vld [vmem:[%s11145_s1 + $0xf60] ss:$16 sps:$4 sm:$0xff]   ;;  %v7543_v22 = vld [vmem:[%s11145_s1 + $0xd44] ss:$16 sps:$4 sm:$0xff]  }
  0xc5   :  { %5140 = vmatprep.subr.bf16.mxu1 %v7474_v23  ;;  %5129 = vmatprep.mubr.bf16.mxu0 %v9111_v42  ;;  %v7546_v23 = vld [vmem:[%s11145_s1 + $0xf44] ss:$16 sps:$4 sm:$0xff]  }
  0xc6   :  { %5170 = vmatprep.mubr.bf16.mxu1 %v9115_v43 }
  0xc7   :  { %5100 = vmatpush1.bf16.msra.mxu0 %v7469_v44  ;;  %v7541_v44 = vld [vmem:[%s11145_s1 + $0xd40] ss:$16 sps:$4 sm:$0xff]  }
  0xc8   :  { %5141 = vmatpush1.bf16.msra.mxu1 %v7472_v45  ;;  %5101 = vmatprep.subr.bf16.mxu0 %v7477_v46  ;;  %v7544_v45 = vld [vmem:[%s11145_s1 + $0xf40] ss:$16 sps:$4 sm:$0xff]   ;;  %v7549_v46 = vld [vmem:[%s11145_s1 + $0xd24] ss:$16 sps:$4 sm:$0xff]  }
  0xc9   :  { %5142 = vmatprep.subr.bf16.mxu1 %v7480_v48  ;;  %v820_v48 = vlaneseq }
  0xcb   :  { %5102 = vmatpush1.bf16.msra.mxu0 %v7475_v49  ;;  %v7552_v49 = vld [vmem:[%s11145_s1 + $0xf24] ss:$16 sps:$4 sm:$0xff]  }
  0xcc   :  { %5143 = vmatpush1.bf16.msra.mxu1 %v7478_v50  ;;  %5103 = vmatprep.subr.bf16.mxu0 %v7483_v52  ;;  %v7547_v50 = vld [vmem:[%s11145_s1 + $0xd20] ss:$16 sps:$4 sm:$0xff]  }
  0xcd   :  { %5144 = vmatprep.subr.bf16.mxu1 %v7486_v53  ;;  %v7550_v52 = vld [vmem:[%s11145_s1 + $0xf20] ss:$16 sps:$4 sm:$0xff]   ;;  %v7555_v53 = vld [vmem:[%s11145_s1 + $0xd04] ss:$16 sps:$4 sm:$0xff]  }
  0xcf   :  { %5104 = vmatpush1.bf16.msra.mxu0 %v7481_v54  ;;  %v9286_v54 = vshrl.u32 %v820_v48, 7  ;;  %v7587_v48 = vld [vmem:[%s11145_s1 + $0x1060] ss:$16 sps:$4 sm:$0xff]  }
  0xd0   :  { %5145 = vmatpush1.bf16.msra.mxu1 %v7484_v55  ;;  %5105 = vmatprep.subr.bf16.mxu0 %v7489_v56  ;;  %v7558_v55 = vld [vmem:[%s11145_s1 + $0xf04] ss:$16 sps:$4 sm:$0xff]   ;;  %v7553_v56 = vld [vmem:[%s11145_s1 + $0xd00] ss:$16 sps:$4 sm:$0xff]  }
  0xd1   :  { %5146 = vmatprep.subr.bf16.mxu1 %v7492_v57  ;;  %v7556_v57 = vld [vmem:[%s11145_s1 + $0xf00] ss:$16 sps:$4 sm:$0xff]  }
  0xd3   :  { %5106 = vmatpush1.bf16.msra.mxu0 %v7487_v58  ;;  %v818_v58 = vld [vmem:[%s11147_s2] sm:$0xf] }
  0xd4   :  { %5147 = vmatpush1.bf16.msra.mxu1 %v7490_v59  ;;  %5107 = vmatprep.subr.bf16.mxu0 %v7495_v60  ;;  %v822_v59 = vsub.s32 0, %v9286_v54  ;;  %v7565_v60 = vld [vmem:[%s11145_s1 + $0x10e4] ss:$16 sps:$4 sm:$0xff]  }
  0xd5   :  { %5148 = vmatprep.subr.bf16.mxu1 %v7498_v61  ;;  %v7568_v61 = vld [vmem:[%s11145_s1 + $0x12e4] ss:$16 sps:$4 sm:$0xff]  }
  0xd7   :  { %5108 = vmatpush1.bf16.msra.mxu0 %v7493_v62  ;;  %v7563_v62 = vld [vmem:[%s11145_s1 + $0x10e0] ss:$16 sps:$4 sm:$0xff]  }
  0xd8   :  { %5149 = vmatpush1.bf16.msra.mxu1 %v7496_v63  ;;  %5109 = vmatprep.subr.bf16.mxu0 %v7501_v0  ;;  %v826_v63 = vsub.s32 1, %v9286_v54  ;;  %v9313_v0 = vcombine.low %v9085_v35, %v9085_v35  ;;  %v7566_v35 = vld [vmem:[%s11145_s1 + $0x12e0] ss:$16 sps:$4 sm:$0xff]  }
  0xd9   :  { %5150 = vmatprep.subr.bf16.mxu1 %v7504_v1  ;;  %v9317_v1 = vcombine.low %v9098_v40, %v9098_v40  ;;  %v7571_v40 = vld [vmem:[%s11145_s1 + $0x10c4] ss:$16 sps:$4 sm:$0xff]  }
  0xdb   :  { %5110 = vmatpush1.bf16.msra.mxu0 %v7499_v2  ;;  %v9322_v2 = vld [vmem:[%s11146_s0 + $0x40] sm:$0xff] }
  0xdc   :  { %5151 = vmatpush1.bf16.msra.mxu1 %v7502_v3  ;;  %5111 = vmatprep.subr.bf16.mxu0 %v7507_v4  ;;  %v9327_v3 = vld [vmem:[%s11146_s0 + $0x48] sm:$0xff]  ;;  %v823_v4 = vrot.slane %v818_v58, %v822_v59  ;;  %v7602_v59 = vld [vmem:[%s11145_s1 + $0x1220] ss:$16 sps:$4 sm:$0xff]  }
  0xdd   :  { %5152 = vmatprep.subr.bf16.mxu1 %v7510_v5  ;;  %v7574_v5 = vld [vmem:[%s11145_s1 + $0x12c4] ss:$16 sps:$4 sm:$0xff]  }
  0xdf   :  { %5112 = vmatpush1.bf16.msra.mxu0 %v7505_v8  ;;  %v827_v8 = vrot.slane %v818_v58, %v826_v63  ;;  %v7599_v58 = vld [vmem:[%s11145_s1 + $0x1020] ss:$16 sps:$4 sm:$0xff]  }
  0xe0   :  { %5153 = vmatpush1.bf16.msra.mxu1 %v7508_v9  ;;  %5113 = vmatprep.subr.bf16.mxu0 %v7513_v10  ;;  %v9340_v9 = vcombine.high %v9322_v2, %v9322_v2  ;;  %v9344_v10 = vcombine.high %v9327_v3, %v9327_v3  ;;  %v7608_v63 = vld [vmem:[%s11145_s1 + $0x1200] ss:$16 sps:$4 sm:$0xff]  }
  0xe1   :  { %5154 = vmatprep.subr.bf16.mxu1 %v7516_v11 }
  0xe3   :  { %5114 = vmatpush2.bf16.msra.mxu0 %v7511_v12 }
  0xe4   :  { %5155 = vmatpush2.bf16.msra.mxu1 %v7514_v13  ;;  %5115 = vmatprep.subr.bf16.mxu0 %v7519_v14  ;;  %v7569_v13 = vld [vmem:[%s11145_s1 + $0x10c0] ss:$16 sps:$4 sm:$0xff]  }
  0xe5   :  { %5156 = vmatprep.subr.bf16.mxu1 %v7522_v15  ;;  %v7572_v15 = vld [vmem:[%s11145_s1 + $0x12c0] ss:$16 sps:$4 sm:$0xff]  }
  0xe7   :  { %5116 = vmatpush2.bf16.msra.mxu0 %v7517_v18 }
  0xe8   :  { %5157 = vmatpush2.bf16.msra.mxu1 %v7520_v19  ;;  %5117 = vmatprep.subr.bf16.mxu0 %v7525_v20  ;;  %v7577_v20 = vld [vmem:[%s11145_s1 + $0x10a4] ss:$16 sps:$4 sm:$0xff]  }
  0xe9   :  { %5158 = vmatprep.subr.bf16.mxu1 %v7528_v21  ;;  %v7580_v21 = vld [vmem:[%s11145_s1 + $0x12a4] ss:$16 sps:$4 sm:$0xff]  }
  0xeb   :  { %5118 = vmatpush2.bf16.msra.mxu0 %v7523_v26 }
  0xec   :  { %5159 = vmatpush2.bf16.msra.mxu1 %v7526_v27  ;;  %5119 = vmatprep.subr.bf16.mxu0 %v7531_v28 }
  0xed   :  { %5160 = vmatprep.subr.bf16.mxu1 %v7534_v29 }
  0xef   :  { %5120 = vmatpush2.bf16.msra.mxu0 %v7529_v30  ;;  %v7575_v30 = vld [vmem:[%s11145_s1 + $0x10a0] ss:$16 sps:$4 sm:$0xff]  }
  0xf0   :  { %5161 = vmatpush2.bf16.msra.mxu1 %v7532_v31  ;;  %5121 = vmatprep.subr.bf16.mxu0 %v7537_v32  ;;  %v7578_v32 = vld [vmem:[%s11145_s1 + $0x12a0] ss:$16 sps:$4 sm:$0xff]  }
  0xf1   :  { %5162 = vmatprep.subr.bf16.mxu1 %v7540_v33 }
  0xf3   :  { %5122 = vmatpush2.bf16.msra.mxu0 %v7535_v34 }
  0xf4   :  { %5163 = vmatpush2.bf16.msra.mxu1 %v7538_v41  ;;  %5123 = vmatprep.subr.bf16.mxu0 %v7543_v22  ;;  %v7583_v41 = vld [vmem:[%s11145_s1 + $0x1084] ss:$16 sps:$4 sm:$0xff]  }
  0xf5   :  { %5164 = vmatprep.subr.bf16.mxu1 %v7546_v23  ;;  %v7586_v22 = vld [vmem:[%s11145_s1 + $0x1284] ss:$16 sps:$4 sm:$0xff]   ;;  %v7581_v23 = vld [vmem:[%s11145_s1 + $0x1080] ss:$16 sps:$4 sm:$0xff]  }
  0xf7   :  { %5124 = vmatpush2.bf16.msra.mxu0 %v7541_v44  ;;  %v7584_v44 = vld [vmem:[%s11145_s1 + $0x1280] ss:$16 sps:$4 sm:$0xff]  }
  0xf8   :  { %5165 = vmatpush2.bf16.msra.mxu1 %v7544_v45  ;;  %5125 = vmatprep.subr.bf16.mxu0 %v7549_v46  ;;  %v7589_v45 = vld [vmem:[%s11145_s1 + $0x1064] ss:$16 sps:$4 sm:$0xff]  }
  0xf9   :  { %5166 = vmatprep.subr.bf16.mxu1 %v7552_v49  ;;  %v7592_v46 = vld [vmem:[%s11145_s1 + $0x1264] ss:$16 sps:$4 sm:$0xff]   ;;  %v7590_v49 = vld [vmem:[%s11145_s1 + $0x1260] ss:$16 sps:$4 sm:$0xff]  }
  0xfb   :  { %5126 = vmatpush2.bf16.msra.mxu0 %v7547_v50  ;;  %v7595_v50 = vld [vmem:[%s11145_s1 + $0x1044] ss:$16 sps:$4 sm:$0xff]  }
  0xfc   :  { %5167 = vmatpush2.bf16.msra.mxu1 %v7550_v52  ;;  %5127 = vmatprep.subr.bf16.mxu0 %v7555_v53  ;;  %v7598_v52 = vld [vmem:[%s11145_s1 + $0x1244] ss:$16 sps:$4 sm:$0xff]   ;;  %v7593_v53 = vld [vmem:[%s11145_s1 + $0x1040] ss:$16 sps:$4 sm:$0xff]  }
  0xfd   :  { %5168 = vmatprep.subr.bf16.mxu1 %v7558_v55  ;;  %v7596_v55 = vld [vmem:[%s11145_s1 + $0x1240] ss:$16 sps:$4 sm:$0xff]  }
  0xff   :  { %5128 = vmatpush2.bf16.msra.mxu0 %v7553_v56  ;;  %v7601_v56 = vld [vmem:[%s11145_s1 + $0x1024] ss:$16 sps:$4 sm:$0xff]  }
 0x100   :  { %5169 = vmatpush2.bf16.msra.mxu1 %v7556_v57  ;;  %5179 = vmatprep.subr.bf16.mxu0 %v7565_v60  ;;  %v7604_v57 = vld [vmem:[%s11145_s1 + $0x1224] ss:$16 sps:$4 sm:$0xff]  }
 0x101   :  { %5220 = vmatprep.subr.bf16.mxu1 %v7568_v61  ;;  %v7607_v60 = vld [vmem:[%s11145_s1 + $0x1004] ss:$16 sps:$4 sm:$0xff]  }
 0x102   :  { %v4885_v11 = vpop.f32.mrf.mxu0  ;;  %5130 = vmatmul.mubr.bf16.vlgmr.msra.gmra.mxu0 %v9313_v0  ;;  %v7610_v61 = vld [vmem:[%s11145_s1 + $0x1204] ss:$16 sps:$4 sm:$0xff]  }
 0x103   :  { %v4926_v12 = vpop.f32.mrf.mxu1  ;;  %5171 = vmatmul.mubr.bf16.vlgmr.msra.gmra.mxu1 %v9317_v1  ;;  %v4886_v14 = vadd.f32 %v4885_v11, %v823_v4  ;;  %5180 = vmatpush1.bf16.msra.mxu0 %v7563_v62  ;;  %v7605_v62 = vld [vmem:[%s11145_s1 + $0x1000] ss:$16 sps:$4 sm:$0xff]   ;;  %v7613_v4 = vld [vmem:[%s11145_s1 + $0x11e4] ss:$16 sps:$4 sm:$0xff]  }
 0x104   :  { %5221 = vmatpush1.bf16.msra.mxu1 %v7566_v35  ;;  %v4887_v18 = vpop.f32.mrf.mxu0  ;;  %5181 = vmatprep.subr.bf16.mxu0 %v7571_v40  ;;  %v7616_v35 = vld [vmem:[%s11145_s1 + $0x13e4] ss:$16 sps:$4 sm:$0xff]   ;;  %v7611_v40 = vld [vmem:[%s11145_s1 + $0x11e0] ss:$16 sps:$4 sm:$0xff]  }
 0x105   :  { %v4928_v19 = vpop.f32.mrf.mxu1  ;;  %5222 = vmatprep.subr.bf16.mxu1 %v7574_v5  ;;  %v9360_v26 = vadd.f32 %v4926_v12, %v4886_v14  ;;  %v4888_v27 = vadd.f32 %v4887_v18, %v827_v8  ;;  %5211 = vmatprep.mubr.bf16.mxu0 %v9340_v9  ;;  %v7614_v5 = vld [vmem:[%s11145_s1 + $0x13e0] ss:$16 sps:$4 sm:$0xff]   ;;  %v7619_v8 = vld [vmem:[%s11145_s1 + $0x11c4] ss:$16 sps:$4 sm:$0xff]  }
 0x106   :  { %5252 = vmatprep.mubr.bf16.mxu1 %v9344_v10  ;;  %v4889_v28 = vpop.f32.mrf.mxu0  ;;  %v7622_v11 = vld [vmem:[%s11145_s1 + $0x13c4] ss:$16 sps:$4 sm:$0xff]   ;;  %v7617_v12 = vld [vmem:[%s11145_s1 + $0x11c0] ss:$16 sps:$4 sm:$0xff]  }
 0x107   :  { %v4930_v29 = vpop.f32.mrf.mxu1  ;;  %v9367_v31 = vadd.f32 %v4928_v19, %v4888_v27  ;;  %5182 = vmatpush1.bf16.msra.mxu0 %v7569_v13  ;;  %v7620_v13 = vld [vmem:[%s11145_s1 + $0x13c0] ss:$16 sps:$4 sm:$0xff]   ;;  %v7625_v14 = vld [vmem:[%s11145_s1 + $0x11a4] ss:$16 sps:$4 sm:$0xff]  }
 0x108   :  { %5223 = vmatpush1.bf16.msra.mxu1 %v7572_v15  ;;  %v4890_v33 = vpop.f32.mrf.mxu0  ;;  %5183 = vmatprep.subr.bf16.mxu0 %v7577_v20  ;;  %v7628_v15 = vld [vmem:[%s11145_s1 + $0x13a4] ss:$16 sps:$4 sm:$0xff]   ;;  %v7623_v18 = vld [vmem:[%s11145_s1 + $0x11a0] ss:$16 sps:$4 sm:$0xff]  }
 0x109   :  { %v4931_v34 = vpop.f32.mrf.mxu1  ;;  %5224 = vmatprep.subr.bf16.mxu1 %v7580_v21  ;;  %v7626_v19 = vld [vmem:[%s11145_s1 + $0x13a0] ss:$16 sps:$4 sm:$0xff]   ;;  %v7631_v20 = vld [vmem:[%s11145_s1 + $0x1184] ss:$16 sps:$4 sm:$0xff]  }
 0x10a   :  { %v7634_v21 = vld [vmem:[%s11145_s1 + $0x1384] ss:$16 sps:$4 sm:$0xff]   ;;  %v7629_v27 = vld [vmem:[%s11145_s1 + $0x1180] ss:$16 sps:$4 sm:$0xff]  }
 0x10b   :  { %5184 = vmatpush1.bf16.msra.mxu0 %v7575_v30  ;;  %v7632_v28 = vld [vmem:[%s11145_s1 + $0x1380] ss:$16 sps:$4 sm:$0xff]   ;;  %v7637_v29 = vld [vmem:[%s11145_s1 + $0x1164] ss:$16 sps:$4 sm:$0xff]  }
 0x10c   :  { %5225 = vmatpush1.bf16.msra.mxu1 %v7578_v32  ;;  %5185 = vmatprep.subr.bf16.mxu0 %v7583_v41  ;;  %v7640_v30 = vld [vmem:[%s11145_s1 + $0x1364] ss:$16 sps:$4 sm:$0xff]   ;;  %v7635_v32 = vld [vmem:[%s11145_s1 + $0x1160] ss:$16 sps:$4 sm:$0xff]  }
 0x10d   :  { %5226 = vmatprep.subr.bf16.mxu1 %v7586_v22  ;;  %v7638_v33 = vld [vmem:[%s11145_s1 + $0x1360] ss:$16 sps:$4 sm:$0xff]   ;;  %v7643_v34 = vld [vmem:[%s11145_s1 + $0x1144] ss:$16 sps:$4 sm:$0xff]  }
 0x10e   :  { %v7646_v41 = vld [vmem:[%s11145_s1 + $0x1344] ss:$16 sps:$4 sm:$0xff]   ;;  %v7641_v22 = vld [vmem:[%s11145_s1 + $0x1140] ss:$16 sps:$4 sm:$0xff]  }
 0x10f   :  { %5186 = vmatpush1.bf16.msra.mxu0 %v7581_v23  ;;  %v7644_v23 = vld [vmem:[%s11145_s1 + $0x1340] ss:$16 sps:$4 sm:$0xff]  }
 0x110   :  { %5227 = vmatpush1.bf16.msra.mxu1 %v7584_v44  ;;  %5187 = vmatprep.subr.bf16.mxu0 %v7589_v45  ;;  %v7649_v44 = vld [vmem:[%s11145_s1 + $0x1124] ss:$16 sps:$4 sm:$0xff]  }
 0x111   :  { %5228 = vmatprep.subr.bf16.mxu1 %v7592_v46  ;;  %v7652_v45 = vld [vmem:[%s11145_s1 + $0x1324] ss:$16 sps:$4 sm:$0xff]   ;;  %v7647_v46 = vld [vmem:[%s11145_s1 + $0x1120] ss:$16 sps:$4 sm:$0xff]  }
 0x113   :  { %5188 = vmatpush1.bf16.msra.mxu0 %v7587_v48  ;;  %v7650_v48 = vld [vmem:[%s11145_s1 + $0x1320] ss:$16 sps:$4 sm:$0xff]  }
 0x114   :  { %5229 = vmatpush1.bf16.msra.mxu1 %v7590_v49  ;;  %5189 = vmatprep.subr.bf16.mxu0 %v7595_v50  ;;  %v7655_v49 = vld [vmem:[%s11145_s1 + $0x1104] ss:$16 sps:$4 sm:$0xff]  }
 0x115   :  { %5230 = vmatprep.subr.bf16.mxu1 %v7598_v52  ;;  %v7658_v50 = vld [vmem:[%s11145_s1 + $0x1304] ss:$16 sps:$4 sm:$0xff]   ;;  %v7653_v52 = vld [vmem:[%s11145_s1 + $0x1100] ss:$16 sps:$4 sm:$0xff]  }
 0x117   :  { %5190 = vmatpush1.bf16.msra.mxu0 %v7593_v53  ;;  %v7656_v53 = vld [vmem:[%s11145_s1 + $0x1300] ss:$16 sps:$4 sm:$0xff]  }
 0x118   :  { %5231 = vmatpush1.bf16.msra.mxu1 %v7596_v55  ;;  %5191 = vmatprep.subr.bf16.mxu0 %v7601_v56  ;;  %v7665_v55 = vld [vmem:[%s11145_s1 + $0x14e4] ss:$16 sps:$4 sm:$0xff]  }
 0x119   :  { %5232 = vmatprep.subr.bf16.mxu1 %v7604_v57  ;;  %v7668_v56 = vld [vmem:[%s11145_s1 + $0x16e4] ss:$16 sps:$4 sm:$0xff]  }
 0x11a   :  { %v9537_v57 = vld [vmem:[%s11146_s0 + $0x50] sm:$0xff] }
 0x11b   :  { %5192 = vmatpush1.bf16.msra.mxu0 %v7599_v58  ;;  %v9542_v58 = vld [vmem:[%s11146_s0 + $0x58] sm:$0xff] }
 0x11c   :  { %5233 = vmatpush1.bf16.msra.mxu1 %v7602_v59  ;;  %5193 = vmatprep.subr.bf16.mxu0 %v7607_v60  ;;  %v7663_v59 = vld [vmem:[%s11145_s1 + $0x14e0] ss:$16 sps:$4 sm:$0xff]  }
 0x11d   :  { %5234 = vmatprep.subr.bf16.mxu1 %v7610_v61  ;;  %v7666_v60 = vld [vmem:[%s11145_s1 + $0x16e0] ss:$16 sps:$4 sm:$0xff]   ;;  %v9552_v61 = vcombine.low %v9322_v2, %v9322_v2 }
 0x11e   :  { %v7669_v2 = vld [vmem:[%s11145_s1 + $0x14c0] ss:$16 sps:$4 sm:$0xff]  }
 0x11f   :  { %5194 = vmatpush1.bf16.msra.mxu0 %v7605_v62  ;;  %v9556_v62 = vcombine.low %v9327_v3, %v9327_v3  ;;  %v7672_v3 = vld [vmem:[%s11145_s1 + $0x16c0] ss:$16 sps:$4 sm:$0xff]  }
 0x120   :  { %5235 = vmatpush1.bf16.msra.mxu1 %v7608_v63  ;;  %5195 = vmatprep.subr.bf16.mxu0 %v7613_v4  ;;  %v7671_v63 = vld [vmem:[%s11145_s1 + $0x14c4] ss:$16 sps:$4 sm:$0xff]  }
 0x121   :  { %5236 = vmatprep.subr.bf16.mxu1 %v7616_v35  ;;  %v7674_v4 = vld [vmem:[%s11145_s1 + $0x16c4] ss:$16 sps:$4 sm:$0xff]   ;;  %v9572_v35 = vcombine.high %v9537_v57, %v9537_v57 }
 0x123   :  { %5196 = vmatpush2.bf16.msra.mxu0 %v7611_v40  ;;  %v9576_v40 = vcombine.high %v9542_v58, %v9542_v58 }
 0x124   :  { %5237 = vmatpush2.bf16.msra.mxu1 %v7614_v5  ;;  %5197 = vmatprep.subr.bf16.mxu0 %v7619_v8 }
 0x125   :  { %5238 = vmatprep.subr.bf16.mxu1 %v7622_v11 }
 0x127   :  { %5198 = vmatpush2.bf16.msra.mxu0 %v7617_v12 }
 0x128   :  { %5239 = vmatpush2.bf16.msra.mxu1 %v7620_v13  ;;  %5199 = vmatprep.subr.bf16.mxu0 %v7625_v14  ;;  %v7677_v14 = vld [vmem:[%s11145_s1 + $0x14a4] ss:$16 sps:$4 sm:$0xff]  }
 0x129   :  { %5240 = vmatprep.subr.bf16.mxu1 %v7628_v15  ;;  %v7680_v15 = vld [vmem:[%s11145_s1 + $0x16a4] ss:$16 sps:$4 sm:$0xff]  }
 0x12b   :  { %5200 = vmatpush2.bf16.msra.mxu0 %v7623_v18 }
 0x12c   :  { %5241 = vmatpush2.bf16.msra.mxu1 %v7626_v19  ;;  %5201 = vmatprep.subr.bf16.mxu0 %v7631_v20  ;;  %v7678_v20 = vld [vmem:[%s11145_s1 + $0x16a0] ss:$16 sps:$4 sm:$0xff]  }
 0x12d   :  { %5242 = vmatprep.subr.bf16.mxu1 %v7634_v21 }
 0x12f   :  { %5202 = vmatpush2.bf16.msra.mxu0 %v7629_v27 }
 0x130   :  { %5243 = vmatpush2.bf16.msra.mxu1 %v7632_v28  ;;  %5203 = vmatprep.subr.bf16.mxu0 %v7637_v29 }
 0x131   :  { %5244 = vmatprep.subr.bf16.mxu1 %v7640_v30  ;;  %v7683_v30 = vld [vmem:[%s11145_s1 + $0x1484] ss:$16 sps:$4 sm:$0xff]  }
 0x133   :  { %5204 = vmatpush2.bf16.msra.mxu0 %v7635_v32  ;;  %v7686_v32 = vld [vmem:[%s11145_s1 + $0x1684] ss:$16 sps:$4 sm:$0xff]  }
 0x134   :  { %5245 = vmatpush2.bf16.msra.mxu1 %v7638_v33  ;;  %5205 = vmatprep.subr.bf16.mxu0 %v7643_v34  ;;  %v7681_v33 = vld [vmem:[%s11145_s1 + $0x1480] ss:$16 sps:$4 sm:$0xff]  }
 0x135   :  { %5246 = vmatprep.subr.bf16.mxu1 %v7646_v41  ;;  %v7684_v34 = vld [vmem:[%s11145_s1 + $0x1680] ss:$16 sps:$4 sm:$0xff]   ;;  %v7689_v41 = vld [vmem:[%s11145_s1 + $0x1464] ss:$16 sps:$4 sm:$0xff]  }
 0x137   :  { %5206 = vmatpush2.bf16.msra.mxu0 %v7641_v22  ;;  %v7692_v22 = vld [vmem:[%s11145_s1 + $0x1664] ss:$16 sps:$4 sm:$0xff]  }
 0x138   :  { %5247 = vmatpush2.bf16.msra.mxu1 %v7644_v23  ;;  %5207 = vmatprep.subr.bf16.mxu0 %v7649_v44  ;;  %v7687_v23 = vld [vmem:[%s11145_s1 + $0x1460] ss:$16 sps:$4 sm:$0xff]  }
 0x139   :  { %5248 = vmatprep.subr.bf16.mxu1 %v7652_v45  ;;  %v7690_v44 = vld [vmem:[%s11145_s1 + $0x1660] ss:$16 sps:$4 sm:$0xff]   ;;  %v7695_v45 = vld [vmem:[%s11145_s1 + $0x1444] ss:$16 sps:$4 sm:$0xff]  }
 0x13b   :  { %5208 = vmatpush2.bf16.msra.mxu0 %v7647_v46  ;;  %v7698_v46 = vld [vmem:[%s11145_s1 + $0x1644] ss:$16 sps:$4 sm:$0xff]  }
 0x13c   :  { %5249 = vmatpush2.bf16.msra.mxu1 %v7650_v48  ;;  %5209 = vmatprep.subr.bf16.mxu0 %v7655_v49  ;;  %v7693_v48 = vld [vmem:[%s11145_s1 + $0x1440] ss:$16 sps:$4 sm:$0xff]  }
 0x13d   :  { %5250 = vmatprep.subr.bf16.mxu1 %v7658_v50  ;;  %v7696_v49 = vld [vmem:[%s11145_s1 + $0x1640] ss:$16 sps:$4 sm:$0xff]   ;;  %v7701_v50 = vld [vmem:[%s11145_s1 + $0x1424] ss:$16 sps:$4 sm:$0xff]  }
 0x13f   :  { %5210 = vmatpush2.bf16.msra.mxu0 %v7653_v52  ;;  %v7704_v52 = vld [vmem:[%s11145_s1 + $0x1624] ss:$16 sps:$4 sm:$0xff]  }
 0x140   :  { %5251 = vmatpush2.bf16.msra.mxu1 %v7656_v53  ;;  %5261 = vmatprep.subr.bf16.mxu0 %v7665_v55  ;;  %v7699_v53 = vld [vmem:[%s11145_s1 + $0x1420] ss:$16 sps:$4 sm:$0xff]  }
 0x141   :  { %5302 = vmatprep.subr.bf16.mxu1 %v7668_v56  ;;  %v7702_v55 = vld [vmem:[%s11145_s1 + $0x1620] ss:$16 sps:$4 sm:$0xff]   ;;  %v7707_v56 = vld [vmem:[%s11145_s1 + $0x1404] ss:$16 sps:$4 sm:$0xff]  }
 0x142   :  { %v4967_v5 = vpop.f32.mrf.mxu0  ;;  %5212 = vmatmul.mubr.bf16.vlgmr.msra.gmra.mxu0 %v9552_v61 }
 0x143   :  { %v5008_v8 = vpop.f32.mrf.mxu1  ;;  %5253 = vmatmul.mubr.bf16.vlgmr.msra.gmra.mxu1 %v9556_v62  ;;  %v4968_v11 = vadd.f32 %v4967_v5, %v9360_v26  ;;  %5262 = vmatpush1.bf16.msra.mxu0 %v7663_v59  ;;  %v7675_v26 = vld [vmem:[%s11145_s1 + $0x14a0] ss:$16 sps:$4 sm:$0xff]   ;;  %v7710_v59 = vld [vmem:[%s11145_s1 + $0x1604] ss:$16 sps:$4 sm:$0xff]  }
 0x144   :  { %5303 = vmatpush1.bf16.msra.mxu1 %v7666_v60  ;;  %v4969_v12 = vpop.f32.mrf.mxu0  ;;  %5263 = vmatprep.subr.bf16.mxu0 %v7671_v63  ;;  %v7705_v60 = vld [vmem:[%s11145_s1 + $0x1400] ss:$16 sps:$4 sm:$0xff]  }
 0x145   :  { %v5010_v13 = vpop.f32.mrf.mxu1  ;;  %5304 = vmatprep.subr.bf16.mxu1 %v7674_v4  ;;  %v9587_v18 = vadd.f32 %v5008_v8, %v4968_v11  ;;  %v4970_v19 = vadd.f32 %v4969_v12, %v9367_v31  ;;  %5293 = vmatprep.mubr.bf16.mxu0 %v9572_v35  ;;  %v7708_v63 = vld [vmem:[%s11145_s1 + $0x1600] ss:$16 sps:$4 sm:$0xff]   ;;  %v7713_v4 = vld [vmem:[%s11145_s1 + $0x15e4] ss:$16 sps:$4 sm:$0xff]  }
 0x146   :  { %5334 = vmatprep.mubr.bf16.mxu1 %v9576_v40  ;;  %v4971_v21 = vpop.f32.mrf.mxu0  ;;  %v7714_v5 = vld [vmem:[%s11145_s1 + $0x17e0] ss:$16 sps:$4 sm:$0xff]   ;;  %v7719_v8 = vld [vmem:[%s11145_s1 + $0x15c4] ss:$16 sps:$4 sm:$0xff]  }
 0x147   :  { %v5012_v27 = vpop.f32.mrf.mxu1  ;;  %v9598_v28 = vadd.f32 %v5010_v13, %v4970_v19  ;;  %5264 = vmatpush1.bf16.msra.mxu0 %v7669_v2  ;;  %v7716_v2 = vld [vmem:[%s11145_s1 + $0x17e4] ss:$16 sps:$4 sm:$0xff]   ;;  %v7717_v12 = vld [vmem:[%s11145_s1 + $0x15c0] ss:$16 sps:$4 sm:$0xff]  }
 0x148   :  { %5305 = vmatpush1.bf16.msra.mxu1 %v7672_v3  ;;  %v4972_v29 = vpop.f32.mrf.mxu0  ;;  %5265 = vmatprep.subr.bf16.mxu0 %v7677_v14  ;;  %v7711_v3 = vld [vmem:[%s11145_s1 + $0x15e0] ss:$16 sps:$4 sm:$0xff]   ;;  %v7722_v11 = vld [vmem:[%s11145_s1 + $0x17c4] ss:$16 sps:$4 sm:$0xff]  }
 0x149   :  { %v5013_v31 = vpop.f32.mrf.mxu1  ;;  %5306 = vmatprep.subr.bf16.mxu1 %v7680_v15  ;;  %v7720_v13 = vld [vmem:[%s11145_s1 + $0x17c0] ss:$16 sps:$4 sm:$0xff]   ;;  %v7725_v14 = vld [vmem:[%s11145_s1 + $0x15a4] ss:$16 sps:$4 sm:$0xff]  }
 0x14a   :  { %v7728_v15 = vld [vmem:[%s11145_s1 + $0x17a4] ss:$16 sps:$4 sm:$0xff]   ;;  %v7723_v19 = vld [vmem:[%s11145_s1 + $0x15a0] ss:$16 sps:$4 sm:$0xff]  }
 0x14b   :  { %5266 = vmatpush1.bf16.msra.mxu0 %v7675_v26  ;;  %v7726_v26 = vld [vmem:[%s11145_s1 + $0x17a0] ss:$16 sps:$4 sm:$0xff]   ;;  %v7734_v21 = vld [vmem:[%s11145_s1 + $0x1784] ss:$16 sps:$4 sm:$0xff]  }
 0x14c   :  { %5307 = vmatpush1.bf16.msra.mxu1 %v7678_v20  ;;  %5267 = vmatprep.subr.bf16.mxu0 %v7683_v30  ;;  %v7731_v20 = vld [vmem:[%s11145_s1 + $0x1584] ss:$16 sps:$4 sm:$0xff]   ;;  %v7729_v27 = vld [vmem:[%s11145_s1 + $0x1580] ss:$16 sps:$4 sm:$0xff]  }
 0x14d   :  { %5308 = vmatprep.subr.bf16.mxu1 %v7686_v32  ;;  %v7732_v29 = vld [vmem:[%s11145_s1 + $0x1780] ss:$16 sps:$4 sm:$0xff]   ;;  %v7737_v31 = vld [vmem:[%s11145_s1 + $0x1564] ss:$16 sps:$4 sm:$0xff]  }
 0x14e   :  { %v7740_v30 = vld [vmem:[%s11145_s1 + $0x1764] ss:$16 sps:$4 sm:$0xff]   ;;  %v7735_v32 = vld [vmem:[%s11145_s1 + $0x1560] ss:$16 sps:$4 sm:$0xff]  }
 0x14f   :  { %5268 = vmatpush1.bf16.msra.mxu0 %v7681_v33  ;;  %v7738_v33 = vld [vmem:[%s11145_s1 + $0x1760] ss:$16 sps:$4 sm:$0xff]  }
 0x150   :  { %5309 = vmatpush1.bf16.msra.mxu1 %v7684_v34  ;;  %5269 = vmatprep.subr.bf16.mxu0 %v7689_v41  ;;  %v7743_v34 = vld [vmem:[%s11145_s1 + $0x1544] ss:$16 sps:$4 sm:$0xff]  }
 0x151   :  { %5310 = vmatprep.subr.bf16.mxu1 %v7692_v22  ;;  %v7746_v41 = vld [vmem:[%s11145_s1 + $0x1744] ss:$16 sps:$4 sm:$0xff]   ;;  %v7741_v22 = vld [vmem:[%s11145_s1 + $0x1540] ss:$16 sps:$4 sm:$0xff]  }
 0x153   :  { %5270 = vmatpush1.bf16.msra.mxu0 %v7687_v23  ;;  %v7744_v23 = vld [vmem:[%s11145_s1 + $0x1740] ss:$16 sps:$4 sm:$0xff]  }
 0x154   :  { %5311 = vmatpush1.bf16.msra.mxu1 %v7690_v44  ;;  %5271 = vmatprep.subr.bf16.mxu0 %v7695_v45  ;;  %v7749_v44 = vld [vmem:[%s11145_s1 + $0x1524] ss:$16 sps:$4 sm:$0xff]  }
 0x155   :  { %5312 = vmatprep.subr.bf16.mxu1 %v7698_v46  ;;  %v7752_v45 = vld [vmem:[%s11145_s1 + $0x1724] ss:$16 sps:$4 sm:$0xff]   ;;  %v7747_v46 = vld [vmem:[%s11145_s1 + $0x1520] ss:$16 sps:$4 sm:$0xff]  }
 0x157   :  { %5272 = vmatpush1.bf16.msra.mxu0 %v7693_v48  ;;  %v7750_v48 = vld [vmem:[%s11145_s1 + $0x1720] ss:$16 sps:$4 sm:$0xff]  }
 0x158   :  { %5313 = vmatpush1.bf16.msra.mxu1 %v7696_v49  ;;  %5273 = vmatprep.subr.bf16.mxu0 %v7701_v50  ;;  %v7755_v49 = vld [vmem:[%s11145_s1 + $0x1504] ss:$16 sps:$4 sm:$0xff]  }
 0x159   :  { %5314 = vmatprep.subr.bf16.mxu1 %v7704_v52  ;;  %v7758_v50 = vld [vmem:[%s11145_s1 + $0x1704] ss:$16 sps:$4 sm:$0xff]   ;;  %v7753_v52 = vld [vmem:[%s11145_s1 + $0x1500] ss:$16 sps:$4 sm:$0xff]  }
 0x15b   :  { %5274 = vmatpush1.bf16.msra.mxu0 %v7699_v53  ;;  %v7756_v53 = vld [vmem:[%s11145_s1 + $0x1700] ss:$16 sps:$4 sm:$0xff]  }
 0x15c   :  { %5315 = vmatpush1.bf16.msra.mxu1 %v7702_v55  ;;  %5275 = vmatprep.subr.bf16.mxu0 %v7707_v56  ;;  %v7765_v55 = vld [vmem:[%s11145_s1 + $0x1864] ss:$16 sps:$4 sm:$0xff]   ;;  %v7768_v56 = vld [vmem:[%s11145_s1 + $0xec] ss:$16 sps:$4 sm:$0xff]  }
 0x15d   :  { %5316 = vmatprep.subr.bf16.mxu1 %v7710_v59  ;;  %v7763_v59 = vld [vmem:[%s11145_s1 + $0x1860] ss:$16 sps:$4 sm:$0xff]  }
 0x15f   :  { %5276 = vmatpush1.bf16.msra.mxu0 %v7705_v60  ;;  %v7766_v60 = vld [vmem:[%s11145_s1 + $0xe8] ss:$16 sps:$4 sm:$0xff]  }
 0x160   :  { %5317 = vmatpush1.bf16.msra.mxu1 %v7708_v63  ;;  %5277 = vmatprep.subr.bf16.mxu0 %v7713_v4  ;;  %v9770_v63 = vcombine.low %v9537_v57, %v9537_v57  ;;  %v9774_v4 = vcombine.low %v9542_v58, %v9542_v58  ;;  %v7769_v57 = vld [vmem:[%s11145_s1 + $0x1840] ss:$16 sps:$4 sm:$0xff]   ;;  %v7772_v58 = vld [vmem:[%s11145_s1 + $0xc8] ss:$16 sps:$4 sm:$0xff]  }
 0x161   :  { %5318 = vmatprep.subr.bf16.mxu1 %v7716_v2  ;;  %v7771_v2 = vld [vmem:[%s11145_s1 + $0x1844] ss:$16 sps:$4 sm:$0xff]  }
 0x163   :  { %5278 = vmatpush2.bf16.msra.mxu0 %v7711_v3  ;;  %v7774_v3 = vld [vmem:[%s11145_s1 + $0xcc] ss:$16 sps:$4 sm:$0xff]  }
 0x164   :  { %5319 = vmatpush2.bf16.msra.mxu1 %v7714_v5  ;;  %5279 = vmatprep.subr.bf16.mxu0 %v7719_v8 }
 0x165   :  { %5320 = vmatprep.subr.bf16.mxu1 %v7722_v11 }
 0x167   :  { %5280 = vmatpush2.bf16.msra.mxu0 %v7717_v12 }
 0x168   :  { %5321 = vmatpush2.bf16.msra.mxu1 %v7720_v13  ;;  %5281 = vmatprep.subr.bf16.mxu0 %v7725_v14  ;;  %v7777_v14 = vld [vmem:[%s11145_s1 + $0x1824] ss:$16 sps:$4 sm:$0xff]  }
 0x169   :  { %5322 = vmatprep.subr.bf16.mxu1 %v7728_v15  ;;  %v7780_v15 = vld [vmem:[%s11145_s1 + $0xac] ss:$16 sps:$4 sm:$0xff]  }
 0x16b   :  { %5282 = vmatpush2.bf16.msra.mxu0 %v7723_v19 }
 0x16c   :  { %5323 = vmatpush2.bf16.msra.mxu1 %v7726_v26  ;;  %5283 = vmatprep.subr.bf16.mxu0 %v7731_v20  ;;  %v7778_v20 = vld [vmem:[%s11145_s1 + $0xa8] ss:$16 sps:$4 sm:$0xff]  }
 0x16d   :  { %5324 = vmatprep.subr.bf16.mxu1 %v7734_v21  ;;  %v8398_v21 = vmov 0  }
 0x16f   :  { %5284 = vmatpush2.bf16.msra.mxu0 %v7729_v27 }
 0x170   :  { %5325 = vmatpush2.bf16.msra.mxu1 %v7732_v29  ;;  %5285 = vmatprep.subr.bf16.mxu0 %v7737_v31 }
 0x171   :  { %5326 = vmatprep.subr.bf16.mxu1 %v7740_v30 }
 0x173   :  { %5286 = vmatpush2.bf16.msra.mxu0 %v7735_v32  ;;  %v7783_v32 = vld [vmem:[%s11145_s1 + $0x1804] ss:$16 sps:$4 sm:$0xff]  }
 0x174   :  { %5327 = vmatpush2.bf16.msra.mxu1 %v7738_v33  ;;  %5287 = vmatprep.subr.bf16.mxu0 %v7743_v34  ;;  %v7786_v33 = vld [vmem:[%s11145_s1 + $0x8c] ss:$16 sps:$4 sm:$0xff]   ;;  %v7784_v34 = vld [vmem:[%s11145_s1 + $0x88] ss:$16 sps:$4 sm:$0xff]  }
 0x175   :  { %5328 = vmatprep.subr.bf16.mxu1 %v7746_v41  ;;  %v7787_v41 = vld [vmem:[%s11146_s0 + $0x60] ss:$0 sps:$4 sm:$0xff]  }
 0x177   :  { %5288 = vmatpush2.bf16.msra.mxu0 %v7741_v22  ;;  %v7790_v22 = vld [vmem:[%s11145_s1 + $0x6c] ss:$16 sps:$4 sm:$0xff]  }
 0x178   :  { %5329 = vmatpush2.bf16.msra.mxu1 %v7744_v23  ;;  %5289 = vmatprep.subr.bf16.mxu0 %v7749_v44  ;;  %v7793_v23 = vld [vmem:[%s11145_s1 + $0x2ec] ss:$16 sps:$4 sm:$0xff]   ;;  %v7788_v44 = vld [vmem:[%s11145_s1 + $0x68] ss:$16 sps:$4 sm:$0xff]  }
 0x179   :  { %5330 = vmatprep.subr.bf16.mxu1 %v7752_v45  ;;  %v7791_v45 = vld [vmem:[%s11145_s1 + $0x2e8] ss:$16 sps:$4 sm:$0xff]  }
 0x17b   :  { %5290 = vmatpush2.bf16.msra.mxu0 %v7747_v46  ;;  %v7796_v46 = vld [vmem:[%s11145_s1 + $0x4c] ss:$16 sps:$4 sm:$0xff]  }
 0x17c   :  { %5331 = vmatpush2.bf16.msra.mxu1 %v7750_v48  ;;  %5291 = vmatprep.subr.bf16.mxu0 %v7755_v49  ;;  %v7799_v48 = vld [vmem:[%s11145_s1 + $0x2cc] ss:$16 sps:$4 sm:$0xff]   ;;  %v7794_v49 = vld [vmem:[%s11145_s1 + $0x48] ss:$16 sps:$4 sm:$0xff]  }
 0x17d   :  { %5332 = vmatprep.subr.bf16.mxu1 %v7758_v50  ;;  %v7797_v50 = vld [vmem:[%s11145_s1 + $0x2c8] ss:$16 sps:$4 sm:$0xff]  }
 0x17f   :  { %5292 = vmatpush2.bf16.msra.mxu0 %v7753_v52  ;;  %v7802_v52 = vld [vmem:[%s11145_s1 + $0x2c] ss:$16 sps:$4 sm:$0xff]  }
 0x180   :  { %5333 = vmatpush2.bf16.msra.mxu1 %v7756_v53  ;;  %5351 = vmatprep.subr.bf16.mxu0 %v7765_v55  ;;  %v7805_v53 = vld [vmem:[%s11145_s1 + $0x2ac] ss:$16 sps:$4 sm:$0xff]   ;;  %v7800_v55 = vld [vmem:[%s11145_s1 + $0x28] ss:$16 sps:$4 sm:$0xff]  }
 0x181   :  { %5384 = vmatprep.subr.bf16.mxu1 %v7768_v56  ;;  %v7803_v56 = vld [vmem:[%s11145_s1 + $0x2a8] ss:$16 sps:$4 sm:$0xff]  }
 0x182   :  { %v5049_v5 = vpop.f32.mrf.mxu0  ;;  %5294 = vmatmul.mubr.bf16.vlgmr.msra.gmra.mxu0 %v9770_v63 }
 0x183   :  { %v5090_v8 = vpop.f32.mrf.mxu1  ;;  %5335 = vmatmul.mubr.bf16.vlgmr.msra.gmra.mxu1 %v9774_v4  ;;  %v5050_v11 = vadd.f32 %v5049_v5, %v9587_v18  ;;  %5352 = vmatpush1.bf16.msra.mxu0 %v7763_v59  ;;  %v7775_v18 = vld [vmem:[%s11145_s1 + $0x1820] ss:$16 sps:$4 sm:$0xff]   ;;  %v7808_v59 = vld [vmem:[%s11145_s1 + $0xc] ss:$16 sps:$4 sm:$0xff]   ;;  %v7815_v5 = vld [vmem:[%s11145_s1 + $0x268] ss:$16 sps:$4 sm:$0xff]  }
 0x184   :  { %5385 = vmatpush1.bf16.msra.mxu1 %v7766_v60  ;;  %v5051_v12 = vpop.f32.mrf.mxu0  ;;  %5353 = vmatprep.subr.bf16.mxu0 %v7771_v2  ;;  %v7806_v60 = vld [vmem:[%s11145_s1 + $0x8] ss:$16 sps:$4 sm:$0xff]  }
 0x185   :  { %v5092_v13 = vpop.f32.mrf.mxu1  ;;  %5386 = vmatprep.subr.bf16.mxu1 %v7774_v3  ;;  %v9797_v19 = vadd.f32 %v5090_v8, %v5050_v11  ;;  %v5052_v26 = vadd.f32 %v5051_v12, %v9598_v28  ;;  %5375 = vmatprep.mubr.bf16.mxu0 %v8398_v21  ;;  %v7809_v2 = vld [vmem:[%s11145_s1 + $0x288] ss:$16 sps:$4 sm:$0xff]   ;;  %v7814_v3 = vld [vmem:[%s11145_s1 + $0x1ec] ss:$16 sps:$4 sm:$0xff]  }
 0x186   :  { %5416 = vmatprep.mubr.bf16.mxu1 %v8570_v47  ;;  %v5053_v27 = vpop.f32.mrf.mxu0  ;;  %v7781_v47 = vld [vmem:[%s11145_s1 + $0x1800] ss:$16 sps:$4 sm:$0xff]   ;;  %v7820_v8 = vld [vmem:[%s11145_s1 + $0x1cc] ss:$16 sps:$4 sm:$0xff]   ;;  %v7818_v12 = vld [vmem:[%s11145_s1 + $0x1c8] ss:$16 sps:$4 sm:$0xff]  }
 0x187   :  { %v5094_v29 = vpop.f32.mrf.mxu1  ;;  %v9808_v31 = vadd.f32 %v5092_v13, %v5052_v26  ;;  %5354 = vmatpush1.bf16.msra.mxu0 %v7769_v57  ;;  %v7817_v57 = vld [vmem:[%s11145_s1 + $0x26c] ss:$16 sps:$4 sm:$0xff]   ;;  %v7821_v13 = vld [vmem:[%s11145_s1 + $0x248] ss:$16 sps:$4 sm:$0xff]  }
 0x188   :  { %5387 = vmatpush1.bf16.msra.mxu1 %v7772_v58  ;;  %v5054_v28 = vpop.f32.mrf.mxu0  ;;  %5355 = vmatprep.subr.bf16.mxu0 %v7777_v14  ;;  %v7812_v58 = vld [vmem:[%s11145_s1 + $0x1e8] ss:$16 sps:$4 sm:$0xff]   ;;  %v7823_v11 = vld [vmem:[%s11145_s1 + $0x24c] ss:$16 sps:$4 sm:$0xff]  }
 0x189   :  { %v5095_v30 = vpop.f32.mrf.mxu1  ;;  %5388 = vmatprep.subr.bf16.mxu1 %v7780_v15  ;;  %v7826_v14 = vld [vmem:[%s11145_s1 + $0x1ac] ss:$16 sps:$4 sm:$0xff]   ;;  %v7824_v26 = vld [vmem:[%s11145_s1 + $0x1a8] ss:$16 sps:$4 sm:$0xff]  }
 0x18a   :  { %v7829_v15 = vld [vmem:[%s11145_s1 + $0x22c] ss:$16 sps:$4 sm:$0xff]   ;;  %v7830_v29 = vld [vmem:[%s11145_s1 + $0x188] ss:$16 sps:$4 sm:$0xff]  }
 0x18b   :  { %5356 = vmatpush1.bf16.msra.mxu0 %v7775_v18  ;;  %v7827_v18 = vld [vmem:[%s11145_s1 + $0x228] ss:$16 sps:$4 sm:$0xff]   ;;  %v7835_v27 = vld [vmem:[%s11145_s1 + $0x20c] ss:$16 sps:$4 sm:$0xff]  }
 0x18c   :  { %5389 = vmatpush1.bf16.msra.mxu1 %v7778_v20  ;;  %5357 = vmatprep.subr.bf16.mxu0 %v7783_v32  ;;  %v7832_v20 = vld [vmem:[%s11145_s1 + $0x18c] ss:$16 sps:$4 sm:$0xff]   ;;  %v7833_v28 = vld [vmem:[%s11145_s1 + $0x208] ss:$16 sps:$4 sm:$0xff]  }
 0x18d   :  { %5390 = vmatprep.subr.bf16.mxu1 %v7786_v33  ;;  %v7838_v30 = vld [vmem:[%s11145_s1 + $0x16c] ss:$16 sps:$4 sm:$0xff]   ;;  %v7836_v33 = vld [vmem:[%s11145_s1 + $0x168] ss:$16 sps:$4 sm:$0xff]  }
 0x18e   :  { %v7841_v32 = vld [vmem:[%s11145_s1 + $0x3ec] ss:$16 sps:$4 sm:$0xff]  }
 0x18f   :  { %5358 = vmatpush1.bf16.msra.mxu0 %v7781_v47  ;;  %v7839_v47 = vld [vmem:[%s11145_s1 + $0x3e8] ss:$16 sps:$4 sm:$0xff]  }
 0x190   :  { %5391 = vmatpush1.bf16.msra.mxu1 %v7784_v34  ;;  %5425 = vmatprep.subr.bf16.mxu0 %v7793_v23  ;;  %v7844_v34 = vld [vmem:[%s11145_s1 + $0x14c] ss:$16 sps:$4 sm:$0xff]   ;;  %v7845_v23 = vld [vmem:[%s11145_s1 + $0x3c8] ss:$16 sps:$4 sm:$0xff]  }
 0x191   :  { %5392 = vmatprep.subr.bf16.mxu1 %v7790_v22  ;;  %v7842_v22 = vld [vmem:[%s11145_s1 + $0x148] ss:$16 sps:$4 sm:$0xff]  }
 0x192   :  { %7083 = vmatmul.mubr.msk.bf16.vlgmr.msra.gmra.mxu0 %vm4847_vm0, %v7787_v41  ;;  %v7847_v41 = vld [vmem:[%s11145_s1 + $0x3cc] ss:$16 sps:$4 sm:$0xff]  }
 0x193   :  { %5426 = vmatpush1.bf16.msra.mxu0 %v7791_v45  ;;  %5457 = vmatprep.mubr.bf16.mxu0 %v8581_v51  ;;  %v7811_v51 = vld [vmem:[%s11145_s1 + $0x28c] ss:$16 sps:$4 sm:$0xff]  }
 0x194   :  { %5393 = vmatpush1.bf16.msra.mxu1 %v7788_v44  ;;  %5427 = vmatprep.subr.bf16.mxu0 %v7799_v48  ;;  %v7850_v44 = vld [vmem:[%s11145_s1 + $0x12c] ss:$16 sps:$4 sm:$0xff]   ;;  %v7851_v48 = vld [vmem:[%s11145_s1 + $0x3a8] ss:$16 sps:$4 sm:$0xff]  }
 0x195   :  { %5394 = vmatprep.subr.bf16.mxu1 %v7796_v46  ;;  %v7853_v45 = vld [vmem:[%s11145_s1 + $0x3ac] ss:$16 sps:$4 sm:$0xff]   ;;  %v7848_v46 = vld [vmem:[%s11145_s1 + $0x128] ss:$16 sps:$4 sm:$0xff]  }
 0x197   :  { %5428 = vmatpush1.bf16.msra.mxu0 %v7797_v50  ;;  %v7859_v50 = vld [vmem:[%s11145_s1 + $0x38c] ss:$16 sps:$4 sm:$0xff]  }
 0x198   :  { %5395 = vmatpush1.bf16.msra.mxu1 %v7794_v49  ;;  %5429 = vmatprep.subr.bf16.mxu0 %v7805_v53  ;;  %v7856_v49 = vld [vmem:[%s11145_s1 + $0x10c] ss:$16 sps:$4 sm:$0xff]   ;;  %v7857_v53 = vld [vmem:[%s11145_s1 + $0x388] ss:$16 sps:$4 sm:$0xff]  }
 0x199   :  { %5396 = vmatprep.subr.bf16.mxu1 %v7802_v52  ;;  %v7854_v52 = vld [vmem:[%s11145_s1 + $0x108] ss:$16 sps:$4 sm:$0xff]  }
 0x19b   :  { %5430 = vmatpush1.bf16.msra.mxu0 %v7803_v56  ;;  %v7865_v56 = vld [vmem:[%s11145_s1 + $0x4ec] ss:$16 sps:$4 sm:$0xff]  }
 0x19c   :  { %5397 = vmatpush1.bf16.msra.mxu1 %v7800_v55  ;;  %5431 = vmatprep.subr.bf16.mxu0 %v7811_v51  ;;  %v7862_v55 = vld [vmem:[%s11145_s1 + $0x36c] ss:$16 sps:$4 sm:$0xff]   ;;  %v7863_v51 = vld [vmem:[%s11145_s1 + $0x4e8] ss:$16 sps:$4 sm:$0xff]  }
 0x19d   :  { %5398 = vmatprep.subr.bf16.mxu1 %v7808_v59  ;;  %v7860_v59 = vld [vmem:[%s11145_s1 + $0x368] ss:$16 sps:$4 sm:$0xff]  }
 0x19f   :  { %5432 = vmatpush1.bf16.msra.mxu0 %v7809_v2  ;;  %v7871_v2 = vld [vmem:[%s11145_s1 + $0x4cc] ss:$16 sps:$4 sm:$0xff]  }
 0x1a0   :  { %5399 = vmatpush1.bf16.msra.mxu1 %v7806_v60  ;;  %5433 = vmatprep.subr.bf16.mxu0 %v7817_v57  ;;  %v7868_v60 = vld [vmem:[%s11145_s1 + $0x34c] ss:$16 sps:$4 sm:$0xff]   ;;  %v7869_v57 = vld [vmem:[%s11145_s1 + $0x4c8] ss:$16 sps:$4 sm:$0xff]  }
 0x1a1   :  { %5400 = vmatprep.subr.bf16.mxu1 %v7814_v3  ;;  %v7866_v3 = vld [vmem:[%s11145_s1 + $0x348] ss:$16 sps:$4 sm:$0xff]  }
 0x1a3   :  { %5434 = vmatpush1.bf16.msra.mxu0 %v7815_v5 }
 0x1a4   :  { %5401 = vmatpush2.bf16.msra.mxu1 %v7812_v58  ;;  %5435 = vmatprep.subr.bf16.mxu0 %v7823_v11 }
 0x1a5   :  { %5402 = vmatprep.subr.bf16.mxu1 %v7820_v8 }
 0x1a7   :  { %5436 = vmatpush1.bf16.msra.mxu0 %v7821_v13  ;;  %v7874_v13 = vld [vmem:[%s11145_s1 + $0x32c] ss:$16 sps:$4 sm:$0xff]  }
 0x1a8   :  { %5403 = vmatpush2.bf16.msra.mxu1 %v7818_v12  ;;  %5437 = vmatprep.subr.bf16.mxu0 %v7829_v15 }
 0x1a9   :  { %5404 = vmatprep.subr.bf16.mxu1 %v7826_v14  ;;  %v7877_v14 = vld [vmem:[%s11145_s1 + $0x4ac] ss:$16 sps:$4 sm:$0xff]  }
 0x1ab   :  { %5438 = vmatpush1.bf16.msra.mxu0 %v7827_v18 }
 0x1ac   :  { %5405 = vmatpush2.bf16.msra.mxu1 %v7824_v26  ;;  %5439 = vmatprep.subr.bf16.mxu0 %v7835_v27  ;;  %v7875_v26 = vld [vmem:[%s11145_s1 + $0x4a8] ss:$16 sps:$4 sm:$0xff]  }
 0x1ad   :  { %5406 = vmatprep.subr.bf16.mxu1 %v7832_v20 }
 0x1af   :  { %5440 = vmatpush1.bf16.msra.mxu0 %v7833_v28 }
 0x1b0   :  { %5407 = vmatpush2.bf16.msra.mxu1 %v7830_v29  ;;  %5441 = vmatprep.subr.bf16.mxu0 %v7841_v32  ;;  %v7881_v32 = vld [vmem:[%s11145_s1 + $0x488] ss:$16 sps:$4 sm:$0xff]  }
 0x1b1   :  { %5408 = vmatprep.subr.bf16.mxu1 %v7838_v30  ;;  %v7883_v30 = vld [vmem:[%s11145_s1 + $0x48c] ss:$16 sps:$4 sm:$0xff]  }
 0x1b3   :  { %5442 = vmatpush2.bf16.msra.mxu0 %v7839_v47  ;;  %v7889_v47 = vld [vmem:[%s11145_s1 + $0x6ec] ss:$16 sps:$4 sm:$0xff]  }
 0x1b4   :  { %5409 = vmatpush2.bf16.msra.mxu1 %v7836_v33  ;;  %5443 = vmatprep.subr.bf16.mxu0 %v7847_v41  ;;  %v7886_v33 = vld [vmem:[%s11145_s1 + $0x46c] ss:$16 sps:$4 sm:$0xff]   ;;  %v7887_v41 = vld [vmem:[%s11145_s1 + $0x6e8] ss:$16 sps:$4 sm:$0xff]  }
 0x1b5   :  { %5410 = vmatprep.subr.bf16.mxu1 %v7844_v34  ;;  %v7884_v34 = vld [vmem:[%s11145_s1 + $0x468] ss:$16 sps:$4 sm:$0xff]  }
 0x1b7   :  { %5444 = vmatpush2.bf16.msra.mxu0 %v7845_v23  ;;  %v7895_v23 = vld [vmem:[%s11145_s1 + $0x6cc] ss:$16 sps:$4 sm:$0xff]  }
 0x1b8   :  { %5411 = vmatpush2.bf16.msra.mxu1 %v7842_v22  ;;  %5445 = vmatprep.subr.bf16.mxu0 %v7853_v45  ;;  %v7892_v22 = vld [vmem:[%s11145_s1 + $0x44c] ss:$16 sps:$4 sm:$0xff]   ;;  %v7893_v45 = vld [vmem:[%s11145_s1 + $0x6c8] ss:$16 sps:$4 sm:$0xff]  }
 0x1b9   :  { %5412 = vmatprep.subr.bf16.mxu1 %v7850_v44  ;;  %v7890_v44 = vld [vmem:[%s11145_s1 + $0x448] ss:$16 sps:$4 sm:$0xff]  }
 0x1bb   :  { %5446 = vmatpush2.bf16.msra.mxu0 %v7851_v48  ;;  %v7896_v48 = vld [vmem:[%s11145_s1 + $0x428] ss:$16 sps:$4 sm:$0xff]  }
 0x1bc   :  { %5413 = vmatpush2.bf16.msra.mxu1 %v7848_v46  ;;  %5447 = vmatprep.subr.bf16.mxu0 %v7859_v50  ;;  %v7898_v46 = vld [vmem:[%s11145_s1 + $0x42c] ss:$16 sps:$4 sm:$0xff]  }
 0x1bd   :  { %5414 = vmatprep.subr.bf16.mxu1 %v7856_v49  ;;  %v7899_v49 = vld [vmem:[%s11145_s1 + $0x6a8] ss:$16 sps:$4 sm:$0xff]   ;;  %v7904_v50 = vld [vmem:[%s11145_s1 + $0x40c] ss:$16 sps:$4 sm:$0xff]  }
 0x1bf   :  { %5448 = vmatpush2.bf16.msra.mxu0 %v7857_v53  ;;  %v7905_v53 = vld [vmem:[%s11145_s1 + $0x688] ss:$16 sps:$4 sm:$0xff]  }
 0x1c0   :  { %5415 = vmatpush2.bf16.msra.mxu1 %v7854_v52  ;;  %5449 = vmatprep.subr.bf16.mxu0 %v7862_v55  ;;  %v7902_v52 = vld [vmem:[%s11145_s1 + $0x408] ss:$16 sps:$4 sm:$0xff]   ;;  %v7910_v55 = vld [vmem:[%s11145_s1 + $0x5ec] ss:$16 sps:$4 sm:$0xff]  }
 0x1c1   :  { %5466 = vmatprep.subr.bf16.mxu1 %v7865_v56  ;;  %v7913_v56 = vld [vmem:[%s11145_s1 + $0x66c] ss:$16 sps:$4 sm:$0xff]  }
 0x1c2   :  { %v5131_v58 = vpop.f32.mrf.mxu0 }
 0x1c3   :  { %v5172_v5 = vpop.f32.mrf.mxu1  ;;  %5417 = vmatmul.mubr.bf16.vlgmr.msra.gmra.mxu1 %v8639_v6  ;;  %v5132_v8 = vadd.f32 %v5131_v58, %v9797_v19  ;;  %5450 = vmatpush2.bf16.msra.mxu0 %v7860_v59  ;;  %v7872_v19 = vld [vmem:[%s11145_s1 + $0x328] ss:$16 sps:$4 sm:$0xff]   ;;  %v7922_v58 = vld [vmem:[%s11145_s1 + $0x5ac] ss:$16 sps:$4 sm:$0xff]  }
 0x1c4   :  { %5467 = vmatpush1.bf16.msra.mxu1 %v7863_v51  ;;  %v5133_v11 = vpop.f32.mrf.mxu0  ;;  %5451 = vmatprep.subr.bf16.mxu0 %v7868_v60  ;;  %v7908_v59 = vld [vmem:[%s11145_s1 + $0x5e8] ss:$16 sps:$4 sm:$0xff]   ;;  %v7916_v60 = vld [vmem:[%s11145_s1 + $0x5cc] ss:$16 sps:$4 sm:$0xff]  }
 0x1c5   :  { %v5174_v12 = vpop.f32.mrf.mxu1  ;;  %5468 = vmatprep.subr.bf16.mxu1 %v7871_v2  ;;  %v10003_v15 = vadd.f32 %v5172_v5, %v5132_v8  ;;  %v5134_v6 = vadd.f32 %v5133_v11, %v9808_v31  ;;  %5498 = vmatprep.mubr.bf16.mxu1 %v8735_v36  ;;  %v7880_v31 = vld [vmem:[%s11145_s1 + $0x30c] ss:$16 sps:$4 sm:$0xff]   ;;  %v7878_v36 = vld [vmem:[%s11145_s1 + $0x308] ss:$16 sps:$4 sm:$0xff]  }
 0x1c6   :  { %v5135_v18 = vpop.f32.mrf.mxu0  ;;  %v7911_v51 = vld [vmem:[%s11145_s1 + $0x668] ss:$16 sps:$4 sm:$0xff]   ;;  %v7919_v2 = vld [vmem:[%s11145_s1 + $0x64c] ss:$16 sps:$4 sm:$0xff]  }
 0x1c7   :  { %v5176_v20 = vpop.f32.mrf.mxu1  ;;  %v10013_v27 = vadd.f32 %v5174_v12, %v5134_v6  ;;  %5452 = vmatpush2.bf16.msra.mxu0 %v7866_v3  ;;  %v7914_v3 = vld [vmem:[%s11145_s1 + $0x5c8] ss:$16 sps:$4 sm:$0xff]   ;;  %v7925_v5 = vld [vmem:[%s11145_s1 + $0x62c] ss:$16 sps:$4 sm:$0xff]  }
 0x1c8   :  { %5469 = vmatpush1.bf16.msra.mxu1 %v7869_v57  ;;  %v5136_v29 = vpop.f32.mrf.mxu0  ;;  %5453 = vmatprep.subr.bf16.mxu0 %v7874_v13  ;;  %v7917_v57 = vld [vmem:[%s11145_s1 + $0x648] ss:$16 sps:$4 sm:$0xff]   ;;  %v7928_v12 = vld [vmem:[%s11145_s1 + $0x58c] ss:$16 sps:$4 sm:$0xff]  }
 0x1c9   :  { %v5177_v28 = vpop.f32.mrf.mxu1  ;;  %5470 = vmatprep.subr.bf16.mxu1 %v7877_v14  ;;  %v7920_v8 = vld [vmem:[%s11145_s1 + $0x5a8] ss:$16 sps:$4 sm:$0xff]   ;;  %v7931_v13 = vld [vmem:[%s11145_s1 + $0x60c] ss:$16 sps:$4 sm:$0xff]  }
 0x1ca   :  { %v7923_v11 = vld [vmem:[%s11145_s1 + $0x628] ss:$16 sps:$4 sm:$0xff]   ;;  %v7940_v29 = vld [vmem:[%s11145_s1 + $0x54c] ss:$16 sps:$4 sm:$0xff]  }
 0x1cb   :  { %5454 = vmatpush2.bf16.msra.mxu0 %v7872_v19  ;;  %v7926_v14 = vld [vmem:[%s11145_s1 + $0x588] ss:$16 sps:$4 sm:$0xff]   ;;  %v7934_v19 = vld [vmem:[%s11145_s1 + $0x56c] ss:$16 sps:$4 sm:$0xff]  }
 0x1cc   :  { %5471 = vmatpush1.bf16.msra.mxu1 %v7875_v26  ;;  %5455 = vmatprep.subr.bf16.mxu0 %v7880_v31  ;;  %v7929_v6 = vld [vmem:[%s11145_s1 + $0x608] ss:$16 sps:$4 sm:$0xff]   ;;  %v7937_v26 = vld [vmem:[%s11145_s1 + $0x7ec] ss:$16 sps:$4 sm:$0xff]  }
 0x1cd   :  { %5472 = vmatprep.subr.bf16.mxu1 %v7883_v30  ;;  %v7932_v18 = vld [vmem:[%s11145_s1 + $0x568] ss:$16 sps:$4 sm:$0xff]   ;;  %v7943_v28 = vld [vmem:[%s11145_s1 + $0x7cc] ss:$16 sps:$4 sm:$0xff]  }
 0x1ce   :  { %v7935_v20 = vld [vmem:[%s11145_s1 + $0x7e8] ss:$16 sps:$4 sm:$0xff]  }
 0x1cf   :  { %5456 = vmatpush2.bf16.msra.mxu0 %v7878_v36  ;;  %v7938_v31 = vld [vmem:[%s11145_s1 + $0x548] ss:$16 sps:$4 sm:$0xff]   ;;  %v7946_v36 = vld [vmem:[%s11145_s1 + $0x52c] ss:$16 sps:$4 sm:$0xff]  }
 0x1d0   :  { %5473 = vmatpush1.bf16.msra.mxu1 %v7881_v32  ;;  %5507 = vmatprep.subr.bf16.mxu0 %v7889_v47  ;;  %v7941_v30 = vld [vmem:[%s11145_s1 + $0x7c8] ss:$16 sps:$4 sm:$0xff]   ;;  %v7949_v32 = vld [vmem:[%s11145_s1 + $0x7ac] ss:$16 sps:$4 sm:$0xff]  }
 0x1d1   :  { %5474 = vmatprep.subr.bf16.mxu1 %v7886_v33  ;;  %v7944_v33 = vld [vmem:[%s11145_s1 + $0x528] ss:$16 sps:$4 sm:$0xff]  }
 0x1d2   :  { %5458 = vmatmul.mubr.bf16.vlgmr.msra.gmra.mxu0 %v8641_v7  ;;  %v7901_v7 = vld [vmem:[%s11145_s1 + $0x6ac] ss:$16 sps:$4 sm:$0xff]   ;;  %v7947_v47 = vld [vmem:[%s11145_s1 + $0x7a8] ss:$16 sps:$4 sm:$0xff]  }
 0x1d3   :  { %5508 = vmatpush1.bf16.msra.mxu0 %v7887_v41  ;;  %5539 = vmatprep.mubr.bf16.mxu0 %v8739_v37  ;;  %v7907_v37 = vld [vmem:[%s11145_s1 + $0x68c] ss:$16 sps:$4 sm:$0xff]  }
 0x1d4   :  { %5475 = vmatpush1.bf16.msra.mxu1 %v7884_v34  ;;  %5509 = vmatprep.subr.bf16.mxu0 %v7895_v23  ;;  %v7952_v34 = vld [vmem:[%s11145_s1 + $0x50c] ss:$16 sps:$4 sm:$0xff]   ;;  %v7953_v23 = vld [vmem:[%s11145_s1 + $0x788] ss:$16 sps:$4 sm:$0xff]  }
 0x1d5   :  { %5476 = vmatprep.subr.bf16.mxu1 %v7892_v22  ;;  %v7955_v41 = vld [vmem:[%s11145_s1 + $0x78c] ss:$16 sps:$4 sm:$0xff]   ;;  %v7950_v22 = vld [vmem:[%s11145_s1 + $0x508] ss:$16 sps:$4 sm:$0xff]  }
 0x1d7   :  { %5510 = vmatpush1.bf16.msra.mxu0 %v7893_v45  ;;  %v7961_v45 = vld [vmem:[%s11145_s1 + $0x8ec] ss:$16 sps:$4 sm:$0xff]  }
 0x1d8   :  { %5477 = vmatpush1.bf16.msra.mxu1 %v7890_v44  ;;  %5511 = vmatprep.subr.bf16.mxu0 %v7901_v7  ;;  %v7958_v44 = vld [vmem:[%s11145_s1 + $0x76c] ss:$16 sps:$4 sm:$0xff]   ;;  %v7959_v7 = vld [vmem:[%s11145_s1 + $0x8e8] ss:$16 sps:$4 sm:$0xff]  }
 0x1d9   :  { %5478 = vmatprep.subr.bf16.mxu1 %v7898_v46  ;;  %v7956_v46 = vld [vmem:[%s11145_s1 + $0x768] ss:$16 sps:$4 sm:$0xff]  }
 0x1db   :  { %5512 = vmatpush1.bf16.msra.mxu0 %v7899_v49  ;;  %v7967_v49 = vld [vmem:[%s11145_s1 + $0x8cc] ss:$16 sps:$4 sm:$0xff]  }
 0x1dc   :  { %5479 = vmatpush1.bf16.msra.mxu1 %v7896_v48  ;;  %5513 = vmatprep.subr.bf16.mxu0 %v7907_v37  ;;  %v7964_v48 = vld [vmem:[%s11145_s1 + $0x74c] ss:$16 sps:$4 sm:$0xff]  }
 0x1dd   :  { %5480 = vmatprep.subr.bf16.mxu1 %v7904_v50 }
 0x1df   :  { %5514 = vmatpush1.bf16.msra.mxu0 %v7905_v53  ;;  %v7962_v53 = vld [vmem:[%s11145_s1 + $0x748] ss:$16 sps:$4 sm:$0xff]  }
 0x1e0   :  { %5481 = vmatpush1.bf16.msra.mxu1 %v7902_v52  ;;  %5515 = vmatprep.subr.bf16.mxu0 %v7913_v56 }
 0x1e1   :  { %5482 = vmatprep.subr.bf16.mxu1 %v7910_v55  ;;  %v7965_v55 = vld [vmem:[%s11145_s1 + $0x8c8] ss:$16 sps:$4 sm:$0xff]  }
 0x1e3   :  { %5516 = vmatpush1.bf16.msra.mxu0 %v7911_v51 }
 0x1e4   :  { %5483 = vmatpush2.bf16.msra.mxu1 %v7908_v59  ;;  %5517 = vmatprep.subr.bf16.mxu0 %v7919_v2 }
 0x1e5   :  { %5484 = vmatprep.subr.bf16.mxu1 %v7916_v60 }
 0x1e7   :  { %5518 = vmatpush1.bf16.msra.mxu0 %v7917_v57 }
 0x1e8   :  { %5485 = vmatpush2.bf16.msra.mxu1 %v7914_v3  ;;  %5519 = vmatprep.subr.bf16.mxu0 %v7925_v5  ;;  %v7971_v5 = vld [vmem:[%s11145_s1 + $0x8a8] ss:$16 sps:$4 sm:$0xff]  }
 0x1e9   :  { %5486 = vmatprep.subr.bf16.mxu1 %v7922_v58  ;;  %v7968_v58 = vld [vmem:[%s11145_s1 + $0x728] ss:$16 sps:$4 sm:$0xff]  }
 0x1eb   :  { %5520 = vmatpush1.bf16.msra.mxu0 %v7923_v11 }
 0x1ec   :  { %5487 = vmatpush2.bf16.msra.mxu1 %v7920_v8  ;;  %5521 = vmatprep.subr.bf16.mxu0 %v7931_v13  ;;  %v7977_v13 = vld [vmem:[%s11145_s1 + $0x888] ss:$16 sps:$4 sm:$0xff]  }
 0x1ed   :  { %5488 = vmatprep.subr.bf16.mxu1 %v7928_v12  ;;  %v7974_v12 = vld [vmem:[%s11145_s1 + $0x708] ss:$16 sps:$4 sm:$0xff]  }
 0x1ef   :  { %5522 = vmatpush1.bf16.msra.mxu0 %v7929_v6  ;;  %v7985_v6 = vld [vmem:[%s11145_s1 + $0xaec] ss:$16 sps:$4 sm:$0xff]  }
 0x1f0   :  { %5489 = vmatpush2.bf16.msra.mxu1 %v7926_v14  ;;  %5523 = vmatprep.subr.bf16.mxu0 %v7937_v26  ;;  %v7982_v14 = vld [vmem:[%s11145_s1 + $0x86c] ss:$16 sps:$4 sm:$0xff]   ;;  %v7983_v26 = vld [vmem:[%s11145_s1 + $0xae8] ss:$16 sps:$4 sm:$0xff]  }
 0x1f1   :  { %5490 = vmatprep.subr.bf16.mxu1 %v7934_v19  ;;  %v7980_v19 = vld [vmem:[%s11145_s1 + $0x868] ss:$16 sps:$4 sm:$0xff]  }
 0x1f3   :  { %5524 = vmatpush2.bf16.msra.mxu0 %v7935_v20  ;;  %v7991_v20 = vld [vmem:[%s11145_s1 + $0xacc] ss:$16 sps:$4 sm:$0xff]  }
 0x1f4   :  { %5491 = vmatpush2.bf16.msra.mxu1 %v7932_v18  ;;  %5525 = vmatprep.subr.bf16.mxu0 %v7943_v28  ;;  %v7988_v18 = vld [vmem:[%s11145_s1 + $0x84c] ss:$16 sps:$4 sm:$0xff]   ;;  %v7989_v28 = vld [vmem:[%s11145_s1 + $0xac8] ss:$16 sps:$4 sm:$0xff]  }
 0x1f5   :  { %5492 = vmatprep.subr.bf16.mxu1 %v7940_v29  ;;  %v7986_v29 = vld [vmem:[%s11145_s1 + $0x848] ss:$16 sps:$4 sm:$0xff]  }
 0x1f7   :  { %5526 = vmatpush2.bf16.msra.mxu0 %v7941_v30  ;;  %v7992_v30 = vld [vmem:[%s11145_s1 + $0x828] ss:$16 sps:$4 sm:$0xff]  }
 0x1f8   :  { %5493 = vmatpush2.bf16.msra.mxu1 %v7938_v31  ;;  %5527 = vmatprep.subr.bf16.mxu0 %v7949_v32  ;;  %v7994_v31 = vld [vmem:[%s11145_s1 + $0x82c] ss:$16 sps:$4 sm:$0xff]  }
 0x1f9   :  { %5494 = vmatprep.subr.bf16.mxu1 %v7946_v36  ;;  %v7995_v36 = vld [vmem:[%s11145_s1 + $0xaa8] ss:$16 sps:$4 sm:$0xff]   ;;  %v8000_v32 = vld [vmem:[%s11145_s1 + $0x80c] ss:$16 sps:$4 sm:$0xff]  }
 0x1fb   :  { %5528 = vmatpush2.bf16.msra.mxu0 %v7947_v47  ;;  %v8001_v47 = vld [vmem:[%s11145_s1 + $0xa88] ss:$16 sps:$4 sm:$0xff]  }
 0x1fc   :  { %5495 = vmatpush2.bf16.msra.mxu1 %v7944_v33  ;;  %5529 = vmatprep.subr.bf16.mxu0 %v7955_v41  ;;  %v7998_v33 = vld [vmem:[%s11145_s1 + $0x808] ss:$16 sps:$4 sm:$0xff]   ;;  %v8009_v41 = vld [vmem:[%s11145_s1 + $0xa6c] ss:$16 sps:$4 sm:$0xff]  }
 0x1fd   :  { %5496 = vmatprep.subr.bf16.mxu1 %v7952_v34  ;;  %v8006_v34 = vld [vmem:[%s11145_s1 + $0x9ec] ss:$16 sps:$4 sm:$0xff]  }
 0x1ff   :  { %5530 = vmatpush2.bf16.msra.mxu0 %v7953_v23  ;;  %v8007_v23 = vld [vmem:[%s11145_s1 + $0xa68] ss:$16 sps:$4 sm:$0xff]  }
 0x200   :  { %5497 = vmatpush2.bf16.msra.mxu1 %v7950_v22  ;;  %5531 = vmatprep.subr.bf16.mxu0 %v7958_v44  ;;  %v8004_v22 = vld [vmem:[%s11145_s1 + $0x9e8] ss:$16 sps:$4 sm:$0xff]   ;;  %v8012_v44 = vld [vmem:[%s11145_s1 + $0x9cc] ss:$16 sps:$4 sm:$0xff]  }
 0x201   :  { %5548 = vmatprep.subr.bf16.mxu1 %v7961_v45  ;;  %v8015_v45 = vld [vmem:[%s11145_s1 + $0xa4c] ss:$16 sps:$4 sm:$0xff]  }
 0x202   :  { %v5213_v50 = vpop.f32.mrf.mxu0 }
 0x203   :  { %v5254_v37 = vpop.f32.mrf.mxu1  ;;  %5499 = vmatmul.mubr.bf16.vlgmr.msra.gmra.mxu1 %v8859_v16  ;;  %v5214_v52 = vadd.f32 %v5213_v50, %v10003_v15  ;;  %5532 = vmatpush2.bf16.msra.mxu0 %v7956_v46  ;;  %v7970_v16 = vld [vmem:[%s11145_s1 + $0x72c] ss:$16 sps:$4 sm:$0xff]   ;;  %v8010_v46 = vld [vmem:[%s11145_s1 + $0x9c8] ss:$16 sps:$4 sm:$0xff]  }
 0x204   :  { %5549 = vmatpush1.bf16.msra.mxu1 %v7959_v7  ;;  %v5215_v56 = vpop.f32.mrf.mxu0  ;;  %5533 = vmatprep.subr.bf16.mxu0 %v7964_v48  ;;  %v7973_v15 = vld [vmem:[%s11145_s1 + $0x8ac] ss:$16 sps:$4 sm:$0xff]   ;;  %v8013_v7 = vld [vmem:[%s11145_s1 + $0xa48] ss:$16 sps:$4 sm:$0xff]  }
 0x205   :  { %v5256_v59 = vpop.f32.mrf.mxu1  ;;  %5550 = vmatprep.subr.bf16.mxu1 %v7967_v49  ;;  %v10205_v51 = vadd.f32 %v5254_v37, %v5214_v52  ;;  %v5216_v60 = vadd.f32 %v5215_v56, %v10013_v27  ;;  %5580 = vmatprep.mubr.bf16.mxu1 %v8889_v24  ;;  %v7976_v24 = vld [vmem:[%s11145_s1 + $0x70c] ss:$16 sps:$4 sm:$0xff]   ;;  %v8016_v50 = vld [vmem:[%s11145_s1 + $0x9a8] ss:$16 sps:$4 sm:$0xff]  }
 0x206   :  { %v5217_v2 = vpop.f32.mrf.mxu0  ;;  %v7979_v27 = vld [vmem:[%s11145_s1 + $0x88c] ss:$16 sps:$4 sm:$0xff]   ;;  %v8019_v37 = vld [vmem:[%s11145_s1 + $0xa28] ss:$16 sps:$4 sm:$0xff]  }
 0x207   :  { %v5258_v3 = vpop.f32.mrf.mxu1  ;;  %v10209_v57 = vadd.f32 %v5256_v59, %v5216_v60  ;;  %5534 = vmatpush2.bf16.msra.mxu0 %v7962_v53  ;;  %v8018_v48 = vld [vmem:[%s11145_s1 + $0x9ac] ss:$16 sps:$4 sm:$0xff]   ;;  %v8025_v56 = vld [vmem:[%s11145_s1 + $0xa08] ss:$16 sps:$4 sm:$0xff]  }
 0x208   :  { %5551 = vmatpush1.bf16.msra.mxu1 %v7965_v55  ;;  %v5218_v8 = vpop.f32.mrf.mxu0  ;;  %5535 = vmatprep.subr.bf16.mxu0 %v7970_v16  ;;  %v8021_v49 = vld [vmem:[%s11145_s1 + $0xa2c] ss:$16 sps:$4 sm:$0xff]   ;;  %v8022_v55 = vld [vmem:[%s11145_s1 + $0x988] ss:$16 sps:$4 sm:$0xff]  }
 0x209   :  { %v5259_v11 = vpop.f32.mrf.mxu1  ;;  %5552 = vmatprep.subr.bf16.mxu1 %v7973_v15  ;;  %v8024_v52 = vld [vmem:[%s11145_s1 + $0x98c] ss:$16 sps:$4 sm:$0xff]   ;;  %v8028_v15 = vld [vmem:[%s11145_s1 + $0x968] ss:$16 sps:$4 sm:$0xff]  }
 0x20a   :  { %v8027_v53 = vld [vmem:[%s11145_s1 + $0xa0c] ss:$16 sps:$4 sm:$0xff]   ;;  %v8031_v60 = vld [vmem:[%s11145_s1 + $0xbe8] ss:$16 sps:$4 sm:$0xff]  }
 0x20b   :  { %5536 = vmatpush2.bf16.msra.mxu0 %v7968_v58  ;;  %v8030_v59 = vld [vmem:[%s11145_s1 + $0x96c] ss:$16 sps:$4 sm:$0xff]   ;;  %v8034_v58 = vld [vmem:[%s11145_s1 + $0x948] ss:$16 sps:$4 sm:$0xff]  }
 0x20c   :  { %5553 = vmatpush1.bf16.msra.mxu1 %v7971_v5  ;;  %5537 = vmatprep.subr.bf16.mxu0 %v7976_v24  ;;  %v8033_v16 = vld [vmem:[%s11145_s1 + $0xbec] ss:$16 sps:$4 sm:$0xff]   ;;  %v8037_v5 = vld [vmem:[%s11145_s1 + $0xbc8] ss:$16 sps:$4 sm:$0xff]  }
 0x20d   :  { %5554 = vmatprep.subr.bf16.mxu1 %v7979_v27  ;;  %v8036_v2 = vld [vmem:[%s11145_s1 + $0x94c] ss:$16 sps:$4 sm:$0xff]   ;;  %v8040_v24 = vld [vmem:[%s11145_s1 + $0x928] ss:$16 sps:$4 sm:$0xff]  }
 0x20e   :  { %v8039_v3 = vld [vmem:[%s11145_s1 + $0xbcc] ss:$16 sps:$4 sm:$0xff]   ;;  %v8043_v27 = vld [vmem:[%s11145_s1 + $0xba8] ss:$16 sps:$4 sm:$0xff]  }
 0x20f   :  { %5538 = vmatpush2.bf16.msra.mxu0 %v7974_v12  ;;  %v8042_v8 = vld [vmem:[%s11145_s1 + $0x92c] ss:$16 sps:$4 sm:$0xff]  }
 0x210   :  { %5555 = vmatpush1.bf16.msra.mxu1 %v7977_v13  ;;  %5589 = vmatprep.subr.bf16.mxu0 %v7985_v6  ;;  %v8045_v11 = vld [vmem:[%s11145_s1 + $0xbac] ss:$16 sps:$4 sm:$0xff]   ;;  %v8049_v6 = vld [vmem:[%s11145_s1 + $0xb88] ss:$16 sps:$4 sm:$0xff]  }
 0x211   :  { %5556 = vmatprep.subr.bf16.mxu1 %v7982_v14  ;;  %v8048_v12 = vld [vmem:[%s11145_s1 + $0x90c] ss:$16 sps:$4 sm:$0xff]   ;;  %v8046_v14 = vld [vmem:[%s11145_s1 + $0x908] ss:$16 sps:$4 sm:$0xff]  }
 0x212   :  { %5540 = vmatmul.mubr.bf16.vlgmr.msra.gmra.mxu0 %v8863_v17  ;;  %v7997_v17 = vld [vmem:[%s11145_s1 + $0xaac] ss:$16 sps:$4 sm:$0xff]  }
 0x213   :  { %5590 = vmatpush1.bf16.msra.mxu0 %v7983_v26  ;;  %5621 = vmatprep.mubr.bf16.mxu0 %v8893_v25  ;;  %v8003_v25 = vld [vmem:[%s11145_s1 + $0xa8c] ss:$16 sps:$4 sm:$0xff]  }
 0x214   :  { %5557 = vmatpush1.bf16.msra.mxu1 %v7980_v19  ;;  %5591 = vmatprep.subr.bf16.mxu0 %v7991_v20  ;;  %v8051_v13 = vld [vmem:[%s11145_s1 + $0xb8c] ss:$16 sps:$4 sm:$0xff]   ;;  %v8055_v20 = vld [vmem:[%s11145_s1 + $0xce8] ss:$16 sps:$4 sm:$0xff]  }
 0x215   :  { %5558 = vmatprep.subr.bf16.mxu1 %v7988_v18  ;;  %v8054_v19 = vld [vmem:[%s11145_s1 + $0xb6c] ss:$16 sps:$4 sm:$0xff]   ;;  %v8052_v18 = vld [vmem:[%s11145_s1 + $0xb68] ss:$16 sps:$4 sm:$0xff]  }
 0x216   :  { %v8057_v26 = vld [vmem:[%s11145_s1 + $0xcec] ss:$16 sps:$4 sm:$0xff]  }
 0x217   :  { %5592 = vmatpush1.bf16.msra.mxu0 %v7989_v28  ;;  %v8063_v28 = vld [vmem:[%s11145_s1 + $0xccc] ss:$16 sps:$4 sm:$0xff]  }
 0x218   :  { %5559 = vmatpush1.bf16.msra.mxu1 %v7986_v29  ;;  %5593 = vmatprep.subr.bf16.mxu0 %v7997_v17  ;;  %v8060_v29 = vld [vmem:[%s11145_s1 + $0xb4c] ss:$16 sps:$4 sm:$0xff]  }
 0x219   :  { %5560 = vmatprep.subr.bf16.mxu1 %v7994_v31 }
 0x21b   :  { %5594 = vmatpush1.bf16.msra.mxu0 %v7995_v36  ;;  %v8058_v36 = vld [vmem:[%s11145_s1 + $0xb48] ss:$16 sps:$4 sm:$0xff]  }
 0x21c   :  { %5561 = vmatpush1.bf16.msra.mxu1 %v7992_v30  ;;  %5595 = vmatprep.subr.bf16.mxu0 %v8003_v25 }
 0x21d   :  { %5562 = vmatprep.subr.bf16.mxu1 %v8000_v32  ;;  %v8061_v32 = vld [vmem:[%s11145_s1 + $0xcc8] ss:$16 sps:$4 sm:$0xff]  }
 0x21f   :  { %5596 = vmatpush1.bf16.msra.mxu0 %v8001_v47 }
 0x220   :  { %5563 = vmatpush1.bf16.msra.mxu1 %v7998_v33  ;;  %5597 = vmatprep.subr.bf16.mxu0 %v8009_v41 }
 0x221   :  { %5564 = vmatprep.subr.bf16.mxu1 %v8006_v34 }
 0x223   :  { %5598 = vmatpush1.bf16.msra.mxu0 %v8007_v23 }
 0x224   :  { %5565 = vmatpush2.bf16.msra.mxu1 %v8004_v22  ;;  %5599 = vmatprep.subr.bf16.mxu0 %v8015_v45  ;;  %v8067_v45 = vld [vmem:[%s11145_s1 + $0xca8] ss:$16 sps:$4 sm:$0xff]  }
 0x225   :  { %5566 = vmatprep.subr.bf16.mxu1 %v8012_v44  ;;  %v8064_v44 = vld [vmem:[%s11145_s1 + $0xb28] ss:$16 sps:$4 sm:$0xff]  }
 0x227   :  { %5600 = vmatpush1.bf16.msra.mxu0 %v8013_v7 }
 0x228   :  { %5567 = vmatpush2.bf16.msra.mxu1 %v8010_v46  ;;  %5601 = vmatprep.subr.bf16.mxu0 %v8021_v49  ;;  %v8073_v49 = vld [vmem:[%s11145_s1 + $0xc88] ss:$16 sps:$4 sm:$0xff]  }
 0x229   :  { %5568 = vmatprep.subr.bf16.mxu1 %v8018_v48  ;;  %v8070_v48 = vld [vmem:[%s11145_s1 + $0xb08] ss:$16 sps:$4 sm:$0xff]  }
 0x22b   :  { %5602 = vmatpush1.bf16.msra.mxu0 %v8019_v37  ;;  %v8081_v37 = vld [vmem:[%s11145_s1 + $0xeec] ss:$16 sps:$4 sm:$0xff]  }
 0x22c   :  { %5569 = vmatpush2.bf16.msra.mxu1 %v8016_v50  ;;  %5603 = vmatprep.subr.bf16.mxu0 %v8027_v53  ;;  %v8078_v50 = vld [vmem:[%s11145_s1 + $0xc6c] ss:$16 sps:$4 sm:$0xff]   ;;  %v8079_v53 = vld [vmem:[%s11145_s1 + $0xee8] ss:$16 sps:$4 sm:$0xff]  }
 0x22d   :  { %5570 = vmatprep.subr.bf16.mxu1 %v8024_v52  ;;  %v8076_v52 = vld [vmem:[%s11145_s1 + $0xc68] ss:$16 sps:$4 sm:$0xff]  }
 0x22f   :  { %5604 = vmatpush1.bf16.msra.mxu0 %v8025_v56  ;;  %v8087_v56 = vld [vmem:[%s11145_s1 + $0xecc] ss:$16 sps:$4 sm:$0xff]  }
 0x230   :  { %5571 = vmatpush2.bf16.msra.mxu1 %v8022_v55  ;;  %5605 = vmatprep.subr.bf16.mxu0 %v8033_v16  ;;  %v8084_v55 = vld [vmem:[%s11145_s1 + $0xc4c] ss:$16 sps:$4 sm:$0xff]  }
 0x231   :  { %5572 = vmatprep.subr.bf16.mxu1 %v8030_v59 }
 0x233   :  { %5606 = vmatpush2.bf16.msra.mxu0 %v8031_v60  ;;  %v8085_v60 = vld [vmem:[%s11145_s1 + $0xec8] ss:$16 sps:$4 sm:$0xff]  }
 0x234   :  { %5573 = vmatpush2.bf16.msra.mxu1 %v8028_v15  ;;  %5607 = vmatprep.subr.bf16.mxu0 %v8039_v3  ;;  %v8082_v15 = vld [vmem:[%s11145_s1 + $0xc48] ss:$16 sps:$4 sm:$0xff]   ;;  %v8090_v3 = vld [vmem:[%s11145_s1 + $0xc2c] ss:$16 sps:$4 sm:$0xff]  }
 0x235   :  { %5574 = vmatprep.subr.bf16.mxu1 %v8036_v2 }
 0x237   :  { %5608 = vmatpush2.bf16.msra.mxu0 %v8037_v5 }
 0x238   :  { %5575 = vmatpush2.bf16.msra.mxu1 %v8034_v58  ;;  %5609 = vmatprep.subr.bf16.mxu0 %v8045_v11  ;;  %v8091_v11 = vld [vmem:[%s11145_s1 + $0xea8] ss:$16 sps:$4 sm:$0xff]  }
 0x239   :  { %5576 = vmatprep.subr.bf16.mxu1 %v8042_v8  ;;  %v8088_v8 = vld [vmem:[%s11145_s1 + $0xc28] ss:$16 sps:$4 sm:$0xff]  }
 0x23b   :  { %5610 = vmatpush2.bf16.msra.mxu0 %v8043_v27  ;;  %v8096_v27 = vld [vmem:[%s11145_s1 + $0xc0c] ss:$16 sps:$4 sm:$0xff]  }
 0x23c   :  { %5577 = vmatpush2.bf16.msra.mxu1 %v8040_v24  ;;  %5611 = vmatprep.subr.bf16.mxu0 %v8051_v13  ;;  %v8097_v13 = vld [vmem:[%s11145_s1 + $0xe88] ss:$16 sps:$4 sm:$0xff]  }
 0x23d   :  { %5578 = vmatprep.subr.bf16.mxu1 %v8048_v12  ;;  %v8094_v12 = vld [vmem:[%s11145_s1 + $0xc08] ss:$16 sps:$4 sm:$0xff]  }
 0x23f   :  { %5612 = vmatpush2.bf16.msra.mxu0 %v8049_v6  ;;  %v8105_v6 = vld [vmem:[%s11145_s1 + $0xe6c] ss:$16 sps:$4 sm:$0xff]  }
 0x240   :  { %5579 = vmatpush2.bf16.msra.mxu1 %v8046_v14  ;;  %5613 = vmatprep.subr.bf16.mxu0 %v8054_v19  ;;  %v8102_v14 = vld [vmem:[%s11145_s1 + $0xdec] ss:$16 sps:$4 sm:$0xff]   ;;  %v8100_v19 = vld [vmem:[%s11145_s1 + $0xde8] ss:$16 sps:$4 sm:$0xff]  }
 0x241   :  { %5630 = vmatprep.subr.bf16.mxu1 %v8057_v26  ;;  %v8103_v26 = vld [vmem:[%s11145_s1 + $0xe68] ss:$16 sps:$4 sm:$0xff]  }
 0x242   :  { %v5295_v31 = vpop.f32.mrf.mxu0 }
 0x243   :  { %v5336_v17 = vpop.f32.mrf.mxu1  ;;  %5581 = vmatmul.mubr.bf16.vlgmr.msra.gmra.mxu1 %v9089_v38  ;;  %v5296_v30 = vadd.f32 %v5295_v31, %v10205_v51  ;;  %5614 = vmatpush2.bf16.msra.mxu0 %v8052_v18  ;;  %v8066_v38 = vld [vmem:[%s11145_s1 + $0xb2c] ss:$16 sps:$4 sm:$0xff]  }
 0x244   :  { %5631 = vmatpush1.bf16.msra.mxu1 %v8055_v20  ;;  %v5297_v25 = vpop.f32.mrf.mxu0  ;;  %5615 = vmatprep.subr.bf16.mxu0 %v8060_v29  ;;  %v8069_v51 = vld [vmem:[%s11145_s1 + $0xcac] ss:$16 sps:$4 sm:$0xff]   ;;  %v8106_v29 = vld [vmem:[%s11145_s1 + $0xdc8] ss:$16 sps:$4 sm:$0xff]  }
 0x245   :  { %v5338_v33 = vpop.f32.mrf.mxu1  ;;  %5632 = vmatprep.subr.bf16.mxu1 %v8063_v28  ;;  %v5337_v47 = vadd.f32 %v5336_v17, %v5296_v30  ;;  %v5298_v34 = vadd.f32 %v5297_v25, %v10209_v57  ;;  %5662 = vmatprep.mubr.bf16.mxu1 %v9111_v42  ;;  %v8072_v42 = vld [vmem:[%s11145_s1 + $0xb0c] ss:$16 sps:$4 sm:$0xff]   ;;  %v8109_v28 = vld [vmem:[%s11145_s1 + $0xe48] ss:$16 sps:$4 sm:$0xff]  }
 0x246   :  { %v5299_v41 = vpop.f32.mrf.mxu0  ;;  %v8075_v57 = vld [vmem:[%s11145_s1 + $0xc8c] ss:$16 sps:$4 sm:$0xff]   ;;  %v8112_v30 = vld [vmem:[%s11145_s1 + $0xda8] ss:$16 sps:$4 sm:$0xff]  }
 0x247   :  { %v5340_v22 = vpop.f32.mrf.mxu1  ;;  %v5339_v23 = vadd.f32 %v5338_v33, %v5298_v34  ;;  %5616 = vmatpush2.bf16.msra.mxu0 %v8058_v36  ;;  %v8108_v18 = vld [vmem:[%s11145_s1 + $0xdcc] ss:$16 sps:$4 sm:$0xff]   ;;  %v8115_v36 = vld [vmem:[%s11145_s1 + $0xe28] ss:$16 sps:$4 sm:$0xff]  }
 0x248   :  { %5633 = vmatpush1.bf16.msra.mxu1 %v8061_v32  ;;  %v5300_v46 = vpop.f32.mrf.mxu0  ;;  %5617 = vmatprep.subr.bf16.mxu0 %v8066_v38  ;;  %v8111_v20 = vld [vmem:[%s11145_s1 + $0xe4c] ss:$16 sps:$4 sm:$0xff]   ;;  %v8118_v33 = vld [vmem:[%s11145_s1 + $0xd88] ss:$16 sps:$4 sm:$0xff]  }
 0x249   :  { %v5341_v7 = vpop.f32.mrf.mxu1  ;;  %5634 = vmatprep.subr.bf16.mxu1 %v8069_v51  ;;  %v8114_v31 = vld [vmem:[%s11145_s1 + $0xdac] ss:$16 sps:$4 sm:$0xff]   ;;  %v8121_v38 = vld [vmem:[%s11145_s1 + $0xe08] ss:$16 sps:$4 sm:$0xff]  }
 0x24a   :  { %v8117_v17 = vld [vmem:[%s11145_s1 + $0xe2c] ss:$16 sps:$4 sm:$0xff]   ;;  %v8124_v34 = vld [vmem:[%s11145_s1 + $0xd68] ss:$16 sps:$4 sm:$0xff]  }
 0x24b   :  { %5618 = vmatpush2.bf16.msra.mxu0 %v8064_v44  ;;  %v8120_v32 = vld [vmem:[%s11145_s1 + $0xd8c] ss:$16 sps:$4 sm:$0xff]   ;;  %v8127_v41 = vld [vmem:[%s11145_s1 + $0xfe8] ss:$16 sps:$4 sm:$0xff]  }
 0x24c   :  { %5635 = vmatpush1.bf16.msra.mxu1 %v8067_v45  ;;  %5619 = vmatprep.subr.bf16.mxu0 %v8072_v42  ;;  %v8123_v25 = vld [vmem:[%s11145_s1 + $0xe0c] ss:$16 sps:$4 sm:$0xff]   ;;  %v8130_v44 = vld [vmem:[%s11145_s1 + $0xd48] ss:$16 sps:$4 sm:$0xff]  }
 0x24d   :  { %5636 = vmatprep.subr.bf16.mxu1 %v8075_v57  ;;  %v8126_v51 = vld [vmem:[%s11145_s1 + $0xd6c] ss:$16 sps:$4 sm:$0xff]   ;;  %v8133_v45 = vld [vmem:[%s11145_s1 + $0xfc8] ss:$16 sps:$4 sm:$0xff]  }
 0x24e   :  { %v8132_v22 = vld [vmem:[%s11145_s1 + $0xd4c] ss:$16 sps:$4 sm:$0xff]   ;;  %v8136_v42 = vld [vmem:[%s11145_s1 + $0xd28] ss:$16 sps:$4 sm:$0xff]  }
 0x24f   :  { %5620 = vmatpush2.bf16.msra.mxu0 %v8070_v48  ;;  %v8138_v46 = vld [vmem:[%s11145_s1 + $0xd2c] ss:$16 sps:$4 sm:$0xff]   ;;  %v8139_v57 = vld [vmem:[%s11145_s1 + $0xfa8] ss:$16 sps:$4 sm:$0xff]  }
 0x250   :  { %5637 = vmatpush1.bf16.msra.mxu1 %v8073_v49  ;;  %5671 = vmatprep.subr.bf16.mxu0 %v8081_v37  ;;  %v8141_v7 = vld [vmem:[%s11145_s1 + $0xfac] ss:$16 sps:$4 sm:$0xff]   ;;  %v8145_v37 = vld [vmem:[%s11145_s1 + $0xf88] ss:$16 sps:$4 sm:$0xff]  }
 0x251   :  { %5638 = vmatprep.subr.bf16.mxu1 %v8078_v50  ;;  %v8144_v48 = vld [vmem:[%s11145_s1 + $0xd0c] ss:$16 sps:$4 sm:$0xff]   ;;  %v8142_v50 = vld [vmem:[%s11145_s1 + $0xd08] ss:$16 sps:$4 sm:$0xff]  }
 0x252   :  { %v5377_v59 = vpop.f32.mrf.mxu0  ;;  %5622 = vmatmul.mubr.bf16.vlgmr.msra.gmra.mxu0 %v9093_v39  ;;  %v8093_v39 = vld [vmem:[%s11145_s1 + $0xeac] ss:$16 sps:$4 sm:$0xff]  }
 0x253   :  { %v10446_v16 = vadd.f32 %v5377_v59, %v5337_v47  ;;  %5672 = vmatpush1.bf16.msra.mxu0 %v8079_v53  ;;  %5703 = vmatprep.mubr.bf16.mxu0 %v9115_v43  ;;  %v8099_v43 = vld [vmem:[%s11145_s1 + $0xe8c] ss:$16 sps:$4 sm:$0xff]  }
 0x254   :  { %5639 = vmatpush1.bf16.msra.mxu1 %v8076_v52  ;;  %v5379_v2 = vpop.f32.mrf.mxu0  ;;  %5673 = vmatprep.subr.bf16.mxu0 %v8087_v56  ;;  %v8129_v47 = vld [vmem:[%s11145_s1 + $0xfec] ss:$16 sps:$4 sm:$0xff]   ;;  %v8151_v56 = vld [vmem:[%s11145_s1 + $0x10e8] ss:$16 sps:$4 sm:$0xff]  }
 0x255   :  { %5640 = vmatprep.subr.bf16.mxu1 %v8084_v55  ;;  %v10460_v58 = vadd.f32 %v5379_v2, %v5339_v23  ;;  %v8135_v23 = vld [vmem:[%s11145_s1 + $0xfcc] ss:$16 sps:$4 sm:$0xff]   ;;  %v8148_v55 = vld [vmem:[%s11145_s1 + $0xf68] ss:$16 sps:$4 sm:$0xff]  }
 0x256   :  { %v5381_v5 = vpop.f32.mrf.mxu0  ;;  %v8147_v49 = vld [vmem:[%s11145_s1 + $0xf8c] ss:$16 sps:$4 sm:$0xff]   ;;  %v8154_v2 = vld [vmem:[%s11145_s1 + $0xf48] ss:$16 sps:$4 sm:$0xff]  }
 0x257   :  { %5674 = vmatpush1.bf16.msra.mxu0 %v8085_v60  ;;  %v8150_v52 = vld [vmem:[%s11145_s1 + $0xf6c] ss:$16 sps:$4 sm:$0xff]  }
 0x258   :  { %5641 = vmatpush1.bf16.msra.mxu1 %v8082_v15  ;;  %v5382_v24 = vpop.f32.mrf.mxu0  ;;  %5675 = vmatprep.subr.bf16.mxu0 %v8093_v39  ;;  %v8153_v53 = vld [vmem:[%s11145_s1 + $0x10ec] ss:$16 sps:$4 sm:$0xff]  }
 0x259   :  { %5642 = vmatprep.subr.bf16.mxu1 %v8090_v3  ;;  %v8156_v59 = vld [vmem:[%s11145_s1 + $0xf4c] ss:$16 sps:$4 sm:$0xff]   ;;  %v8157_v3 = vld [vmem:[%s11145_s1 + $0x10c8] ss:$16 sps:$4 sm:$0xff]  }
 0x25a   :  { %v8159_v15 = vld [vmem:[%s11145_s1 + $0x10cc] ss:$16 sps:$4 sm:$0xff]   ;;  %v8163_v24 = vld [vmem:[%s11145_s1 + $0x10a8] ss:$16 sps:$4 sm:$0xff]  }
 0x25b   :  { %5676 = vmatpush1.bf16.msra.mxu0 %v8091_v11  ;;  %v8162_v5 = vld [vmem:[%s11145_s1 + $0xf2c] ss:$16 sps:$4 sm:$0xff]   ;;  %v8160_v11 = vld [vmem:[%s11145_s1 + $0xf28] ss:$16 sps:$4 sm:$0xff]  }
 0x25c   :  { %5643 = vmatpush1.bf16.msra.mxu1 %v8088_v8  ;;  %5677 = vmatprep.subr.bf16.mxu0 %v8099_v43  ;;  %v8168_v43 = vld [vmem:[%s11145_s1 + $0xf0c] ss:$16 sps:$4 sm:$0xff]  }
 0x25d   :  { %5644 = vmatprep.subr.bf16.mxu1 %v8096_v27 }
 0x25f   :  { %5678 = vmatpush1.bf16.msra.mxu0 %v8097_v13  ;;  %v834_v13 = vsub.s32 3, %v9286_v54 }
 0x260   :  { %5645 = vmatpush1.bf16.msra.mxu1 %v8094_v12  ;;  %5679 = vmatprep.subr.bf16.mxu0 %v8105_v6  ;;  %v830_v12 = vsub.s32 2, %v9286_v54  ;;  %v8169_v6 = vld [vmem:[%s11145_s1 + $0x1088] ss:$16 sps:$4 sm:$0xff]   ;;  %v8177_v54 = vld [vmem:[%s11145_s1 + $0x12ec] ss:$16 sps:$4 sm:$0xff]  }
 0x261   :  { %5646 = vmatprep.subr.bf16.mxu1 %v8102_v14  ;;  %v8166_v14 = vld [vmem:[%s11145_s1 + $0xf08] ss:$16 sps:$4 sm:$0xff]  }
 0x263   :  { %5680 = vmatpush1.bf16.msra.mxu0 %v8103_v26  ;;  %v8396_v26 = vld [vmem:[%s11147_s2] sm:$0xf] }
 0x264   :  { %5647 = vmatpush2.bf16.msra.mxu1 %v8100_v19  ;;  %5681 = vmatprep.subr.bf16.mxu0 %v8111_v20  ;;  %v8174_v19 = vld [vmem:[%s11145_s1 + $0x106c] ss:$16 sps:$4 sm:$0xff]   ;;  %v835_v20 = vrot.slane %v8396_v26, %v834_v13 }
 0x265   :  { %5648 = vmatprep.subr.bf16.mxu1 %v8108_v18  ;;  %v831_v18 = vrot.slane %v8396_v26, %v830_v12  ;;  %v8234_v12 = vld [vmem:[%s11145_s1 + $0x112c] ss:$16 sps:$4 sm:$0xff]   ;;  %v8238_v26 = vld [vmem:[%s11145_s1 + $0x1108] ss:$16 sps:$4 sm:$0xff]  }
 0x266   :  { %v8237_v13 = vld [vmem:[%s11145_s1 + $0x13ac] ss:$16 sps:$4 sm:$0xff]  }
 0x267   :  { %5682 = vmatpush1.bf16.msra.mxu0 %v8109_v28  ;;  %v8175_v28 = vld [vmem:[%s11145_s1 + $0x12e8] ss:$16 sps:$4 sm:$0xff]  }
 0x268   :  { %5649 = vmatpush2.bf16.msra.mxu1 %v8106_v29  ;;  %5683 = vmatprep.subr.bf16.mxu0 %v8117_v17  ;;  %v8172_v29 = vld [vmem:[%s11145_s1 + $0x1068] ss:$16 sps:$4 sm:$0xff]   ;;  %v8183_v17 = vld [vmem:[%s11145_s1 + $0x12cc] ss:$16 sps:$4 sm:$0xff]  }
 0x269   :  { %5650 = vmatprep.subr.bf16.mxu1 %v8114_v31  ;;  %v8180_v31 = vld [vmem:[%s11145_s1 + $0x104c] ss:$16 sps:$4 sm:$0xff]  }
 0x26b   :  { %5684 = vmatpush1.bf16.msra.mxu0 %v8115_v36  ;;  %v8178_v36 = vld [vmem:[%s11145_s1 + $0x1048] ss:$16 sps:$4 sm:$0xff]  }
 0x26c   :  { %5651 = vmatpush2.bf16.msra.mxu1 %v8112_v30  ;;  %5685 = vmatprep.subr.bf16.mxu0 %v8123_v25 }
 0x26d   :  { %5652 = vmatprep.subr.bf16.mxu1 %v8120_v32  ;;  %v8181_v32 = vld [vmem:[%s11145_s1 + $0x12c8] ss:$16 sps:$4 sm:$0xff]  }
 0x26f   :  { %5686 = vmatpush1.bf16.msra.mxu0 %v8121_v38 }
 0x270   :  { %5653 = vmatpush2.bf16.msra.mxu1 %v8118_v33  ;;  %5687 = vmatprep.subr.bf16.mxu0 %v8129_v47  ;;  %v8186_v33 = vld [vmem:[%s11145_s1 + $0x102c] ss:$16 sps:$4 sm:$0xff]  }
 0x271   :  { %5654 = vmatprep.subr.bf16.mxu1 %v8126_v51 }
 0x273   :  { %5688 = vmatpush2.bf16.msra.mxu0 %v8127_v41 }
 0x274   :  { %5655 = vmatpush2.bf16.msra.mxu1 %v8124_v34  ;;  %5689 = vmatprep.subr.bf16.mxu0 %v8135_v23  ;;  %v8189_v34 = vld [vmem:[%s11145_s1 + $0x12ac] ss:$16 sps:$4 sm:$0xff]  }
 0x275   :  { %5656 = vmatprep.subr.bf16.mxu1 %v8132_v22  ;;  %v8187_v22 = vld [vmem:[%s11145_s1 + $0x12a8] ss:$16 sps:$4 sm:$0xff]  }
 0x277   :  { %5690 = vmatpush2.bf16.msra.mxu0 %v8133_v45  ;;  %v8192_v45 = vld [vmem:[%s11145_s1 + $0x100c] ss:$16 sps:$4 sm:$0xff]  }
 0x278   :  { %5657 = vmatpush2.bf16.msra.mxu1 %v8130_v44  ;;  %5691 = vmatprep.subr.bf16.mxu0 %v8141_v7  ;;  %v8190_v7 = vld [vmem:[%s11145_s1 + $0x1008] ss:$16 sps:$4 sm:$0xff]  }
 0x279   :  { %5658 = vmatprep.subr.bf16.mxu1 %v8138_v46  ;;  %v8195_v46 = vld [vmem:[%s11145_s1 + $0x128c] ss:$16 sps:$4 sm:$0xff]  }
 0x27b   :  { %5692 = vmatpush2.bf16.msra.mxu0 %v8139_v57  ;;  %v8201_v57 = vld [vmem:[%s11145_s1 + $0x126c] ss:$16 sps:$4 sm:$0xff]  }
 0x27c   :  { %5659 = vmatpush2.bf16.msra.mxu1 %v8136_v42  ;;  %5693 = vmatprep.subr.bf16.mxu0 %v8147_v49  ;;  %v8198_v42 = vld [vmem:[%s11145_s1 + $0x11ec] ss:$16 sps:$4 sm:$0xff]   ;;  %v8199_v49 = vld [vmem:[%s11145_s1 + $0x1268] ss:$16 sps:$4 sm:$0xff]  }
 0x27d   :  { %5660 = vmatprep.subr.bf16.mxu1 %v8144_v48  ;;  %v8196_v48 = vld [vmem:[%s11145_s1 + $0x11e8] ss:$16 sps:$4 sm:$0xff]  }
 0x27f   :  { %5694 = vmatpush2.bf16.msra.mxu0 %v8145_v37  ;;  %v8207_v37 = vld [vmem:[%s11145_s1 + $0x124c] ss:$16 sps:$4 sm:$0xff]  }
 0x280   :  { %5661 = vmatpush2.bf16.msra.mxu1 %v8142_v50  ;;  %5695 = vmatprep.subr.bf16.mxu0 %v8150_v52  ;;  %v8204_v50 = vld [vmem:[%s11145_s1 + $0x11cc] ss:$16 sps:$4 sm:$0xff]   ;;  %v8202_v52 = vld [vmem:[%s11145_s1 + $0x11c8] ss:$16 sps:$4 sm:$0xff]  }
 0x281   :  { %5712 = vmatprep.subr.bf16.mxu1 %v8153_v53  ;;  %v8205_v53 = vld [vmem:[%s11145_s1 + $0x1248] ss:$16 sps:$4 sm:$0xff]  }
 0x283   :  { %v5418_v60 = vpop.f32.mrf.mxu1  ;;  %5663 = vmatmul.mubr.bf16.vlgmr.msra.gmra.mxu1 %v9313_v0  ;;  %5696 = vmatpush2.bf16.msra.mxu0 %v8148_v55  ;;  %v8165_v0 = vld [vmem:[%s11145_s1 + $0x10ac] ss:$16 sps:$4 sm:$0xff]  }
 0x284   :  { %5713 = vmatpush1.bf16.msra.mxu1 %v8151_v56  ;;  %5697 = vmatprep.subr.bf16.mxu0 %v8156_v59  ;;  %v5419_v30 = vadd.f32 %v5418_v60, %v831_v18  ;;  %v8210_v55 = vld [vmem:[%s11145_s1 + $0x11ac] ss:$16 sps:$4 sm:$0xff]   ;;  %v8208_v59 = vld [vmem:[%s11145_s1 + $0x11a8] ss:$16 sps:$4 sm:$0xff]  }
 0x285   :  { %v5420_v39 = vpop.f32.mrf.mxu1  ;;  %5714 = vmatprep.subr.bf16.mxu1 %v8159_v15  ;;  %5744 = vmatprep.mubr.bf16.mxu1 %v9340_v9  ;;  %v8171_v9 = vld [vmem:[%s11145_s1 + $0x108c] ss:$16 sps:$4 sm:$0xff]   ;;  %v8211_v15 = vld [vmem:[%s11145_s1 + $0x1228] ss:$16 sps:$4 sm:$0xff]  }
 0x286   :  { %v5421_v38 = vadd.f32 %v5420_v39, %v835_v20  ;;  %v8213_v56 = vld [vmem:[%s11145_s1 + $0x122c] ss:$16 sps:$4 sm:$0xff]   ;;  %v8217_v39 = vld [vmem:[%s11145_s1 + $0x1208] ss:$16 sps:$4 sm:$0xff]  }
 0x287   :  { %v5422_v8 = vpop.f32.mrf.mxu1  ;;  %5698 = vmatpush2.bf16.msra.mxu0 %v8154_v2  ;;  %v8216_v60 = vld [vmem:[%s11145_s1 + $0x118c] ss:$16 sps:$4 sm:$0xff]   ;;  %v8241_v18 = vld [vmem:[%s11145_s1 + $0x1388] ss:$16 sps:$4 sm:$0xff]  }
 0x288   :  { %5715 = vmatpush1.bf16.msra.mxu1 %v8157_v3  ;;  %5699 = vmatprep.subr.bf16.mxu0 %v8162_v5  ;;  %v8219_v2 = vld [vmem:[%s11145_s1 + $0x120c] ss:$16 sps:$4 sm:$0xff]   ;;  %v8214_v3 = vld [vmem:[%s11145_s1 + $0x1188] ss:$16 sps:$4 sm:$0xff]  }
 0x289   :  { %v5423_v27 = vpop.f32.mrf.mxu1  ;;  %5716 = vmatprep.subr.bf16.mxu1 %v8165_v0  ;;  %v8222_v5 = vld [vmem:[%s11145_s1 + $0x116c] ss:$16 sps:$4 sm:$0xff]   ;;  %v8220_v8 = vld [vmem:[%s11145_s1 + $0x1168] ss:$16 sps:$4 sm:$0xff]  }
 0x28a   :  { %v8225_v0 = vld [vmem:[%s11145_s1 + $0x13ec] ss:$16 sps:$4 sm:$0xff]  }
 0x28b   :  { %5700 = vmatpush2.bf16.msra.mxu0 %v8160_v11  ;;  %v8223_v11 = vld [vmem:[%s11145_s1 + $0x13e8] ss:$16 sps:$4 sm:$0xff]   ;;  %v8231_v27 = vld [vmem:[%s11145_s1 + $0x13cc] ss:$16 sps:$4 sm:$0xff]  }
 0x28c   :  { %5717 = vmatpush1.bf16.msra.mxu1 %v8163_v24  ;;  %5701 = vmatprep.subr.bf16.mxu0 %v8168_v43  ;;  %v8228_v24 = vld [vmem:[%s11145_s1 + $0x114c] ss:$16 sps:$4 sm:$0xff]   ;;  %v8226_v43 = vld [vmem:[%s11145_s1 + $0x1148] ss:$16 sps:$4 sm:$0xff]  }
 0x28d   :  { %5718 = vmatprep.subr.bf16.mxu1 %v8171_v9  ;;  %v8229_v9 = vld [vmem:[%s11145_s1 + $0x13c8] ss:$16 sps:$4 sm:$0xff]   ;;  %v8246_v20 = vld [vmem:[%s11145_s1 + $0x136c] ss:$16 sps:$4 sm:$0xff]  }
 0x28f   :  { %5702 = vmatpush2.bf16.msra.mxu0 %v8166_v14  ;;  %v8232_v14 = vld [vmem:[%s11145_s1 + $0x1128] ss:$16 sps:$4 sm:$0xff]  }
 0x290   :  { %5719 = vmatpush1.bf16.msra.mxu1 %v8169_v6  ;;  %5753 = vmatprep.subr.bf16.mxu0 %v8177_v54  ;;  %v8235_v6 = vld [vmem:[%s11145_s1 + $0x13a8] ss:$16 sps:$4 sm:$0xff]   ;;  %v8243_v54 = vld [vmem:[%s11145_s1 + $0x138c] ss:$16 sps:$4 sm:$0xff]  }
 0x291   :  { %5720 = vmatprep.subr.bf16.mxu1 %v8174_v19  ;;  %v8240_v19 = vld [vmem:[%s11145_s1 + $0x110c] ss:$16 sps:$4 sm:$0xff]  }
 0x292   :  { %v5459_v25 = vpop.f32.mrf.mxu0  ;;  %5704 = vmatmul.mubr.bf16.vlgmr.msra.gmra.mxu0 %v9317_v1  ;;  %v8184_v1 = vld [vmem:[%s11145_s1 + $0x1028] ss:$16 sps:$4 sm:$0xff]  }
 0x293   :  { %v10660_v51 = vadd.f32 %v5459_v25, %v5419_v30  ;;  %5754 = vmatpush1.bf16.msra.mxu0 %v8175_v28  ;;  %5785 = vmatprep.mubr.bf16.mxu0 %v9344_v10  ;;  %v8193_v10 = vld [vmem:[%s11145_s1 + $0x1288] ss:$16 sps:$4 sm:$0xff]   ;;  %v8255_v30 = vld [vmem:[%s11145_s1 + $0x14cc] ss:$16 sps:$4 sm:$0xff]  }
 0x294   :  { %5721 = vmatpush1.bf16.msra.mxu1 %v8172_v29  ;;  %v5461_v47 = vpop.f32.mrf.mxu0  ;;  %5755 = vmatprep.subr.bf16.mxu0 %v8183_v17  ;;  %v8249_v29 = vld [vmem:[%s11145_s1 + $0x14ec] ss:$16 sps:$4 sm:$0xff]   ;;  %v8244_v28 = vld [vmem:[%s11145_s1 + $0x1368] ss:$16 sps:$4 sm:$0xff]  }
 0x295   :  { %5722 = vmatprep.subr.bf16.mxu1 %v8180_v31  ;;  %v10665_v41 = vadd.f32 %v5461_v47, %v5421_v38  ;;  %v8247_v31 = vld [vmem:[%s11145_s1 + $0x14e8] ss:$16 sps:$4 sm:$0xff]   ;;  %v8252_v17 = vld [vmem:[%s11145_s1 + $0x134c] ss:$16 sps:$4 sm:$0xff]  }
 0x296   :  { %v5463_v23 = vpop.f32.mrf.mxu0  ;;  %v8250_v25 = vld [vmem:[%s11145_s1 + $0x1348] ss:$16 sps:$4 sm:$0xff]   ;;  %v8258_v47 = vld [vmem:[%s11145_s1 + $0x132c] ss:$16 sps:$4 sm:$0xff]  }
 0x297   :  { %5756 = vmatpush1.bf16.msra.mxu0 %v8181_v32 }
 0x298   :  { %5723 = vmatpush1.bf16.msra.mxu1 %v8178_v36  ;;  %v5464_v44 = vpop.f32.mrf.mxu0  ;;  %5757 = vmatprep.subr.bf16.mxu0 %v8189_v34 }
 0x299   :  { %5724 = vmatprep.subr.bf16.mxu1 %v8186_v33  ;;  %v8253_v33 = vld [vmem:[%s11145_s1 + $0x14c8] ss:$16 sps:$4 sm:$0xff]  }
 0x29a   :  { %v8262_v44 = vld [vmem:[%s11145_s1 + $0x1308] ss:$16 sps:$4 sm:$0xff]  }
 0x29b   :  { %5758 = vmatpush1.bf16.msra.mxu0 %v8187_v22  ;;  %v8259_v22 = vld [vmem:[%s11145_s1 + $0x14a8] ss:$16 sps:$4 sm:$0xff]  }
 0x29c   :  { %5725 = vmatpush1.bf16.msra.mxu1 %v8184_v1  ;;  %5759 = vmatprep.subr.bf16.mxu0 %v8195_v46  ;;  %v8256_v1 = vld [vmem:[%s11145_s1 + $0x1328] ss:$16 sps:$4 sm:$0xff]   ;;  %v8270_v46 = vld [vmem:[%s11145_s1 + $0x146c] ss:$16 sps:$4 sm:$0xff]  }
 0x29d   :  { %5726 = vmatprep.subr.bf16.mxu1 %v8192_v45  ;;  %v8265_v45 = vld [vmem:[%s11145_s1 + $0x1488] ss:$16 sps:$4 sm:$0xff]  }
 0x29f   :  { %5760 = vmatpush1.bf16.msra.mxu0 %v8193_v10  ;;  %v8268_v10 = vld [vmem:[%s11145_s1 + $0x1468] ss:$16 sps:$4 sm:$0xff]  }
 0x2a0   :  { %5727 = vmatpush1.bf16.msra.mxu1 %v8190_v7  ;;  %5761 = vmatprep.subr.bf16.mxu0 %v8201_v57  ;;  %v8273_v7 = vld [vmem:[%s11145_s1 + $0x16ec] ss:$16 sps:$4 sm:$0xff]  }
 0x2a1   :  { %5728 = vmatprep.subr.bf16.mxu1 %v8198_v42  ;;  %v8271_v42 = vld [vmem:[%s11145_s1 + $0x16e8] ss:$16 sps:$4 sm:$0xff]   ;;  %v8276_v57 = vld [vmem:[%s11145_s1 + $0x144c] ss:$16 sps:$4 sm:$0xff]  }
 0x2a3   :  { %5762 = vmatpush1.bf16.msra.mxu0 %v8199_v49 }
 0x2a4   :  { %5729 = vmatpush2.bf16.msra.mxu1 %v8196_v48  ;;  %5763 = vmatprep.subr.bf16.mxu0 %v8207_v37  ;;  %v8279_v48 = vld [vmem:[%s11145_s1 + $0x16cc] ss:$16 sps:$4 sm:$0xff]   ;;  %v8274_v37 = vld [vmem:[%s11145_s1 + $0x1448] ss:$16 sps:$4 sm:$0xff]  }
 0x2a5   :  { %5730 = vmatprep.subr.bf16.mxu1 %v8204_v50 }
 0x2a7   :  { %5764 = vmatpush1.bf16.msra.mxu0 %v8205_v53 }
 0x2a8   :  { %5731 = vmatpush2.bf16.msra.mxu1 %v8202_v52  ;;  %5765 = vmatprep.subr.bf16.mxu0 %v8213_v56  ;;  %v8277_v52 = vld [vmem:[%s11145_s1 + $0x16c8] ss:$16 sps:$4 sm:$0xff]  }
 0x2a9   :  { %5732 = vmatprep.subr.bf16.mxu1 %v8210_v55  ;;  %v8282_v55 = vld [vmem:[%s11145_s1 + $0x142c] ss:$16 sps:$4 sm:$0xff]  }
 0x2ab   :  { %5766 = vmatpush1.bf16.msra.mxu0 %v8211_v15  ;;  %v8280_v15 = vld [vmem:[%s11145_s1 + $0x1428] ss:$16 sps:$4 sm:$0xff]  }
 0x2ac   :  { %5733 = vmatpush2.bf16.msra.mxu1 %v8208_v59  ;;  %5767 = vmatprep.subr.bf16.mxu0 %v8219_v2 }
 0x2ad   :  { %5734 = vmatprep.subr.bf16.mxu1 %v8216_v60  ;;  %v8283_v60 = vld [vmem:[%s11145_s1 + $0x16a8] ss:$16 sps:$4 sm:$0xff]  }
 0x2af   :  { %5768 = vmatpush1.bf16.msra.mxu0 %v8217_v39  ;;  %v8286_v39 = vld [vmem:[%s11145_s1 + $0x1408] ss:$16 sps:$4 sm:$0xff]  }
 0x2b0   :  { %5735 = vmatpush2.bf16.msra.mxu1 %v8214_v3  ;;  %5769 = vmatprep.subr.bf16.mxu0 %v8225_v0  ;;  %v8288_v3 = vld [vmem:[%s11145_s1 + $0x140c] ss:$16 sps:$4 sm:$0xff]  }
 0x2b1   :  { %5736 = vmatprep.subr.bf16.mxu1 %v8222_v5  ;;  %v8289_v5 = vld [vmem:[%s11145_s1 + $0x1688] ss:$16 sps:$4 sm:$0xff]   ;;  %v8294_v0 = vld [vmem:[%s11145_s1 + $0x15ec] ss:$16 sps:$4 sm:$0xff]  }
 0x2b3   :  { %5770 = vmatpush2.bf16.msra.mxu0 %v8223_v11  ;;  %v8292_v11 = vld [vmem:[%s11145_s1 + $0x15e8] ss:$16 sps:$4 sm:$0xff]  }
 0x2b4   :  { %5737 = vmatpush2.bf16.msra.mxu1 %v8220_v8  ;;  %5771 = vmatprep.subr.bf16.mxu0 %v8231_v27  ;;  %v8297_v8 = vld [vmem:[%s11145_s1 + $0x166c] ss:$16 sps:$4 sm:$0xff]  }
 0x2b5   :  { %5738 = vmatprep.subr.bf16.mxu1 %v8228_v24  ;;  %v8295_v24 = vld [vmem:[%s11145_s1 + $0x1668] ss:$16 sps:$4 sm:$0xff]   ;;  %v8300_v27 = vld [vmem:[%s11145_s1 + $0x15cc] ss:$16 sps:$4 sm:$0xff]  }
 0x2b7   :  { %5772 = vmatpush2.bf16.msra.mxu0 %v8229_v9  ;;  %v8298_v9 = vld [vmem:[%s11145_s1 + $0x15c8] ss:$16 sps:$4 sm:$0xff]  }
 0x2b8   :  { %5739 = vmatpush2.bf16.msra.mxu1 %v8226_v43  ;;  %5773 = vmatprep.subr.bf16.mxu0 %v8237_v13  ;;  %v8303_v43 = vld [vmem:[%s11145_s1 + $0x164c] ss:$16 sps:$4 sm:$0xff]  }
 0x2b9   :  { %5740 = vmatprep.subr.bf16.mxu1 %v8234_v12  ;;  %v8301_v12 = vld [vmem:[%s11145_s1 + $0x1648] ss:$16 sps:$4 sm:$0xff]   ;;  %v8306_v13 = vld [vmem:[%s11145_s1 + $0x15ac] ss:$16 sps:$4 sm:$0xff]  }
 0x2bb   :  { %5774 = vmatpush2.bf16.msra.mxu0 %v8235_v6  ;;  %v8304_v6 = vld [vmem:[%s11145_s1 + $0x15a8] ss:$16 sps:$4 sm:$0xff]  }
 0x2bc   :  { %5741 = vmatpush2.bf16.msra.mxu1 %v8232_v14  ;;  %5775 = vmatprep.subr.bf16.mxu0 %v8243_v54  ;;  %v8309_v14 = vld [vmem:[%s11145_s1 + $0x162c] ss:$16 sps:$4 sm:$0xff]  }
 0x2bd   :  { %5742 = vmatprep.subr.bf16.mxu1 %v8240_v19  ;;  %v8307_v19 = vld [vmem:[%s11145_s1 + $0x1628] ss:$16 sps:$4 sm:$0xff]   ;;  %v8312_v54 = vld [vmem:[%s11145_s1 + $0x158c] ss:$16 sps:$4 sm:$0xff]  }
 0x2bf   :  { %5776 = vmatpush2.bf16.msra.mxu0 %v8241_v18  ;;  %v8310_v18 = vld [vmem:[%s11145_s1 + $0x1588] ss:$16 sps:$4 sm:$0xff]  }
 0x2c0   :  { %5743 = vmatpush2.bf16.msra.mxu1 %v8238_v26  ;;  %5777 = vmatprep.subr.bf16.mxu0 %v8246_v20  ;;  %v8315_v26 = vld [vmem:[%s11145_s1 + $0x160c] ss:$16 sps:$4 sm:$0xff]   ;;  %v8313_v20 = vld [vmem:[%s11145_s1 + $0x1608] ss:$16 sps:$4 sm:$0xff]  }
 0x2c1   :  { %5794 = vmatprep.subr.bf16.mxu1 %v8249_v29  ;;  %v8318_v29 = vld [vmem:[%s11145_s1 + $0x156c] ss:$16 sps:$4 sm:$0xff]  }
 0x2c3   :  { %v5500_v36 = vpop.f32.mrf.mxu1  ;;  %5745 = vmatmul.mubr.bf16.vlgmr.msra.gmra.mxu1 %v9552_v61  ;;  %5778 = vmatpush2.bf16.msra.mxu0 %v8244_v28  ;;  %v8261_v61 = vld [vmem:[%s11145_s1 + $0x14ac] ss:$16 sps:$4 sm:$0xff]  }
 0x2c4   :  { %v5501_v32 = vadd.f32 %v5500_v36, %v10660_v51  ;;  %5795 = vmatpush1.bf16.msra.mxu1 %v8247_v31  ;;  %5779 = vmatprep.subr.bf16.mxu0 %v8252_v17  ;;  %v8321_v28 = vld [vmem:[%s11145_s1 + $0x17ec] ss:$16 sps:$4 sm:$0xff]   ;;  %v8316_v31 = vld [vmem:[%s11145_s1 + $0x1568] ss:$16 sps:$4 sm:$0xff]  }
 0x2c5   :  { %v5502_v38 = vpop.f32.mrf.mxu1  ;;  %5796 = vmatprep.subr.bf16.mxu1 %v8255_v30  ;;  %5826 = vmatprep.mubr.bf16.mxu1 %v9572_v35  ;;  %v8267_v35 = vld [vmem:[%s11145_s1 + $0x148c] ss:$16 sps:$4 sm:$0xff]   ;;  %v8319_v17 = vld [vmem:[%s11145_s1 + $0x17e8] ss:$16 sps:$4 sm:$0xff]  }
 0x2c6   :  { %v5503_v51 = vadd.f32 %v5502_v38, %v10665_v41  ;;  %v8264_v41 = vld [vmem:[%s11145_s1 + $0x130c] ss:$16 sps:$4 sm:$0xff]  }
 0x2c7   :  { %v5504_v34 = vpop.f32.mrf.mxu1  ;;  %5780 = vmatpush2.bf16.msra.mxu0 %v8250_v25  ;;  %v8324_v30 = vld [vmem:[%s11145_s1 + $0x154c] ss:$16 sps:$4 sm:$0xff]   ;;  %v8325_v25 = vld [vmem:[%s11145_s1 + $0x17c8] ss:$16 sps:$4 sm:$0xff]  }
 0x2c8   :  { %5797 = vmatpush1.bf16.msra.mxu1 %v8253_v33  ;;  %5781 = vmatprep.subr.bf16.mxu0 %v8258_v47  ;;  %v8327_v36 = vld [vmem:[%s11145_s1 + $0x17cc] ss:$16 sps:$4 sm:$0xff]   ;;  %v8328_v47 = vld [vmem:[%s11145_s1 + $0x1528] ss:$16 sps:$4 sm:$0xff]  }
 0x2c9   :  { %v5505_v23 = vpop.f32.mrf.mxu1  ;;  %5798 = vmatprep.subr.bf16.mxu1 %v8261_v61  ;;  %v8330_v33 = vld [vmem:[%s11145_s1 + $0x152c] ss:$16 sps:$4 sm:$0xff]   ;;  %v8331_v61 = vld [vmem:[%s11145_s1 + $0x17a8] ss:$16 sps:$4 sm:$0xff]  }
 0x2ca   :  { %v8333_v38 = vld [vmem:[%s11145_s1 + $0x17ac] ss:$16 sps:$4 sm:$0xff]  }
 0x2cb   :  { %5782 = vmatpush2.bf16.msra.mxu0 %v8256_v1  ;;  %v8339_v34 = vld [vmem:[%s11145_s1 + $0x178c] ss:$16 sps:$4 sm:$0xff]   ;;  %v8334_v1 = vld [vmem:[%s11145_s1 + $0x1508] ss:$16 sps:$4 sm:$0xff]  }
 0x2cc   :  { %5799 = vmatpush1.bf16.msra.mxu1 %v8259_v22  ;;  %5783 = vmatprep.subr.bf16.mxu0 %v8264_v41  ;;  %v8337_v22 = vld [vmem:[%s11145_s1 + $0x1788] ss:$16 sps:$4 sm:$0xff]   ;;  %v8342_v23 = vld [vmem:[%s11145_s1 + $0x176c] ss:$16 sps:$4 sm:$0xff]  }
 0x2cd   :  { %5800 = vmatprep.subr.bf16.mxu1 %v8267_v35  ;;  %v8345_v41 = vld [vmem:[%s11145_s1 + $0x186c] ss:$16 sps:$4 sm:$0xff]   ;;  %v8340_v35 = vld [vmem:[%s11145_s1 + $0x1768] ss:$16 sps:$4 sm:$0xff]  }
 0x2cf   :  { %5784 = vmatpush2.bf16.msra.mxu0 %v8262_v44  ;;  %v8343_v44 = vld [vmem:[%s11145_s1 + $0x1868] ss:$16 sps:$4 sm:$0xff]  }
 0x2d0   :  { %5801 = vmatpush1.bf16.msra.mxu1 %v8265_v45  ;;  %5835 = vmatprep.subr.bf16.mxu0 %v8273_v7  ;;  %v8348_v45 = vld [vmem:[%s11145_s1 + $0x174c] ss:$16 sps:$4 sm:$0xff]  }
 0x2d1   :  { %5802 = vmatprep.subr.bf16.mxu1 %v8270_v46  ;;  %v8351_v46 = vld [vmem:[%s11145_s1 + $0x184c] ss:$16 sps:$4 sm:$0xff]  }
 0x2d2   :  { %v5541_v49 = vpop.f32.mrf.mxu0  ;;  %5786 = vmatmul.mubr.bf16.vlgmr.msra.gmra.mxu0 %v9556_v62  ;;  %v8285_v62 = vld [vmem:[%s11145_s1 + $0x16ac] ss:$16 sps:$4 sm:$0xff]  }
 0x2d3   :  { %v10853_v50 = vadd.f32 %v5541_v49, %v5501_v32  ;;  %5836 = vmatpush1.bf16.msra.mxu0 %v8271_v42  ;;  %5867 = vmatprep.mubr.bf16.mxu0 %v9576_v40  ;;  %v8291_v40 = vld [vmem:[%s11145_s1 + $0x168c] ss:$16 sps:$4 sm:$0xff]   ;;  %v8322_v32 = vld [vmem:[%s11145_s1 + $0x1548] ss:$16 sps:$4 sm:$0xff]  }
 0x2d4   :  { %5803 = vmatpush1.bf16.msra.mxu1 %v8268_v10  ;;  %v5543_v53 = vpop.f32.mrf.mxu0  ;;  %5837 = vmatprep.subr.bf16.mxu0 %v8279_v48  ;;  %v8346_v42 = vld [vmem:[%s11145_s1 + $0x1748] ss:$16 sps:$4 sm:$0xff]   ;;  %v8354_v49 = vld [vmem:[%s11145_s1 + $0x172c] ss:$16 sps:$4 sm:$0xff]  }
 0x2d5   :  { %5804 = vmatprep.subr.bf16.mxu1 %v8276_v57  ;;  %v10867_v56 = vadd.f32 %v5543_v53, %v5503_v51  ;;  %v8336_v51 = vld [vmem:[%s11145_s1 + $0x150c] ss:$16 sps:$4 sm:$0xff]   ;;  %v8349_v57 = vld [vmem:[%s11145_s1 + $0x1848] ss:$16 sps:$4 sm:$0xff]  }
 0x2d6   :  { %v5545_v59 = vpop.f32.mrf.mxu0  ;;  %v8355_v53 = vld [vmem:[%s11145_s1 + $0x1828] ss:$16 sps:$4 sm:$0xff]  }
 0x2d7   :  { %5838 = vmatpush1.bf16.msra.mxu0 %v8277_v52  ;;  %v8352_v52 = vld [vmem:[%s11145_s1 + $0x1728] ss:$16 sps:$4 sm:$0xff]  }
 0x2d8   :  { %5805 = vmatpush1.bf16.msra.mxu1 %v8274_v37  ;;  %v5546_v2 = vpop.f32.mrf.mxu0  ;;  %5839 = vmatprep.subr.bf16.mxu0 %v8285_v62  ;;  %v8360_v62 = vld [vmem:[%s11145_s1 + $0x170c] ss:$16 sps:$4 sm:$0xff]   ;;  %v8361_v59 = vld [vmem:[%s11145_s1 + $0x1808] ss:$16 sps:$4 sm:$0xff]  }
 0x2d9   :  { %5806 = vmatprep.subr.bf16.mxu1 %v8282_v55  ;;  %v8365_v2 = vld [vmem:[%s11148_s3 + $0x38] sm:$0xff]  }
 0x2db   :  { %5840 = vmatpush1.bf16.msra.mxu0 %v8283_v60  ;;  %v5918_v60 = vmax.f32 %v10460_v58, 0.0 }
 0x2dc   :  { %5807 = vmatpush1.bf16.msra.mxu1 %v8280_v15  ;;  %5841 = vmatprep.subr.bf16.mxu0 %v8291_v40  ;;  %v8364_v15 = vld [vmem:[%s11148_s3 + $0x78] sm:$0xff]  }
 0x2dd   :  { %5808 = vmatprep.subr.bf16.mxu1 %v8288_v3  ;;  %v8366_v3 = vld [vmem:[%s11148_s3 + $0x70] sm:$0xff]   ;;  %v5922_v40 = vpack.c.bf16 %v5918_v60, %v5918_v60 }
 0x2df   :  { %5842 = vmatpush1.bf16.msra.mxu0 %v8289_v5  ;;  %v8397_v5 = vld [vmem:[%s11146_s0 + $0x60] ss:$0 sps:$4 sm:$0xff]  }
 0x2e0   :  { %5809 = vmatpush1.bf16.msra.mxu1 %v8286_v39  ;;  %5843 = vmatprep.subr.bf16.mxu0 %v8297_v8 }
 0x2e1   :  { %5810 = vmatprep.subr.bf16.mxu1 %v8294_v0  ;;  %v8367_v0 = vld [vmem:[%s11148_s3 + $0x30] sm:$0xff]  }
 0x2e3   :  { %5844 = vmatpush1.bf16.msra.mxu0 %v8295_v24 }
 0x2e4   :  { %5811 = vmatpush2.bf16.msra.mxu1 %v8292_v11  ;;  %5845 = vmatprep.subr.bf16.mxu0 %v8303_v43  ;;  %v8368_v11 = vld [vmem:[%s11148_s3 + $0x68] sm:$0xff]  }
 0x2e5   :  { %5812 = vmatprep.subr.bf16.mxu1 %v8300_v27  ;;  %v8369_v27 = vld [vmem:[%s11148_s3 + $0x28] sm:$0xff]  }
 0x2e7   :  { %5846 = vmatpush1.bf16.msra.mxu0 %v8301_v12  ;;  %v8380_v12 = vld [vmem:[%s11148_s3 + $0xf8] sm:$0xff]  }
 0x2e8   :  { %5813 = vmatpush2.bf16.msra.mxu1 %v8298_v9  ;;  %5847 = vmatprep.subr.bf16.mxu0 %v8309_v14  ;;  %v8370_v9 = vld [vmem:[%s11148_s3 + $0x60] sm:$0xff]  }
 0x2e9   :  { %5814 = vmatprep.subr.bf16.mxu1 %v8306_v13  ;;  %v8381_v13 = vld [vmem:[%s11148_s3 + $0xb8] sm:$0xff]   ;;  %v8371_v14 = vld [vmem:[%s11148_s3 + $0x20] sm:$0xff]  }
 0x2eb   :  { %5848 = vmatpush1.bf16.msra.mxu0 %v8307_v19  ;;  %v8373_v19 = vld [vmem:[%s11148_s3 + $0x18] sm:$0xff]  }
 0x2ec   :  { %5815 = vmatpush2.bf16.msra.mxu1 %v8304_v6  ;;  %5849 = vmatprep.subr.bf16.mxu0 %v8315_v26  ;;  %v8372_v6 = vld [vmem:[%s11148_s3 + $0x58] sm:$0xff]   ;;  %v8375_v26 = vld [vmem:[%s11148_s3 + $0x10] sm:$0xff]  }
 0x2ed   :  { %5816 = vmatprep.subr.bf16.mxu1 %v8312_v54  ;;  %v8374_v54 = vld [vmem:[%s11148_s3 + $0x50] sm:$0xff]  }
 0x2ef   :  { %5850 = vmatpush1.bf16.msra.mxu0 %v8313_v20  ;;  %v8377_v20 = vld [vmem:[%s11148_s3 + $0x8] sm:$0xff]  }
 0x2f0   :  { %5817 = vmatpush2.bf16.msra.mxu1 %v8310_v18  ;;  %5851 = vmatprep.subr.bf16.mxu0 %v8321_v28  ;;  %v8376_v18 = vld [vmem:[%s11148_s3 + $0x48] sm:$0xff]   ;;  %v8379_v28 = vld [vmem:[%s11148_s3] sm:$0xff]  }
 0x2f1   :  { %5818 = vmatprep.subr.bf16.mxu1 %v8318_v29  ;;  %v8378_v29 = vld [vmem:[%s11148_s3 + $0x40] sm:$0xff]  }
 0x2f3   :  { %5852 = vmatpush2.bf16.msra.mxu0 %v8319_v17 }
 0x2f4   :  { %5819 = vmatpush2.bf16.msra.mxu1 %v8316_v31  ;;  %5853 = vmatprep.subr.bf16.mxu0 %v8327_v36  ;;  %v5917_v31 = vmax.f32 %v10446_v16, 0.0  ;;  %v8383_v36 = vld [vmem:[%s11148_s3 + $0xb0] sm:$0xff]   ;;  %v8384_v16 = vld [vmem:[%s11148_s3 + $0xe8] sm:$0xff]  }
 0x2f5   :  { %5820 = vmatprep.subr.bf16.mxu1 %v8324_v30  ;;  %v8382_v30 = vld [vmem:[%s11148_s3 + $0xf0] sm:$0xff]  }
 0x2f6   :  { %v5921_v17 = vpack.c.bf16 %v5917_v31, %v5917_v31 }
 0x2f7   :  { %5854 = vmatpush2.bf16.msra.mxu0 %v8325_v25 }
 0x2f8   :  { %5821 = vmatpush2.bf16.msra.mxu1 %v8322_v32  ;;  %5855 = vmatprep.subr.bf16.mxu0 %v8333_v38 }
 0x2f9   :  { %5822 = vmatprep.subr.bf16.mxu1 %v8330_v33 }
 0x2fb   :  { %5856 = vmatpush2.bf16.msra.mxu0 %v8331_v61 }
 0x2fc   :  { %5823 = vmatpush2.bf16.msra.mxu1 %v8328_v47  ;;  %5857 = vmatprep.subr.bf16.mxu0 %v8339_v34  ;;  %v8385_v47 = vld [vmem:[%s11148_s3 + $0xa8] sm:$0xff]   ;;  %v8386_v34 = vld [vmem:[%s11148_s3 + $0xe0] sm:$0xff]  }
 0x2fd   :  { %5824 = vmatprep.subr.bf16.mxu1 %v8336_v51 }
 0x2ff   :  { %5858 = vmatpush2.bf16.msra.mxu0 %v8337_v22  ;;  %v8388_v22 = vld [vmem:[%s11148_s3 + $0xd8] sm:$0xff]  }
 0x300   :  { %5825 = vmatpush2.bf16.msra.mxu1 %v8334_v1  ;;  %5859 = vmatprep.subr.bf16.mxu0 %v8342_v23  ;;  %v8387_v1 = vld [vmem:[%s11148_s3 + $0xa0] sm:$0xff]   ;;  %v8389_v23 = vld [vmem:[%s11148_s3 + $0x98] sm:$0xff]  }
 0x301   :  { %5884 = vmatprep.subr.bf16.mxu1 %v8345_v41  ;;  %v8390_v41 = vld [vmem:[%s11148_s3 + $0xd0] sm:$0xff]  }
 0x303   :  { %v5582_v7 = vpop.f32.mrf.mxu1  ;;  %5827 = vmatmul.mubr.bf16.vlgmr.msra.gmra.mxu1 %v9770_v63  ;;  %5860 = vmatpush2.bf16.msra.mxu0 %v8340_v35  ;;  %v8357_v63 = vld [vmem:[%s11145_s1 + $0x182c] ss:$16 sps:$4 sm:$0xff]   ;;  %v8391_v35 = vld [vmem:[%s11148_s3 + $0x90] sm:$0xff]  }
 0x304   :  { %v5583_v10 = vadd.f32 %v5582_v7, %v10853_v50  ;;  %5885 = vmatpush1.bf16.msra.mxu1 %v8343_v44  ;;  %5861 = vmatprep.subr.bf16.mxu0 %v8348_v45  ;;  %v8392_v7 = vld [vmem:[%s11148_s3 + $0xc8] sm:$0xff]  }
 0x305   :  { %v5584_v48 = vpop.f32.mrf.mxu1  ;;  %5886 = vmatprep.subr.bf16.mxu1 %v8351_v46  ;;  %5908 = vmatprep.mubr.bf16.mxu1 %v8398_v21  ;;  %v8363_v21 = vld [vmem:[%s11145_s1 + $0x180c] ss:$16 sps:$4 sm:$0xff]  }
 0x306   :  { %v5585_v50 = vadd.f32 %v5584_v48, %v10867_v56  ;;  %v8358_v56 = vld [vmem:[%s11145_s1 + $0x1708] ss:$16 sps:$4 sm:$0xff]  }
 0x307   :  { %v5586_v37 = vpop.f32.mrf.mxu1  ;;  %5862 = vmatpush2.bf16.msra.mxu0 %v8346_v42  ;;  %v8393_v42 = vld [vmem:[%s11148_s3 + $0x88] sm:$0xff]  }
 0x308   :  { %5887 = vmatpush1.bf16.msra.mxu1 %v8349_v57  ;;  %5863 = vmatprep.subr.bf16.mxu0 %v8354_v49  ;;  %v8394_v49 = vld [vmem:[%s11148_s3 + $0xc0] sm:$0xff]  }
 0x309   :  { %v5587_v55 = vpop.f32.mrf.mxu1  ;;  %5888 = vmatprep.subr.bf16.mxu1 %v8357_v63  ;;  %v8395_v63 = vld [vmem:[%s11148_s3 + $0x80] sm:$0xff]  }
 0x30b   :  { %5864 = vmatpush2.bf16.msra.mxu0 %v8352_v52 }
 0x30c   :  { %5889 = vmatpush1.bf16.msra.mxu1 %v8355_v53  ;;  %5865 = vmatprep.subr.bf16.mxu0 %v8360_v62 }
 0x30d   :  { %5890 = vmatprep.subr.bf16.mxu1 %v8363_v21 }
 0x30f   :  { %5866 = vmatpush2.bf16.msra.mxu0 %v8358_v56 }
 0x310   :  { %5891 = vmatpush1.bf16.msra.mxu1 %v8361_v59  ;;  %7118 = vmatprep.subr.bf16.mxu0 %v8364_v15 }
 0x311   :  { %7140 = vmatprep.subr.bf16.mxu1 %v8380_v12 }
 0x312   :  { %v5623_v39 = vpop.f32.mrf.mxu0  ;;  %5868 = vmatmul.mubr.bf16.vlgmr.msra.gmra.mxu0 %v9774_v4 }
 0x313   :  { %7084 = vmatmul.mubr.msk.bf16.vlgmr.msra.gmra.mxu1 %vm4847_vm0, %v8397_v5  ;;  %v5624_v58 = vadd.f32 %v5623_v39, %v5583_v10  ;;  %7119 = vmatpush3.bf16.msra.mxu0 %v8365_v2 }
 0x314   :  { %6220 = vmatprep.mubr.bf16.mxu0 %v5922_v40  ;;  %v5625_v8 = vpop.f32.mrf.mxu0  ;;  %7120 = vmatprep.subr.bf16.mxu0 %v8366_v3 }
 0x315   :  { %v5626_v4 = vadd.f32 %v5625_v8, %v5585_v50  ;;  %7141 = vmatpush3.bf16.msra.mxu1 %v8381_v13 }
 0x316   :  { %v5627_v24 = vpop.f32.mrf.mxu0  ;;  %7142 = vmatprep.subr.bf16.mxu1 %v8382_v30 }
 0x317   :  { %7121 = vmatpush3.bf16.msra.mxu0 %v8367_v0 }
 0x318   :  { %v5628_v43 = vpop.f32.mrf.mxu0  ;;  %7122 = vmatprep.subr.bf16.mxu0 %v8368_v11 }
 0x319   :  { %7143 = vmatpush3.bf16.msra.mxu1 %v8383_v36  ;;  %v7085_v36 = vld [vmem:[%s11149_s4] ss:$0 sm:$0xff] }
 0x31a   :  { %7144 = vmatprep.subr.bf16.mxu1 %v8384_v16 }
 0x31b   :  { %7123 = vmatpush3.bf16.msra.mxu0 %v8369_v27 }
 0x31c   :  { %7124 = vmatprep.subr.bf16.mxu0 %v8370_v9 }
 0x31d   :  { %7145 = vmatpush3.bf16.msra.mxu1 %v8385_v47 }
 0x31e   :  { %7146 = vmatprep.subr.bf16.mxu1 %v8386_v34 }
 0x31f   :  { %7125 = vmatpush3.bf16.msra.mxu0 %v8371_v14 }
 0x320   :  { %7126 = vmatprep.subr.bf16.mxu0 %v8372_v6 }
 0x321   :  { %7147 = vmatpush3.bf16.msra.mxu1 %v8387_v1 }
 0x322   :  { %7148 = vmatprep.subr.bf16.mxu1 %v8388_v22 }
 0x323   :  { %7127 = vmatpush3.bf16.msra.mxu0 %v8373_v19 }
 0x324   :  { %7128 = vmatprep.subr.bf16.mxu0 %v8374_v54 }
 0x325   :  { %7149 = vmatpush3.bf16.msra.mxu1 %v8389_v23 }
 0x326   :  { %7150 = vmatprep.subr.bf16.mxu1 %v8390_v41 }
 0x327   :  { %7129 = vmatpush3.bf16.msra.mxu0 %v8375_v26 }
 0x328   :  { %7130 = vmatprep.subr.bf16.mxu0 %v8376_v18 }
 0x329   :  { %7151 = vmatpush3.bf16.msra.mxu1 %v8391_v35 }
 0x32a   :  { %7152 = vmatprep.subr.bf16.mxu1 %v8392_v7 }
 0x32b   :  { %7131 = vmatpush3.bf16.msra.mxu0 %v8377_v20 }
 0x32c   :  { %7132 = vmatprep.subr.bf16.mxu0 %v8378_v29 }
 0x32d   :  { %7153 = vmatpush3.bf16.msra.mxu1 %v8393_v42 }
 0x32e   :  { %7154 = vmatprep.subr.bf16.mxu1 %v8394_v49 }
 0x32f   :  { %7133 = vmatpush3.bf16.msra.mxu0 %v8379_v28 }
 0x331   :  { %7155 = vmatpush3.bf16.msra.mxu1 %v8395_v63 }
 0x332   :  { %6221 = vmatmul.mubr.bf16.vlgmr.msra.gmra.mxu0 %v5921_v17 }
 0x343   :  { %v5664_v32 = vpop.f32.mrf.mxu1 }
 0x344   :  { %v5665_v25 = vadd.f32 %v5664_v32, %v5624_v58 }
 0x345   :  { %v5666_v33 = vpop.f32.mrf.mxu1 }
 0x346   :  { %v5667_v38 = vadd.f32 %v5666_v33, %v5626_v4 }
 0x347   :  { %v5668_v61 = vpop.f32.mrf.mxu1 }
 0x349   :  { %v5669_v51 = vpop.f32.mrf.mxu1 }
 0x352   :  { %v5705_v44 = vpop.f32.mrf.mxu0 }
 0x353   :  { %v5706_v45 = vadd.f32 %v5705_v44, %v5665_v25 }
 0x354   :  { %v5707_v46 = vpop.f32.mrf.mxu0 }
 0x355   :  { %v5708_v10 = vadd.f32 %v5707_v46, %v5667_v38 }
 0x356   :  { %v5709_v57 = vpop.f32.mrf.mxu0 }
 0x358   :  { %v5710_v48 = vpop.f32.mrf.mxu0 }
 0x383   :  { %v5746_v50 = vpop.f32.mrf.mxu1 }
 0x384   :  { %v5747_v37 = vadd.f32 %v5746_v50, %v5706_v45 }
 0x385   :  { %v5748_v52 = vpop.f32.mrf.mxu1 }
 0x386   :  { %v5749_v53 = vadd.f32 %v5748_v52, %v5708_v10 }
 0x387   :  { %v5750_v55 = vpop.f32.mrf.mxu1 }
 0x389   :  { %v5751_v62 = vpop.f32.mrf.mxu1 }
 0x392   :  { %v5787_v21 = vpop.f32.mrf.mxu0 }
 0x393   :  { %v5788_v39 = vadd.f32 %v5787_v21, %v5747_v37 }
 0x394   :  { %v5789_v56 = vpop.f32.mrf.mxu0 }
 0x395   :  { %v5790_v5 = vadd.f32 %v5789_v56, %v5749_v53 }
 0x396   :  { %v5791_v59 = vpop.f32.mrf.mxu0 }
 0x398   :  { %v5792_v15 = vpop.f32.mrf.mxu0 }
 0x3c3   :  { %v5828_v60 = vpop.f32.mrf.mxu1 }
 0x3c4   :  { %v5829_v58 = vadd.f32 %v5828_v60, %v5788_v39 }
 0x3c5   :  { %v5830_v2 = vpop.f32.mrf.mxu1 }
 0x3c6   :  { %v5831_v11 = vadd.f32 %v5830_v2, %v5790_v5 }
 0x3c7   :  { %v5832_v3 = vpop.f32.mrf.mxu1 }
 0x3c9   :  { %v5833_v40 = vpop.f32.mrf.mxu1 }
 0x3d2   :  { %v5869_v0 = vpop.f32.mrf.mxu0 }
 0x3d3   :  { %v5910_v8 = vpop.f32.mrf.mxu1  ;;  %v5870_v4 = vadd.f32 %v5869_v0, %v5829_v58 }
 0x3d4   :  { %v5871_v24 = vpop.f32.mrf.mxu0 }
 0x3d5   :  { %v5912_v27 = vpop.f32.mrf.mxu1  ;;  %v5911_v43 = vadd.f32 %v5910_v8, %v5870_v4  ;;  %v5872_v9 = vadd.f32 %v5871_v24, %v5831_v11 }
 0x3d6   :  { %v5873_v12 = vpop.f32.mrf.mxu0 }
 0x3d7   :  { %v5914_v13 = vpop.f32.mrf.mxu1  ;;  %v5913_v14 = vadd.f32 %v5912_v27, %v5872_v9  ;;  %v5919_v6 = vmax.f32 %v5911_v43, 0.0 }
 0x3d8   :  { %v5874_v19 = vpop.f32.mrf.mxu0 }
 0x3d9   :  { %v5915_v54 = vpop.f32.mrf.mxu1  ;;  %v5920_v26 = vmax.f32 %v5913_v14, 0.0  ;;  %v5923_v20 = vpack.c.bf16 %v5919_v6, %v5919_v6 }
 0x3db   :  { %v5924_v18 = vpack.c.bf16 %v5920_v26, %v5920_v26 }
 0x3dd   :  { %6260 = vmatprep.mubr.bf16.mxu1 %v5924_v18 }
 0x3de   :  { %6261 = vmatmul.mubr.bf16.vlgmr.msra.gmra.mxu1 %v5923_v20 }
 0x3f2   :  { %v7134_v29 = vpop.f32.mrf.mxu0 }
 0x3f4   :  { %v7135_v28 = vpop.f32.mrf.mxu0 }
 0x3f5   :  { %v7136_v31 = vadd.f32 %v7135_v28, %v7134_v29 }
 0x3f6   :  { %v7137_v17 = vpop.f32.mrf.mxu0 }
 0x3f7   :  { %v6223_v33 = vadd.f32 %v7136_v31, %v7085_v36 }
 0x3f8   :  { %v7138_v30 = vpop.f32.mrf.mxu0 }
 0x49e   :  { %v7156_v32 = vpop.f32.mrf.mxu1 }
 0x4a0   :  { %v7157_v25 = vpop.f32.mrf.mxu1 }
 0x4a1   :  { %v7158_v16 = vadd.f32 %v7157_v25, %v7156_v32 }
 0x4a2   :  { %v7159_v38 = vpop.f32.mrf.mxu1 }
 0x4a3   :  { %v6263_v47 = vadd.f32 %v7158_v16, %v6223_v33 }
 0x4a4   :  { %v7160_v61 = vpop.f32.mrf.mxu1 }
 0x4a5   :  { %6269 = vst.msk [vmem:[%s11150_s5] sm:$0xff] %vm6268_vm1, %v6263_v47 }

// kernel: mario_net1_forward.2
= control target key start
LH: loop header
LB: loop body
LE: loop exit
PB: predicated region body
PF: predicated region fallthrough
CT: control target
= control target key end

     0   :  { %s14040_s30 = smov 0   ;;  %s17846_s0 = inlined_call_operand.vmem [shape: bf16[2,400,64], index: 0, kind: input, shape index: {}]   ;;  %s17847_s1 = inlined_call_operand.vmem [shape: bf16[64,32], index: 1, kind: input, shape index: {}]   ;;  %s17848_s2 = inlined_call_operand.vmem [shape: f32[1,32], index: 2, kind: input, shape index: {}]   ;;  %s17849_s3 = inlined_call_operand.vmem [shape: bf16[16,81,400], index: 3, kind: input, shape index: {}]   ;;  %s17850_s4 = inlined_call_operand.vmem [shape: bf16[16,32,64], index: 4, kind: input, shape index: {}]   ;;  %s17851_s5 = inlined_call_operand.vmem [shape: f32[1,64], index: 5, kind: input, shape index: {}]   ;;  %s17852_s6 = inlined_call_operand.vmem [shape: bf16[9,49,81], index: 6, kind: input, shape index: {}]   ;;  %s17853_s7 = inlined_call_operand.vmem [shape: bf16[9,64,64], index: 7, kind: input, shape index: {}]   ;;  %s17854_s8 = inlined_call_operand.vmem [shape: f32[1,64], index: 8, kind: input, shape index: {}]   ;;  %s17855_s9 = inlined_call_operand.vmem [shape: bf16[2,49,64], index: 9, kind: output, shape index: {}]  }
   0x1 LB: > { %s10108_s10 = sadd.s32 4294967295, %s13985_s30   ;;  %p10112_p0 = scmp.ge.s32.totalorder %s13985_s30, 1  ;;  %s13985_s30 = sphi %s14040_s30, %s19_s30  }
   0x2   : > { %p287_p1 = scmp.lt.s32.totalorder %s13985_s30, 3 }
   0x4   : > { %p288_p2 = pnand %p10112_p0, %p287_p1 }
   0x6   : > { %291 = sbr.rel (%p288_p2) target bundleno = 6444 (0x192c), region = 56 }
   0xb   : > { %v13302_v0 = vld [vmem:[%s17847_s1 + $0x18] sm:$0xff]   ;;  %v13987_v1 = vmov 0.0   ;;  %v13303_v2 = vld [vmem:[%s17847_s1 + $0x10] sm:$0xff]   ;;  %vm13988_vm0 = vmmov 0   ;;  %p323_p3 = scmp.lt.s32.totalorder %s10108_s10, 1  ;;  %v13304_v3 = vld [vmem:[%s17847_s1 + $0x8] sm:$0xff]  }
   0xc   : > { %12601 = vmatprep.subr.bf16.mxu0 %v13987_v1  ;;  %12609 = vmatprep.mubr.msk.bf16.mxu0 %vm13988_vm0, %v13987_v1  ;;  %v13305_v4 = vld [vmem:[%s17847_s1] sm:$0xff]   ;;  %vm548_vm1 = vcmask 523264   ;;  %v13331_v29 = vld [vmem:[%s17850_s4 + $0x18] sm:$0xff]   ;;  %v13332_v31 = vld [vmem:[%s17850_s4 + $0x10] sm:$0xff]   ;;  %vm1062_vm2 = vcmask 130048   ;;  %vm1583_vm3 = vcmask 261120  }
   0xd   : > { %12602 = vmatpush3.bf16.msra.mxu0 %v13302_v0  ;;  %s17978_s10 = smov (!%p323_p3, %s10108_s10), 1  ;;  %v14180_v32 = vld [vmem:[%s17848_s2] ss:$0 sm:$0xff]  ;;  %vm8026_vm4 = vcmask 662528   ;;  %vm8039_vm5 = vcmask 1040384   ;;  %vm10040_vm6 = vcmask 519168  }
   0xe   : > { %12603 = vmatprep.subr.bf16.mxu0 %v13987_v1  ;;  %s13289_s17 = smul.u32 200, %s17978_s10  ;;  %vm10047_vm7 = vcmask 516096   ;;  %vm10048_vm8 = vsmask.f32 256 }
   0xf   : > { %s13290_s29 = smul.u32 28, %s17978_s10  ;;  %vm10049_vm9 = vmand %vm10047_vm7, %vm10048_vm8 }
  0x10   : > { %s14068_s20 = scalar_lea.vmem %s17846_s0, %s13289_s17 }
  0x11   : > { %12604 = vmatpush3.bf16.msra.mxu0 %v13303_v2  ;;  %v13306_v5 = vld [vmem:[%s14068_s20] sm:$0xff]   ;;  %v13307_v6 = vld [vmem:[%s14068_s20 + $0x8] sm:$0xff]   ;;  %v13308_v7 = vld [vmem:[%s14068_s20 + $0x10] sm:$0xff]   ;;  %s17827_s13 = scalar_lea.vmem %s17855_s9, %s13290_s29 }
  0x12   : > { %12605 = vmatprep.subr.bf16.mxu0 %v13987_v1  ;;  %v13309_v8 = vld [vmem:[%s14068_s20 + $0x18] sm:$0xff]   ;;  %v13310_v9 = vld [vmem:[%s14068_s20 + $0x20] sm:$0xff]   ;;  %v13311_v10 = vld [vmem:[%s14068_s20 + $0x28] sm:$0xff]  }
  0x13   : > { %v13312_v11 = vld [vmem:[%s14068_s20 + $0x30] sm:$0xff]   ;;  %v13313_v12 = vld [vmem:[%s14068_s20 + $0x38] sm:$0xff]   ;;  %v13314_v13 = vld [vmem:[%s14068_s20 + $0x40] sm:$0xff]  }
  0x14   : > { %v13315_v14 = vld [vmem:[%s14068_s20 + $0x48] sm:$0xff]   ;;  %v13316_v15 = vld [vmem:[%s14068_s20 + $0x50] sm:$0xff]   ;;  %v13317_v16 = vld [vmem:[%s14068_s20 + $0x58] sm:$0xff]  }
  0x15   : > { %12606 = vmatpush3.bf16.msra.mxu0 %v13304_v3  ;;  %v13318_v17 = vld [vmem:[%s14068_s20 + $0x60] sm:$0xff]   ;;  %v13319_v18 = vld [vmem:[%s14068_s20 + $0x68] sm:$0xff]   ;;  %v13320_v19 = vld [vmem:[%s14068_s20 + $0x70] sm:$0xff]  }
  0x16   : > { %12607 = vmatprep.subr.bf16.mxu0 %v13987_v1  ;;  %v13321_v20 = vld [vmem:[%s14068_s20 + $0x78] sm:$0xff]   ;;  %v13322_v21 = vld [vmem:[%s14068_s20 + $0x80] sm:$0xff]   ;;  %v13323_v22 = vld [vmem:[%s14068_s20 + $0x88] sm:$0xff]  }
  0x17   : > { %v13324_v23 = vld [vmem:[%s14068_s20 + $0x90] sm:$0xff]   ;;  %v13325_v24 = vld [vmem:[%s14068_s20 + $0x98] sm:$0xff]   ;;  %v13326_v25 = vld [vmem:[%s14068_s20 + $0xa0] sm:$0xff]  }
  0x18   : > { %v13327_v26 = vld [vmem:[%s14068_s20 + $0xa8] sm:$0xff]   ;;  %v13328_v27 = vld [vmem:[%s14068_s20 + $0xb0] sm:$0xff]   ;;  %v13329_v28 = vld [vmem:[%s14068_s20 + $0xb8] sm:$0xff]  }
  0x19   : > { %12608 = vmatpush3.bf16.msra.mxu0 %v13305_v4  ;;  %v13330_v30 = vld [vmem:[%s14068_s20 + $0xc0] sm:$0xff]  }
  0x1a   : > { %12709 = vmatprep.subr.bf16.mxu0 %v13331_v29 }
  0x1c   : > { %12610 = vmatmul.mubr.msk.bf16.vlgmr.msra.gmra.mxu0 %vm548_vm1, %v13306_v5 }
  0x1d   : > { %12613 = vmatprep.mubr.msk.bf16.mxu0 %vm13988_vm0, %v13987_v1  ;;  %12710 = vmatpush3.bf16.msra.mxu0 %v13331_v29 }
  0x1e   : > { %12711 = vmatprep.subr.bf16.mxu0 %v13332_v31 }
  0x21   : > { %12712 = vmatpush3.bf16.msra.mxu0 %v13332_v31 }
  0x24   : > { %12614 = vmatmul.mubr.msk.bf16.gmra.mxu0 %vm548_vm1, %v13307_v6 }
  0x25   : > { %12617 = vmatprep.mubr.msk.bf16.mxu0 %vm13988_vm0, %v13987_v1 }
  0x2c   : > { %12618 = vmatmul.mubr.msk.bf16.gmra.mxu0 %vm548_vm1, %v13308_v7 }
  0x2d   : > { %12621 = vmatprep.mubr.msk.bf16.mxu0 %vm13988_vm0, %v13987_v1 }
  0x34   : > { %12622 = vmatmul.mubr.msk.bf16.gmra.mxu0 %vm548_vm1, %v13309_v8 }
  0x35   : > { %12625 = vmatprep.mubr.msk.bf16.mxu0 %vm13988_vm0, %v13987_v1 }
  0x3c   : > { %12626 = vmatmul.mubr.msk.bf16.gmra.mxu0 %vm548_vm1, %v13310_v9 }
  0x3d   : > { %12629 = vmatprep.mubr.msk.bf16.mxu0 %vm13988_vm0, %v13987_v1 }
  0x44   : > { %12630 = vmatmul.mubr.msk.bf16.gmra.mxu0 %vm548_vm1, %v13311_v10 }
  0x45   : > { %12633 = vmatprep.mubr.msk.bf16.mxu0 %vm13988_vm0, %v13987_v1 }
  0x4c   : > { %12634 = vmatmul.mubr.msk.bf16.gmra.mxu0 %vm548_vm1, %v13312_v11 }
  0x4d   : > { %12637 = vmatprep.mubr.msk.bf16.mxu0 %vm13988_vm0, %v13987_v1 }
  0x54   : > { %12638 = vmatmul.mubr.msk.bf16.gmra.mxu0 %vm548_vm1, %v13313_v12 }
  0x55   : > { %12641 = vmatprep.mubr.msk.bf16.mxu0 %vm13988_vm0, %v13987_v1 }
  0x5c   : > { %12642 = vmatmul.mubr.msk.bf16.gmra.mxu0 %vm548_vm1, %v13314_v13 }
  0x5d   : > { %12645 = vmatprep.mubr.msk.bf16.mxu0 %vm13988_vm0, %v13987_v1 }
  0x64   : > { %12646 = vmatmul.mubr.msk.bf16.gmra.mxu0 %vm548_vm1, %v13315_v14 }
  0x65   : > { %12649 = vmatprep.mubr.msk.bf16.mxu0 %vm13988_vm0, %v13987_v1 }
  0x6c   : > { %12650 = vmatmul.mubr.msk.bf16.gmra.mxu0 %vm548_vm1, %v13316_v15 }
  0x6d   : > { %12653 = vmatprep.mubr.msk.bf16.mxu0 %vm13988_vm0, %v13987_v1 }
  0x74   : > { %12654 = vmatmul.mubr.msk.bf16.gmra.mxu0 %vm548_vm1, %v13317_v16 }
  0x75   : > { %12657 = vmatprep.mubr.msk.bf16.mxu0 %vm13988_vm0, %v13987_v1 }
  0x7c   : > { %12658 = vmatmul.mubr.msk.bf16.gmra.mxu0 %vm548_vm1, %v13318_v17 }
  0x7d   : > { %12661 = vmatprep.mubr.msk.bf16.mxu0 %vm13988_vm0, %v13987_v1 }
  0x84   : > { %12662 = vmatmul.mubr.msk.bf16.gmra.mxu0 %vm548_vm1, %v13319_v18 }
  0x85   : > { %12665 = vmatprep.mubr.msk.bf16.mxu0 %vm13988_vm0, %v13987_v1 }
  0x8c   : > { %12666 = vmatmul.mubr.msk.bf16.gmra.mxu0 %vm548_vm1, %v13320_v19  ;;  %v13335_v19 = vld [vmem:[%s17849_s3 + $0x4] ss:$16 sps:$4 sm:$0xff]  }
  0x8d   : > { %12669 = vmatprep.mubr.msk.bf16.mxu0 %vm13988_vm0, %v13987_v1  ;;  %1113 = vmatprep.mubr.bf16.mxu1 %v13335_v19 }
  0x94   : > { %12670 = vmatmul.mubr.msk.bf16.gmra.mxu0 %vm548_vm1, %v13321_v20 }
  0x95   : > { %12673 = vmatprep.mubr.msk.bf16.mxu0 %vm13988_vm0, %v13987_v1 }
  0x9c   : > { %12674 = vmatmul.mubr.msk.bf16.gmra.mxu0 %vm548_vm1, %v13322_v21 }
  0x9d   : > { %12677 = vmatprep.mubr.msk.bf16.mxu0 %vm13988_vm0, %v13987_v1 }
  0xa4   : > { %12678 = vmatmul.mubr.msk.bf16.gmra.mxu0 %vm548_vm1, %v13323_v22 }
  0xa5   : > { %12681 = vmatprep.mubr.msk.bf16.mxu0 %vm13988_vm0, %v13987_v1 }
  0xac   : > { %12682 = vmatmul.mubr.msk.bf16.gmra.mxu0 %vm548_vm1, %v13324_v23 }
  0xad   : > { %12685 = vmatprep.mubr.msk.bf16.mxu0 %vm13988_vm0, %v13987_v1 }
  0xb4   : > { %12686 = vmatmul.mubr.msk.bf16.gmra.mxu0 %vm548_vm1, %v13325_v24 }
  0xb5   : > { %12689 = vmatprep.mubr.msk.bf16.mxu0 %vm13988_vm0, %v13987_v1 }
  0xbc   : > { %12690 = vmatmul.mubr.msk.bf16.gmra.mxu0 %vm548_vm1, %v13326_v25 }
  0xbd   : > { %12693 = vmatprep.mubr.msk.bf16.mxu0 %vm13988_vm0, %v13987_v1 }
  0xc4   : > { %12694 = vmatmul.mubr.msk.bf16.gmra.mxu0 %vm548_vm1, %v13327_v26 }
  0xc5   : > { %12697 = vmatprep.mubr.msk.bf16.mxu0 %vm13988_vm0, %v13987_v1 }
  0xcc   : > { %12698 = vmatmul.mubr.msk.bf16.gmra.mxu0 %vm548_vm1, %v13328_v27 }
  0xcd   : > { %12701 = vmatprep.mubr.msk.bf16.mxu0 %vm13988_vm0, %v13987_v1 }
  0xd4   : > { %12702 = vmatmul.mubr.msk.bf16.gmra.mxu0 %vm548_vm1, %v13329_v28 }
  0xd5   : > { %12705 = vmatprep.mubr.msk.bf16.mxu0 %vm13988_vm0, %v13987_v1 }
  0xdc   : > { %v658_v33 = vpop.f32.mrf.mxu0  ;;  %12706 = vmatmul.mubr.msk.bf16.gmra.mxu0 %vm548_vm1, %v13330_v30 }
  0xdd   : > { %v659_v35 = vadd.f32 %v14180_v32, %v658_v33 }
  0xde   : > { %v12611_v34 = vpop.f32.mrf.mxu0 }
  0xdf   : > { %v857_v39 = vmax.f32 %v659_v35, 0.0 }
  0xe0   : > { %v661_v36 = vpop.f32.mrf.mxu0 }
  0xe1   : > { %v662_v37 = vadd.f32 %v14180_v32, %v661_v36 }
  0xe2   : > { %v12612_v38 = vpop.f32.mrf.mxu0 }
  0xe3   : > { %v858_v40 = vmax.f32 %v662_v37, 0.0 }
  0xe4   : > { %v666_v41 = vpop.f32.mrf.mxu0 }
  0xe5   : > { %v14185_v42 = vpack.c.bf16 %v858_v40, %v857_v39  ;;  %v667_v44 = vadd.f32 %v14180_v32, %v666_v41 }
  0xe6   : > { %v12615_v43 = vpop.f32.mrf.mxu0 }
  0xe7   : > { %v859_v48 = vmax.f32 %v667_v44, 0.0 }
  0xe8   : > { %v669_v45 = vpop.f32.mrf.mxu0 }
  0xe9   : > { %v670_v46 = vadd.f32 %v14180_v32, %v669_v45 }
  0xea   : > { %v12616_v47 = vpop.f32.mrf.mxu0 }
  0xeb   : > { %v860_v49 = vmax.f32 %v670_v46, 0.0 }
  0xec   : > { %v674_v50 = vpop.f32.mrf.mxu0 }
  0xed   : > { %v14189_v51 = vpack.c.bf16 %v860_v49, %v859_v48  ;;  %v675_v53 = vadd.f32 %v14180_v32, %v674_v50 }
  0xee   : > { %v12619_v52 = vpop.f32.mrf.mxu0 }
  0xef   : > { %v861_v57 = vmax.f32 %v675_v53, 0.0 }
  0xf0   : > { %v677_v54 = vpop.f32.mrf.mxu0 }
  0xf1   : > { %v678_v55 = vadd.f32 %v14180_v32, %v677_v54 }
  0xf2   : > { %v12620_v56 = vpop.f32.mrf.mxu0 }
  0xf3   : > { %v862_v58 = vmax.f32 %v678_v55, 0.0 }
  0xf4   : > { %v682_v59 = vpop.f32.mrf.mxu0 }
  0xf5   : > { %v14193_v60 = vpack.c.bf16 %v862_v58, %v861_v57  ;;  %v683_v62 = vadd.f32 %v14180_v32, %v682_v59 }
  0xf6   : > { %v12623_v61 = vpop.f32.mrf.mxu0 }
  0xf7   : > { %v863_v2 = vmax.f32 %v683_v62, 0.0 }
  0xf8   : > { %v685_v63 = vpop.f32.mrf.mxu0 }
  0xf9   : > { %v686_v0 = vadd.f32 %v14180_v32, %v685_v63 }
  0xfa   : > { %v12624_v1 = vpop.f32.mrf.mxu0 }
  0xfb   : > { %v864_v3 = vmax.f32 %v686_v0, 0.0 }
  0xfc   : > { %v690_v4 = vpop.f32.mrf.mxu0 }
  0xfd   : > { %v14197_v5 = vpack.c.bf16 %v864_v3, %v863_v2  ;;  %v691_v7 = vadd.f32 %v14180_v32, %v690_v4 }
  0xfe   : > { %v12627_v6 = vpop.f32.mrf.mxu0 }
  0xff   : > { %v865_v11 = vmax.f32 %v691_v7, 0.0 }
 0x100   : > { %v693_v8 = vpop.f32.mrf.mxu0 }
 0x101   : > { %v694_v9 = vadd.f32 %v14180_v32, %v693_v8 }
 0x102   : > { %v12628_v10 = vpop.f32.mrf.mxu0 }
 0x103   : > { %v866_v12 = vmax.f32 %v694_v9, 0.0 }
 0x104   : > { %v698_v13 = vpop.f32.mrf.mxu0 }
 0x105   : > { %v14201_v14 = vpack.c.bf16 %v866_v12, %v865_v11  ;;  %v699_v16 = vadd.f32 %v14180_v32, %v698_v13 }
 0x106   : > { %v12631_v15 = vpop.f32.mrf.mxu0 }
 0x107   : > { %v867_v21 = vmax.f32 %v699_v16, 0.0 }
 0x108   : > { %v701_v17 = vpop.f32.mrf.mxu0 }
 0x109   : > { %v702_v18 = vadd.f32 %v14180_v32, %v701_v17 }
 0x10a   : > { %v12632_v20 = vpop.f32.mrf.mxu0 }
 0x10b   : > { %v868_v22 = vmax.f32 %v702_v18, 0.0 }
 0x10c   : > { %v706_v23 = vpop.f32.mrf.mxu0 }
 0x10d   : > { %v14208_v24 = vpack.c.bf16 %v868_v22, %v867_v21  ;;  %v707_v26 = vadd.f32 %v14180_v32, %v706_v23 }
 0x10e   : > { %v12635_v25 = vpop.f32.mrf.mxu0 }
 0x10f   : > { %v869_v30 = vmax.f32 %v707_v26, 0.0 }
 0x110   : > { %v709_v27 = vpop.f32.mrf.mxu0 }
 0x111   : > { %v710_v28 = vadd.f32 %v14180_v32, %v709_v27 }
 0x112   : > { %v12636_v29 = vpop.f32.mrf.mxu0 }
 0x113   : > { %v870_v31 = vmax.f32 %v710_v28, 0.0 }
 0x114   : > { %v714_v33 = vpop.f32.mrf.mxu0 }
 0x115   : > { %v14212_v34 = vpack.c.bf16 %v870_v31, %v869_v30  ;;  %v715_v36 = vadd.f32 %v14180_v32, %v714_v33 }
 0x116   : > { %v12639_v35 = vpop.f32.mrf.mxu0 }
 0x117   : > { %v871_v40 = vmax.f32 %v715_v36, 0.0 }
 0x118   : > { %v717_v37 = vpop.f32.mrf.mxu0 }
 0x119   : > { %v718_v38 = vadd.f32 %v14180_v32, %v717_v37 }
 0x11a   : > { %v12640_v39 = vpop.f32.mrf.mxu0 }
 0x11b   : > { %v872_v41 = vmax.f32 %v718_v38, 0.0 }
 0x11c   : > { %v722_v43 = vpop.f32.mrf.mxu0 }
 0x11d   : > { %v14216_v44 = vpack.c.bf16 %v872_v41, %v871_v40  ;;  %v723_v46 = vadd.f32 %v14180_v32, %v722_v43 }
 0x11e   : > { %v12643_v45 = vpop.f32.mrf.mxu0 }
 0x11f   : > { %v873_v50 = vmax.f32 %v723_v46, 0.0 }
 0x120   : > { %v725_v47 = vpop.f32.mrf.mxu0 }
 0x121   : > { %v726_v48 = vadd.f32 %v14180_v32, %v725_v47 }
 0x122   : > { %v12644_v49 = vpop.f32.mrf.mxu0 }
 0x123   : > { %v874_v52 = vmax.f32 %v726_v48, 0.0 }
 0x124   : > { %v730_v53 = vpop.f32.mrf.mxu0 }
 0x125   : > { %v14220_v54 = vpack.c.bf16 %v874_v52, %v873_v50  ;;  %v731_v56 = vadd.f32 %v14180_v32, %v730_v53 }
 0x126   : > { %v12647_v55 = vpop.f32.mrf.mxu0 }
 0x127   : > { %v875_v61 = vmax.f32 %v731_v56, 0.0 }
 0x128   : > { %v733_v57 = vpop.f32.mrf.mxu0 }
 0x129   : > { %v734_v58 = vadd.f32 %v14180_v32, %v733_v57 }
 0x12a   : > { %v12648_v59 = vpop.f32.mrf.mxu0 }
 0x12b   : > { %v876_v62 = vmax.f32 %v734_v58, 0.0 }
 0x12c   : > { %v14224_v63 = vpop.f32.mrf.mxu0 }
 0x12d   : > { %v14226_v0 = vpack.c.bf16 %v876_v62, %v875_v61 }
 0x12e   : > { %v12651_v1 = vpop.f32.mrf.mxu0 }
 0x130   : > { %v741_v2 = vpop.f32.mrf.mxu0 }
 0x132   : > { %v12652_v3 = vpop.f32.mrf.mxu0 }
 0x134   : > { %v746_v4 = vpop.f32.mrf.mxu0 }
 0x135   : > { %v747_v62 = vadd.f32 %v14180_v32, %v746_v4 }
 0x136   : > { %v12655_v6 = vpop.f32.mrf.mxu0 }
 0x137   : > { %v879_v4 = vmax.f32 %v747_v62, 0.0 }
 0x138   : > { %v749_v7 = vpop.f32.mrf.mxu0 }
 0x139   : > { %v750_v53 = vadd.f32 %v14180_v32, %v749_v7 }
 0x13a   : > { %v12656_v8 = vpop.f32.mrf.mxu0 }
 0x13b   : > { %v742_v8 = vadd.f32 %v14180_v32, %v741_v2  ;;  %v880_v7 = vmax.f32 %v750_v53, 0.0 }
 0x13c   : > { %v754_v9 = vpop.f32.mrf.mxu0 }
 0x13d   : > { %v755_v49 = vadd.f32 %v14180_v32, %v754_v9 }
 0x13e   : > { %v12659_v10 = vpop.f32.mrf.mxu0 }
 0x13f   : > { %v881_v1 = vmax.f32 %v755_v49, 0.0  ;;  %v13341_v49 = vld [vmem:[%s17849_s3 + $0x40] ss:$16 sps:$4 sm:$0xff]  }
 0x140   : > { %v757_v11 = vpop.f32.mrf.mxu0 }
 0x141   : > { %v758_v43 = vadd.f32 %v14180_v32, %v757_v11 }
 0x142   : > { %v12660_v12 = vpop.f32.mrf.mxu0 }
 0x143   : > { %v882_v56 = vmax.f32 %v758_v43, 0.0  ;;  %v739_v12 = vadd.f32 %v14180_v32, %v14224_v63  ;;  %v13339_v43 = vld [vmem:[%s17849_s3 + $0x44] ss:$16 sps:$4 sm:$0xff]  }
 0x144   : > { %v762_v13 = vpop.f32.mrf.mxu0 }
 0x145   : > { %v763_v38 = vadd.f32 %v14180_v32, %v762_v13  ;;  %v14255_v9 = vpack.c.bf16 %v882_v56, %v881_v1 }
 0x146   : > { %v12663_v15 = vpop.f32.mrf.mxu0 }
 0x147   : > { %v883_v50 = vmax.f32 %v763_v38, 0.0 }
 0x148   : > { %v765_v16 = vpop.f32.mrf.mxu0 }
 0x149   : > { %v766_v31 = vadd.f32 %v14180_v32, %v765_v16  ;;  %v878_v16 = vmax.f32 %v742_v8, 0.0 }
 0x14a   : > { %v12664_v17 = vpop.f32.mrf.mxu0 }
 0x14b   : > { %v884_v45 = vmax.f32 %v766_v31, 0.0  ;;  %v14263_v17 = vpack.c.bf16 %v880_v7, %v879_v4 }
 0x14c   : > { %v770_v18 = vpop.f32.mrf.mxu0 }
 0x14d   : > { %v771_v28 = vadd.f32 %v14180_v32, %v770_v18  ;;  %v14247_v57 = vpack.c.bf16 %v884_v45, %v883_v50 }
 0x14e   : > { %v12667_v19 = vpop.f32.mrf.mxu0 }
 0x14f   : > { %v885_v39 = vmax.f32 %v771_v28, 0.0 }
 0x150   : > { %v773_v20 = vpop.f32.mrf.mxu0 }
 0x151   : > { %v774_v25 = vadd.f32 %v14180_v32, %v773_v20  ;;  %v877_v20 = vmax.f32 %v739_v12, 0.0 }
 0x152   : > { %v12668_v21 = vpop.f32.mrf.mxu0 }
 0x153   : > { %v886_v33 = vmax.f32 %v774_v25, 0.0 }
 0x154   : > { %v778_v22 = vpop.f32.mrf.mxu0 }
 0x155   : > { %v779_v26 = vadd.f32 %v14180_v32, %v778_v22  ;;  %v14237_v46 = vpack.c.bf16 %v886_v33, %v885_v39  ;;  %v14271_v22 = vpack.c.bf16 %v878_v16, %v877_v20  ;;  %v13336_v33 = vld [vmem:[%s17849_s3 + $0x24] ss:$16 sps:$4 sm:$0xff]   ;;  %v13338_v39 = vld [vmem:[%s17849_s3 + $0x20] ss:$16 sps:$4 sm:$0xff]  }
 0x156   : > { %v12671_v23 = vpop.f32.mrf.mxu0 }
 0x157   : > { %v887_v35 = vmax.f32 %v779_v26, 0.0 }
 0x158   : > { %v781_v27 = vpop.f32.mrf.mxu0 }
 0x159   : > { %v782_v29 = vadd.f32 %v14180_v32, %v781_v27 }
 0x15a   : > { %v12672_v30 = vpop.f32.mrf.mxu0 }
 0x15b   : > { %v888_v36 = vmax.f32 %v782_v29, 0.0  ;;  %v13333_v30 = vld [vmem:[%s17849_s3] ss:$16 sps:$4 sm:$0xff]  }
 0x15c   : > { %v786_v37 = vpop.f32.mrf.mxu0 }
 0x15d   : > { %v14234_v40 = vpack.c.bf16 %v888_v36, %v887_v35  ;;  %v787_v47 = vadd.f32 %v14180_v32, %v786_v37  ;;  %v17856_v35 = vmov 0  }
 0x15e   : > { %v12675_v41 = vpop.f32.mrf.mxu0 }
 0x15f   : > { %17860 = vst [vmem:[#allocation2_spill] sm:$0xff] %v14234_v40  ;;  %11479 = vmatprep.subr.bf16.mxu1 %v14234_v40  ;;  %11599 = vmatprep.subr.bf16.mxu0 %v14234_v40  ;;  %v889_v58 = vmax.f32 %v787_v47, 0.0 }
 0x160   : > { %v789_v48 = vpop.f32.mrf.mxu0  ;;  %11480 = vmatpush3.bf16.msra.mxu1 %v14216_v44 }
 0x161   : > { %v790_v52 = vadd.f32 %v14180_v32, %v789_v48  ;;  %11481 = vmatprep.subr.bf16.mxu1 %v14237_v46 }
 0x162   : > { %v12676_v55 = vpop.f32.mrf.mxu0 }
 0x163   : > { %v890_v59 = vmax.f32 %v790_v52, 0.0  ;;  %v13342_v52 = vld [vmem:[%s17849_s3 + $0x64] ss:$16 sps:$4 sm:$0xff]  }
 0x164   : > { %v794_v61 = vpop.f32.mrf.mxu0  ;;  %11482 = vmatpush3.bf16.msra.mxu1 %v14212_v34 }
 0x165   : > { %v14251_v3 = vpack.c.bf16 %v890_v59, %v889_v58  ;;  %11483 = vmatprep.subr.bf16.mxu1 %v14247_v57  ;;  %v795_v10 = vadd.f32 %v14180_v32, %v794_v61  ;;  %v13344_v58 = vld [vmem:[%s17849_s3 + $0x60] ss:$16 sps:$4 sm:$0xff]   ;;  %v13345_v61 = vld [vmem:[%s17849_s3 + $0x84] ss:$16 sps:$4 sm:$0xff]  }
 0x166   : > { %v12679_v6 = vpop.f32.mrf.mxu0 }
 0x167   : > { %v891_v2 = vmax.f32 %v795_v10, 0.0 }
 0x168   : > { %v797_v11 = vpop.f32.mrf.mxu0  ;;  %11484 = vmatpush3.bf16.msra.mxu1 %v14208_v24 }
 0x169   : > { %v798_v13 = vadd.f32 %v14180_v32, %v797_v11  ;;  %11485 = vmatprep.subr.bf16.mxu1 %v14255_v9  ;;  %v952_v11 = vld [vmem:[%s17849_s3 + $0xa0] sm:$0x11] }
 0x16a   : > { %v12680_v15 = vpop.f32.mrf.mxu0 }
 0x16b   : > { %v892_v18 = vmax.f32 %v798_v13, 0.0  ;;  %v13347_v15 = vld [vmem:[%s17849_s3 + $0x80] ss:$16 sps:$4 sm:$0xff]  }
 0x16c   : > { %v14265_v19 = vpop.f32.mrf.mxu0  ;;  %11486 = vmatpush3.bf16.msra.mxu1 %v14201_v14 }
 0x16d   : > { %v14268_v21 = vpack.c.bf16 %v892_v18, %v891_v2  ;;  %11487 = vmatprep.subr.bf16.mxu1 %v14263_v17 }
 0x16e   : > { %v12683_v63 = vpop.f32.mrf.mxu0 }
 0x16f   : > { %v10191_v63 = vcombine.high %v952_v11, %v952_v11 }
 0x170   : > { %v14273_v23 = vpop.f32.mrf.mxu0  ;;  %11488 = vmatpush3.bf16.msra.mxu1 %v14197_v5 }
 0x171   : > { %11489 = vmatprep.subr.bf16.mxu1 %v14271_v22 }
 0x172   : > { %v12684_v25 = vpop.f32.mrf.mxu0 }
 0x174   : > { %v14277_v26 = vpop.f32.mrf.mxu0  ;;  %11490 = vmatpush3.bf16.msra.mxu1 %v14193_v60 }
 0x175   : > { %11491 = vmatprep.subr.bf16.mxu1 %v14226_v0 }
 0x176   : > { %v12687_v27 = vpop.f32.mrf.mxu0 }
 0x178   : > { %v14281_v28 = vpop.f32.mrf.mxu0  ;;  %11492 = vmatpush3.bf16.msra.mxu1 %v14189_v51 }
 0x179   : > { %11493 = vmatprep.subr.bf16.mxu1 %v14220_v54 }
 0x17a   : > { %v12688_v29 = vpop.f32.mrf.mxu0 }
 0x17c   : > { %v818_v31 = vpop.f32.mrf.mxu0  ;;  %11494 = vmatpush3.bf16.msra.mxu1 %v14185_v42 }
 0x17d   : > { %1161 = vmatprep.subr.bf16.mxu1 %v17856_v35 }
 0x17e   : > { %v12691_v36 = vpop.f32.mrf.mxu0 }
 0x17f   : > { %1114 = vmatmul.mubr.bf16.vlgmr.msra.gmra.mxu1 %v13333_v30 }
 0x180   : > { %v821_v37 = vpop.f32.mrf.mxu0  ;;  %1121 = vmatprep.mubr.bf16.mxu1 %v13336_v33 }
 0x181   : > { %v822_v33 = vadd.f32 %v14180_v32, %v821_v37  ;;  %v13352_v37 = vld [vmem:[%s17849_s3 + $0xc] ss:$16 sps:$4 sm:$0xff]  }
 0x182   : > { %v12692_v38 = vpop.f32.mrf.mxu0 }
 0x184   : > { %v826_v41 = vpop.f32.mrf.mxu0 }
 0x185   : > { %v827_v27 = vadd.f32 %v14180_v32, %v826_v41  ;;  %v10190_v41 = vcombine.low %v952_v11, %v952_v11  ;;  %v13358_v11 = vld [vmem:[%s17849_s3 + $0x48] ss:$16 sps:$4 sm:$0xff]  }
 0x186   : > { %v12695_v45 = vpop.f32.mrf.mxu0 }
 0x187   : > { %1122 = vmatmul.mubr.bf16.gmra.mxu1 %v13338_v39  ;;  %v899_v45 = vmax.f32 %v827_v27, 0.0  ;;  %v13370_v27 = vld [vmem:[%s17849_s3 + $0xd4] ss:$16 sps:$4 sm:$0xff]  }
 0x188   : > { %v829_v47 = vpop.f32.mrf.mxu0  ;;  %1129 = vmatprep.mubr.bf16.mxu1 %v13339_v43  ;;  %v819_v43 = vadd.f32 %v14180_v32, %v818_v31  ;;  %v811_v31 = vadd.f32 %v14180_v32, %v14277_v26 }
 0x189   : > { %v830_v2 = vadd.f32 %v14180_v32, %v829_v47  ;;  %v814_v47 = vadd.f32 %v14180_v32, %v14281_v28  ;;  %v806_v28 = vadd.f32 %v14180_v32, %v14273_v23 }
 0x18a   : > { %v12696_v48 = vpop.f32.mrf.mxu0 }
 0x18b   : > { %v900_v36 = vmax.f32 %v830_v2, 0.0  ;;  %v898_v48 = vmax.f32 %v822_v33, 0.0  ;;  %v894_v26 = vmax.f32 %v806_v28, 0.0  ;;  %v13375_v33 = vld [vmem:[%s17849_s3 + $0xf0] ss:$16 sps:$4 sm:$0xff]  }
 0x18c   : > { %v834_v50 = vpop.f32.mrf.mxu0  ;;  %v13387_v28 = vld [vmem:[%s17849_s3 + $0xdc] ss:$16 sps:$4 sm:$0xff]  }
 0x18d   : > { %v835_v12 = vadd.f32 %v14180_v32, %v834_v50  ;;  %v897_v50 = vmax.f32 %v819_v43, 0.0  ;;  %v13379_v43 = vld [vmem:[%s17849_s3 + $0x134] ss:$16 sps:$4 sm:$0xff]  }
 0x18e   : > { %v12699_v53 = vpop.f32.mrf.mxu0 }
 0x18f   : > { %1130 = vmatmul.mubr.bf16.gmra.mxu1 %v13341_v49  ;;  %v901_v29 = vmax.f32 %v835_v12, 0.0  ;;  %v14335_v49 = vpack.c.bf16 %v900_v36, %v899_v45  ;;  %v14346_v53 = vpack.c.bf16 %v898_v48, %v897_v50  ;;  %v13359_v12 = vld [vmem:[%s17849_s3 + $0x6c] ss:$16 sps:$4 sm:$0xff]   ;;  %v13376_v36 = vld [vmem:[%s17849_s3 + $0x114] ss:$16 sps:$4 sm:$0xff]  }
 0x190   : > { %v837_v55 = vpop.f32.mrf.mxu0  ;;  %1137 = vmatprep.mubr.bf16.mxu1 %v13342_v52  ;;  %v896_v52 = vmax.f32 %v814_v47, 0.0  ;;  %v10220_v45 = vld [vmem:[%s17849_s3 + $0x150] sm:$0x11]  ;;  %v13401_v48 = vld [vmem:[%s17850_s4 + $0x8] sm:$0xff]  }
 0x191   : > { %v838_v8 = vadd.f32 %v14180_v32, %v837_v55  ;;  %v803_v55 = vadd.f32 %v14180_v32, %v14265_v19  ;;  %v10243_v47 = vcombine.high %v10220_v45, %v10220_v45  ;;  %v13384_v50 = vld [vmem:[%s17849_s3 + $0xb8] ss:$16 sps:$4 sm:$0xff]  }
 0x192   : > { %v12700_v56 = vpop.f32.mrf.mxu0 }
 0x193   : > { %v902_v18 = vmax.f32 %v838_v8, 0.0  ;;  %v895_v56 = vmax.f32 %v811_v31, 0.0  ;;  %v13350_v8 = vld [vmem:[%s17849_s3 + $0x8] ss:$16 sps:$4 sm:$0xff]   ;;  %v13386_v31 = vld [vmem:[%s17849_s3 + $0xbc] ss:$16 sps:$4 sm:$0xff]  }
 0x194   : > { %v842_v59 = vpop.f32.mrf.mxu0 }
 0x195   : > { %v843_v1 = vadd.f32 %v14180_v32, %v842_v59  ;;  %v14328_v38 = vpack.c.bf16 %v902_v18, %v901_v29  ;;  %v893_v59 = vmax.f32 %v803_v55, 0.0  ;;  %v13372_v29 = vld [vmem:[%s17849_s3 + $0xd0] ss:$16 sps:$4 sm:$0xff]   ;;  %v13389_v55 = vld [vmem:[%s17849_s3 + $0xd8] ss:$16 sps:$4 sm:$0xff]  }
 0x196   : > { %v12703_v62 = vpop.f32.mrf.mxu0 }
 0x197   : > { %1138 = vmatmul.mubr.bf16.gmra.mxu1 %v13344_v58  ;;  %v903_v4 = vmax.f32 %v843_v1, 0.0  ;;  %v14353_v58 = vpack.c.bf16 %v896_v52, %v895_v56  ;;  %v14357_v23 = vpack.c.bf16 %v894_v26, %v893_v59  ;;  %v13402_v52 = vld [vmem:[%s17850_s4] sm:$0xff]   ;;  %v13390_v56 = vld [vmem:[%s17849_s3 + $0xfc] ss:$16 sps:$4 sm:$0xff]   ;;  %v13392_v26 = vld [vmem:[%s17849_s3 + $0xf8] ss:$16 sps:$4 sm:$0xff]  }
 0x198   : > { %v845_v6 = vpop.f32.mrf.mxu0  ;;  %1145 = vmatprep.mubr.bf16.mxu1 %v13345_v61  ;;  %v13393_v59 = vld [vmem:[%s17849_s3 + $0x11c] ss:$16 sps:$4 sm:$0xff]  }
 0x199   : > { %v846_v7 = vadd.f32 %v14180_v32, %v845_v6 }
 0x19a   : > { %v12704_v10 = vpop.f32.mrf.mxu0 }
 0x19b   : > { %v904_v13 = vmax.f32 %v846_v7, 0.0  ;;  %v13355_v7 = vld [vmem:[%s17849_s3 + $0x28] ss:$16 sps:$4 sm:$0xff]   ;;  %v13356_v10 = vld [vmem:[%s17849_s3 + $0x4c] ss:$16 sps:$4 sm:$0xff]  }
 0x19c   : > { %v850_v16 = vpop.f32.mrf.mxu0 }
 0x19d   : > { %v14322_v20 = vpack.c.bf16 %v904_v13, %v903_v4  ;;  %v851_v19 = vadd.f32 %v14180_v32, %v850_v16  ;;  %v13361_v4 = vld [vmem:[%s17849_s3 + $0x68] ss:$16 sps:$4 sm:$0xff]   ;;  %v13362_v13 = vld [vmem:[%s17849_s3 + $0x8c] ss:$16 sps:$4 sm:$0xff]  }
 0x19e   : > { %v12707_v25 = vpop.f32.mrf.mxu0  ;;  %v13364_v16 = vld [vmem:[%s17849_s3 + $0x88] ss:$16 sps:$4 sm:$0xff]  }
 0x19f   : > { %1162 = vmatpush1.bf16.msra.mxu1 %v14322_v20  ;;  %v905_v62 = vmax.f32 %v851_v19, 0.0  ;;  %v13367_v25 = vld [vmem:[%s17849_s3 + $0xb0] ss:$16 sps:$4 sm:$0xff]   ;;  %v13395_v19 = vld [vmem:[%s17849_s3 + $0x118] ss:$16 sps:$4 sm:$0xff]  }
 0x1a0   : > { %1163 = vmatprep.subr.bf16.mxu1 %v17856_v35  ;;  %1146 = vmatmul.mubr.bf16.gmra.mxu1 %v13347_v15  ;;  %v853_v30 = vpop.f32.mrf.mxu0  ;;  %v953_v15 = vld [vmem:[%s17849_s3 + $0xa8] sm:$0x11] }
 0x1a1   : > { %1153 = vmatprep.mubr.bf16.mxu1 %v10191_v63  ;;  %v854_v61 = vadd.f32 %v14180_v32, %v853_v30  ;;  %v13353_v32 = vld [vmem:[%s17849_s3 + $0x2c] ss:$16 sps:$4 sm:$0xff]   ;;  %v10193_v2 = vcombine.high %v953_v15, %v953_v15  ;;  %v10192_v18 = vcombine.low %v953_v15, %v953_v15  ;;  %v13369_v63 = vld [vmem:[%s17849_s3 + $0xb4] ss:$16 sps:$4 sm:$0xff]  }
 0x1a2   : > { %v12708_v39 = vpop.f32.mrf.mxu0  ;;  %v13373_v30 = vld [vmem:[%s17849_s3 + $0xf4] ss:$16 sps:$4 sm:$0xff]  }
 0x1a3   : > { %1164 = vmatpush1.bf16.msra.mxu1 %v14328_v38  ;;  %v906_v1 = vmax.f32 %v854_v61, 0.0  ;;  %v13378_v39 = vld [vmem:[%s17849_s3 + $0x110] ss:$16 sps:$4 sm:$0xff]   ;;  %v13396_v61 = vld [vmem:[%s17849_s3 + $0x13c] ss:$16 sps:$4 sm:$0xff]  }
 0x1a4   : > { %1165 = vmatprep.subr.bf16.mxu1 %v17856_v35 }
 0x1a5   : > { %v14367_v6 = vpack.c.bf16 %v906_v1, %v905_v62  ;;  %v10221_v62 = vld [vmem:[%s17849_s3 + $0x158] sm:$0x11] }
 0x1a6   : > { %v13398_v1 = vld [vmem:[%s17849_s3 + $0x138] ss:$16 sps:$4 sm:$0xff]  }
 0x1a7   : > { %1166 = vmatpush1.bf16.msra.mxu1 %v14335_v49 }
 0x1a8   : > { %1167 = vmatprep.subr.bf16.mxu1 %v17856_v35  ;;  %1154 = vmatmul.mubr.bf16.gmra.mxu1 %v10190_v41  ;;  %v13381_v41 = vld [vmem:[%s17849_s3 + $0x130] ss:$16 sps:$4 sm:$0xff]  }
 0x1a9   : > { %10194 = vmatprep.mubr.msk.bf16.mxu1 %vm1062_vm2, %v13352_v37  ;;  %v10242_v37 = vcombine.low %v10220_v45, %v10220_v45 }
 0x1ab   : > { %1168 = vmatpush1.bf16.msra.mxu1 %v14346_v53 }
 0x1ac   : > { %1169 = vmatprep.subr.bf16.mxu1 %v17856_v35 }
 0x1af   : > { %1170 = vmatpush1.bf16.msra.mxu1 %v14353_v58 }
 0x1b0   : > { %1171 = vmatprep.subr.bf16.mxu1 %v17856_v35 }
 0x1b3   : > { %1172 = vmatpush1.bf16.msra.mxu1 %v14357_v23 }
 0x1b4   : > { %1173 = vmatprep.subr.bf16.mxu1 %v17856_v35 }
 0x1b7   : > { %1174 = vmatpush1.bf16.msra.mxu1 %v14268_v21 }
 0x1b8   : > { %1175 = vmatprep.subr.bf16.mxu1 %v17856_v35 }
 0x1bb   : > { %1176 = vmatpush1.bf16.msra.mxu1 %v14251_v3 }
 0x1bc   : > { %1191 = vmatprep.subr.bf16.mxu1 %v17856_v35 }
 0x1bf   : > { %1192 = vmatpush2.bf16.msra.mxu1 %v14367_v6 }
 0x1c0   : > { %11531 = vmatprep.subr.bf16.mxu1 %v14234_v40 }
 0x1c2   : > { %1194 = vmatmul.mubr.bf16.vlgmr.msra.gmra.mxu1 %v13350_v8  ;;  %v10245_v8 = vcombine.high %v10221_v62, %v10221_v62 }
 0x1c3   : > { %11532 = vmatpush3.bf16.msra.mxu1 %v14216_v44  ;;  %10195 = vmatprep.mubr.msk.bf16.mxu1 %vm1062_vm2, %v13353_v32 }
 0x1c4   : > { %11533 = vmatprep.subr.bf16.mxu1 %v14237_v46 }
 0x1c7   : > { %11534 = vmatpush3.bf16.msra.mxu1 %v14212_v34 }
 0x1c8   : > { %11535 = vmatprep.subr.bf16.mxu1 %v14247_v57 }
 0x1ca   : > { %1202 = vmatmul.mubr.bf16.gmra.mxu1 %v13355_v7 }
 0x1cb   : > { %11536 = vmatpush3.bf16.msra.mxu1 %v14208_v24  ;;  %10196 = vmatprep.mubr.msk.bf16.mxu1 %vm1062_vm2, %v13356_v10 }
 0x1cc   : > { %11537 = vmatprep.subr.bf16.mxu1 %v14255_v9 }
 0x1cf   : > { %11538 = vmatpush3.bf16.msra.mxu1 %v14201_v14 }
 0x1d0   : > { %11539 = vmatprep.subr.bf16.mxu1 %v14263_v17 }
 0x1d2   : > { %1210 = vmatmul.mubr.bf16.gmra.mxu1 %v13358_v11 }
 0x1d3   : > { %11540 = vmatpush3.bf16.msra.mxu1 %v14197_v5  ;;  %10197 = vmatprep.mubr.msk.bf16.mxu1 %vm1062_vm2, %v13359_v12 }
 0x1d4   : > { %11541 = vmatprep.subr.bf16.mxu1 %v14271_v22 }
 0x1d7   : > { %11542 = vmatpush3.bf16.msra.mxu1 %v14193_v60 }
 0x1d8   : > { %11543 = vmatprep.subr.bf16.mxu1 %v14226_v0 }
 0x1da   : > { %1218 = vmatmul.mubr.bf16.gmra.mxu1 %v13361_v4  ;;  %v10244_v4 = vcombine.low %v10221_v62, %v10221_v62 }
 0x1db   : > { %11544 = vmatpush3.bf16.msra.mxu1 %v14189_v51  ;;  %10198 = vmatprep.mubr.msk.bf16.mxu1 %vm1062_vm2, %v13362_v13 }
 0x1dc   : > { %11545 = vmatprep.subr.bf16.mxu1 %v14220_v54 }
 0x1df   : > { %11546 = vmatpush3.bf16.msra.mxu1 %v14185_v42 }
 0x1e0   : > { %1480 = vmatprep.subr.bf16.mxu1 %v17856_v35 }
 0x1e2   : > { %1226 = vmatmul.mubr.bf16.gmra.mxu1 %v13364_v16 }
 0x1e3   : > { %10199 = vmatprep.mubr.msk.bf16.mxu1 %vm1062_vm2, %v10193_v2 }
 0x1ea   : > { %1234 = vmatmul.mubr.bf16.gmra.mxu1 %v10192_v18 }
 0x1eb   : > { %1432 = vmatprep.mubr.bf16.mxu1 %v13369_v63 }
 0x1f2   : > { %1433 = vmatmul.mubr.bf16.vlgmr.msra.gmra.mxu1 %v13367_v25 }
 0x1f3   : > { %1481 = vmatpush1.bf16.msra.mxu1 %v14322_v20  ;;  %1440 = vmatprep.mubr.bf16.mxu1 %v13370_v27 }
 0x1f4   : > { %1482 = vmatprep.subr.bf16.mxu1 %v17856_v35 }
 0x1f7   : > { %1483 = vmatpush1.bf16.msra.mxu1 %v14328_v38 }
 0x1f8   : > { %1484 = vmatprep.subr.bf16.mxu1 %v17856_v35 }
 0x1fa   : > { %1441 = vmatmul.mubr.bf16.gmra.mxu1 %v13372_v29 }
 0x1fb   : > { %1485 = vmatpush1.bf16.msra.mxu1 %v14335_v49  ;;  %1448 = vmatprep.mubr.bf16.mxu1 %v13373_v30 }
 0x1fc   : > { %1486 = vmatprep.subr.bf16.mxu1 %v17856_v35 }
 0x1ff   : > { %1487 = vmatpush1.bf16.msra.mxu1 %v14346_v53 }
 0x200   : > { %1488 = vmatprep.subr.bf16.mxu1 %v17856_v35 }
 0x202   : > { %1449 = vmatmul.mubr.bf16.gmra.mxu1 %v13375_v33 }
 0x203   : > { %1489 = vmatpush1.bf16.msra.mxu1 %v14353_v58  ;;  %1456 = vmatprep.mubr.bf16.mxu1 %v13376_v36 }
 0x204   : > { %1490 = vmatprep.subr.bf16.mxu1 %v17856_v35 }
 0x207   : > { %1491 = vmatpush1.bf16.msra.mxu1 %v14357_v23 }
 0x208   : > { %1492 = vmatprep.subr.bf16.mxu1 %v17856_v35 }
 0x20a   : > { %1457 = vmatmul.mubr.bf16.gmra.mxu1 %v13378_v39 }
 0x20b   : > { %1493 = vmatpush1.bf16.msra.mxu1 %v14268_v21  ;;  %1464 = vmatprep.mubr.bf16.mxu1 %v13379_v43 }
 0x20c   : > { %1494 = vmatprep.subr.bf16.mxu1 %v17856_v35 }
 0x20f   : > { %1495 = vmatpush1.bf16.msra.mxu1 %v14251_v3 }
 0x210   : > { %1510 = vmatprep.subr.bf16.mxu1 %v17856_v35 }
 0x212   : > { %1465 = vmatmul.mubr.bf16.gmra.mxu1 %v13381_v41 }
 0x213   : > { %1511 = vmatpush2.bf16.msra.mxu1 %v14367_v6  ;;  %1472 = vmatprep.mubr.bf16.mxu1 %v10243_v47 }
 0x214   : > { %12725 = vmatprep.subr.bf16.mxu1 %v13401_v48 }
 0x21a   : > { %1473 = vmatmul.mubr.bf16.gmra.mxu1 %v10242_v37 }
 0x21b   : > { %10246 = vmatprep.mubr.msk.bf16.mxu1 %vm1062_vm2, %v13386_v31 }
 0x222   : > { %1513 = vmatmul.mubr.bf16.vlgmr.msra.gmra.mxu1 %v13384_v50 }
 0x223   : > { %10247 = vmatprep.mubr.msk.bf16.mxu1 %vm1062_vm2, %v13387_v28  ;;  %12726 = vmatpush3.bf16.msra.mxu1 %v13401_v48 }
 0x224   : > { %12727 = vmatprep.subr.bf16.mxu1 %v13402_v52 }
 0x227   : > { %12728 = vmatpush3.bf16.msra.mxu1 %v13402_v52 }
 0x228   : > { %2021 = vmatprep.subr.bf16.mxu1 %v17856_v35 }
 0x22a   : > { %1521 = vmatmul.mubr.bf16.gmra.mxu1 %v13389_v55 }
 0x22b   : > { %10248 = vmatprep.mubr.msk.bf16.mxu1 %vm1062_vm2, %v13390_v56 }
 0x232   : > { %1529 = vmatmul.mubr.bf16.gmra.mxu1 %v13392_v26 }
 0x233   : > { %10249 = vmatprep.mubr.msk.bf16.mxu1 %vm1062_vm2, %v13393_v59 }
 0x23a   : > { %1537 = vmatmul.mubr.bf16.gmra.mxu1 %v13395_v19 }
 0x23b   : > { %10250 = vmatprep.mubr.msk.bf16.mxu1 %vm1062_vm2, %v13396_v61 }
 0x23f   : > { %v11495_v32 = vpop.f32.mrf.mxu1 }
 0x241   : > { %v11496_v7 = vpop.f32.mrf.mxu1 }
 0x242   : > { %1545 = vmatmul.mubr.bf16.gmra.mxu1 %v13398_v1  ;;  %v11497_v10 = vadd.f32 %v11496_v7, %v11495_v32 }
 0x243   : > { %10251 = vmatprep.mubr.msk.bf16.mxu1 %vm1062_vm2, %v10245_v8  ;;  %v11498_v11 = vpop.f32.mrf.mxu1 }
 0x245   : > { %v11499_v12 = vpop.f32.mrf.mxu1 }
 0x246   : > { %v11500_v59 = vadd.f32 %v11499_v12, %v11498_v11 }
 0x247   : > { %v11501_v13 = vpop.f32.mrf.mxu1 }
 0x249   : > { %v11502_v15 = vpop.f32.mrf.mxu1 }
 0x24a   : > { %1553 = vmatmul.mubr.bf16.gmra.mxu1 %v10244_v4  ;;  %v11503_v16 = vadd.f32 %v11502_v15, %v11501_v13 }
 0x24b   : > { %v11504_v2 = vpop.f32.mrf.mxu1 }
 0x24d   : > { %v11505_v18 = vpop.f32.mrf.mxu1 }
 0x24e   : > { %v11506_v4 = vadd.f32 %v11505_v18, %v11504_v2 }
 0x24f   : > { %v11507_v63 = vpop.f32.mrf.mxu1 }
 0x251   : > { %v11508_v25 = vpop.f32.mrf.mxu1 }
 0x252   : > { %v11509_v27 = vadd.f32 %v11508_v25, %v11507_v63 }
 0x253   : > { %v11510_v29 = vpop.f32.mrf.mxu1 }
 0x255   : > { %v11511_v30 = vpop.f32.mrf.mxu1 }
 0x256   : > { %v11512_v11 = vadd.f32 %v11511_v30, %v11510_v29 }
 0x257   : > { %v11513_v33 = vpop.f32.mrf.mxu1 }
 0x259   : > { %v11514_v36 = vpop.f32.mrf.mxu1 }
 0x25a   : > { %v11515_v39 = vadd.f32 %v11514_v36, %v11513_v33 }
 0x25b   : > { %v11516_v43 = vpop.f32.mrf.mxu1 }
 0x25d   : > { %v11517_v45 = vpop.f32.mrf.mxu1 }
 0x260   : > { %v11519_v41 = vpop.f32.mrf.mxu1 }
 0x262   : > { %v11520_v47 = vpop.f32.mrf.mxu1 }
 0x263   : > { %v11521_v48 = vadd.f32 %v11520_v47, %v11519_v41 }
 0x264   : > { %v11522_v37 = vpop.f32.mrf.mxu1 }
 0x266   : > { %v11523_v31 = vpop.f32.mrf.mxu1 }
 0x268   : > { %v11525_v50 = vpop.f32.mrf.mxu1 }
 0x26a   : > { %v11526_v28 = vpop.f32.mrf.mxu1 }
 0x26c   : > { %v11528_v52 = vpop.f32.mrf.mxu1 }
 0x26e   : > { %v11529_v55 = vpop.f32.mrf.mxu1 }
 0x26f   : > { %v11518_v55 = vadd.f32 %v11517_v45, %v11516_v43 }
 0x282   : > { %v1195_v56 = vpop.f32.mrf.mxu1 }
 0x283   : > { %v1196_v61 = vadd.f32 %v11497_v10, %v1195_v56 }
 0x284   : > { %v1197_v26 = vpop.f32.mrf.mxu1 }
 0x286   : > { %v1198_v19 = vpop.f32.mrf.mxu1 }
 0x287   : > { %v1199_v62 = vadd.f32 %v11500_v59, %v1198_v19 }
 0x288   : > { %v1200_v1 = vpop.f32.mrf.mxu1 }
 0x289   : > { %v1241_v8 = vpack.c.bf16 %v1199_v62, %v1196_v61  ;;  %v11524_v61 = vadd.f32 %v11523_v31, %v11522_v37  ;;  %v11527_v1 = vadd.f32 %v11526_v28, %v11525_v50  ;;  %v13405_v37 = vld [vmem:[%s17849_s3 + $0x16c] ss:$16 sps:$4 sm:$0xff]  }
 0x28a   : > { %v1203_v32 = vpop.f32.mrf.mxu1 }
 0x28b   : > { %12729 = vmatprep.mubr.msk.bf16.mxu1 %vm1583_vm3, %v1241_v8  ;;  %v1204_v15 = vadd.f32 %v11503_v16, %v1203_v32 }
 0x28c   : > { %v1205_v7 = vpop.f32.mrf.mxu1 }
 0x28e   : > { %v1206_v13 = vpop.f32.mrf.mxu1 }
 0x28f   : > { %v1207_v63 = vadd.f32 %v11506_v4, %v1206_v13  ;;  %v13403_v13 = vld [vmem:[%s17849_s3 + $0x168] ss:$16 sps:$4 sm:$0xff]  }
 0x290   : > { %v1208_v25 = vpop.f32.mrf.mxu1 }
 0x291   : > { %v1242_v33 = vpack.c.bf16 %v1207_v63, %v1204_v15  ;;  %v13412_v63 = vld [vmem:[%s17849_s3 + $0x18c] ss:$16 sps:$4 sm:$0xff]  }
 0x292   : > { %v1211_v36 = vpop.f32.mrf.mxu1 }
 0x293   : > { %12730 = vmatmul.mubr.msk.bf16.vlgmr.msra.gmra.mxu1 %vm1583_vm3, %v1242_v33  ;;  %v1212_v41 = vadd.f32 %v11509_v27, %v1211_v36 }
 0x294   : > { %2022 = vmatpush1.bf16.msra.mxu1 %v14322_v20  ;;  %v1213_v10 = vpop.f32.mrf.mxu1 }
 0x295   : > { %2023 = vmatprep.subr.bf16.mxu1 %v17856_v35  ;;  %v13414_v10 = vld [vmem:[%s17849_s3 + $0x188] ss:$16 sps:$4 sm:$0xff]  }
 0x296   : > { %v1214_v12 = vpop.f32.mrf.mxu1 }
 0x297   : > { %v1215_v47 = vadd.f32 %v11512_v11, %v1214_v12  ;;  %v13418_v12 = vld [vmem:[%s17849_s3 + $0x1ac] ss:$16 sps:$4 sm:$0xff]  }
 0x298   : > { %2024 = vmatpush1.bf16.msra.mxu1 %v14328_v38  ;;  %v1216_v2 = vpop.f32.mrf.mxu1 }
 0x299   : > { %v1243_v18 = vpack.c.bf16 %v1215_v47, %v1212_v41  ;;  %2025 = vmatprep.subr.bf16.mxu1 %v17856_v35 }
 0x29a   : > { %v1219_v16 = vpop.f32.mrf.mxu1 }
 0x29b   : > { %12733 = vmatprep.mubr.msk.bf16.mxu1 %vm1583_vm3, %v1243_v18  ;;  %v1220_v30 = vadd.f32 %v11515_v39, %v1219_v16  ;;  %v13420_v18 = vld [vmem:[%s17849_s3 + $0x1a8] ss:$16 sps:$4 sm:$0xff]  }
 0x29c   : > { %2026 = vmatpush1.bf16.msra.mxu1 %v14335_v49  ;;  %v1221_v52 = vpop.f32.mrf.mxu1 }
 0x29d   : > { %2027 = vmatprep.subr.bf16.mxu1 %v17856_v35  ;;  %v13424_v52 = vld [vmem:[%s17849_s3 + $0x1cc] ss:$16 sps:$4 sm:$0xff]  }
 0x29e   : > { %v1222_v29 = vpop.f32.mrf.mxu1 }
 0x29f   : > { %v1223_v56 = vadd.f32 %v11518_v55, %v1222_v29 }
 0x2a0   : > { %2028 = vmatpush1.bf16.msra.mxu1 %v14346_v53  ;;  %v1224_v27 = vpop.f32.mrf.mxu1 }
 0x2a1   : > { %v1244_v26 = vpack.c.bf16 %v1223_v56, %v1220_v30  ;;  %2029 = vmatprep.subr.bf16.mxu1 %v17856_v35  ;;  %v13426_v56 = vld [vmem:[%s17849_s3 + $0x1c8] ss:$16 sps:$4 sm:$0xff]  }
 0x2a2   : > { %v1227_v59 = vpop.f32.mrf.mxu1 }
 0x2a3   : > { %12734 = vmatmul.mubr.msk.bf16.gmra.mxu1 %vm1583_vm3, %v1244_v26  ;;  %v1228_v45 = vadd.f32 %v11521_v48, %v1227_v59  ;;  %v13430_v26 = vld [vmem:[%s17849_s3 + $0x1ec] ss:$16 sps:$4 sm:$0xff]  }
 0x2a4   : > { %2030 = vmatpush1.bf16.msra.mxu1 %v14353_v58  ;;  %v1229_v19 = vpop.f32.mrf.mxu1 }
 0x2a5   : > { %2031 = vmatprep.subr.bf16.mxu1 %v17856_v35 }
 0x2a6   : > { %v1230_v43 = vpop.f32.mrf.mxu1 }
 0x2a7   : > { %v1231_v62 = vadd.f32 %v11524_v61, %v1230_v43  ;;  %v10293_v61 = vld [vmem:[%s17849_s3 + $0x208] sm:$0x11] }
 0x2a8   : > { %2032 = vmatpush1.bf16.msra.mxu1 %v14357_v23  ;;  %v1232_v39 = vpop.f32.mrf.mxu1 }
 0x2a9   : > { %v1245_v8 = vpack.c.bf16 %v1231_v62, %v1228_v45  ;;  %2033 = vmatprep.subr.bf16.mxu1 %v17856_v35  ;;  %v13432_v45 = vld [vmem:[%s17849_s3 + $0x1e8] ss:$16 sps:$4 sm:$0xff]   ;;  %v10317_v39 = vcombine.high %v10293_v61, %v10293_v61 }
 0x2aa   : > { %v1235_v32 = vpop.f32.mrf.mxu1 }
 0x2ab   : > { %v1236_v7 = vadd.f32 %v11527_v1, %v1235_v32  ;;  %12737 = vmatprep.mubr.msk.bf16.mxu1 %vm1583_vm3, %v1245_v8 }
 0x2ac   : > { %2034 = vmatpush1.bf16.msra.mxu1 %v14268_v21  ;;  %v1237_v4 = vpop.f32.mrf.mxu1 }
 0x2ad   : > { %v1246_v48 = vpack.c.bf16 %v1236_v7, %v1236_v7  ;;  %2035 = vmatprep.subr.bf16.mxu1 %v17856_v35  ;;  %v10316_v7 = vcombine.low %v10293_v61, %v10293_v61 }
 0x2ae   : > { %v1238_v31 = vpop.f32.mrf.mxu1 }
 0x2af   : > { %12738 = vmatmul.mubr.msk.bf16.gmra.mxu1 %vm1583_vm3, %v1246_v48 }
 0x2b0   : > { %2036 = vmatpush1.bf16.msra.mxu1 %v14251_v3  ;;  %v1239_v50 = vpop.f32.mrf.mxu1  ;;  %10318 = vmatprep.mubr.msk.bf16.mxu1 %vm1062_vm2, %v13405_v37 }
 0x2b1   : > { %2051 = vmatprep.subr.bf16.mxu1 %v17856_v35 }
 0x2b2   : > { %v14544_v28 = vpop.f32.mrf.mxu1 }
 0x2b4   : > { %2052 = vmatpush2.bf16.msra.mxu1 %v14367_v6  ;;  %v14550_v15 = vpop.f32.mrf.mxu1 }
 0x2b5   : > { %11659 = vmatprep.subr.bf16.mxu1 %v14234_v40 }
 0x2b6   : > { %v11550_v25 = vpop.f32.mrf.mxu1 }
 0x2b7   : > { %2054 = vmatmul.mubr.bf16.vlgmr.msra.gmra.mxu1 %v13403_v13  ;;  %v11549_v13 = vadd.f32 %v14550_v15, %v14544_v28 }
 0x2b8   : > { %11660 = vmatpush3.bf16.msra.mxu1 %v14216_v44  ;;  %v11551_v33 = vpop.f32.mrf.mxu1  ;;  %10319 = vmatprep.mubr.msk.bf16.mxu1 %vm1062_vm2, %v13412_v63 }
 0x2b9   : > { %11661 = vmatprep.subr.bf16.mxu1 %v14237_v46  ;;  %v11552_v63 = vadd.f32 %v11551_v33, %v11550_v25 }
 0x2ba   : > { %v14559_v36 = vpop.f32.mrf.mxu1 }
 0x2bc   : > { %11662 = vmatpush3.bf16.msra.mxu1 %v14212_v34  ;;  %v11554_v11 = vpop.f32.mrf.mxu1 }
 0x2bd   : > { %11663 = vmatprep.subr.bf16.mxu1 %v14247_v57 }
 0x2be   : > { %v11556_v41 = vpop.f32.mrf.mxu1 }
 0x2bf   : > { %2062 = vmatmul.mubr.bf16.gmra.mxu1 %v13414_v10 }
 0x2c0   : > { %11664 = vmatpush3.bf16.msra.mxu1 %v14208_v24  ;;  %v11557_v47 = vpop.f32.mrf.mxu1  ;;  %10320 = vmatprep.mubr.msk.bf16.mxu1 %vm1062_vm2, %v13418_v12 }
 0x2c1   : > { %11665 = vmatprep.subr.bf16.mxu1 %v14255_v9 }
 0x2c2   : > { %v14572_v2 = vpop.f32.mrf.mxu1 }
 0x2c4   : > { %11666 = vmatpush3.bf16.msra.mxu1 %v14201_v14  ;;  %v11560_v16 = vpop.f32.mrf.mxu1 }
 0x2c5   : > { %11667 = vmatprep.subr.bf16.mxu1 %v14263_v17  ;;  %v11561_v15 = vadd.f32 %v11560_v16, %v14572_v2 }
 0x2c6   : > { %v11562_v55 = vpop.f32.mrf.mxu1 }
 0x2c7   : > { %2070 = vmatmul.mubr.bf16.gmra.mxu1 %v13420_v18 }
 0x2c8   : > { %11668 = vmatpush3.bf16.msra.mxu1 %v14197_v5  ;;  %v11563_v29 = vpop.f32.mrf.mxu1  ;;  %10321 = vmatprep.mubr.msk.bf16.mxu1 %vm1062_vm2, %v13424_v52 }
 0x2c9   : > { %11669 = vmatprep.subr.bf16.mxu1 %v14271_v22  ;;  %v11564_v25 = vadd.f32 %v11563_v29, %v11562_v55 }
 0x2ca   : > { %v14585_v30 = vpop.f32.mrf.mxu1 }
 0x2cc   : > { %11670 = vmatpush3.bf16.msra.mxu1 %v14193_v60  ;;  %v11566_v27 = vpop.f32.mrf.mxu1 }
 0x2cd   : > { %11671 = vmatprep.subr.bf16.mxu1 %v14226_v0  ;;  %v11567_v2 = vadd.f32 %v11566_v27, %v14585_v30 }
 0x2ce   : > { %v11568_v59 = vpop.f32.mrf.mxu1 }
 0x2cf   : > { %2078 = vmatmul.mubr.bf16.gmra.mxu1 %v13426_v56 }
 0x2d0   : > { %11672 = vmatpush3.bf16.msra.mxu1 %v14189_v51  ;;  %v11569_v19 = vpop.f32.mrf.mxu1  ;;  %10322 = vmatprep.mubr.msk.bf16.mxu1 %vm1062_vm2, %v13430_v26 }
 0x2d1   : > { %11673 = vmatprep.subr.bf16.mxu1 %v14220_v54  ;;  %v11570_v16 = vadd.f32 %v11569_v19, %v11568_v59 }
 0x2d2   : > { %v14601_v43 = vpop.f32.mrf.mxu1 }
 0x2d4   : > { %11674 = vmatpush3.bf16.msra.mxu1 %v14185_v42  ;;  %v14607_v62 = vpop.f32.mrf.mxu1 }
 0x2d5   : > { %v11573_v30 = vadd.f32 %v14607_v62, %v14601_v43  ;;  %v13408_v62 = vld [vmem:[%s17849_s3 + $0x164] ss:$16 sps:$4 sm:$0xff]  }
 0x2d6   : > { %v11574_v1 = vpop.f32.mrf.mxu1 }
 0x2d7   : > { %2086 = vmatmul.mubr.bf16.gmra.mxu1 %v13432_v45  ;;  %v11555_v45 = vadd.f32 %v11554_v11, %v14559_v36 }
 0x2d8   : > { %v11575_v8 = vpop.f32.mrf.mxu1  ;;  %10323 = vmatprep.mubr.msk.bf16.mxu1 %vm1062_vm2, %v10317_v39  ;;  %v11558_v39 = vadd.f32 %v11557_v47, %v11556_v41 }
 0x2d9   : > { %v11576_v27 = vadd.f32 %v11575_v8, %v11574_v1 }
 0x2da   : > { %v14610_v32 = vpop.f32.mrf.mxu1 }
 0x2dc   : > { %v14612_v4 = vpop.f32.mrf.mxu1 }
 0x2de   : > { %v11580_v37 = vpop.f32.mrf.mxu1 }
 0x2df   : > { %2094 = vmatmul.mubr.bf16.gmra.mxu1 %v10316_v7 }
 0x2e0   : > { %v11581_v48 = vpop.f32.mrf.mxu1 }
 0x2e2   : > { %v1514_v31 = vpop.f32.mrf.mxu1 }
 0x2e3   : > { %v1515_v12 = vadd.f32 %v11549_v13, %v1514_v31 }
 0x2e4   : > { %v1516_v50 = vpop.f32.mrf.mxu1 }
 0x2e6   : > { %v1517_v10 = vpop.f32.mrf.mxu1 }
 0x2e7   : > { %v1518_v18 = vadd.f32 %v11552_v63, %v1517_v10 }
 0x2e8   : > { %v1519_v52 = vpop.f32.mrf.mxu1 }
 0x2e9   : > { %v1560_v56 = vpack.c.bf16 %v1518_v18, %v1515_v12 }
 0x2ea   : > { %v1522_v26 = vpop.f32.mrf.mxu1 }
 0x2eb   : > { %12713 = vmatprep.mubr.msk.bf16.mxu0 %vm1583_vm3, %v1560_v56  ;;  %v1523_v37 = vadd.f32 %v11555_v45, %v1522_v26  ;;  %v11579_v56 = vadd.f32 %v14612_v4, %v14610_v32  ;;  %v13406_v4 = vld [vmem:[%s17849_s3 + $0x160] ss:$16 sps:$4 sm:$0xff]  }
 0x2ec   : > { %v1524_v61 = vpop.f32.mrf.mxu1 }
 0x2ee   : > { %v1525_v7 = vpop.f32.mrf.mxu1 }
 0x2ef   : > { %v1526_v48 = vadd.f32 %v11558_v39, %v1525_v7  ;;  %v13411_v39 = vld [vmem:[%s17849_s3 + $0x184] ss:$16 sps:$4 sm:$0xff]   ;;  %v13409_v7 = vld [vmem:[%s17849_s3 + $0x180] ss:$16 sps:$4 sm:$0xff]  }
 0x2f0   : > { %v1527_v50 = vpop.f32.mrf.mxu1 }
 0x2f1   : > { %v1561_v35 = vpack.c.bf16 %v1526_v48, %v1523_v37  ;;  %v13417_v37 = vld [vmem:[%s17849_s3 + $0x1a4] ss:$16 sps:$4 sm:$0xff]   ;;  %v13415_v48 = vld [vmem:[%s17849_s3 + $0x1a0] ss:$16 sps:$4 sm:$0xff]  }
 0x2f2   : > { %v1530_v40 = vpop.f32.mrf.mxu1  ;;  %v13423_v50 = vld [vmem:[%s17849_s3 + $0x1c4] ss:$16 sps:$4 sm:$0xff]  }
 0x2f3   : > { %12714 = vmatmul.mubr.msk.bf16.vlgmr.msra.gmra.mxu0 %vm1583_vm3, %v1561_v35  ;;  %v1531_v31 = vadd.f32 %v11561_v15, %v1530_v40  ;;  %v13429_v15 = vld [vmem:[%s17849_s3 + $0x1e4] ss:$16 sps:$4 sm:$0xff]  }
 0x2f4   : > { %11600 = vmatpush3.bf16.msra.mxu0 %v14216_v44  ;;  %v1532_v28 = vpop.f32.mrf.mxu1 }
 0x2f5   : > { %11601 = vmatprep.subr.bf16.mxu0 %v14237_v46  ;;  %v13421_v28 = vld [vmem:[%s17849_s3 + $0x1c0] ss:$16 sps:$4 sm:$0xff]  }
 0x2f6   : > { %v1533_v33 = vpop.f32.mrf.mxu1 }
 0x2f7   : > { %v1534_v36 = vadd.f32 %v11564_v25, %v1533_v33  ;;  %v10292_v25 = vld [vmem:[%s17849_s3 + $0x200] sm:$0x11] }
 0x2f8   : > { %11602 = vmatpush3.bf16.msra.mxu0 %v14212_v34  ;;  %v1535_v11 = vpop.f32.mrf.mxu1  ;;  %v13427_v33 = vld [vmem:[%s17849_s3 + $0x1e0] ss:$16 sps:$4 sm:$0xff]  }
 0x2f9   : > { %v1562_v41 = vpack.c.bf16 %v1534_v36, %v1531_v31  ;;  %11603 = vmatprep.subr.bf16.mxu0 %v14247_v57  ;;  %v10315_v31 = vcombine.high %v10292_v25, %v10292_v25  ;;  %v10314_v36 = vcombine.low %v10292_v25, %v10292_v25  ;;  %v13437_v11 = vld [vmem:[%s17850_s4 + $0x28] sm:$0xff]   ;;  %v13451_v25 = vld [vmem:[%s17849_s3 + $0x250] ss:$16 sps:$4 sm:$0xff]  }
 0x2fa   : > { %v1538_v47 = vpop.f32.mrf.mxu1 }
 0x2fb   : > { %12717 = vmatprep.mubr.msk.bf16.mxu0 %vm1583_vm3, %v1562_v41  ;;  %v1539_v40 = vadd.f32 %v11567_v2, %v1538_v47 }
 0x2fc   : > { %11604 = vmatpush3.bf16.msra.mxu0 %v14208_v24  ;;  %v1540_v35 = vpop.f32.mrf.mxu1 }
 0x2fd   : > { %11605 = vmatprep.subr.bf16.mxu0 %v14255_v9 }
 0x2fe   : > { %v1541_v55 = vpop.f32.mrf.mxu1 }
 0x2ff   : > { %v1542_v29 = vadd.f32 %v11570_v16, %v1541_v55  ;;  %v13438_v16 = vld [vmem:[%s17850_s4 + $0x20] sm:$0xff]  }
 0x300   : > { %11606 = vmatpush3.bf16.msra.mxu0 %v14201_v14  ;;  %v1543_v13 = vpop.f32.mrf.mxu1 }
 0x301   : > { %v1563_v63 = vpack.c.bf16 %v1542_v29, %v1539_v40  ;;  %11607 = vmatprep.subr.bf16.mxu0 %v14263_v17  ;;  %v17862_v29 = vmov 0  }
 0x302   : > { %v1546_v10 = vpop.f32.mrf.mxu1 }
 0x303   : > { %12718 = vmatmul.mubr.msk.bf16.gmra.mxu0 %vm1583_vm3, %v1563_v63  ;;  %v1547_v19 = vadd.f32 %v11573_v30, %v1546_v10 }
 0x304   : > { %11608 = vmatpush3.bf16.msra.mxu0 %v14197_v5  ;;  %v1548_v12 = vpop.f32.mrf.mxu1 }
 0x305   : > { %11609 = vmatprep.subr.bf16.mxu0 %v14271_v22 }
 0x306   : > { %v1549_v59 = vpop.f32.mrf.mxu1 }
 0x307   : > { %v1550_v18 = vadd.f32 %v11576_v27, %v1549_v59 }
 0x308   : > { %11610 = vmatpush3.bf16.msra.mxu0 %v14193_v60  ;;  %v1551_v52 = vpop.f32.mrf.mxu1 }
 0x309   : > { %v1564_v26 = vpack.c.bf16 %v1550_v18, %v1547_v19  ;;  %11611 = vmatprep.subr.bf16.mxu0 %v14226_v0 }
 0x30a   : > { %v1554_v61 = vpop.f32.mrf.mxu1 }
 0x30b   : > { %v1555_v45 = vadd.f32 %v11579_v56, %v1554_v61  ;;  %12721 = vmatprep.mubr.msk.bf16.mxu0 %vm1583_vm3, %v1564_v26 }
 0x30c   : > { %11612 = vmatpush3.bf16.msra.mxu0 %v14189_v51  ;;  %v1556_v43 = vpop.f32.mrf.mxu1 }
 0x30d   : > { %v1565_v1 = vpack.c.bf16 %v1555_v45, %v1555_v45  ;;  %11613 = vmatprep.subr.bf16.mxu0 %v14220_v54  ;;  %v13441_v45 = vld [vmem:[%s17849_s3 + $0x214] ss:$16 sps:$4 sm:$0xff]  }
 0x30e   : > { %v1557_v8 = vpop.f32.mrf.mxu1  ;;  %2414 = vmatprep.mubr.bf16.mxu1 %v13441_v45  ;;  %v13465_v45 = vld [vmem:[%s17849_s3 + $0x294] ss:$16 sps:$4 sm:$0xff]  }
 0x30f   : > { %12722 = vmatmul.mubr.msk.bf16.gmra.mxu0 %vm1583_vm3, %v1565_v1 }
 0x310   : > { %11614 = vmatpush3.bf16.msra.mxu0 %v14185_v42  ;;  %v1558_v32 = vpop.f32.mrf.mxu1  ;;  %1973 = vmatprep.mubr.bf16.mxu0 %v13408_v62  ;;  %v13439_v62 = vld [vmem:[%s17849_s3 + $0x210] ss:$16 sps:$4 sm:$0xff]  }
 0x311   : > { %12741 = vmatprep.subr.bf16.mxu0 %v13437_v11  ;;  %2415 = vmatmul.mubr.bf16.vlgmr.msra.gmra.mxu1 %v13439_v62  ;;  %v13463_v62 = vld [vmem:[%s17849_s3 + $0x290] ss:$16 sps:$4 sm:$0xff]  }
 0x317   : > { %1974 = vmatmul.mubr.bf16.vlgmr.msra.gmra.mxu0 %v13406_v4  ;;  %v13447_v4 = vld [vmem:[%s17849_s3 + $0x234] ss:$16 sps:$4 sm:$0xff]  }
 0x318   : > { %1981 = vmatprep.mubr.bf16.mxu0 %v13411_v39  ;;  %12742 = vmatpush3.bf16.msra.mxu0 %v13437_v11  ;;  %v13459_v11 = vld [vmem:[%s17849_s3 + $0x274] ss:$16 sps:$4 sm:$0xff]  }
 0x319   : > { %12743 = vmatprep.subr.bf16.mxu0 %v13438_v16  ;;  %2422 = vmatprep.mubr.bf16.mxu1 %v13447_v4 }
 0x31c   : > { %12744 = vmatpush3.bf16.msra.mxu0 %v13438_v16 }
 0x31d   : > { %2462 = vmatprep.subr.bf16.mxu0 %v17862_v29 }
 0x31f   : > { %1982 = vmatmul.mubr.bf16.gmra.mxu0 %v13409_v7  ;;  %v13445_v7 = vld [vmem:[%s17849_s3 + $0x230] ss:$16 sps:$4 sm:$0xff]  }
 0x320   : > { %1989 = vmatprep.mubr.bf16.mxu0 %v13417_v37  ;;  %2423 = vmatmul.mubr.bf16.gmra.mxu1 %v13445_v7 }
 0x327   : > { %1990 = vmatmul.mubr.bf16.gmra.mxu0 %v13415_v48 }
 0x328   : > { %1997 = vmatprep.mubr.bf16.mxu0 %v13423_v50 }
 0x32f   : > { %1998 = vmatmul.mubr.bf16.gmra.mxu0 %v13421_v28  ;;  %v13453_v28 = vld [vmem:[%s17849_s3 + $0x254] ss:$16 sps:$4 sm:$0xff]  }
 0x330   : > { %2005 = vmatprep.mubr.bf16.mxu0 %v13429_v15  ;;  %2430 = vmatprep.mubr.bf16.mxu1 %v13453_v28 }
 0x331   : > { %2431 = vmatmul.mubr.bf16.gmra.mxu1 %v13451_v25 }
 0x332   : > { %2438 = vmatprep.mubr.bf16.mxu1 %v13459_v11 }
 0x337   : > { %2006 = vmatmul.mubr.bf16.gmra.mxu0 %v13427_v33 }
 0x338   : > { %2013 = vmatprep.mubr.bf16.mxu0 %v10315_v31 }
 0x33f   : > { %2014 = vmatmul.mubr.bf16.gmra.mxu0 %v10314_v36 }
 0x353   : > { %v14680_v41 = vpop.f32.mrf.mxu1 }
 0x355   : > { %v14682_v47 = vpop.f32.mrf.mxu1 }
 0x357   : > { %v14684_v35 = vpop.f32.mrf.mxu1 }
 0x359   : > { %v14686_v2 = vpop.f32.mrf.mxu1 }
 0x35a   : > { %17861 = vst [vmem:[#allocation3_spill] sm:$0xff] %v14686_v2 }
 0x363   : > { %v14691_v55 = vpop.f32.mrf.mxu1 }
 0x365   : > { %v14693_v40 = vpop.f32.mrf.mxu1 }
 0x367   : > { %v14696_v13 = vpop.f32.mrf.mxu1 }
 0x368   : > { %17863 = vst [vmem:[#allocation4_spill] sm:$0xff] %v14696_v13 }
 0x369   : > { %v14698_v63 = vpop.f32.mrf.mxu1 }
 0x36a   : > { %17864 = vst [vmem:[#allocation5_spill] sm:$0xff] %v14698_v63 }
 0x36f   : > { %v14700_v10 = vpop.f32.mrf.mxu1 }
 0x370   : > { %17865 = vst [vmem:[#allocation6_spill] sm:$0xff] %v14700_v10 }
 0x371   : > { %v14702_v12 = vpop.f32.mrf.mxu1 }
 0x372   : > { %17866 = vst [vmem:[#allocation7_spill] sm:$0xff] %v14702_v12 }
 0x373   : > { %v12740_v30 = vpop.f32.mrf.mxu1 }
 0x374   : > { %v13457_v30 = vld [vmem:[%s17849_s3 + $0x270] ss:$16 sps:$4 sm:$0xff]  }
 0x375   : > { %v14704_v27 = vpop.f32.mrf.mxu1  ;;  %2439 = vmatmul.mubr.bf16.gmra.mxu1 %v13457_v30 }
 0x376   : > { %17867 = vst [vmem:[#allocation8_spill] sm:$0xff] %v14704_v27  ;;  %2446 = vmatprep.mubr.bf16.mxu1 %v13465_v45 }
 0x377   : > { %v14706_v59 = vpop.f32.mrf.mxu1 }
 0x379   : > { %v2057_v19 = vpop.f32.mrf.mxu1 }
 0x37b   : > { %v14708_v18 = vpop.f32.mrf.mxu1 }
 0x37d   : > { %v2060_v52 = vpop.f32.mrf.mxu1  ;;  %2447 = vmatmul.mubr.bf16.gmra.mxu1 %v13463_v62 }
 0x37f   : > { %v14710_v56 = vpop.f32.mrf.mxu1 }
 0x381   : > { %v2065_v26 = vpop.f32.mrf.mxu1 }
 0x383   : > { %v14712_v61 = vpop.f32.mrf.mxu1 }
 0x385   : > { %v2068_v43 = vpop.f32.mrf.mxu1 }
 0x387   : > { %v14720_v1 = vpop.f32.mrf.mxu1 }
 0x389   : > { %v2073_v8 = vpop.f32.mrf.mxu1 }
 0x38a   : > { %v10356_v8 = vld [vmem:[%s17849_s3 + $0x2b0] sm:$0x11] }
 0x38b   : > { %v14722_v32 = vpop.f32.mrf.mxu1  ;;  %v10379_v4 = vcombine.high %v10356_v8, %v10356_v8 }
 0x38d   : > { %v2076_v39 = vpop.f32.mrf.mxu1  ;;  %2454 = vmatprep.mubr.bf16.mxu1 %v10379_v4 }
 0x38e   : > { %v10378_v39 = vcombine.low %v10356_v8, %v10356_v8 }
 0x38f   : > { %v14730_v37 = vpop.f32.mrf.mxu1 }
 0x390   : > { %2455 = vmatmul.mubr.bf16.gmra.mxu1 %v10378_v39 }
 0x391   : > { %v2081_v48 = vpop.f32.mrf.mxu1 }
 0x393   : > { %v14732_v50 = vpop.f32.mrf.mxu1 }
 0x395   : > { %v2084_v15 = vpop.f32.mrf.mxu1 }
 0x397   : > { %v14740_v33 = vpop.f32.mrf.mxu1 }
 0x399   : > { %v2089_v31 = vpop.f32.mrf.mxu1 }
 0x39b   : > { %v14742_v36 = vpop.f32.mrf.mxu1 }
 0x39d   : > { %v2092_v16 = vpop.f32.mrf.mxu1 }
 0x39f   : > { %v14750_v19 = vpop.f32.mrf.mxu1 }
 0x3a1   : > { %v2097_v52 = vpop.f32.mrf.mxu1 }
 0x3a3   : > { %v2098_v26 = vpop.f32.mrf.mxu1 }
 0x3a5   : > { %v2099_v43 = vpop.f32.mrf.mxu1 }
 0x3b3   : > { %v14761_v7 = vpop.f32.mrf.mxu0 }
 0x3b5   : > { %v14763_v48 = vpop.f32.mrf.mxu0 }
 0x3b7   : > { %v14765_v28 = vpop.f32.mrf.mxu0 }
 0x3b9   : > { %v14767_v15 = vpop.f32.mrf.mxu0 }
 0x3ba   : > { %17868 = vst [vmem:[#allocation9_spill] sm:$0xff] %v14767_v15 }
 0x3c3   : > { %v14769_v25 = vpop.f32.mrf.mxu0 }
 0x3c5   : > { %v14771_v31 = vpop.f32.mrf.mxu0 }
 0x3c7   : > { %v14773_v11 = vpop.f32.mrf.mxu0 }
 0x3c8   : > { %17869 = vst [vmem:[#allocation10_spill] sm:$0xff] %v14773_v11 }
 0x3c9   : > { %v14775_v16 = vpop.f32.mrf.mxu0 }
 0x3ca   : > { %17870 = vst [vmem:[#allocation11_spill] sm:$0xff] %v14775_v16 }
 0x3cf   : > { %v14777_v30 = vpop.f32.mrf.mxu0 }
 0x3d0   : > { %17871 = vst [vmem:[#allocation12_spill] sm:$0xff] %v14777_v30 }
 0x3d1   : > { %v14779_v52 = vpop.f32.mrf.mxu0 }
 0x3d2   : > { %17872 = vst [vmem:[#allocation13_spill] sm:$0xff] %v14779_v52 }
 0x3d3   : > { %v12724_v26 = vpop.f32.mrf.mxu0 }
 0x3d5   : > { %v14781_v45 = vpop.f32.mrf.mxu0 }
 0x3d6   : > { %17873 = vst [vmem:[#allocation14_spill] sm:$0xff] %v14781_v45 }
 0x3d7   : > { %v11615_v43 = vpop.f32.mrf.mxu0 }
 0x3d9   : > { %v11616_v62 = vpop.f32.mrf.mxu0 }
 0x3da   : > { %v11617_v4 = vadd.f32 %v11616_v62, %v11615_v43 }
 0x3db   : > { %v11618_v8 = vpop.f32.mrf.mxu0 }
 0x3dc   : > { %v2056_v2 = vadd.f32 %v11617_v4, %v14706_v59 }
 0x3dd   : > { %v11619_v39 = vpop.f32.mrf.mxu0 }
 0x3de   : > { %v11620_v27 = vadd.f32 %v11619_v39, %v11618_v8 }
 0x3df   : > { %v11621_v63 = vpop.f32.mrf.mxu0 }
 0x3e0   : > { %v2059_v15 = vadd.f32 %v11620_v27, %v14708_v18 }
 0x3e1   : > { %v11622_v12 = vpop.f32.mrf.mxu0 }
 0x3e2   : > { %v2101_v16 = vpack.c.bf16 %v2059_v15, %v2056_v2  ;;  %v11623_v30 = vadd.f32 %v11622_v12, %v11621_v63 }
 0x3e3   : > { %v11624_v10 = vpop.f32.mrf.mxu0 }
 0x3e4   : > { %12745 = vmatprep.mubr.msk.bf16.mxu0 %vm1583_vm3, %v2101_v16  ;;  %v2064_v13 = vadd.f32 %v11623_v30, %v14710_v56 }
 0x3e5   : > { %v11625_v26 = vpop.f32.mrf.mxu0 }
 0x3e6   : > { %v11626_v52 = vadd.f32 %v11625_v26, %v11624_v10 }
 0x3e7   : > { %v11627_v45 = vpop.f32.mrf.mxu0 }
 0x3e8   : > { %v2067_v43 = vadd.f32 %v11626_v52, %v14712_v61 }
 0x3e9   : > { %v11628_v62 = vpop.f32.mrf.mxu0 }
 0x3ea   : > { %v2102_v8 = vpack.c.bf16 %v2067_v43, %v2064_v13  ;;  %v11629_v11 = vadd.f32 %v11628_v62, %v11627_v45 }
 0x3eb   : > { %v11630_v39 = vpop.f32.mrf.mxu0 }
 0x3ec   : > { %12746 = vmatmul.mubr.msk.bf16.vlgmr.msra.gmra.mxu0 %vm1583_vm3, %v2102_v8  ;;  %v2072_v10 = vadd.f32 %v11629_v11, %v14720_v1 }
 0x3ed   : > { %2463 = vmatpush1.bf16.msra.mxu0 %v14322_v20  ;;  %v11631_v2 = vpop.f32.mrf.mxu0 }
 0x3ee   : > { %v11632_v27 = vadd.f32 %v11631_v2, %v11630_v39  ;;  %2464 = vmatprep.subr.bf16.mxu0 %v17862_v29 }
 0x3ef   : > { %v11633_v63 = vpop.f32.mrf.mxu0 }
 0x3f0   : > { %v2075_v12 = vadd.f32 %v11632_v27, %v14722_v32 }
 0x3f1   : > { %2465 = vmatpush1.bf16.msra.mxu0 %v14328_v38  ;;  %v11634_v59 = vpop.f32.mrf.mxu0 }
 0x3f2   : > { %v2103_v18 = vpack.c.bf16 %v2075_v12, %v2072_v10  ;;  %2466 = vmatprep.subr.bf16.mxu0 %v17862_v29  ;;  %v11635_v56 = vadd.f32 %v11634_v59, %v11633_v63  ;;  %v13448_v10 = vld [vmem:[%s17849_s3 + $0x23c] ss:$16 sps:$4 sm:$0xff]   ;;  %v17874_v12 = vld [vmem:[#allocation2_spill] sm:$0xff]  ;;  %v13450_v59 = vld [vmem:[%s17849_s3 + $0x238] ss:$16 sps:$4 sm:$0xff]  }
 0x3f3   : > { %v11636_v13 = vpop.f32.mrf.mxu0 }
 0x3f4   : > { %12749 = vmatprep.mubr.msk.bf16.mxu0 %vm1583_vm3, %v2103_v18  ;;  %v2080_v1 = vadd.f32 %v11635_v56, %v14730_v37  ;;  %v13454_v18 = vld [vmem:[%s17849_s3 + $0x25c] ss:$16 sps:$4 sm:$0xff]  }
 0x3f5   : > { %2467 = vmatpush1.bf16.msra.mxu0 %v14335_v49  ;;  %v11637_v61 = vpop.f32.mrf.mxu0  ;;  %v13460_v56 = vld [vmem:[%s17849_s3 + $0x27c] ss:$16 sps:$4 sm:$0xff]  }
 0x3f6   : > { %v11638_v15 = vadd.f32 %v11637_v61, %v11636_v13  ;;  %2468 = vmatprep.subr.bf16.mxu0 %v17862_v29  ;;  %v13456_v13 = vld [vmem:[%s17849_s3 + $0x258] ss:$16 sps:$4 sm:$0xff]  }
 0x3f7   : > { %v11639_v16 = vpop.f32.mrf.mxu0  ;;  %v13462_v61 = vld [vmem:[%s17849_s3 + $0x278] ss:$16 sps:$4 sm:$0xff]  }
 0x3f8   : > { %v2083_v32 = vadd.f32 %v11638_v15, %v14732_v50  ;;  %v13466_v15 = vld [vmem:[%s17849_s3 + $0x29c] ss:$16 sps:$4 sm:$0xff]  }
 0x3f9   : > { %2469 = vmatpush1.bf16.msra.mxu0 %v14346_v53  ;;  %v11640_v11 = vpop.f32.mrf.mxu0 }
 0x3fa   : > { %v2104_v30 = vpack.c.bf16 %v2083_v32, %v2080_v1  ;;  %2470 = vmatprep.subr.bf16.mxu0 %v17862_v29  ;;  %v11641_v45 = vadd.f32 %v11640_v11, %v11639_v16  ;;  %v10357_v16 = vld [vmem:[%s17849_s3 + $0x2b8] sm:$0x11] }
 0x3fb   : > { %v11642_v52 = vpop.f32.mrf.mxu0  ;;  %v13468_v1 = vld [vmem:[%s17849_s3 + $0x298] ss:$16 sps:$4 sm:$0xff]   ;;  %v10381_v32 = vcombine.high %v10357_v16, %v10357_v16  ;;  %v10380_v11 = vcombine.low %v10357_v16, %v10357_v16 }
 0x3fc   : > { %12750 = vmatmul.mubr.msk.bf16.gmra.mxu0 %vm1583_vm3, %v2104_v30  ;;  %v2088_v37 = vadd.f32 %v11641_v45, %v14740_v33  ;;  %v13444_v33 = vld [vmem:[%s17849_s3 + $0x21c] ss:$16 sps:$4 sm:$0xff]  }
 0x3fd   : > { %2471 = vmatpush1.bf16.msra.mxu0 %v14353_v58  ;;  %v11643_v4 = vpop.f32.mrf.mxu0  ;;  %v13473_v30 = vld [vmem:[%s17850_s4 + $0x38] sm:$0xff]  }
 0x3fe   : > { %v11644_v26 = vadd.f32 %v11643_v4, %v11642_v52  ;;  %2472 = vmatprep.subr.bf16.mxu0 %v17862_v29  ;;  %12757 = vmatprep.subr.bf16.mxu1 %v13473_v30  ;;  %v11675_v52 = vpop.f32.mrf.mxu1 }
 0x3ff   : > { %v11645_v43 = vpop.f32.mrf.mxu0  ;;  %12758 = vmatpush3.bf16.msra.mxu1 %v13473_v30 }
 0x400   : > { %v2091_v50 = vadd.f32 %v11644_v26, %v14742_v36  ;;  %v11676_v45 = vpop.f32.mrf.mxu1 }
 0x401   : > { %2473 = vmatpush1.bf16.msra.mxu0 %v14357_v23  ;;  %v11646_v62 = vpop.f32.mrf.mxu0 }
 0x402   : > { %v2105_v8 = vpack.c.bf16 %v2091_v50, %v2088_v37  ;;  %v11647_v39 = vadd.f32 %v11646_v62, %v11645_v43  ;;  %2474 = vmatprep.subr.bf16.mxu0 %v17862_v29  ;;  %v14875_v4 = vpop.f32.mrf.mxu1  ;;  %v14879_v43 = vadd.f32 %v11676_v45, %v11675_v52 }
 0x403   : > { %v11648_v2 = vpop.f32.mrf.mxu0 }
 0x404   : > { %v2096_v27 = vadd.f32 %v11647_v39, %v14750_v19  ;;  %12753 = vmatprep.mubr.msk.bf16.mxu0 %vm1583_vm3, %v2105_v8  ;;  %v13442_v19 = vld [vmem:[%s17849_s3 + $0x218] ss:$16 sps:$4 sm:$0xff]   ;;  %v14877_v26 = vpop.f32.mrf.mxu1  ;;  %v13474_v2 = vld [vmem:[%s17850_s4 + $0x30] sm:$0xff]  }
 0x405   : > { %2475 = vmatpush1.bf16.msra.mxu0 %v14268_v21  ;;  %v11649_v63 = vpop.f32.mrf.mxu0  ;;  %12759 = vmatprep.subr.bf16.mxu1 %v13474_v2 }
 0x406   : > { %v2106_v36 = vpack.c.bf16 %v2096_v27, %v2096_v27  ;;  %2476 = vmatprep.subr.bf16.mxu0 %v17862_v29  ;;  %v11681_v37 = vpop.f32.mrf.mxu1  ;;  %12760 = vmatpush3.bf16.msra.mxu1 %v13474_v2  ;;  %v13475_v2 = vld [vmem:[%s17849_s3 + $0x2c0] ss:$16 sps:$4 sm:$0xff]  }
 0x407   : > { %2903 = vmatprep.subr.bf16.mxu1 %v17862_v29 }
 0x408   : > { %12754 = vmatmul.mubr.msk.bf16.gmra.mxu0 %vm1583_vm3, %v2106_v36  ;;  %v11682_v50 = vpop.f32.mrf.mxu1 }
 0x409   : > { %2477 = vmatpush1.bf16.msra.mxu0 %v14251_v3  ;;  %10382 = vmatprep.mubr.msk.bf16.mxu0 %vm1062_vm2, %v13444_v33  ;;  %v14885_v39 = vadd.f32 %v11682_v50, %v11681_v37  ;;  %v13477_v50 = vld [vmem:[%s17849_s3 + $0x2c4] ss:$16 sps:$4 sm:$0xff]  }
 0x40a   : > { %2492 = vmatprep.subr.bf16.mxu0 %v17862_v29  ;;  %v14881_v62 = vpop.f32.mrf.mxu1 }
 0x40c   : > { %v14883_v8 = vpop.f32.mrf.mxu1 }
 0x40d   : > { %2493 = vmatpush2.bf16.msra.mxu0 %v14367_v6 }
 0x40e   : > { %11719 = vmatprep.subr.bf16.mxu0 %v17874_v12  ;;  %v11687_v27 = vpop.f32.mrf.mxu1 }
 0x410   : > { %2495 = vmatmul.mubr.bf16.vlgmr.msra.gmra.mxu0 %v13442_v19  ;;  %v11688_v63 = vpop.f32.mrf.mxu1 }
 0x411   : > { %11720 = vmatpush3.bf16.msra.mxu0 %v14216_v44  ;;  %10383 = vmatprep.mubr.msk.bf16.mxu0 %vm1062_vm2, %v13448_v10  ;;  %v14895_v19 = vadd.f32 %v11688_v63, %v11687_v27  ;;  %v13483_v27 = vld [vmem:[%s17849_s3 + $0x2e4] ss:$16 sps:$4 sm:$0xff]   ;;  %v13481_v63 = vld [vmem:[%s17849_s3 + $0x2e0] ss:$16 sps:$4 sm:$0xff]  }
 0x412   : > { %11721 = vmatprep.subr.bf16.mxu0 %v14237_v46  ;;  %v14890_v33 = vpop.f32.mrf.mxu1 }
 0x414   : > { %v14893_v36 = vpop.f32.mrf.mxu1 }
 0x415   : > { %11722 = vmatpush3.bf16.msra.mxu0 %v14212_v34 }
 0x416   : > { %11723 = vmatprep.subr.bf16.mxu0 %v14247_v57 }
 0x418   : > { %2503 = vmatmul.mubr.bf16.gmra.mxu0 %v13450_v59 }
 0x419   : > { %11724 = vmatpush3.bf16.msra.mxu0 %v14208_v24  ;;  %10384 = vmatprep.mubr.msk.bf16.mxu0 %vm1062_vm2, %v13454_v18 }
 0x41a   : > { %11725 = vmatprep.subr.bf16.mxu0 %v14255_v9 }
 0x41d   : > { %11726 = vmatpush3.bf16.msra.mxu0 %v14201_v14 }
 0x41e   : > { %11727 = vmatprep.subr.bf16.mxu0 %v14263_v17 }
 0x420   : > { %2511 = vmatmul.mubr.bf16.gmra.mxu0 %v13456_v13 }
 0x421   : > { %11728 = vmatpush3.bf16.msra.mxu0 %v14197_v5  ;;  %10385 = vmatprep.mubr.msk.bf16.mxu0 %vm1062_vm2, %v13460_v56 }
 0x422   : > { %11729 = vmatprep.subr.bf16.mxu0 %v14271_v22 }
 0x425   : > { %11730 = vmatpush3.bf16.msra.mxu0 %v14193_v60 }
 0x426   : > { %11731 = vmatprep.subr.bf16.mxu0 %v14226_v0 }
 0x428   : > { %2519 = vmatmul.mubr.bf16.gmra.mxu0 %v13462_v61 }
 0x429   : > { %11732 = vmatpush3.bf16.msra.mxu0 %v14189_v51  ;;  %10386 = vmatprep.mubr.msk.bf16.mxu0 %vm1062_vm2, %v13466_v15 }
 0x42a   : > { %11733 = vmatprep.subr.bf16.mxu0 %v14220_v54 }
 0x42d   : > { %11734 = vmatpush3.bf16.msra.mxu0 %v14185_v42 }
 0x430   : > { %2527 = vmatmul.mubr.bf16.gmra.mxu0 %v13468_v1 }
 0x431   : > { %10387 = vmatprep.mubr.msk.bf16.mxu0 %vm1062_vm2, %v10381_v32 }
 0x435   : > { %v11693_v10 = vpop.f32.mrf.mxu1 }
 0x437   : > { %v11694_v59 = vpop.f32.mrf.mxu1 }
 0x438   : > { %2535 = vmatmul.mubr.bf16.gmra.mxu0 %v10380_v11  ;;  %v14901_v56 = vadd.f32 %v11694_v59, %v11693_v10  ;;  %v13489_v10 = vld [vmem:[%s17849_s3 + $0x304] ss:$16 sps:$4 sm:$0xff]   ;;  %v13487_v59 = vld [vmem:[%s17849_s3 + $0x300] ss:$16 sps:$4 sm:$0xff]  }
 0x439   : > { %v14897_v18 = vpop.f32.mrf.mxu1  ;;  %2855 = vmatprep.mubr.bf16.mxu0 %v13477_v50 }
 0x43b   : > { %v14899_v13 = vpop.f32.mrf.mxu1 }
 0x43d   : > { %v11699_v61 = vpop.f32.mrf.mxu1 }
 0x43f   : > { %v11700_v15 = vpop.f32.mrf.mxu1 }
 0x440   : > { %v14907_v32 = vadd.f32 %v11700_v15, %v11699_v61  ;;  %2856 = vmatmul.mubr.bf16.vlgmr.msra.gmra.mxu0 %v13475_v2  ;;  %v13495_v61 = vld [vmem:[%s17849_s3 + $0x324] ss:$16 sps:$4 sm:$0xff]   ;;  %v13493_v15 = vld [vmem:[%s17849_s3 + $0x320] ss:$16 sps:$4 sm:$0xff]   ;;  %v1755_v2 = vadd.f32 %v14680_v41, %v14761_v7  ;;  %v1771_v41 = vadd.f32 %v14691_v55, %v14769_v25 }
 0x441   : > { %v14903_v16 = vpop.f32.mrf.mxu1  ;;  %2863 = vmatprep.mubr.bf16.mxu0 %v13483_v27 }
 0x443   : > { %v14905_v1 = vpop.f32.mrf.mxu1 }
 0x448   : > { %2864 = vmatmul.mubr.bf16.gmra.mxu0 %v13481_v63  ;;  %v1747_v63 = vadd.f32 %v14682_v47, %v14763_v48  ;;  %v1763_v47 = vadd.f32 %v14693_v40, %v14771_v31 }
 0x449   : > { %2871 = vmatprep.mubr.bf16.mxu0 %v13489_v10 }
 0x450   : > { %v11705_v11 = vpop.f32.mrf.mxu1  ;;  %2872 = vmatmul.mubr.bf16.gmra.mxu0 %v13487_v59 }
 0x451   : > { %2879 = vmatprep.mubr.bf16.mxu0 %v13495_v61  ;;  %v1758_v61 = vadd.f32 %v14684_v35, %v14765_v28 }
 0x452   : > { %v11706_v30 = vpop.f32.mrf.mxu1 }
 0x453   : > { %v14909_v37 = vadd.f32 %v11706_v30, %v11705_v11  ;;  %v13501_v11 = vld [vmem:[%s17849_s3 + $0x344] ss:$16 sps:$4 sm:$0xff]   ;;  %v13499_v30 = vld [vmem:[%s17849_s3 + $0x340] ss:$16 sps:$4 sm:$0xff]  }
 0x454   : > { %v11708_v52 = vpop.f32.mrf.mxu1 }
 0x455   : > { %v10420_v52 = vld [vmem:[%s17849_s3 + $0x360] sm:$0x11] }
 0x456   : > { %v11709_v45 = vpop.f32.mrf.mxu1  ;;  %v10442_v50 = vcombine.low %v10420_v52, %v10420_v52 }
 0x457   : > { %v10443_v45 = vcombine.high %v10420_v52, %v10420_v52 }
 0x458   : > { %2880 = vmatmul.mubr.bf16.gmra.mxu0 %v13493_v15 }
 0x459   : > { %2887 = vmatprep.mubr.bf16.mxu0 %v13501_v11 }
 0x460   : > { %2888 = vmatmul.mubr.bf16.gmra.mxu0 %v13499_v30 }
 0x461   : > { %2895 = vmatprep.mubr.bf16.mxu0 %v10443_v45 }
 0x468   : > { %2896 = vmatmul.mubr.bf16.gmra.mxu0 %v10442_v50  ;;  %v17877_v50 = vld [vmem:[#allocation10_spill] sm:$0xff] }
 0x4ac   : > { %v12747_v27 = vpop.f32.mrf.mxu0 }
 0x4ad   : > { %v14948_v10 = vadd.f32 %v12747_v27, %v1755_v2  ;;  %v17878_v2 = vld [vmem:[#allocation4_spill] sm:$0xff] }
 0x4ae   : > { %v2176_v59 = vpop.f32.mrf.mxu0  ;;  %v1774_v35 = vadd.f32 %v17878_v2, %v17877_v50 }
 0x4af   : > { %v14952_v15 = vadd.f32 %v2176_v59, %v1747_v63 }
 0x4b0   : > { %v12748_v11 = vpop.f32.mrf.mxu0 }
 0x4b1   : > { %v14954_v30 = vadd.f32 %v12748_v11, %v1758_v61  ;;  %v17881_v61 = vld [vmem:[#allocation12_spill] sm:$0xff]  ;;  %v17882_v11 = vld [vmem:[#allocation6_spill] sm:$0xff] }
 0x4b2   : > { %v14956_v52 = vpop.f32.mrf.mxu0  ;;  %v1787_v55 = vadd.f32 %v17882_v11, %v17881_v61 }
 0x4b3   : > { %17875 = vst [vmem:[#allocation2_spill] sm:$0xff] %v14954_v30  ;;  %17876 = vst [vmem:[#allocation15_spill] sm:$0xff] %v14956_v52  ;;  %v17883_v52 = vld [vmem:[#allocation13_spill] sm:$0xff]  ;;  %v17884_v30 = vld [vmem:[#allocation7_spill] sm:$0xff] }
 0x4b4   : > { %v1779_v40 = vadd.f32 %v17884_v30, %v17883_v52 }
 0x4bc   : > { %v12751_v7 = vpop.f32.mrf.mxu0 }
 0x4bd   : > { %v14962_v48 = vadd.f32 %v12751_v7, %v1771_v41 }
 0x4be   : > { %v2192_v45 = vpop.f32.mrf.mxu0 }
 0x4bf   : > { %v14966_v28 = vadd.f32 %v2192_v45, %v1763_v47 }
 0x4c0   : > { %v12752_v27 = vpop.f32.mrf.mxu0 }
 0x4c1   : > { %v14968_v63 = vadd.f32 %v12752_v27, %v1774_v35  ;;  %v11680_v35 = vadd.f32 %v14877_v26, %v14875_v4 }
 0x4c2   : > { %v14970_v59 = vpop.f32.mrf.mxu0 }
 0x4c3   : > { %17879 = vst [vmem:[#allocation10_spill] sm:$0xff] %v14968_v63  ;;  %17880 = vst [vmem:[#allocation4_spill] sm:$0xff] %v14970_v59 }
 0x4c8   : > { %v12755_v25 = vpop.f32.mrf.mxu0 }
 0x4c9   : > { %v14976_v31 = vadd.f32 %v12755_v25, %v1787_v55  ;;  %v11686_v55 = vadd.f32 %v14883_v8, %v14881_v62 }
 0x4ca   : > { %v2208_v41 = vpop.f32.mrf.mxu0 }
 0x4cb   : > { %v14978_v7 = vadd.f32 %v2208_v41, %v1779_v40 }
 0x4cc   : > { %v12756_v50 = vpop.f32.mrf.mxu0 }
 0x4ce   : > { %v14980_v47 = vpop.f32.mrf.mxu0 }
 0x4cf   : > { %17885 = vst [vmem:[#allocation12_spill] sm:$0xff] %v14980_v47 }
 0x4d0   : > { %v2496_v45 = vpop.f32.mrf.mxu0 }
 0x4d1   : > { %v2497_v61 = vadd.f32 %v14879_v43, %v2496_v45  ;;  %v11692_v43 = vadd.f32 %v14893_v36, %v14890_v33  ;;  %v11698_v33 = vadd.f32 %v14899_v13, %v14897_v18  ;;  %v11704_v18 = vadd.f32 %v14905_v1, %v14903_v16  ;;  %v13480_v1 = vld [vmem:[%s17849_s3 + $0x2cc] ss:$16 sps:$4 sm:$0xff]  }
 0x4d2   : > { %v2498_v2 = vpop.f32.mrf.mxu0 }
 0x4d4   : > { %v2499_v27 = vpop.f32.mrf.mxu0 }
 0x4d5   : > { %v2500_v11 = vadd.f32 %v11680_v35, %v2499_v27 }
 0x4d6   : > { %v2501_v59 = vpop.f32.mrf.mxu0 }
 0x4d7   : > { %v2542_v63 = vpack.c.bf16 %v2500_v11, %v2497_v61 }
 0x4d8   : > { %v2504_v30 = vpop.f32.mrf.mxu0 }
 0x4d9   : > { %12761 = vmatprep.mubr.msk.bf16.mxu1 %vm1583_vm3, %v2542_v63  ;;  %v2505_v40 = vadd.f32 %v14885_v39, %v2504_v30 }
 0x4da   : > { %v2506_v52 = vpop.f32.mrf.mxu0 }
 0x4dc   : > { %v2507_v25 = vpop.f32.mrf.mxu0 }
 0x4dd   : > { %v2508_v41 = vadd.f32 %v11686_v55, %v2507_v25 }
 0x4de   : > { %v2509_v50 = vpop.f32.mrf.mxu0 }
 0x4df   : > { %v2543_v2 = vpack.c.bf16 %v2508_v41, %v2505_v40 }
 0x4e0   : > { %v2512_v4 = vpop.f32.mrf.mxu0 }
 0x4e1   : > { %12762 = vmatmul.mubr.msk.bf16.vlgmr.msra.gmra.mxu1 %vm1583_vm3, %v2543_v2  ;;  %v2513_v62 = vadd.f32 %v14895_v19, %v2512_v4 }
 0x4e2   : > { %2904 = vmatpush1.bf16.msra.mxu1 %v14322_v20  ;;  %v2514_v26 = vpop.f32.mrf.mxu0 }
 0x4e3   : > { %2905 = vmatprep.subr.bf16.mxu1 %v17862_v29  ;;  %v13484_v26 = vld [vmem:[%s17849_s3 + $0x2ec] ss:$16 sps:$4 sm:$0xff]  }
 0x4e4   : > { %v2515_v63 = vpop.f32.mrf.mxu0 }
 0x4e5   : > { %v2516_v8 = vadd.f32 %v11692_v43, %v2515_v63  ;;  %v13486_v43 = vld [vmem:[%s17849_s3 + $0x2e8] ss:$16 sps:$4 sm:$0xff]   ;;  %v13490_v63 = vld [vmem:[%s17849_s3 + $0x30c] ss:$16 sps:$4 sm:$0xff]  }
 0x4e6   : > { %2906 = vmatpush1.bf16.msra.mxu1 %v14328_v38  ;;  %v2517_v39 = vpop.f32.mrf.mxu0 }
 0x4e7   : > { %v2544_v59 = vpack.c.bf16 %v2516_v8, %v2513_v62  ;;  %2907 = vmatprep.subr.bf16.mxu1 %v17862_v29  ;;  %v13492_v62 = vld [vmem:[%s17849_s3 + $0x308] ss:$16 sps:$4 sm:$0xff]   ;;  %v13496_v8 = vld [vmem:[%s17849_s3 + $0x32c] ss:$16 sps:$4 sm:$0xff]  }
 0x4e8   : > { %v2520_v45 = vpop.f32.mrf.mxu0  ;;  %v13498_v39 = vld [vmem:[%s17849_s3 + $0x328] ss:$16 sps:$4 sm:$0xff]  }
 0x4e9   : > { %12765 = vmatprep.mubr.msk.bf16.mxu1 %vm1583_vm3, %v2544_v59  ;;  %v2521_v19 = vadd.f32 %v14901_v56, %v2520_v45  ;;  %v13502_v59 = vld [vmem:[%s17849_s3 + $0x34c] ss:$16 sps:$4 sm:$0xff]  }
 0x4ea   : > { %2908 = vmatpush1.bf16.msra.mxu1 %v14335_v49  ;;  %v2522_v35 = vpop.f32.mrf.mxu0  ;;  %v10421_v45 = vld [vmem:[%s17849_s3 + $0x368] sm:$0x11] }
 0x4eb   : > { %2909 = vmatprep.subr.bf16.mxu1 %v17862_v29  ;;  %v13504_v35 = vld [vmem:[%s17849_s3 + $0x348] ss:$16 sps:$4 sm:$0xff]  }
 0x4ec   : > { %v2523_v36 = vpop.f32.mrf.mxu0 }
 0x4ed   : > { %v2524_v27 = vadd.f32 %v11698_v33, %v2523_v36  ;;  %v10445_v33 = vcombine.high %v10421_v45, %v10421_v45  ;;  %v10444_v36 = vcombine.low %v10421_v45, %v10421_v45 }
 0x4ee   : > { %2910 = vmatpush1.bf16.msra.mxu1 %v14346_v53  ;;  %v2525_v61 = vpop.f32.mrf.mxu0 }
 0x4ef   : > { %v2545_v11 = vpack.c.bf16 %v2524_v27, %v2521_v19  ;;  %2911 = vmatprep.subr.bf16.mxu1 %v17862_v29  ;;  %v13509_v19 = vld [vmem:[%s17850_s4 + $0x48] sm:$0xff]  }
 0x4f0   : > { %v2528_v30 = vpop.f32.mrf.mxu0  ;;  %12773 = vmatprep.subr.bf16.mxu0 %v13509_v19 }
 0x4f1   : > { %12766 = vmatmul.mubr.msk.bf16.gmra.mxu1 %vm1583_vm3, %v2545_v11  ;;  %v2529_v56 = vadd.f32 %v14907_v32, %v2528_v30  ;;  %12774 = vmatpush3.bf16.msra.mxu0 %v13509_v19 }
 0x4f2   : > { %2912 = vmatpush1.bf16.msra.mxu1 %v14353_v58  ;;  %v2530_v52 = vpop.f32.mrf.mxu0 }
 0x4f3   : > { %2913 = vmatprep.subr.bf16.mxu1 %v17862_v29 }
 0x4f4   : > { %v2531_v13 = vpop.f32.mrf.mxu0 }
 0x4f5   : > { %v2532_v55 = vadd.f32 %v11704_v18, %v2531_v13 }
 0x4f6   : > { %2914 = vmatpush1.bf16.msra.mxu1 %v14357_v23  ;;  %v2533_v25 = vpop.f32.mrf.mxu0 }
 0x4f7   : > { %v2546_v40 = vpack.c.bf16 %v2532_v55, %v2529_v56  ;;  %2915 = vmatprep.subr.bf16.mxu1 %v17862_v29 }
 0x4f8   : > { %v2536_v41 = vpop.f32.mrf.mxu0 }
 0x4f9   : > { %v2537_v50 = vadd.f32 %v14909_v37, %v2536_v41  ;;  %12769 = vmatprep.mubr.msk.bf16.mxu1 %vm1583_vm3, %v2546_v40  ;;  %v13478_v37 = vld [vmem:[%s17849_s3 + $0x2c8] ss:$16 sps:$4 sm:$0xff]   ;;  %v13510_v40 = vld [vmem:[%s17850_s4 + $0x40] sm:$0xff]  }
 0x4fa   : > { %2916 = vmatpush1.bf16.msra.mxu1 %v14268_v21  ;;  %v2538_v16 = vpop.f32.mrf.mxu0  ;;  %12775 = vmatprep.subr.bf16.mxu0 %v13510_v40 }
 0x4fb   : > { %v2547_v32 = vpack.c.bf16 %v2537_v50, %v2537_v50  ;;  %2917 = vmatprep.subr.bf16.mxu1 %v17862_v29  ;;  %12776 = vmatpush3.bf16.msra.mxu0 %v13510_v40  ;;  %v13525_v40 = vld [vmem:[%s17849_s3 + $0x3b4] ss:$16 sps:$4 sm:$0xff]  }
 0x4fc   : > { %v2539_v2 = vpop.f32.mrf.mxu0  ;;  %3344 = vmatprep.subr.bf16.mxu0 %v17862_v29 }
 0x4fd   : > { %12770 = vmatmul.mubr.msk.bf16.gmra.mxu1 %vm1583_vm3, %v2547_v32 }
 0x4fe   : > { %2918 = vmatpush1.bf16.msra.mxu1 %v14251_v3  ;;  %v2540_v4 = vpop.f32.mrf.mxu0  ;;  %10446 = vmatprep.mubr.msk.bf16.mxu1 %vm1062_vm2, %v13480_v1 }
 0x4ff   : > { %2933 = vmatprep.subr.bf16.mxu1 %v17862_v29 }
 0x500   : > { %v11735_v27 = vpop.f32.mrf.mxu0 }
 0x502   : > { %2934 = vmatpush2.bf16.msra.mxu1 %v14367_v6  ;;  %v11736_v61 = vpop.f32.mrf.mxu0 }
 0x503   : > { %11779 = vmatprep.subr.bf16.mxu1 %v17874_v12  ;;  %v15083_v52 = vadd.f32 %v11736_v61, %v11735_v27  ;;  %v13513_v27 = vld [vmem:[%s17849_s3 + $0x374] ss:$16 sps:$4 sm:$0xff]   ;;  %v13511_v61 = vld [vmem:[%s17849_s3 + $0x370] ss:$16 sps:$4 sm:$0xff]  }
 0x504   : > { %v15079_v11 = vpop.f32.mrf.mxu0 }
 0x505   : > { %2936 = vmatmul.mubr.bf16.vlgmr.msra.gmra.mxu1 %v13478_v37 }
 0x506   : > { %11780 = vmatpush3.bf16.msra.mxu1 %v14216_v44  ;;  %10447 = vmatprep.mubr.msk.bf16.mxu1 %vm1062_vm2, %v13484_v26  ;;  %v15081_v30 = vpop.f32.mrf.mxu0 }
 0x507   : > { %11781 = vmatprep.subr.bf16.mxu1 %v14237_v46 }
 0x508   : > { %v11741_v18 = vpop.f32.mrf.mxu0 }
 0x50a   : > { %11782 = vmatpush3.bf16.msra.mxu1 %v14212_v34  ;;  %v11742_v13 = vpop.f32.mrf.mxu0 }
 0x50b   : > { %11783 = vmatprep.subr.bf16.mxu1 %v14247_v57  ;;  %v15089_v25 = vadd.f32 %v11742_v13, %v11741_v18  ;;  %v13519_v18 = vld [vmem:[%s17849_s3 + $0x394] ss:$16 sps:$4 sm:$0xff]   ;;  %v13517_v13 = vld [vmem:[%s17849_s3 + $0x390] ss:$16 sps:$4 sm:$0xff]  }
 0x50c   : > { %v15085_v56 = vpop.f32.mrf.mxu0 }
 0x50d   : > { %2944 = vmatmul.mubr.bf16.gmra.mxu1 %v13486_v43 }
 0x50e   : > { %11784 = vmatpush3.bf16.msra.mxu1 %v14208_v24  ;;  %10448 = vmatprep.mubr.msk.bf16.mxu1 %vm1062_vm2, %v13490_v63  ;;  %v15087_v55 = vpop.f32.mrf.mxu0 }
 0x50f   : > { %11785 = vmatprep.subr.bf16.mxu1 %v14255_v9 }
 0x510   : > { %v11747_v41 = vpop.f32.mrf.mxu0 }
 0x512   : > { %11786 = vmatpush3.bf16.msra.mxu1 %v14201_v14  ;;  %v11748_v50 = vpop.f32.mrf.mxu0 }
 0x513   : > { %11787 = vmatprep.subr.bf16.mxu1 %v14263_v17  ;;  %v15099_v32 = vadd.f32 %v11748_v50, %v11747_v41  ;;  %v13523_v41 = vld [vmem:[%s17849_s3 + $0x3b0] ss:$16 sps:$4 sm:$0xff]   ;;  %v13531_v50 = vld [vmem:[%s17849_s3 + $0x3d4] ss:$16 sps:$4 sm:$0xff]  }
 0x514   : > { %v15094_v16 = vpop.f32.mrf.mxu0 }
 0x515   : > { %2952 = vmatmul.mubr.bf16.gmra.mxu1 %v13492_v62 }
 0x516   : > { %11788 = vmatpush3.bf16.msra.mxu1 %v14197_v5  ;;  %10449 = vmatprep.mubr.msk.bf16.mxu1 %vm1062_vm2, %v13496_v8  ;;  %v15097_v1 = vpop.f32.mrf.mxu0 }
 0x517   : > { %11789 = vmatprep.subr.bf16.mxu1 %v14271_v22 }
 0x518   : > { %v11753_v2 = vpop.f32.mrf.mxu0 }
 0x51a   : > { %11790 = vmatpush3.bf16.msra.mxu1 %v14193_v60  ;;  %v11754_v4 = vpop.f32.mrf.mxu0 }
 0x51b   : > { %11791 = vmatprep.subr.bf16.mxu1 %v14226_v0  ;;  %v15105_v43 = vadd.f32 %v11754_v4, %v11753_v2  ;;  %v13529_v2 = vld [vmem:[%s17849_s3 + $0x3d0] ss:$16 sps:$4 sm:$0xff]   ;;  %v13537_v4 = vld [vmem:[%s17849_s3 + $0x3f4] ss:$16 sps:$4 sm:$0xff]  }
 0x51c   : > { %v15101_v37 = vpop.f32.mrf.mxu0 }
 0x51d   : > { %2960 = vmatmul.mubr.bf16.gmra.mxu1 %v13498_v39 }
 0x51e   : > { %11792 = vmatpush3.bf16.msra.mxu1 %v14189_v51  ;;  %10450 = vmatprep.mubr.msk.bf16.mxu1 %vm1062_vm2, %v13502_v59  ;;  %v15103_v26 = vpop.f32.mrf.mxu0 }
 0x51f   : > { %11793 = vmatprep.subr.bf16.mxu1 %v14220_v54 }
 0x520   : > { %v11759_v63 = vpop.f32.mrf.mxu0 }
 0x522   : > { %11794 = vmatpush3.bf16.msra.mxu1 %v14185_v42  ;;  %v11760_v62 = vpop.f32.mrf.mxu0 }
 0x523   : > { %v15111_v59 = vadd.f32 %v11760_v62, %v11759_v63  ;;  %v13535_v63 = vld [vmem:[%s17849_s3 + $0x3f0] ss:$16 sps:$4 sm:$0xff]  }
 0x524   : > { %v15107_v8 = vpop.f32.mrf.mxu0  ;;  %v10484_v62 = vld [vmem:[%s17849_s3 + $0x410] sm:$0x11] }
 0x525   : > { %2968 = vmatmul.mubr.bf16.gmra.mxu1 %v13504_v35 }
 0x526   : > { %10451 = vmatprep.mubr.msk.bf16.mxu1 %vm1062_vm2, %v10445_v33  ;;  %v15109_v39 = vpop.f32.mrf.mxu0 }
 0x528   : > { %v11765_v45 = vpop.f32.mrf.mxu0 }
 0x52a   : > { %v11766_v35 = vpop.f32.mrf.mxu0 }
 0x52b   : > { %v15113_v19 = vadd.f32 %v11766_v35, %v11765_v45  ;;  %v10507_v45 = vcombine.high %v10484_v62, %v10484_v62  ;;  %v10506_v35 = vcombine.low %v10484_v62, %v10484_v62  ;;  %v17888_v62 = vld [vmem:[#allocation10_spill] sm:$0xff] }
 0x52c   : > { %v11768_v33 = vpop.f32.mrf.mxu0 }
 0x52d   : > { %2976 = vmatmul.mubr.bf16.gmra.mxu1 %v10444_v36 }
 0x52e   : > { %v11769_v36 = vpop.f32.mrf.mxu0  ;;  %3296 = vmatprep.mubr.bf16.mxu1 %v13513_v27 }
 0x535   : > { %3297 = vmatmul.mubr.bf16.vlgmr.msra.gmra.mxu1 %v13511_v61 }
 0x536   : > { %3304 = vmatprep.mubr.bf16.mxu1 %v13519_v18 }
 0x53d   : > { %3305 = vmatmul.mubr.bf16.gmra.mxu1 %v13517_v13  ;;  %v17886_v13 = vld [vmem:[#allocation2_spill] sm:$0xff] }
 0x53e   : > { %3312 = vmatprep.mubr.bf16.mxu1 %v13525_v40 }
 0x545   : > { %3313 = vmatmul.mubr.bf16.gmra.mxu1 %v13523_v41 }
 0x546   : > { %3320 = vmatprep.mubr.bf16.mxu1 %v13531_v50 }
 0x54d   : > { %3321 = vmatmul.mubr.bf16.gmra.mxu1 %v13529_v2 }
 0x54e   : > { %3328 = vmatprep.mubr.bf16.mxu1 %v13537_v4 }
 0x555   : > { %3329 = vmatmul.mubr.bf16.gmra.mxu1 %v13535_v63 }
 0x556   : > { %3336 = vmatprep.mubr.bf16.mxu1 %v10507_v45 }
 0x55d   : > { %3337 = vmatmul.mubr.bf16.gmra.mxu1 %v10506_v35 }
 0x5a1   : > { %v12763_v33 = vpop.f32.mrf.mxu1 }
 0x5a2   : > { %v15149_v36 = vadd.f32 %v12763_v33, %v14948_v10 }
 0x5a3   : > { %v2617_v27 = vpop.f32.mrf.mxu1 }
 0x5a4   : > { %v15152_v61 = vadd.f32 %v2617_v27, %v14952_v15 }
 0x5a5   : > { %v12764_v18 = vpop.f32.mrf.mxu1 }
 0x5a6   : > { %v15155_v40 = vadd.f32 %v12764_v18, %v17886_v13 }
 0x5a7   : > { %v15157_v41 = vpop.f32.mrf.mxu1 }
 0x5a8   : > { %17887 = vst [vmem:[#allocation6_spill] sm:$0xff] %v15157_v41 }
 0x5b1   : > { %v12767_v50 = vpop.f32.mrf.mxu1 }
 0x5b2   : > { %v15160_v2 = vadd.f32 %v12767_v50, %v14962_v48 }
 0x5b3   : > { %v2633_v4 = vpop.f32.mrf.mxu1 }
 0x5b4   : > { %v15163_v63 = vadd.f32 %v2633_v4, %v14966_v28  ;;  %v11740_v4 = vadd.f32 %v15081_v30, %v15079_v11 }
 0x5b5   : > { %v12768_v10 = vpop.f32.mrf.mxu1 }
 0x5b6   : > { %v15166_v45 = vadd.f32 %v12768_v10, %v17888_v62 }
 0x5b7   : > { %v15168_v15 = vpop.f32.mrf.mxu1 }
 0x5b8   : > { %17889 = vst [vmem:[#allocation13_spill] sm:$0xff] %v15168_v15 }
 0x5bd   : > { %v12771_v35 = vpop.f32.mrf.mxu1 }
 0x5be   : > { %v15171_v33 = vadd.f32 %v12771_v35, %v14976_v31 }
 0x5bf   : > { %v2649_v27 = vpop.f32.mrf.mxu1 }
 0x5c0   : > { %v15174_v18 = vadd.f32 %v2649_v27, %v14978_v7  ;;  %v11746_v7 = vadd.f32 %v15087_v55, %v15085_v56 }
 0x5c1   : > { %v12772_v48 = vpop.f32.mrf.mxu1 }
 0x5c2   : > { %17890 = vst [vmem:[#allocation7_spill] sm:$0xff] %v15174_v18 }
 0x5c3   : > { %v15176_v13 = vpop.f32.mrf.mxu1 }
 0x5c4   : > { %17891 = vst [vmem:[#allocation2_spill] sm:$0xff] %v15176_v13 }
 0x5c5   : > { %v2937_v50 = vpop.f32.mrf.mxu1 }
 0x5c6   : > { %v2938_v62 = vadd.f32 %v15083_v52, %v2937_v50 }
 0x5c7   : > { %v2939_v28 = vpop.f32.mrf.mxu1 }
 0x5c9   : > { %v2940_v10 = vpop.f32.mrf.mxu1 }
 0x5ca   : > { %v2941_v47 = vadd.f32 %v11740_v4, %v2940_v10 }
 0x5cb   : > { %v2942_v15 = vpop.f32.mrf.mxu1 }
 0x5cc   : > { %v2983_v41 = vpack.c.bf16 %v2941_v47, %v2938_v62  ;;  %v11752_v47 = vadd.f32 %v15097_v1, %v15094_v16  ;;  %v11758_v16 = vadd.f32 %v15103_v26, %v15101_v37  ;;  %v11764_v37 = vadd.f32 %v15109_v39, %v15107_v8  ;;  %v13516_v39 = vld [vmem:[%s17849_s3 + $0x37c] ss:$16 sps:$4 sm:$0xff]  }
 0x5cd   : > { %v2945_v31 = vpop.f32.mrf.mxu1 }
 0x5ce   : > { %12777 = vmatprep.mubr.msk.bf16.mxu0 %vm1583_vm3, %v2983_v41  ;;  %v2946_v48 = vadd.f32 %v15089_v25, %v2945_v31 }
 0x5cf   : > { %v2947_v35 = vpop.f32.mrf.mxu1 }
 0x5d1   : > { %v2948_v27 = vpop.f32.mrf.mxu1 }
 0x5d2   : > { %v2949_v28 = vadd.f32 %v11746_v7, %v2948_v27 }
 0x5d3   : > { %v2950_v13 = vpop.f32.mrf.mxu1 }
 0x5d4   : > { %v2984_v18 = vpack.c.bf16 %v2949_v28, %v2946_v48 }
 0x5d5   : > { %v2953_v11 = vpop.f32.mrf.mxu1 }
 0x5d6   : > { %12778 = vmatmul.mubr.msk.bf16.vlgmr.msra.gmra.mxu0 %vm1583_vm3, %v2984_v18  ;;  %v2954_v56 = vadd.f32 %v15099_v32, %v2953_v11 }
 0x5d7   : > { %3345 = vmatpush1.bf16.msra.mxu0 %v14322_v20  ;;  %v2955_v30 = vpop.f32.mrf.mxu1 }
 0x5d8   : > { %3346 = vmatprep.subr.bf16.mxu0 %v17862_v29  ;;  %v13520_v30 = vld [vmem:[%s17849_s3 + $0x39c] ss:$16 sps:$4 sm:$0xff]  }
 0x5d9   : > { %v2956_v52 = vpop.f32.mrf.mxu1 }
 0x5da   : > { %v2957_v55 = vadd.f32 %v11752_v47, %v2956_v52  ;;  %v13522_v47 = vld [vmem:[%s17849_s3 + $0x398] ss:$16 sps:$4 sm:$0xff]   ;;  %v13526_v52 = vld [vmem:[%s17849_s3 + $0x3bc] ss:$16 sps:$4 sm:$0xff]  }
 0x5db   : > { %3347 = vmatpush1.bf16.msra.mxu0 %v14328_v38  ;;  %v2958_v25 = vpop.f32.mrf.mxu1 }
 0x5dc   : > { %v2985_v41 = vpack.c.bf16 %v2957_v55, %v2954_v56  ;;  %3348 = vmatprep.subr.bf16.mxu0 %v17862_v29  ;;  %v13528_v56 = vld [vmem:[%s17849_s3 + $0x3b8] ss:$16 sps:$4 sm:$0xff]   ;;  %v13532_v55 = vld [vmem:[%s17849_s3 + $0x3dc] ss:$16 sps:$4 sm:$0xff]  }
 0x5dd   : > { %v2961_v15 = vpop.f32.mrf.mxu1  ;;  %v13534_v25 = vld [vmem:[%s17849_s3 + $0x3d8] ss:$16 sps:$4 sm:$0xff]  }
 0x5de   : > { %12781 = vmatprep.mubr.msk.bf16.mxu0 %vm1583_vm3, %v2985_v41  ;;  %v2962_v32 = vadd.f32 %v15105_v43, %v2961_v15  ;;  %v13538_v41 = vld [vmem:[%s17849_s3 + $0x3fc] ss:$16 sps:$4 sm:$0xff]  }
 0x5df   : > { %3349 = vmatpush1.bf16.msra.mxu0 %v14335_v49  ;;  %v2963_v18 = vpop.f32.mrf.mxu1  ;;  %v10485_v15 = vld [vmem:[%s17849_s3 + $0x418] sm:$0x11] }
 0x5e0   : > { %3350 = vmatprep.subr.bf16.mxu0 %v17862_v29  ;;  %v13540_v18 = vld [vmem:[%s17849_s3 + $0x3f8] ss:$16 sps:$4 sm:$0xff]  }
 0x5e1   : > { %v2964_v1 = vpop.f32.mrf.mxu1 }
 0x5e2   : > { %v2965_v13 = vadd.f32 %v11758_v16, %v2964_v1  ;;  %v10509_v16 = vcombine.high %v10485_v15, %v10485_v15  ;;  %v10508_v1 = vcombine.low %v10485_v15, %v10485_v15 }
 0x5e3   : > { %3351 = vmatpush1.bf16.msra.mxu0 %v14346_v53  ;;  %v2966_v50 = vpop.f32.mrf.mxu1 }
 0x5e4   : > { %v2986_v4 = vpack.c.bf16 %v2965_v13, %v2962_v32  ;;  %3352 = vmatprep.subr.bf16.mxu0 %v17862_v29  ;;  %v13545_v32 = vld [vmem:[%s17850_s4 + $0x58] sm:$0xff]  }
 0x5e5   : > { %v2969_v10 = vpop.f32.mrf.mxu1  ;;  %12789 = vmatprep.subr.bf16.mxu1 %v13545_v32 }
 0x5e6   : > { %12782 = vmatmul.mubr.msk.bf16.gmra.mxu0 %vm1583_vm3, %v2986_v4  ;;  %v2970_v43 = vadd.f32 %v15111_v59, %v2969_v10  ;;  %12790 = vmatpush3.bf16.msra.mxu1 %v13545_v32 }
 0x5e7   : > { %3353 = vmatpush1.bf16.msra.mxu0 %v14353_v58  ;;  %v2971_v62 = vpop.f32.mrf.mxu1 }
 0x5e8   : > { %3354 = vmatprep.subr.bf16.mxu0 %v17862_v29 }
 0x5e9   : > { %v2972_v26 = vpop.f32.mrf.mxu1 }
 0x5ea   : > { %v2973_v31 = vadd.f32 %v11764_v37, %v2972_v26 }
 0x5eb   : > { %3355 = vmatpush1.bf16.msra.mxu0 %v14357_v23  ;;  %v2974_v35 = vpop.f32.mrf.mxu1 }
 0x5ec   : > { %v2987_v7 = vpack.c.bf16 %v2973_v31, %v2970_v43  ;;  %3356 = vmatprep.subr.bf16.mxu0 %v17862_v29 }
 0x5ed   : > { %v2977_v27 = vpop.f32.mrf.mxu1 }
 0x5ee   : > { %v2978_v48 = vadd.f32 %v15113_v19, %v2977_v27  ;;  %12785 = vmatprep.mubr.msk.bf16.mxu0 %vm1583_vm3, %v2987_v7  ;;  %v13514_v19 = vld [vmem:[%s17849_s3 + $0x378] ss:$16 sps:$4 sm:$0xff]   ;;  %v13546_v7 = vld [vmem:[%s17850_s4 + $0x50] sm:$0xff]  }
 0x5ef   : > { %3357 = vmatpush1.bf16.msra.mxu0 %v14268_v21  ;;  %v2979_v8 = vpop.f32.mrf.mxu1  ;;  %12791 = vmatprep.subr.bf16.mxu1 %v13546_v7 }
 0x5f0   : > { %v2988_v59 = vpack.c.bf16 %v2978_v48, %v2978_v48  ;;  %3358 = vmatprep.subr.bf16.mxu0 %v17862_v29  ;;  %12792 = vmatpush3.bf16.msra.mxu1 %v13546_v7  ;;  %v13561_v7 = vld [vmem:[%s17849_s3 + $0x464] ss:$16 sps:$4 sm:$0xff]  }
 0x5f1   : > { %v2980_v28 = vpop.f32.mrf.mxu1  ;;  %3785 = vmatprep.subr.bf16.mxu1 %v17862_v29 }
 0x5f2   : > { %12786 = vmatmul.mubr.msk.bf16.gmra.mxu0 %vm1583_vm3, %v2988_v59 }
 0x5f3   : > { %3359 = vmatpush1.bf16.msra.mxu0 %v14251_v3  ;;  %v2981_v11 = vpop.f32.mrf.mxu1  ;;  %10510 = vmatprep.mubr.msk.bf16.mxu0 %vm1062_vm2, %v13516_v39 }
 0x5f4   : > { %3374 = vmatprep.subr.bf16.mxu0 %v17862_v29 }
 0x5f5   : > { %v11795_v13 = vpop.f32.mrf.mxu1 }
 0x5f7   : > { %3375 = vmatpush2.bf16.msra.mxu0 %v14367_v6  ;;  %v11796_v50 = vpop.f32.mrf.mxu1 }
 0x5f8   : > { %11839 = vmatprep.subr.bf16.mxu0 %v17874_v12  ;;  %v15279_v62 = vadd.f32 %v11796_v50, %v11795_v13  ;;  %v13549_v13 = vld [vmem:[%s17849_s3 + $0x424] ss:$16 sps:$4 sm:$0xff]   ;;  %v13547_v50 = vld [vmem:[%s17849_s3 + $0x420] ss:$16 sps:$4 sm:$0xff]  }
 0x5f9   : > { %v15275_v4 = vpop.f32.mrf.mxu1 }
 0x5fa   : > { %3377 = vmatmul.mubr.bf16.vlgmr.msra.gmra.mxu0 %v13514_v19 }
 0x5fb   : > { %11840 = vmatpush3.bf16.msra.mxu0 %v14216_v44  ;;  %10511 = vmatprep.mubr.msk.bf16.mxu0 %vm1062_vm2, %v13520_v30  ;;  %v15277_v10 = vpop.f32.mrf.mxu1 }
 0x5fc   : > { %11841 = vmatprep.subr.bf16.mxu0 %v14237_v46 }
 0x5fd   : > { %v11801_v37 = vpop.f32.mrf.mxu1 }
 0x5ff   : > { %11842 = vmatpush3.bf16.msra.mxu0 %v14212_v34  ;;  %v11802_v26 = vpop.f32.mrf.mxu1 }
 0x600   : > { %11843 = vmatprep.subr.bf16.mxu0 %v14247_v57  ;;  %v15285_v35 = vadd.f32 %v11802_v26, %v11801_v37  ;;  %v13555_v37 = vld [vmem:[%s17849_s3 + $0x444] ss:$16 sps:$4 sm:$0xff]   ;;  %v13553_v26 = vld [vmem:[%s17849_s3 + $0x440] ss:$16 sps:$4 sm:$0xff]  }
 0x601   : > { %v15281_v43 = vpop.f32.mrf.mxu1 }
 0x602   : > { %3385 = vmatmul.mubr.bf16.gmra.mxu0 %v13522_v47 }
 0x603   : > { %11844 = vmatpush3.bf16.msra.mxu0 %v14208_v24  ;;  %10512 = vmatprep.mubr.msk.bf16.mxu0 %vm1062_vm2, %v13526_v52  ;;  %v15283_v31 = vpop.f32.mrf.mxu1 }
 0x604   : > { %11845 = vmatprep.subr.bf16.mxu0 %v14255_v9 }
 0x605   : > { %v11807_v27 = vpop.f32.mrf.mxu1 }
 0x607   : > { %11846 = vmatpush3.bf16.msra.mxu0 %v14201_v14  ;;  %v11808_v48 = vpop.f32.mrf.mxu1 }
 0x608   : > { %11847 = vmatprep.subr.bf16.mxu0 %v14263_v17  ;;  %v15295_v59 = vadd.f32 %v11808_v48, %v11807_v27  ;;  %v13559_v27 = vld [vmem:[%s17849_s3 + $0x460] ss:$16 sps:$4 sm:$0xff]   ;;  %v13567_v48 = vld [vmem:[%s17849_s3 + $0x484] ss:$16 sps:$4 sm:$0xff]  }
 0x609   : > { %v15290_v8 = vpop.f32.mrf.mxu1 }
 0x60a   : > { %3393 = vmatmul.mubr.bf16.gmra.mxu0 %v13528_v56 }
 0x60b   : > { %11848 = vmatpush3.bf16.msra.mxu0 %v14197_v5  ;;  %10513 = vmatprep.mubr.msk.bf16.mxu0 %vm1062_vm2, %v13532_v55  ;;  %v15293_v39 = vpop.f32.mrf.mxu1 }
 0x60c   : > { %11849 = vmatprep.subr.bf16.mxu0 %v14271_v22 }
 0x60d   : > { %v11813_v28 = vpop.f32.mrf.mxu1 }
 0x60f   : > { %11850 = vmatpush3.bf16.msra.mxu0 %v14193_v60  ;;  %v11814_v11 = vpop.f32.mrf.mxu1 }
 0x610   : > { %11851 = vmatprep.subr.bf16.mxu0 %v14226_v0  ;;  %v15301_v47 = vadd.f32 %v11814_v11, %v11813_v28  ;;  %v13565_v28 = vld [vmem:[%s17849_s3 + $0x480] ss:$16 sps:$4 sm:$0xff]   ;;  %v13573_v11 = vld [vmem:[%s17849_s3 + $0x4a4] ss:$16 sps:$4 sm:$0xff]  }
 0x611   : > { %v15297_v19 = vpop.f32.mrf.mxu1 }
 0x612   : > { %3401 = vmatmul.mubr.bf16.gmra.mxu0 %v13534_v25 }
 0x613   : > { %11852 = vmatpush3.bf16.msra.mxu0 %v14189_v51  ;;  %10514 = vmatprep.mubr.msk.bf16.mxu0 %vm1062_vm2, %v13538_v41  ;;  %v15299_v30 = vpop.f32.mrf.mxu1 }
 0x614   : > { %11853 = vmatprep.subr.bf16.mxu0 %v14220_v54 }
 0x615   : > { %v11819_v52 = vpop.f32.mrf.mxu1 }
 0x617   : > { %11854 = vmatpush3.bf16.msra.mxu0 %v14185_v42  ;;  %v11820_v56 = vpop.f32.mrf.mxu1 }
 0x618   : > { %v15307_v41 = vadd.f32 %v11820_v56, %v11819_v52  ;;  %v13571_v52 = vld [vmem:[%s17849_s3 + $0x4a0] ss:$16 sps:$4 sm:$0xff]  }
 0x619   : > { %v15303_v55 = vpop.f32.mrf.mxu1  ;;  %v10548_v56 = vld [vmem:[%s17849_s3 + $0x4c0] sm:$0x11] }
 0x61a   : > { %3409 = vmatmul.mubr.bf16.gmra.mxu0 %v13540_v18 }
 0x61b   : > { %10515 = vmatprep.mubr.msk.bf16.mxu0 %vm1062_vm2, %v10509_v16  ;;  %v15305_v25 = vpop.f32.mrf.mxu1 }
 0x61d   : > { %v11825_v15 = vpop.f32.mrf.mxu1 }
 0x61f   : > { %v11826_v18 = vpop.f32.mrf.mxu1 }
 0x620   : > { %v15309_v32 = vadd.f32 %v11826_v18, %v11825_v15  ;;  %v10571_v15 = vcombine.high %v10548_v56, %v10548_v56  ;;  %v10570_v18 = vcombine.low %v10548_v56, %v10548_v56 }
 0x621   : > { %v11828_v16 = vpop.f32.mrf.mxu1 }
 0x622   : > { %3417 = vmatmul.mubr.bf16.gmra.mxu0 %v10508_v1 }
 0x623   : > { %v11829_v1 = vpop.f32.mrf.mxu1  ;;  %3737 = vmatprep.mubr.bf16.mxu0 %v13549_v13 }
 0x62a   : > { %3738 = vmatmul.mubr.bf16.vlgmr.msra.gmra.mxu0 %v13547_v50 }
 0x62b   : > { %3745 = vmatprep.mubr.bf16.mxu0 %v13555_v37 }
 0x632   : > { %3746 = vmatmul.mubr.bf16.gmra.mxu0 %v13553_v26 }
 0x633   : > { %3753 = vmatprep.mubr.bf16.mxu0 %v13561_v7 }
 0x63a   : > { %3754 = vmatmul.mubr.bf16.gmra.mxu0 %v13559_v27 }
 0x63b   : > { %3761 = vmatprep.mubr.bf16.mxu0 %v13567_v48 }
 0x642   : > { %3762 = vmatmul.mubr.bf16.gmra.mxu0 %v13565_v28 }
 0x643   : > { %3769 = vmatprep.mubr.bf16.mxu0 %v13573_v11 }
 0x64a   : > { %3770 = vmatmul.mubr.bf16.gmra.mxu0 %v13571_v52 }
 0x64b   : > { %3777 = vmatprep.mubr.bf16.mxu0 %v10571_v15 }
 0x652   : > { %3778 = vmatmul.mubr.bf16.gmra.mxu0 %v10570_v18  ;;  %v17894_v18 = vld [vmem:[#allocation7_spill] sm:$0xff] }
 0x696   : > { %v12779_v16 = vpop.f32.mrf.mxu0 }
 0x697   : > { %v15345_v1 = vadd.f32 %v12779_v16, %v15149_v36 }
 0x698   : > { %v3058_v13 = vpop.f32.mrf.mxu0 }
 0x699   : > { %v15348_v50 = vadd.f32 %v3058_v13, %v15152_v61 }
 0x69a   : > { %v12780_v37 = vpop.f32.mrf.mxu0 }
 0x69b   : > { %v15351_v26 = vadd.f32 %v12780_v37, %v15155_v40 }
 0x69c   : > { %v15353_v7 = vpop.f32.mrf.mxu0 }
 0x69d   : > { %17892 = vst [vmem:[#allocation10_spill] sm:$0xff] %v15353_v7 }
 0x6a6   : > { %v12783_v27 = vpop.f32.mrf.mxu0 }
 0x6a7   : > { %v15356_v48 = vadd.f32 %v12783_v27, %v15160_v2  ;;  %v11800_v27 = vadd.f32 %v15277_v10, %v15275_v4 }
 0x6a8   : > { %v3074_v28 = vpop.f32.mrf.mxu0 }
 0x6a9   : > { %v15359_v11 = vadd.f32 %v3074_v28, %v15163_v63 }
 0x6aa   : > { %v12784_v36 = vpop.f32.mrf.mxu0 }
 0x6ab   : > { %v15362_v52 = vadd.f32 %v12784_v36, %v15166_v45 }
 0x6ac   : > { %v15364_v61 = vpop.f32.mrf.mxu0 }
 0x6ad   : > { %17893 = vst [vmem:[#allocation16_spill] sm:$0xff] %v15364_v61 }
 0x6b2   : > { %v12787_v56 = vpop.f32.mrf.mxu0 }
 0x6b3   : > { %v15367_v40 = vadd.f32 %v12787_v56, %v15171_v33 }
 0x6b4   : > { %v3090_v15 = vpop.f32.mrf.mxu0 }
 0x6b5   : > { %v15370_v16 = vadd.f32 %v3090_v15, %v17894_v18  ;;  %v11806_v15 = vadd.f32 %v15283_v31, %v15281_v43 }
 0x6b6   : > { %v12788_v2 = vpop.f32.mrf.mxu0 }
 0x6b7   : > { %17895 = vst [vmem:[#allocation7_spill] sm:$0xff] %v15370_v16 }
 0x6b8   : > { %v15372_v13 = vpop.f32.mrf.mxu0 }
 0x6b9   : > { %17896 = vst [vmem:[#allocation17_spill] sm:$0xff] %v15372_v13 }
 0x6ba   : > { %v3378_v37 = vpop.f32.mrf.mxu0 }
 0x6bb   : > { %v3379_v28 = vadd.f32 %v15279_v62, %v3378_v37  ;;  %v11812_v62 = vadd.f32 %v15293_v39, %v15290_v8  ;;  %v11818_v8 = vadd.f32 %v15299_v30, %v15297_v19  ;;  %v11824_v19 = vadd.f32 %v15305_v25, %v15303_v55  ;;  %v13552_v25 = vld [vmem:[%s17849_s3 + $0x42c] ss:$16 sps:$4 sm:$0xff]  }
 0x6bc   : > { %v3380_v63 = vpop.f32.mrf.mxu0 }
 0x6be   : > { %v3381_v45 = vpop.f32.mrf.mxu0 }
 0x6bf   : > { %v3382_v36 = vadd.f32 %v11800_v27, %v3381_v45 }
 0x6c0   : > { %v3383_v61 = vpop.f32.mrf.mxu0 }
 0x6c1   : > { %v3424_v7 = vpack.c.bf16 %v3382_v36, %v3379_v28 }
 0x6c2   : > { %v3386_v33 = vpop.f32.mrf.mxu0 }
 0x6c3   : > { %12793 = vmatprep.mubr.msk.bf16.mxu1 %vm1583_vm3, %v3424_v7  ;;  %v3387_v2 = vadd.f32 %v15285_v35, %v3386_v33 }
 0x6c4   : > { %v3388_v56 = vpop.f32.mrf.mxu0 }
 0x6c6   : > { %v3389_v18 = vpop.f32.mrf.mxu0 }
 0x6c7   : > { %v3390_v63 = vadd.f32 %v11806_v15, %v3389_v18 }
 0x6c8   : > { %v3391_v13 = vpop.f32.mrf.mxu0 }
 0x6c9   : > { %v3425_v16 = vpack.c.bf16 %v3390_v63, %v3387_v2 }
 0x6ca   : > { %v3394_v4 = vpop.f32.mrf.mxu0 }
 0x6cb   : > { %12794 = vmatmul.mubr.msk.bf16.vlgmr.msra.gmra.mxu1 %vm1583_vm3, %v3425_v16  ;;  %v3395_v43 = vadd.f32 %v15295_v59, %v3394_v4 }
 0x6cc   : > { %3786 = vmatpush1.bf16.msra.mxu1 %v14322_v20  ;;  %v3396_v10 = vpop.f32.mrf.mxu0 }
 0x6cd   : > { %3787 = vmatprep.subr.bf16.mxu1 %v17862_v29  ;;  %v13556_v10 = vld [vmem:[%s17849_s3 + $0x44c] ss:$16 sps:$4 sm:$0xff]  }
 0x6ce   : > { %v3397_v7 = vpop.f32.mrf.mxu0 }
 0x6cf   : > { %v3398_v31 = vadd.f32 %v11812_v62, %v3397_v7  ;;  %v13558_v62 = vld [vmem:[%s17849_s3 + $0x448] ss:$16 sps:$4 sm:$0xff]   ;;  %v13562_v7 = vld [vmem:[%s17849_s3 + $0x46c] ss:$16 sps:$4 sm:$0xff]  }
 0x6d0   : > { %3788 = vmatpush1.bf16.msra.mxu1 %v14328_v38  ;;  %v3399_v35 = vpop.f32.mrf.mxu0 }
 0x6d1   : > { %v3426_v61 = vpack.c.bf16 %v3398_v31, %v3395_v43  ;;  %3789 = vmatprep.subr.bf16.mxu1 %v17862_v29  ;;  %v13564_v43 = vld [vmem:[%s17849_s3 + $0x468] ss:$16 sps:$4 sm:$0xff]   ;;  %v13568_v31 = vld [vmem:[%s17849_s3 + $0x48c] ss:$16 sps:$4 sm:$0xff]  }
 0x6d2   : > { %v3402_v13 = vpop.f32.mrf.mxu0  ;;  %v13570_v35 = vld [vmem:[%s17849_s3 + $0x488] ss:$16 sps:$4 sm:$0xff]  }
 0x6d3   : > { %12797 = vmatprep.mubr.msk.bf16.mxu1 %vm1583_vm3, %v3426_v61  ;;  %v3403_v59 = vadd.f32 %v15301_v47, %v3402_v13  ;;  %v13574_v61 = vld [vmem:[%s17849_s3 + $0x4ac] ss:$16 sps:$4 sm:$0xff]  }
 0x6d4   : > { %3790 = vmatpush1.bf16.msra.mxu1 %v14335_v49  ;;  %v3404_v16 = vpop.f32.mrf.mxu0  ;;  %v10549_v13 = vld [vmem:[%s17849_s3 + $0x4c8] sm:$0x11] }
 0x6d5   : > { %3791 = vmatprep.subr.bf16.mxu1 %v17862_v29  ;;  %v13576_v16 = vld [vmem:[%s17849_s3 + $0x4a8] ss:$16 sps:$4 sm:$0xff]  }
 0x6d6   : > { %v3405_v39 = vpop.f32.mrf.mxu0 }
 0x6d7   : > { %v3406_v37 = vadd.f32 %v11818_v8, %v3405_v39  ;;  %v10573_v8 = vcombine.high %v10549_v13, %v10549_v13  ;;  %v10572_v39 = vcombine.low %v10549_v13, %v10549_v13 }
 0x6d8   : > { %3792 = vmatpush1.bf16.msra.mxu1 %v14346_v53  ;;  %v3407_v27 = vpop.f32.mrf.mxu0 }
 0x6d9   : > { %v3427_v45 = vpack.c.bf16 %v3406_v37, %v3403_v59  ;;  %3793 = vmatprep.subr.bf16.mxu1 %v17862_v29  ;;  %v13581_v59 = vld [vmem:[%s17850_s4 + $0x68] sm:$0xff]  }
 0x6da   : > { %v3410_v28 = vpop.f32.mrf.mxu0  ;;  %12805 = vmatprep.subr.bf16.mxu0 %v13581_v59 }
 0x6db   : > { %12798 = vmatmul.mubr.msk.bf16.gmra.mxu1 %vm1583_vm3, %v3427_v45  ;;  %v3411_v47 = vadd.f32 %v15307_v41, %v3410_v28  ;;  %12806 = vmatpush3.bf16.msra.mxu0 %v13581_v59 }
 0x6dc   : > { %3794 = vmatpush1.bf16.msra.mxu1 %v14353_v58  ;;  %v3412_v36 = vpop.f32.mrf.mxu0 }
 0x6dd   : > { %3795 = vmatprep.subr.bf16.mxu1 %v17862_v29 }
 0x6de   : > { %v3413_v30 = vpop.f32.mrf.mxu0 }
 0x6df   : > { %v3414_v33 = vadd.f32 %v11824_v19, %v3413_v30 }
 0x6e0   : > { %3796 = vmatpush1.bf16.msra.mxu1 %v14357_v23  ;;  %v3415_v56 = vpop.f32.mrf.mxu0 }
 0x6e1   : > { %v3428_v15 = vpack.c.bf16 %v3414_v33, %v3411_v47  ;;  %3797 = vmatprep.subr.bf16.mxu1 %v17862_v29 }
 0x6e2   : > { %v3418_v18 = vpop.f32.mrf.mxu0 }
 0x6e3   : > { %v3419_v2 = vadd.f32 %v15309_v32, %v3418_v18  ;;  %12801 = vmatprep.mubr.msk.bf16.mxu1 %vm1583_vm3, %v3428_v15  ;;  %v13550_v32 = vld [vmem:[%s17849_s3 + $0x428] ss:$16 sps:$4 sm:$0xff]   ;;  %v13582_v15 = vld [vmem:[%s17850_s4 + $0x60] sm:$0xff]  }
 0x6e4   : > { %3798 = vmatpush1.bf16.msra.mxu1 %v14268_v21  ;;  %v3420_v55 = vpop.f32.mrf.mxu0  ;;  %12807 = vmatprep.subr.bf16.mxu0 %v13582_v15 }
 0x6e5   : > { %v3429_v41 = vpack.c.bf16 %v3419_v2, %v3419_v2  ;;  %3799 = vmatprep.subr.bf16.mxu1 %v17862_v29  ;;  %12808 = vmatpush3.bf16.msra.mxu0 %v13582_v15  ;;  %v13597_v15 = vld [vmem:[%s17849_s3 + $0x514] ss:$16 sps:$4 sm:$0xff]  }
 0x6e6   : > { %v3421_v63 = vpop.f32.mrf.mxu0  ;;  %4226 = vmatprep.subr.bf16.mxu0 %v17862_v29 }
 0x6e7   : > { %12802 = vmatmul.mubr.msk.bf16.gmra.mxu1 %vm1583_vm3, %v3429_v41 }
 0x6e8   : > { %3800 = vmatpush1.bf16.msra.mxu1 %v14251_v3  ;;  %v3422_v4 = vpop.f32.mrf.mxu0  ;;  %10574 = vmatprep.mubr.msk.bf16.mxu1 %vm1062_vm2, %v13552_v25 }
 0x6e9   : > { %3815 = vmatprep.subr.bf16.mxu1 %v17862_v29 }
 0x6ea   : > { %v11855_v37 = vpop.f32.mrf.mxu0 }
 0x6ec   : > { %3816 = vmatpush2.bf16.msra.mxu1 %v14367_v6  ;;  %v11856_v27 = vpop.f32.mrf.mxu0 }
 0x6ed   : > { %11899 = vmatprep.subr.bf16.mxu1 %v17874_v12  ;;  %v15475_v36 = vadd.f32 %v11856_v27, %v11855_v37  ;;  %v13585_v37 = vld [vmem:[%s17849_s3 + $0x4d4] ss:$16 sps:$4 sm:$0xff]   ;;  %v13583_v27 = vld [vmem:[%s17849_s3 + $0x4d0] ss:$16 sps:$4 sm:$0xff]  }
 0x6ee   : > { %v15471_v45 = vpop.f32.mrf.mxu0 }
 0x6ef   : > { %3818 = vmatmul.mubr.bf16.vlgmr.msra.gmra.mxu1 %v13550_v32 }
 0x6f0   : > { %11900 = vmatpush3.bf16.msra.mxu1 %v14216_v44  ;;  %10575 = vmatprep.mubr.msk.bf16.mxu1 %vm1062_vm2, %v13556_v10  ;;  %v15473_v28 = vpop.f32.mrf.mxu0 }
 0x6f1   : > { %11901 = vmatprep.subr.bf16.mxu1 %v14237_v46 }
 0x6f2   : > { %v11861_v19 = vpop.f32.mrf.mxu0 }
 0x6f4   : > { %11902 = vmatpush3.bf16.msra.mxu1 %v14212_v34  ;;  %v11862_v30 = vpop.f32.mrf.mxu0 }
 0x6f5   : > { %11903 = vmatprep.subr.bf16.mxu1 %v14247_v57  ;;  %v15481_v56 = vadd.f32 %v11862_v30, %v11861_v19  ;;  %v13591_v19 = vld [vmem:[%s17849_s3 + $0x4f4] ss:$16 sps:$4 sm:$0xff]   ;;  %v13589_v30 = vld [vmem:[%s17849_s3 + $0x4f0] ss:$16 sps:$4 sm:$0xff]  }
 0x6f6   : > { %v15477_v47 = vpop.f32.mrf.mxu0 }
 0x6f7   : > { %3826 = vmatmul.mubr.bf16.gmra.mxu1 %v13558_v62 }
 0x6f8   : > { %11904 = vmatpush3.bf16.msra.mxu1 %v14208_v24  ;;  %10576 = vmatprep.mubr.msk.bf16.mxu1 %vm1062_vm2, %v13562_v7  ;;  %v15479_v33 = vpop.f32.mrf.mxu0 }
 0x6f9   : > { %11905 = vmatprep.subr.bf16.mxu1 %v14255_v9 }
 0x6fa   : > { %v11867_v18 = vpop.f32.mrf.mxu0 }
 0x6fc   : > { %11906 = vmatpush3.bf16.msra.mxu1 %v14201_v14  ;;  %v11868_v2 = vpop.f32.mrf.mxu0 }
 0x6fd   : > { %11907 = vmatprep.subr.bf16.mxu1 %v14263_v17  ;;  %v15491_v41 = vadd.f32 %v11868_v2, %v11867_v18  ;;  %v13595_v18 = vld [vmem:[%s17849_s3 + $0x510] ss:$16 sps:$4 sm:$0xff]   ;;  %v13603_v2 = vld [vmem:[%s17849_s3 + $0x534] ss:$16 sps:$4 sm:$0xff]  }
 0x6fe   : > { %v15486_v55 = vpop.f32.mrf.mxu0 }
 0x6ff   : > { %3834 = vmatmul.mubr.bf16.gmra.mxu1 %v13564_v43 }
 0x700   : > { %11908 = vmatpush3.bf16.msra.mxu1 %v14197_v5  ;;  %10577 = vmatprep.mubr.msk.bf16.mxu1 %vm1062_vm2, %v13568_v31  ;;  %v15489_v25 = vpop.f32.mrf.mxu0 }
 0x701   : > { %11909 = vmatprep.subr.bf16.mxu1 %v14271_v22 }
 0x702   : > { %v11873_v63 = vpop.f32.mrf.mxu0 }
 0x704   : > { %11910 = vmatpush3.bf16.msra.mxu1 %v14193_v60  ;;  %v11874_v4 = vpop.f32.mrf.mxu0 }
 0x705   : > { %11911 = vmatprep.subr.bf16.mxu1 %v14226_v0  ;;  %v15497_v62 = vadd.f32 %v11874_v4, %v11873_v63  ;;  %v13601_v63 = vld [vmem:[%s17849_s3 + $0x530] ss:$16 sps:$4 sm:$0xff]   ;;  %v13609_v4 = vld [vmem:[%s17849_s3 + $0x554] ss:$16 sps:$4 sm:$0xff]  }
 0x706   : > { %v15493_v32 = vpop.f32.mrf.mxu0 }
 0x707   : > { %3842 = vmatmul.mubr.bf16.gmra.mxu1 %v13570_v35 }
 0x708   : > { %11912 = vmatpush3.bf16.msra.mxu1 %v14189_v51  ;;  %10578 = vmatprep.mubr.msk.bf16.mxu1 %vm1062_vm2, %v13574_v61  ;;  %v15495_v10 = vpop.f32.mrf.mxu0 }
 0x709   : > { %11913 = vmatprep.subr.bf16.mxu1 %v14220_v54 }
 0x70a   : > { %v11879_v7 = vpop.f32.mrf.mxu0 }
 0x70c   : > { %11914 = vmatpush3.bf16.msra.mxu1 %v14185_v42  ;;  %v11880_v43 = vpop.f32.mrf.mxu0 }
 0x70d   : > { %v15503_v61 = vadd.f32 %v11880_v43, %v11879_v7  ;;  %v13607_v7 = vld [vmem:[%s17849_s3 + $0x550] ss:$16 sps:$4 sm:$0xff]  }
 0x70e   : > { %v15499_v31 = vpop.f32.mrf.mxu0  ;;  %v10612_v43 = vld [vmem:[%s17849_s3 + $0x570] sm:$0x11] }
 0x70f   : > { %3850 = vmatmul.mubr.bf16.gmra.mxu1 %v13576_v16 }
 0x710   : > { %10579 = vmatprep.mubr.msk.bf16.mxu1 %vm1062_vm2, %v10573_v8  ;;  %v15501_v35 = vpop.f32.mrf.mxu0 }
 0x712   : > { %v11885_v13 = vpop.f32.mrf.mxu0 }
 0x714   : > { %v11886_v16 = vpop.f32.mrf.mxu0 }
 0x715   : > { %v15505_v59 = vadd.f32 %v11886_v16, %v11885_v13  ;;  %v10635_v13 = vcombine.high %v10612_v43, %v10612_v43  ;;  %v10634_v16 = vcombine.low %v10612_v43, %v10612_v43 }
 0x716   : > { %v11888_v8 = vpop.f32.mrf.mxu0 }
 0x717   : > { %3858 = vmatmul.mubr.bf16.gmra.mxu1 %v10572_v39 }
 0x718   : > { %v11889_v39 = vpop.f32.mrf.mxu0  ;;  %4178 = vmatprep.mubr.bf16.mxu1 %v13585_v37 }
 0x71f   : > { %4179 = vmatmul.mubr.bf16.vlgmr.msra.gmra.mxu1 %v13583_v27 }
 0x720   : > { %4186 = vmatprep.mubr.bf16.mxu1 %v13591_v19 }
 0x727   : > { %4187 = vmatmul.mubr.bf16.gmra.mxu1 %v13589_v30 }
 0x728   : > { %4194 = vmatprep.mubr.bf16.mxu1 %v13597_v15 }
 0x72f   : > { %4195 = vmatmul.mubr.bf16.gmra.mxu1 %v13595_v18 }
 0x730   : > { %4202 = vmatprep.mubr.bf16.mxu1 %v13603_v2 }
 0x737   : > { %4203 = vmatmul.mubr.bf16.gmra.mxu1 %v13601_v63 }
 0x738   : > { %4210 = vmatprep.mubr.bf16.mxu1 %v13609_v4 }
 0x73f   : > { %4211 = vmatmul.mubr.bf16.gmra.mxu1 %v13607_v7 }
 0x740   : > { %4218 = vmatprep.mubr.bf16.mxu1 %v10635_v13 }
 0x747   : > { %4219 = vmatmul.mubr.bf16.gmra.mxu1 %v10634_v16  ;;  %v17899_v16 = vld [vmem:[#allocation7_spill] sm:$0xff] }
 0x78b   : > { %v12795_v8 = vpop.f32.mrf.mxu1 }
 0x78c   : > { %v15541_v39 = vadd.f32 %v12795_v8, %v15345_v1 }
 0x78d   : > { %v3499_v37 = vpop.f32.mrf.mxu1 }
 0x78e   : > { %v15544_v27 = vadd.f32 %v3499_v37, %v15348_v50 }
 0x78f   : > { %v12796_v19 = vpop.f32.mrf.mxu1 }
 0x790   : > { %v15547_v30 = vadd.f32 %v12796_v19, %v15351_v26 }
 0x791   : > { %v15549_v15 = vpop.f32.mrf.mxu1 }
 0x792   : > { %17897 = vst [vmem:[#allocation18_spill] sm:$0xff] %v15549_v15 }
 0x79b   : > { %v12799_v18 = vpop.f32.mrf.mxu1 }
 0x79c   : > { %v15552_v2 = vadd.f32 %v12799_v18, %v15356_v48  ;;  %v11860_v18 = vadd.f32 %v15473_v28, %v15471_v45 }
 0x79d   : > { %v3515_v63 = vpop.f32.mrf.mxu1 }
 0x79e   : > { %v15555_v4 = vadd.f32 %v3515_v63, %v15359_v11 }
 0x79f   : > { %v12800_v1 = vpop.f32.mrf.mxu1 }
 0x7a0   : > { %v15558_v7 = vadd.f32 %v12800_v1, %v15362_v52 }
 0x7a1   : > { %v15560_v50 = vpop.f32.mrf.mxu1 }
 0x7a2   : > { %17898 = vst [vmem:[#allocation19_spill] sm:$0xff] %v15560_v50 }
 0x7a7   : > { %v12803_v43 = vpop.f32.mrf.mxu1 }
 0x7a8   : > { %v15563_v26 = vadd.f32 %v12803_v43, %v15367_v40 }
 0x7a9   : > { %v3531_v13 = vpop.f32.mrf.mxu1 }
 0x7aa   : > { %v15566_v8 = vadd.f32 %v3531_v13, %v17899_v16  ;;  %v11866_v13 = vadd.f32 %v15479_v33, %v15477_v47 }
 0x7ab   : > { %v12804_v48 = vpop.f32.mrf.mxu1 }
 0x7ac   : > { %17900 = vst [vmem:[#allocation7_spill] sm:$0xff] %v15566_v8 }
 0x7ad   : > { %v15568_v37 = vpop.f32.mrf.mxu1 }
 0x7ae   : > { %17901 = vst [vmem:[#allocation20_spill] sm:$0xff] %v15568_v37 }
 0x7af   : > { %v3819_v19 = vpop.f32.mrf.mxu1 }
 0x7b0   : > { %v3820_v63 = vadd.f32 %v15475_v36, %v3819_v19  ;;  %v11872_v36 = vadd.f32 %v15489_v25, %v15486_v55  ;;  %v11878_v55 = vadd.f32 %v15495_v10, %v15493_v32  ;;  %v11884_v32 = vadd.f32 %v15501_v35, %v15499_v31  ;;  %v13588_v35 = vld [vmem:[%s17849_s3 + $0x4dc] ss:$16 sps:$4 sm:$0xff]  }
 0x7b1   : > { %v3821_v11 = vpop.f32.mrf.mxu1 }
 0x7b3   : > { %v3822_v52 = vpop.f32.mrf.mxu1 }
 0x7b4   : > { %v3823_v1 = vadd.f32 %v11860_v18, %v3822_v52 }
 0x7b5   : > { %v3824_v50 = vpop.f32.mrf.mxu1 }
 0x7b6   : > { %v3865_v15 = vpack.c.bf16 %v3823_v1, %v3820_v63 }
 0x7b7   : > { %v3827_v40 = vpop.f32.mrf.mxu1 }
 0x7b8   : > { %12809 = vmatprep.mubr.msk.bf16.mxu0 %vm1583_vm3, %v3865_v15  ;;  %v3828_v48 = vadd.f32 %v15481_v56, %v3827_v40 }
 0x7b9   : > { %v3829_v43 = vpop.f32.mrf.mxu1 }
 0x7bb   : > { %v3830_v16 = vpop.f32.mrf.mxu1 }
 0x7bc   : > { %v3831_v11 = vadd.f32 %v11866_v13, %v3830_v16 }
 0x7bd   : > { %v3832_v37 = vpop.f32.mrf.mxu1 }
 0x7be   : > { %v3866_v8 = vpack.c.bf16 %v3831_v11, %v3828_v48 }
 0x7bf   : > { %v3835_v45 = vpop.f32.mrf.mxu1 }
 0x7c0   : > { %12810 = vmatmul.mubr.msk.bf16.vlgmr.msra.gmra.mxu0 %vm1583_vm3, %v3866_v8  ;;  %v3836_v47 = vadd.f32 %v15491_v41, %v3835_v45 }
 0x7c1   : > { %4227 = vmatpush1.bf16.msra.mxu0 %v14322_v20  ;;  %v3837_v28 = vpop.f32.mrf.mxu1 }
 0x7c2   : > { %4228 = vmatprep.subr.bf16.mxu0 %v17862_v29  ;;  %v13592_v28 = vld [vmem:[%s17849_s3 + $0x4fc] ss:$16 sps:$4 sm:$0xff]  }
 0x7c3   : > { %v3838_v15 = vpop.f32.mrf.mxu1 }
 0x7c4   : > { %v3839_v33 = vadd.f32 %v11872_v36, %v3838_v15  ;;  %v13594_v36 = vld [vmem:[%s17849_s3 + $0x4f8] ss:$16 sps:$4 sm:$0xff]   ;;  %v13598_v15 = vld [vmem:[%s17849_s3 + $0x51c] ss:$16 sps:$4 sm:$0xff]  }
 0x7c5   : > { %4229 = vmatpush1.bf16.msra.mxu0 %v14328_v38  ;;  %v3840_v56 = vpop.f32.mrf.mxu1 }
 0x7c6   : > { %v3867_v50 = vpack.c.bf16 %v3839_v33, %v3836_v47  ;;  %4230 = vmatprep.subr.bf16.mxu0 %v17862_v29  ;;  %v13600_v47 = vld [vmem:[%s17849_s3 + $0x518] ss:$16 sps:$4 sm:$0xff]   ;;  %v13604_v33 = vld [vmem:[%s17849_s3 + $0x53c] ss:$16 sps:$4 sm:$0xff]  }
 0x7c7   : > { %v3843_v37 = vpop.f32.mrf.mxu1  ;;  %v13606_v56 = vld [vmem:[%s17849_s3 + $0x538] ss:$16 sps:$4 sm:$0xff]  }
 0x7c8   : > { %12813 = vmatprep.mubr.msk.bf16.mxu0 %vm1583_vm3, %v3867_v50  ;;  %v3844_v41 = vadd.f32 %v15497_v62, %v3843_v37  ;;  %v13610_v50 = vld [vmem:[%s17849_s3 + $0x55c] ss:$16 sps:$4 sm:$0xff]  }
 0x7c9   : > { %4231 = vmatpush1.bf16.msra.mxu0 %v14335_v49  ;;  %v3845_v8 = vpop.f32.mrf.mxu1  ;;  %v10613_v37 = vld [vmem:[%s17849_s3 + $0x578] sm:$0x11] }
 0x7ca   : > { %4232 = vmatprep.subr.bf16.mxu0 %v17862_v29  ;;  %v13612_v8 = vld [vmem:[%s17849_s3 + $0x558] ss:$16 sps:$4 sm:$0xff]  }
 0x7cb   : > { %v3846_v25 = vpop.f32.mrf.mxu1 }
 0x7cc   : > { %v3847_v19 = vadd.f32 %v11878_v55, %v3846_v25  ;;  %v10637_v55 = vcombine.high %v10613_v37, %v10613_v37  ;;  %v10636_v25 = vcombine.low %v10613_v37, %v10613_v37 }
 0x7cd   : > { %4233 = vmatpush1.bf16.msra.mxu0 %v14346_v53  ;;  %v3848_v18 = vpop.f32.mrf.mxu1 }
 0x7ce   : > { %v3868_v52 = vpack.c.bf16 %v3847_v19, %v3844_v41  ;;  %4234 = vmatprep.subr.bf16.mxu0 %v17862_v29  ;;  %v13617_v41 = vld [vmem:[%s17850_s4 + $0x78] sm:$0xff]  }
 0x7cf   : > { %v3851_v63 = vpop.f32.mrf.mxu1  ;;  %12821 = vmatprep.subr.bf16.mxu1 %v13617_v41 }
 0x7d0   : > { %12814 = vmatmul.mubr.msk.bf16.gmra.mxu0 %vm1583_vm3, %v3868_v52  ;;  %v3852_v62 = vadd.f32 %v15503_v61, %v3851_v63  ;;  %12822 = vmatpush3.bf16.msra.mxu1 %v13617_v41 }
 0x7d1   : > { %4235 = vmatpush1.bf16.msra.mxu0 %v14353_v58  ;;  %v3853_v1 = vpop.f32.mrf.mxu1 }
 0x7d2   : > { %4236 = vmatprep.subr.bf16.mxu0 %v17862_v29 }
 0x7d3   : > { %v3854_v10 = vpop.f32.mrf.mxu1 }
 0x7d4   : > { %v3855_v40 = vadd.f32 %v11884_v32, %v3854_v10 }
 0x7d5   : > { %4237 = vmatpush1.bf16.msra.mxu0 %v14357_v23  ;;  %v3856_v43 = vpop.f32.mrf.mxu1 }
 0x7d6   : > { %v3869_v13 = vpack.c.bf16 %v3855_v40, %v3852_v62  ;;  %4238 = vmatprep.subr.bf16.mxu0 %v17862_v29 }
 0x7d7   : > { %v3859_v16 = vpop.f32.mrf.mxu1 }
 0x7d8   : > { %v3860_v48 = vadd.f32 %v15505_v59, %v3859_v16  ;;  %12817 = vmatprep.mubr.msk.bf16.mxu0 %vm1583_vm3, %v3869_v13  ;;  %v13586_v59 = vld [vmem:[%s17849_s3 + $0x4d8] ss:$16 sps:$4 sm:$0xff]   ;;  %v13618_v13 = vld [vmem:[%s17850_s4 + $0x70] sm:$0xff]  }
 0x7d9   : > { %4239 = vmatpush1.bf16.msra.mxu0 %v14268_v21  ;;  %v3861_v31 = vpop.f32.mrf.mxu1  ;;  %12823 = vmatprep.subr.bf16.mxu1 %v13618_v13 }
 0x7da   : > { %v3870_v61 = vpack.c.bf16 %v3860_v48, %v3860_v48  ;;  %4240 = vmatprep.subr.bf16.mxu0 %v17862_v29  ;;  %12824 = vmatpush3.bf16.msra.mxu1 %v13618_v13  ;;  %v13633_v13 = vld [vmem:[%s17849_s3 + $0x5c4] ss:$16 sps:$4 sm:$0xff]  }
 0x7db   : > { %v3862_v11 = vpop.f32.mrf.mxu1  ;;  %4667 = vmatprep.subr.bf16.mxu1 %v17862_v29 }
 0x7dc   : > { %12818 = vmatmul.mubr.msk.bf16.gmra.mxu0 %vm1583_vm3, %v3870_v61 }
 0x7dd   : > { %4241 = vmatpush1.bf16.msra.mxu0 %v14251_v3  ;;  %v3863_v45 = vpop.f32.mrf.mxu1  ;;  %10638 = vmatprep.mubr.msk.bf16.mxu0 %vm1062_vm2, %v13588_v35 }
 0x7de   : > { %4256 = vmatprep.subr.bf16.mxu0 %v17862_v29 }
 0x7df   : > { %v11915_v19 = vpop.f32.mrf.mxu1 }
 0x7e1   : > { %4257 = vmatpush2.bf16.msra.mxu0 %v14367_v6  ;;  %v11916_v18 = vpop.f32.mrf.mxu1 }
 0x7e2   : > { %11959 = vmatprep.subr.bf16.mxu0 %v17874_v12  ;;  %v15671_v1 = vadd.f32 %v11916_v18, %v11915_v19  ;;  %v13621_v19 = vld [vmem:[%s17849_s3 + $0x584] ss:$16 sps:$4 sm:$0xff]   ;;  %v13619_v18 = vld [vmem:[%s17849_s3 + $0x580] ss:$16 sps:$4 sm:$0xff]  }
 0x7e3   : > { %v15667_v52 = vpop.f32.mrf.mxu1 }
 0x7e4   : > { %4259 = vmatmul.mubr.bf16.vlgmr.msra.gmra.mxu0 %v13586_v59 }
 0x7e5   : > { %11960 = vmatpush3.bf16.msra.mxu0 %v14216_v44  ;;  %10639 = vmatprep.mubr.msk.bf16.mxu0 %vm1062_vm2, %v13592_v28  ;;  %v15669_v63 = vpop.f32.mrf.mxu1 }
 0x7e6   : > { %11961 = vmatprep.subr.bf16.mxu0 %v14237_v46 }
 0x7e7   : > { %v11921_v32 = vpop.f32.mrf.mxu1 }
 0x7e9   : > { %11962 = vmatpush3.bf16.msra.mxu0 %v14212_v34  ;;  %v11922_v10 = vpop.f32.mrf.mxu1 }
 0x7ea   : > { %11963 = vmatprep.subr.bf16.mxu0 %v14247_v57  ;;  %v15677_v43 = vadd.f32 %v11922_v10, %v11921_v32  ;;  %v13627_v32 = vld [vmem:[%s17849_s3 + $0x5a4] ss:$16 sps:$4 sm:$0xff]   ;;  %v13625_v10 = vld [vmem:[%s17849_s3 + $0x5a0] ss:$16 sps:$4 sm:$0xff]  }
 0x7eb   : > { %v15673_v62 = vpop.f32.mrf.mxu1 }
 0x7ec   : > { %4267 = vmatmul.mubr.bf16.gmra.mxu0 %v13594_v36 }
 0x7ed   : > { %11964 = vmatpush3.bf16.msra.mxu0 %v14208_v24  ;;  %10640 = vmatprep.mubr.msk.bf16.mxu0 %vm1062_vm2, %v13598_v15  ;;  %v15675_v40 = vpop.f32.mrf.mxu1 }
 0x7ee   : > { %11965 = vmatprep.subr.bf16.mxu0 %v14255_v9 }
 0x7ef   : > { %v11927_v16 = vpop.f32.mrf.mxu1 }
 0x7f1   : > { %11966 = vmatpush3.bf16.msra.mxu0 %v14201_v14  ;;  %v11928_v48 = vpop.f32.mrf.mxu1 }
 0x7f2   : > { %11967 = vmatprep.subr.bf16.mxu0 %v14263_v17  ;;  %v15687_v61 = vadd.f32 %v11928_v48, %v11927_v16  ;;  %v13631_v16 = vld [vmem:[%s17849_s3 + $0x5c0] ss:$16 sps:$4 sm:$0xff]   ;;  %v13639_v48 = vld [vmem:[%s17849_s3 + $0x5e4] ss:$16 sps:$4 sm:$0xff]  }
 0x7f3   : > { %v15682_v31 = vpop.f32.mrf.mxu1 }
 0x7f4   : > { %4275 = vmatmul.mubr.bf16.gmra.mxu0 %v13600_v47 }
 0x7f5   : > { %11968 = vmatpush3.bf16.msra.mxu0 %v14197_v5  ;;  %10641 = vmatprep.mubr.msk.bf16.mxu0 %vm1062_vm2, %v13604_v33  ;;  %v15685_v35 = vpop.f32.mrf.mxu1 }
 0x7f6   : > { %11969 = vmatprep.subr.bf16.mxu0 %v14271_v22 }
 0x7f7   : > { %v11933_v11 = vpop.f32.mrf.mxu1 }
 0x7f9   : > { %11970 = vmatpush3.bf16.msra.mxu0 %v14193_v60  ;;  %v11934_v45 = vpop.f32.mrf.mxu1 }
 0x7fa   : > { %11971 = vmatprep.subr.bf16.mxu0 %v14226_v0  ;;  %v15693_v36 = vadd.f32 %v11934_v45, %v11933_v11  ;;  %v13637_v11 = vld [vmem:[%s17849_s3 + $0x5e0] ss:$16 sps:$4 sm:$0xff]   ;;  %v13645_v45 = vld [vmem:[%s17849_s3 + $0x604] ss:$16 sps:$4 sm:$0xff]  }
 0x7fb   : > { %v15689_v59 = vpop.f32.mrf.mxu1 }
 0x7fc   : > { %4283 = vmatmul.mubr.bf16.gmra.mxu0 %v13606_v56 }
 0x7fd   : > { %11972 = vmatpush3.bf16.msra.mxu0 %v14189_v51  ;;  %10642 = vmatprep.mubr.msk.bf16.mxu0 %vm1062_vm2, %v13610_v50  ;;  %v15691_v28 = vpop.f32.mrf.mxu1 }
 0x7fe   : > { %11973 = vmatprep.subr.bf16.mxu0 %v14220_v54 }
 0x7ff   : > { %v11939_v15 = vpop.f32.mrf.mxu1 }
 0x801   : > { %11974 = vmatpush3.bf16.msra.mxu0 %v14185_v42  ;;  %v11940_v47 = vpop.f32.mrf.mxu1 }
 0x802   : > { %v15699_v50 = vadd.f32 %v11940_v47, %v11939_v15  ;;  %v13643_v15 = vld [vmem:[%s17849_s3 + $0x600] ss:$16 sps:$4 sm:$0xff]  }
 0x803   : > { %v15695_v33 = vpop.f32.mrf.mxu1  ;;  %v10676_v47 = vld [vmem:[%s17849_s3 + $0x620] sm:$0x11] }
 0x804   : > { %4291 = vmatmul.mubr.bf16.gmra.mxu0 %v13612_v8 }
 0x805   : > { %10643 = vmatprep.mubr.msk.bf16.mxu0 %vm1062_vm2, %v10637_v55  ;;  %v15697_v56 = vpop.f32.mrf.mxu1 }
 0x807   : > { %v11945_v37 = vpop.f32.mrf.mxu1 }
 0x809   : > { %v11946_v8 = vpop.f32.mrf.mxu1 }
 0x80a   : > { %v15701_v41 = vadd.f32 %v11946_v8, %v11945_v37  ;;  %v10699_v37 = vcombine.high %v10676_v47, %v10676_v47  ;;  %v10698_v8 = vcombine.low %v10676_v47, %v10676_v47 }
 0x80b   : > { %v11948_v55 = vpop.f32.mrf.mxu1 }
 0x80c   : > { %4299 = vmatmul.mubr.bf16.gmra.mxu0 %v10636_v25 }
 0x80d   : > { %v11949_v25 = vpop.f32.mrf.mxu1  ;;  %4619 = vmatprep.mubr.bf16.mxu0 %v13621_v19 }
 0x814   : > { %4620 = vmatmul.mubr.bf16.vlgmr.msra.gmra.mxu0 %v13619_v18 }
 0x815   : > { %4627 = vmatprep.mubr.bf16.mxu0 %v13627_v32 }
 0x81c   : > { %4628 = vmatmul.mubr.bf16.gmra.mxu0 %v13625_v10 }
 0x81d   : > { %4635 = vmatprep.mubr.bf16.mxu0 %v13633_v13 }
 0x824   : > { %4636 = vmatmul.mubr.bf16.gmra.mxu0 %v13631_v16 }
 0x825   : > { %4643 = vmatprep.mubr.bf16.mxu0 %v13639_v48 }
 0x82c   : > { %4644 = vmatmul.mubr.bf16.gmra.mxu0 %v13637_v11 }
 0x82d   : > { %4651 = vmatprep.mubr.bf16.mxu0 %v13645_v45 }
 0x834   : > { %4652 = vmatmul.mubr.bf16.gmra.mxu0 %v13643_v15 }
 0x835   : > { %4659 = vmatprep.mubr.bf16.mxu0 %v10699_v37 }
 0x83c   : > { %4660 = vmatmul.mubr.bf16.gmra.mxu0 %v10698_v8  ;;  %v17904_v8 = vld [vmem:[#allocation7_spill] sm:$0xff] }
 0x880   : > { %v12811_v55 = vpop.f32.mrf.mxu0 }
 0x881   : > { %v15737_v25 = vadd.f32 %v12811_v55, %v15541_v39 }
 0x882   : > { %v3940_v19 = vpop.f32.mrf.mxu0 }
 0x883   : > { %v15740_v18 = vadd.f32 %v3940_v19, %v15544_v27 }
 0x884   : > { %v12812_v32 = vpop.f32.mrf.mxu0 }
 0x885   : > { %v15743_v10 = vadd.f32 %v12812_v32, %v15547_v30 }
 0x886   : > { %v15745_v13 = vpop.f32.mrf.mxu0 }
 0x887   : > { %17902 = vst [vmem:[#allocation21_spill] sm:$0xff] %v15745_v13 }
 0x890   : > { %v12815_v16 = vpop.f32.mrf.mxu0 }
 0x891   : > { %v15748_v48 = vadd.f32 %v12815_v16, %v15552_v2  ;;  %v11920_v16 = vadd.f32 %v15669_v63, %v15667_v52 }
 0x892   : > { %v3956_v11 = vpop.f32.mrf.mxu0 }
 0x893   : > { %v15751_v45 = vadd.f32 %v3956_v11, %v15555_v4 }
 0x894   : > { %v12816_v39 = vpop.f32.mrf.mxu0 }
 0x895   : > { %v15754_v15 = vadd.f32 %v12816_v39, %v15558_v7 }
 0x896   : > { %v15756_v27 = vpop.f32.mrf.mxu0 }
 0x897   : > { %17903 = vst [vmem:[#allocation22_spill] sm:$0xff] %v15756_v27 }
 0x89c   : > { %v12819_v47 = vpop.f32.mrf.mxu0 }
 0x89d   : > { %v15759_v30 = vadd.f32 %v12819_v47, %v15563_v26 }
 0x89e   : > { %v3972_v37 = vpop.f32.mrf.mxu0 }
 0x89f   : > { %v15762_v55 = vadd.f32 %v3972_v37, %v17904_v8  ;;  %v11926_v37 = vadd.f32 %v15675_v40, %v15673_v62 }
 0x8a0   : > { %v12820_v2 = vpop.f32.mrf.mxu0 }
 0x8a1   : > { %17905 = vst [vmem:[#allocation7_spill] sm:$0xff] %v15762_v55 }
 0x8a2   : > { %v15764_v19 = vpop.f32.mrf.mxu0 }
 0x8a3   : > { %17906 = vst [vmem:[#allocation23_spill] sm:$0xff] %v15764_v19 }
 0x8a4   : > { %v4260_v32 = vpop.f32.mrf.mxu0 }
 0x8a5   : > { %v4261_v11 = vadd.f32 %v15671_v1, %v4260_v32  ;;  %v11932_v1 = vadd.f32 %v15685_v35, %v15682_v31  ;;  %v11938_v31 = vadd.f32 %v15691_v28, %v15689_v59  ;;  %v11944_v59 = vadd.f32 %v15697_v56, %v15695_v33  ;;  %v13624_v56 = vld [vmem:[%s17849_s3 + $0x58c] ss:$16 sps:$4 sm:$0xff]  }
 0x8a6   : > { %v4262_v4 = vpop.f32.mrf.mxu0 }
 0x8a8   : > { %v4263_v7 = vpop.f32.mrf.mxu0 }
 0x8a9   : > { %v4264_v39 = vadd.f32 %v11920_v16, %v4263_v7 }
 0x8aa   : > { %v4265_v27 = vpop.f32.mrf.mxu0 }
 0x8ab   : > { %v4306_v13 = vpack.c.bf16 %v4264_v39, %v4261_v11 }
 0x8ac   : > { %v4268_v26 = vpop.f32.mrf.mxu0 }
 0x8ad   : > { %12825 = vmatprep.mubr.msk.bf16.mxu1 %vm1583_vm3, %v4306_v13  ;;  %v4269_v2 = vadd.f32 %v15677_v43, %v4268_v26 }
 0x8ae   : > { %v4270_v47 = vpop.f32.mrf.mxu0 }
 0x8b0   : > { %v4271_v8 = vpop.f32.mrf.mxu0 }
 0x8b1   : > { %v4272_v4 = vadd.f32 %v11926_v37, %v4271_v8 }
 0x8b2   : > { %v4273_v19 = vpop.f32.mrf.mxu0 }
 0x8b3   : > { %v4307_v55 = vpack.c.bf16 %v4272_v4, %v4269_v2 }
 0x8b4   : > { %v4276_v52 = vpop.f32.mrf.mxu0 }
 0x8b5   : > { %12826 = vmatmul.mubr.msk.bf16.vlgmr.msra.gmra.mxu1 %vm1583_vm3, %v4307_v55  ;;  %v4277_v62 = vadd.f32 %v15687_v61, %v4276_v52 }
 0x8b6   : > { %4668 = vmatpush1.bf16.msra.mxu1 %v14322_v20  ;;  %v4278_v63 = vpop.f32.mrf.mxu0 }
 0x8b7   : > { %4669 = vmatprep.subr.bf16.mxu1 %v17862_v29  ;;  %v13628_v63 = vld [vmem:[%s17849_s3 + $0x5ac] ss:$16 sps:$4 sm:$0xff]  }
 0x8b8   : > { %v4279_v13 = vpop.f32.mrf.mxu0 }
 0x8b9   : > { %v4280_v40 = vadd.f32 %v11932_v1, %v4279_v13  ;;  %v13630_v1 = vld [vmem:[%s17849_s3 + $0x5a8] ss:$16 sps:$4 sm:$0xff]   ;;  %v13634_v13 = vld [vmem:[%s17849_s3 + $0x5cc] ss:$16 sps:$4 sm:$0xff]  }
 0x8ba   : > { %4670 = vmatpush1.bf16.msra.mxu1 %v14328_v38  ;;  %v4281_v43 = vpop.f32.mrf.mxu0 }
 0x8bb   : > { %v4308_v27 = vpack.c.bf16 %v4280_v40, %v4277_v62  ;;  %4671 = vmatprep.subr.bf16.mxu1 %v17862_v29  ;;  %v13636_v62 = vld [vmem:[%s17849_s3 + $0x5c8] ss:$16 sps:$4 sm:$0xff]   ;;  %v13640_v40 = vld [vmem:[%s17849_s3 + $0x5ec] ss:$16 sps:$4 sm:$0xff]  }
 0x8bc   : > { %v4284_v19 = vpop.f32.mrf.mxu0  ;;  %v13642_v43 = vld [vmem:[%s17849_s3 + $0x5e8] ss:$16 sps:$4 sm:$0xff]  }
 0x8bd   : > { %12829 = vmatprep.mubr.msk.bf16.mxu1 %vm1583_vm3, %v4308_v27  ;;  %v4285_v61 = vadd.f32 %v15693_v36, %v4284_v19  ;;  %v13646_v27 = vld [vmem:[%s17849_s3 + $0x60c] ss:$16 sps:$4 sm:$0xff]  }
 0x8be   : > { %4672 = vmatpush1.bf16.msra.mxu1 %v14335_v49  ;;  %v4286_v55 = vpop.f32.mrf.mxu0  ;;  %v10677_v19 = vld [vmem:[%s17849_s3 + $0x628] sm:$0x11] }
 0x8bf   : > { %4673 = vmatprep.subr.bf16.mxu1 %v17862_v29  ;;  %v13648_v55 = vld [vmem:[%s17849_s3 + $0x608] ss:$16 sps:$4 sm:$0xff]  }
 0x8c0   : > { %v4287_v35 = vpop.f32.mrf.mxu0 }
 0x8c1   : > { %v4288_v32 = vadd.f32 %v11938_v31, %v4287_v35  ;;  %v10701_v31 = vcombine.high %v10677_v19, %v10677_v19  ;;  %v10700_v35 = vcombine.low %v10677_v19, %v10677_v19 }
 0x8c2   : > { %4674 = vmatpush1.bf16.msra.mxu1 %v14346_v53  ;;  %v4289_v16 = vpop.f32.mrf.mxu0 }
 0x8c3   : > { %v4309_v7 = vpack.c.bf16 %v4288_v32, %v4285_v61  ;;  %4675 = vmatprep.subr.bf16.mxu1 %v17862_v29  ;;  %v13653_v61 = vld [vmem:[%s17850_s4 + $0x88] sm:$0xff]  }
 0x8c4   : > { %v4292_v11 = vpop.f32.mrf.mxu0  ;;  %12837 = vmatprep.subr.bf16.mxu0 %v13653_v61 }
 0x8c5   : > { %12830 = vmatmul.mubr.msk.bf16.gmra.mxu1 %vm1583_vm3, %v4309_v7  ;;  %v4293_v36 = vadd.f32 %v15699_v50, %v4292_v11  ;;  %12838 = vmatpush3.bf16.msra.mxu0 %v13653_v61 }
 0x8c6   : > { %4676 = vmatpush1.bf16.msra.mxu1 %v14353_v58  ;;  %v4294_v39 = vpop.f32.mrf.mxu0 }
 0x8c7   : > { %4677 = vmatprep.subr.bf16.mxu1 %v17862_v29 }
 0x8c8   : > { %v4295_v28 = vpop.f32.mrf.mxu0 }
 0x8c9   : > { %v4296_v26 = vadd.f32 %v11944_v59, %v4295_v28 }
 0x8ca   : > { %4678 = vmatpush1.bf16.msra.mxu1 %v14357_v23  ;;  %v4297_v47 = vpop.f32.mrf.mxu0 }
 0x8cb   : > { %v4310_v37 = vpack.c.bf16 %v4296_v26, %v4293_v36  ;;  %4679 = vmatprep.subr.bf16.mxu1 %v17862_v29 }
 0x8cc   : > { %v4300_v8 = vpop.f32.mrf.mxu0 }
 0x8cd   : > { %v4301_v2 = vadd.f32 %v15701_v41, %v4300_v8  ;;  %12833 = vmatprep.mubr.msk.bf16.mxu1 %vm1583_vm3, %v4310_v37  ;;  %v13622_v41 = vld [vmem:[%s17849_s3 + $0x588] ss:$16 sps:$4 sm:$0xff]   ;;  %v13654_v37 = vld [vmem:[%s17850_s4 + $0x80] sm:$0xff]  }
 0x8ce   : > { %4680 = vmatpush1.bf16.msra.mxu1 %v14268_v21  ;;  %v4302_v33 = vpop.f32.mrf.mxu0  ;;  %12839 = vmatprep.subr.bf16.mxu0 %v13654_v37 }
 0x8cf   : > { %v4311_v50 = vpack.c.bf16 %v4301_v2, %v4301_v2  ;;  %4681 = vmatprep.subr.bf16.mxu1 %v17862_v29  ;;  %12840 = vmatpush3.bf16.msra.mxu0 %v13654_v37  ;;  %v13669_v37 = vld [vmem:[%s17849_s3 + $0x674] ss:$16 sps:$4 sm:$0xff]  }
 0x8d0   : > { %v4303_v4 = vpop.f32.mrf.mxu0  ;;  %5108 = vmatprep.subr.bf16.mxu0 %v17862_v29 }
 0x8d1   : > { %12834 = vmatmul.mubr.msk.bf16.gmra.mxu1 %vm1583_vm3, %v4311_v50 }
 0x8d2   : > { %4682 = vmatpush1.bf16.msra.mxu1 %v14251_v3  ;;  %v4304_v52 = vpop.f32.mrf.mxu0  ;;  %10702 = vmatprep.mubr.msk.bf16.mxu1 %vm1062_vm2, %v13624_v56 }
 0x8d3   : > { %4697 = vmatprep.subr.bf16.mxu1 %v17862_v29 }
 0x8d4   : > { %v11975_v32 = vpop.f32.mrf.mxu0 }
 0x8d6   : > { %4698 = vmatpush2.bf16.msra.mxu1 %v14367_v6  ;;  %v11976_v16 = vpop.f32.mrf.mxu0 }
 0x8d7   : > { %12019 = vmatprep.subr.bf16.mxu1 %v17874_v12  ;;  %v15867_v39 = vadd.f32 %v11976_v16, %v11975_v32  ;;  %v13657_v32 = vld [vmem:[%s17849_s3 + $0x634] ss:$16 sps:$4 sm:$0xff]   ;;  %v13655_v16 = vld [vmem:[%s17849_s3 + $0x630] ss:$16 sps:$4 sm:$0xff]  }
 0x8d8   : > { %v15863_v7 = vpop.f32.mrf.mxu0 }
 0x8d9   : > { %4700 = vmatmul.mubr.bf16.vlgmr.msra.gmra.mxu1 %v13622_v41 }
 0x8da   : > { %12020 = vmatpush3.bf16.msra.mxu1 %v14216_v44  ;;  %10703 = vmatprep.mubr.msk.bf16.mxu1 %vm1062_vm2, %v13628_v63  ;;  %v15865_v11 = vpop.f32.mrf.mxu0 }
 0x8db   : > { %12021 = vmatprep.subr.bf16.mxu1 %v14237_v46 }
 0x8dc   : > { %v11981_v59 = vpop.f32.mrf.mxu0 }
 0x8de   : > { %12022 = vmatpush3.bf16.msra.mxu1 %v14212_v34  ;;  %v11982_v28 = vpop.f32.mrf.mxu0 }
 0x8df   : > { %12023 = vmatprep.subr.bf16.mxu1 %v14247_v57  ;;  %v15873_v47 = vadd.f32 %v11982_v28, %v11981_v59  ;;  %v13663_v59 = vld [vmem:[%s17849_s3 + $0x654] ss:$16 sps:$4 sm:$0xff]   ;;  %v13661_v28 = vld [vmem:[%s17849_s3 + $0x650] ss:$16 sps:$4 sm:$0xff]  }
 0x8e0   : > { %v15869_v36 = vpop.f32.mrf.mxu0 }
 0x8e1   : > { %4708 = vmatmul.mubr.bf16.gmra.mxu1 %v13630_v1 }
 0x8e2   : > { %12024 = vmatpush3.bf16.msra.mxu1 %v14208_v24  ;;  %10704 = vmatprep.mubr.msk.bf16.mxu1 %vm1062_vm2, %v13634_v13  ;;  %v15871_v26 = vpop.f32.mrf.mxu0 }
 0x8e3   : > { %12025 = vmatprep.subr.bf16.mxu1 %v14255_v9 }
 0x8e4   : > { %v11987_v8 = vpop.f32.mrf.mxu0 }
 0x8e6   : > { %12026 = vmatpush3.bf16.msra.mxu1 %v14201_v14  ;;  %v11988_v2 = vpop.f32.mrf.mxu0 }
 0x8e7   : > { %12027 = vmatprep.subr.bf16.mxu1 %v14263_v17  ;;  %v15883_v50 = vadd.f32 %v11988_v2, %v11987_v8  ;;  %v13667_v8 = vld [vmem:[%s17849_s3 + $0x670] ss:$16 sps:$4 sm:$0xff]   ;;  %v13675_v2 = vld [vmem:[%s17849_s3 + $0x694] ss:$16 sps:$4 sm:$0xff]  }
 0x8e8   : > { %v15878_v33 = vpop.f32.mrf.mxu0 }
 0x8e9   : > { %4716 = vmatmul.mubr.bf16.gmra.mxu1 %v13636_v62 }
 0x8ea   : > { %12028 = vmatpush3.bf16.msra.mxu1 %v14197_v5  ;;  %10705 = vmatprep.mubr.msk.bf16.mxu1 %vm1062_vm2, %v13640_v40  ;;  %v15881_v56 = vpop.f32.mrf.mxu0 }
 0x8eb   : > { %12029 = vmatprep.subr.bf16.mxu1 %v14271_v22 }
 0x8ec   : > { %v11993_v4 = vpop.f32.mrf.mxu0 }
 0x8ee   : > { %12030 = vmatpush3.bf16.msra.mxu1 %v14193_v60  ;;  %v11994_v52 = vpop.f32.mrf.mxu0 }
 0x8ef   : > { %12031 = vmatprep.subr.bf16.mxu1 %v14226_v0  ;;  %v15889_v1 = vadd.f32 %v11994_v52, %v11993_v4  ;;  %v13673_v4 = vld [vmem:[%s17849_s3 + $0x690] ss:$16 sps:$4 sm:$0xff]   ;;  %v13681_v52 = vld [vmem:[%s17849_s3 + $0x6b4] ss:$16 sps:$4 sm:$0xff]  }
 0x8f0   : > { %v15885_v41 = vpop.f32.mrf.mxu0 }
 0x8f1   : > { %4724 = vmatmul.mubr.bf16.gmra.mxu1 %v13642_v43 }
 0x8f2   : > { %12032 = vmatpush3.bf16.msra.mxu1 %v14189_v51  ;;  %10706 = vmatprep.mubr.msk.bf16.mxu1 %vm1062_vm2, %v13646_v27  ;;  %v15887_v63 = vpop.f32.mrf.mxu0 }
 0x8f3   : > { %12033 = vmatprep.subr.bf16.mxu1 %v14220_v54 }
 0x8f4   : > { %v11999_v13 = vpop.f32.mrf.mxu0 }
 0x8f6   : > { %12034 = vmatpush3.bf16.msra.mxu1 %v14185_v42  ;;  %v12000_v62 = vpop.f32.mrf.mxu0 }
 0x8f7   : > { %v15895_v27 = vadd.f32 %v12000_v62, %v11999_v13  ;;  %v13679_v13 = vld [vmem:[%s17849_s3 + $0x6b0] ss:$16 sps:$4 sm:$0xff]  }
 0x8f8   : > { %v15891_v40 = vpop.f32.mrf.mxu0  ;;  %v10740_v62 = vld [vmem:[%s17849_s3 + $0x6d0] sm:$0x11] }
 0x8f9   : > { %4732 = vmatmul.mubr.bf16.gmra.mxu1 %v13648_v55 }
 0x8fa   : > { %10707 = vmatprep.mubr.msk.bf16.mxu1 %vm1062_vm2, %v10701_v31  ;;  %v15893_v43 = vpop.f32.mrf.mxu0 }
 0x8fc   : > { %v12005_v19 = vpop.f32.mrf.mxu0 }
 0x8fe   : > { %v12006_v55 = vpop.f32.mrf.mxu0 }
 0x8ff   : > { %v15897_v61 = vadd.f32 %v12006_v55, %v12005_v19  ;;  %v10763_v19 = vcombine.high %v10740_v62, %v10740_v62  ;;  %v10762_v55 = vcombine.low %v10740_v62, %v10740_v62 }
 0x900   : > { %v12008_v31 = vpop.f32.mrf.mxu0 }
 0x901   : > { %4740 = vmatmul.mubr.bf16.gmra.mxu1 %v10700_v35 }
 0x902   : > { %v12009_v35 = vpop.f32.mrf.mxu0  ;;  %5060 = vmatprep.mubr.bf16.mxu1 %v13657_v32 }
 0x909   : > { %5061 = vmatmul.mubr.bf16.vlgmr.msra.gmra.mxu1 %v13655_v16 }
 0x90a   : > { %5068 = vmatprep.mubr.bf16.mxu1 %v13663_v59 }
 0x911   : > { %5069 = vmatmul.mubr.bf16.gmra.mxu1 %v13661_v28 }
 0x912   : > { %5076 = vmatprep.mubr.bf16.mxu1 %v13669_v37 }
 0x919   : > { %5077 = vmatmul.mubr.bf16.gmra.mxu1 %v13667_v8 }
 0x91a   : > { %5084 = vmatprep.mubr.bf16.mxu1 %v13675_v2 }
 0x921   : > { %5085 = vmatmul.mubr.bf16.gmra.mxu1 %v13673_v4 }
 0x922   : > { %5092 = vmatprep.mubr.bf16.mxu1 %v13681_v52 }
 0x929   : > { %5093 = vmatmul.mubr.bf16.gmra.mxu1 %v13679_v13 }
 0x92a   : > { %5100 = vmatprep.mubr.bf16.mxu1 %v10763_v19 }
 0x931   : > { %5101 = vmatmul.mubr.bf16.gmra.mxu1 %v10762_v55  ;;  %v17909_v55 = vld [vmem:[#allocation7_spill] sm:$0xff] }
 0x975   : > { %v12827_v31 = vpop.f32.mrf.mxu1 }
 0x976   : > { %v15933_v35 = vadd.f32 %v12827_v31, %v15737_v25 }
 0x977   : > { %v4381_v32 = vpop.f32.mrf.mxu1 }
 0x978   : > { %v15936_v16 = vadd.f32 %v4381_v32, %v15740_v18 }
 0x979   : > { %v12828_v59 = vpop.f32.mrf.mxu1 }
 0x97a   : > { %v15939_v28 = vadd.f32 %v12828_v59, %v15743_v10 }
 0x97b   : > { %v15941_v37 = vpop.f32.mrf.mxu1 }
 0x97c   : > { %17907 = vst [vmem:[#allocation24_spill] sm:$0xff] %v15941_v37 }
 0x985   : > { %v12831_v8 = vpop.f32.mrf.mxu1 }
 0x986   : > { %v15944_v2 = vadd.f32 %v12831_v8, %v15748_v48  ;;  %v11980_v8 = vadd.f32 %v15865_v11, %v15863_v7 }
 0x987   : > { %v4397_v4 = vpop.f32.mrf.mxu1 }
 0x988   : > { %v15947_v52 = vadd.f32 %v4397_v4, %v15751_v45 }
 0x989   : > { %v12832_v25 = vpop.f32.mrf.mxu1 }
 0x98a   : > { %v15950_v13 = vadd.f32 %v12832_v25, %v15754_v15 }
 0x98b   : > { %v15952_v18 = vpop.f32.mrf.mxu1 }
 0x98c   : > { %17908 = vst [vmem:[#allocation25_spill] sm:$0xff] %v15952_v18 }
 0x991   : > { %v12835_v62 = vpop.f32.mrf.mxu1 }
 0x992   : > { %v15955_v10 = vadd.f32 %v12835_v62, %v15759_v30 }
 0x993   : > { %v4413_v19 = vpop.f32.mrf.mxu1 }
 0x994   : > { %v15958_v31 = vadd.f32 %v4413_v19, %v17909_v55  ;;  %v11986_v19 = vadd.f32 %v15871_v26, %v15869_v36 }
 0x995   : > { %v12836_v48 = vpop.f32.mrf.mxu1 }
 0x996   : > { %17910 = vst [vmem:[#allocation7_spill] sm:$0xff] %v15958_v31 }
 0x997   : > { %v15960_v32 = vpop.f32.mrf.mxu1 }
 0x998   : > { %17911 = vst [vmem:[#allocation26_spill] sm:$0xff] %v15960_v32 }
 0x999   : > { %v4701_v59 = vpop.f32.mrf.mxu1 }
 0x99a   : > { %v4702_v4 = vadd.f32 %v15867_v39, %v4701_v59  ;;  %v11992_v39 = vadd.f32 %v15881_v56, %v15878_v33  ;;  %v11998_v33 = vadd.f32 %v15887_v63, %v15885_v41  ;;  %v12004_v41 = vadd.f32 %v15893_v43, %v15891_v40  ;;  %v13660_v43 = vld [vmem:[%s17849_s3 + $0x63c] ss:$16 sps:$4 sm:$0xff]  }
 0x99b   : > { %v4703_v45 = vpop.f32.mrf.mxu1 }
 0x99d   : > { %v4704_v15 = vpop.f32.mrf.mxu1 }
 0x99e   : > { %v4705_v25 = vadd.f32 %v11980_v8, %v4704_v15 }
 0x99f   : > { %v4706_v18 = vpop.f32.mrf.mxu1 }
 0x9a0   : > { %v4747_v37 = vpack.c.bf16 %v4705_v25, %v4702_v4 }
 0x9a1   : > { %v4709_v30 = vpop.f32.mrf.mxu1 }
 0x9a2   : > { %12841 = vmatprep.mubr.msk.bf16.mxu0 %vm1583_vm3, %v4747_v37  ;;  %v4710_v48 = vadd.f32 %v15873_v47, %v4709_v30 }
 0x9a3   : > { %v4711_v62 = vpop.f32.mrf.mxu1 }
 0x9a5   : > { %v4712_v55 = vpop.f32.mrf.mxu1 }
 0x9a6   : > { %v4713_v45 = vadd.f32 %v11986_v19, %v4712_v55 }
 0x9a7   : > { %v4714_v32 = vpop.f32.mrf.mxu1 }
 0x9a8   : > { %v4748_v31 = vpack.c.bf16 %v4713_v45, %v4710_v48 }
 0x9a9   : > { %v4717_v7 = vpop.f32.mrf.mxu1 }
 0x9aa   : > { %12842 = vmatmul.mubr.msk.bf16.vlgmr.msra.gmra.mxu0 %vm1583_vm3, %v4748_v31  ;;  %v4718_v36 = vadd.f32 %v15883_v50, %v4717_v7 }
 0x9ab   : > { %5109 = vmatpush1.bf16.msra.mxu0 %v14322_v20  ;;  %v4719_v11 = vpop.f32.mrf.mxu1 }
 0x9ac   : > { %5110 = vmatprep.subr.bf16.mxu0 %v17862_v29  ;;  %v13664_v11 = vld [vmem:[%s17849_s3 + $0x65c] ss:$16 sps:$4 sm:$0xff]  }
 0x9ad   : > { %v4720_v37 = vpop.f32.mrf.mxu1 }
 0x9ae   : > { %v4721_v26 = vadd.f32 %v11992_v39, %v4720_v37  ;;  %v13666_v39 = vld [vmem:[%s17849_s3 + $0x658] ss:$16 sps:$4 sm:$0xff]   ;;  %v13670_v37 = vld [vmem:[%s17849_s3 + $0x67c] ss:$16 sps:$4 sm:$0xff]  }
 0x9af   : > { %5111 = vmatpush1.bf16.msra.mxu0 %v14328_v38  ;;  %v4722_v47 = vpop.f32.mrf.mxu1 }
 0x9b0   : > { %v4749_v18 = vpack.c.bf16 %v4721_v26, %v4718_v36  ;;  %5112 = vmatprep.subr.bf16.mxu0 %v17862_v29  ;;  %v13672_v36 = vld [vmem:[%s17849_s3 + $0x678] ss:$16 sps:$4 sm:$0xff]   ;;  %v13676_v26 = vld [vmem:[%s17849_s3 + $0x69c] ss:$16 sps:$4 sm:$0xff]  }
 0x9b1   : > { %v4725_v32 = vpop.f32.mrf.mxu1  ;;  %v13678_v47 = vld [vmem:[%s17849_s3 + $0x698] ss:$16 sps:$4 sm:$0xff]  }
 0x9b2   : > { %12845 = vmatprep.mubr.msk.bf16.mxu0 %vm1583_vm3, %v4749_v18  ;;  %v4726_v50 = vadd.f32 %v15889_v1, %v4725_v32  ;;  %v13682_v18 = vld [vmem:[%s17849_s3 + $0x6bc] ss:$16 sps:$4 sm:$0xff]  }
 0x9b3   : > { %5113 = vmatpush1.bf16.msra.mxu0 %v14335_v49  ;;  %v4727_v31 = vpop.f32.mrf.mxu1  ;;  %v10741_v32 = vld [vmem:[%s17849_s3 + $0x6d8] sm:$0x11] }
 0x9b4   : > { %5114 = vmatprep.subr.bf16.mxu0 %v17862_v29  ;;  %v13684_v31 = vld [vmem:[%s17849_s3 + $0x6b8] ss:$16 sps:$4 sm:$0xff]  }
 0x9b5   : > { %v4728_v56 = vpop.f32.mrf.mxu1 }
 0x9b6   : > { %v4729_v59 = vadd.f32 %v11998_v33, %v4728_v56  ;;  %v10765_v33 = vcombine.high %v10741_v32, %v10741_v32  ;;  %v10764_v56 = vcombine.low %v10741_v32, %v10741_v32 }
 0x9b7   : > { %5115 = vmatpush1.bf16.msra.mxu0 %v14346_v53  ;;  %v4730_v8 = vpop.f32.mrf.mxu1 }
 0x9b8   : > { %v4750_v15 = vpack.c.bf16 %v4729_v59, %v4726_v50  ;;  %5116 = vmatprep.subr.bf16.mxu0 %v17862_v29  ;;  %v13689_v50 = vld [vmem:[%s17850_s4 + $0x98] sm:$0xff]  }
 0x9b9   : > { %v4733_v4 = vpop.f32.mrf.mxu1  ;;  %12853 = vmatprep.subr.bf16.mxu1 %v13689_v50 }
 0x9ba   : > { %12846 = vmatmul.mubr.msk.bf16.gmra.mxu0 %vm1583_vm3, %v4750_v15  ;;  %v4734_v1 = vadd.f32 %v15895_v27, %v4733_v4  ;;  %12854 = vmatpush3.bf16.msra.mxu1 %v13689_v50 }
 0x9bb   : > { %5117 = vmatpush1.bf16.msra.mxu0 %v14353_v58  ;;  %v4735_v25 = vpop.f32.mrf.mxu1 }
 0x9bc   : > { %5118 = vmatprep.subr.bf16.mxu0 %v17862_v29 }
 0x9bd   : > { %v4736_v63 = vpop.f32.mrf.mxu1 }
 0x9be   : > { %v4737_v30 = vadd.f32 %v12004_v41, %v4736_v63 }
 0x9bf   : > { %5119 = vmatpush1.bf16.msra.mxu0 %v14357_v23  ;;  %v4738_v62 = vpop.f32.mrf.mxu1 }
 0x9c0   : > { %v4751_v19 = vpack.c.bf16 %v4737_v30, %v4734_v1  ;;  %5120 = vmatprep.subr.bf16.mxu0 %v17862_v29 }
 0x9c1   : > { %v4741_v55 = vpop.f32.mrf.mxu1 }
 0x9c2   : > { %v4742_v48 = vadd.f32 %v15897_v61, %v4741_v55  ;;  %12849 = vmatprep.mubr.msk.bf16.mxu0 %vm1583_vm3, %v4751_v19  ;;  %v13658_v61 = vld [vmem:[%s17849_s3 + $0x638] ss:$16 sps:$4 sm:$0xff]   ;;  %v13690_v19 = vld [vmem:[%s17850_s4 + $0x90] sm:$0xff]  }
 0x9c3   : > { %5121 = vmatpush1.bf16.msra.mxu0 %v14268_v21  ;;  %v4743_v40 = vpop.f32.mrf.mxu1  ;;  %12855 = vmatprep.subr.bf16.mxu1 %v13690_v19 }
 0x9c4   : > { %v4752_v27 = vpack.c.bf16 %v4742_v48, %v4742_v48  ;;  %5122 = vmatprep.subr.bf16.mxu0 %v17862_v29  ;;  %12856 = vmatpush3.bf16.msra.mxu1 %v13690_v19  ;;  %v13705_v19 = vld [vmem:[%s17849_s3 + $0x724] ss:$16 sps:$4 sm:$0xff]  }
 0x9c5   : > { %v4744_v45 = vpop.f32.mrf.mxu1  ;;  %5549 = vmatprep.subr.bf16.mxu1 %v17862_v29 }
 0x9c6   : > { %12850 = vmatmul.mubr.msk.bf16.gmra.mxu0 %vm1583_vm3, %v4752_v27 }
 0x9c7   : > { %5123 = vmatpush1.bf16.msra.mxu0 %v14251_v3  ;;  %v4745_v7 = vpop.f32.mrf.mxu1  ;;  %10766 = vmatprep.mubr.msk.bf16.mxu0 %vm1062_vm2, %v13660_v43 }
 0x9c8   : > { %5138 = vmatprep.subr.bf16.mxu0 %v17862_v29 }
 0x9c9   : > { %v12035_v59 = vpop.f32.mrf.mxu1 }
 0x9cb   : > { %5139 = vmatpush2.bf16.msra.mxu0 %v14367_v6  ;;  %v12036_v8 = vpop.f32.mrf.mxu1 }
 0x9cc   : > { %12079 = vmatprep.subr.bf16.mxu0 %v17874_v12  ;;  %v16063_v25 = vadd.f32 %v12036_v8, %v12035_v59  ;;  %v13693_v59 = vld [vmem:[%s17849_s3 + $0x6e4] ss:$16 sps:$4 sm:$0xff]   ;;  %v13691_v8 = vld [vmem:[%s17849_s3 + $0x6e0] ss:$16 sps:$4 sm:$0xff]  }
 0x9cd   : > { %v16059_v15 = vpop.f32.mrf.mxu1 }
 0x9ce   : > { %5141 = vmatmul.mubr.bf16.vlgmr.msra.gmra.mxu0 %v13658_v61 }
 0x9cf   : > { %12080 = vmatpush3.bf16.msra.mxu0 %v14216_v44  ;;  %10767 = vmatprep.mubr.msk.bf16.mxu0 %vm1062_vm2, %v13664_v11  ;;  %v16061_v4 = vpop.f32.mrf.mxu1 }
 0x9d0   : > { %12081 = vmatprep.subr.bf16.mxu0 %v14237_v46 }
 0x9d1   : > { %v12041_v41 = vpop.f32.mrf.mxu1 }
 0x9d3   : > { %12082 = vmatpush3.bf16.msra.mxu0 %v14212_v34  ;;  %v12042_v63 = vpop.f32.mrf.mxu1 }
 0x9d4   : > { %12083 = vmatprep.subr.bf16.mxu0 %v14247_v57  ;;  %v16069_v62 = vadd.f32 %v12042_v63, %v12041_v41  ;;  %v13699_v41 = vld [vmem:[%s17849_s3 + $0x704] ss:$16 sps:$4 sm:$0xff]   ;;  %v13697_v63 = vld [vmem:[%s17849_s3 + $0x700] ss:$16 sps:$4 sm:$0xff]  }
 0x9d5   : > { %v16065_v1 = vpop.f32.mrf.mxu1 }
 0x9d6   : > { %5149 = vmatmul.mubr.bf16.gmra.mxu0 %v13666_v39 }
 0x9d7   : > { %12084 = vmatpush3.bf16.msra.mxu0 %v14208_v24  ;;  %10768 = vmatprep.mubr.msk.bf16.mxu0 %vm1062_vm2, %v13670_v37  ;;  %v16067_v30 = vpop.f32.mrf.mxu1 }
 0x9d8   : > { %12085 = vmatprep.subr.bf16.mxu0 %v14255_v9 }
 0x9d9   : > { %v12047_v55 = vpop.f32.mrf.mxu1 }
 0x9db   : > { %12086 = vmatpush3.bf16.msra.mxu0 %v14201_v14  ;;  %v12048_v48 = vpop.f32.mrf.mxu1 }
 0x9dc   : > { %12087 = vmatprep.subr.bf16.mxu0 %v14263_v17  ;;  %v16079_v27 = vadd.f32 %v12048_v48, %v12047_v55  ;;  %v13703_v55 = vld [vmem:[%s17849_s3 + $0x720] ss:$16 sps:$4 sm:$0xff]   ;;  %v13711_v48 = vld [vmem:[%s17849_s3 + $0x744] ss:$16 sps:$4 sm:$0xff]  }
 0x9dd   : > { %v16074_v40 = vpop.f32.mrf.mxu1 }
 0x9de   : > { %5157 = vmatmul.mubr.bf16.gmra.mxu0 %v13672_v36 }
 0x9df   : > { %12088 = vmatpush3.bf16.msra.mxu0 %v14197_v5  ;;  %10769 = vmatprep.mubr.msk.bf16.mxu0 %vm1062_vm2, %v13676_v26  ;;  %v16077_v43 = vpop.f32.mrf.mxu1 }
 0x9e0   : > { %12089 = vmatprep.subr.bf16.mxu0 %v14271_v22 }
 0x9e1   : > { %v12053_v45 = vpop.f32.mrf.mxu1 }
 0x9e3   : > { %12090 = vmatpush3.bf16.msra.mxu0 %v14193_v60  ;;  %v12054_v7 = vpop.f32.mrf.mxu1 }
 0x9e4   : > { %12091 = vmatprep.subr.bf16.mxu0 %v14226_v0  ;;  %v16085_v39 = vadd.f32 %v12054_v7, %v12053_v45  ;;  %v13709_v45 = vld [vmem:[%s17849_s3 + $0x740] ss:$16 sps:$4 sm:$0xff]   ;;  %v13717_v7 = vld [vmem:[%s17849_s3 + $0x764] ss:$16 sps:$4 sm:$0xff]  }
 0x9e5   : > { %v16081_v61 = vpop.f32.mrf.mxu1 }
 0x9e6   : > { %5165 = vmatmul.mubr.bf16.gmra.mxu0 %v13678_v47 }
 0x9e7   : > { %12092 = vmatpush3.bf16.msra.mxu0 %v14189_v51  ;;  %10770 = vmatprep.mubr.msk.bf16.mxu0 %vm1062_vm2, %v13682_v18  ;;  %v16083_v11 = vpop.f32.mrf.mxu1 }
 0x9e8   : > { %12093 = vmatprep.subr.bf16.mxu0 %v14220_v54 }
 0x9e9   : > { %v12059_v37 = vpop.f32.mrf.mxu1 }
 0x9eb   : > { %12094 = vmatpush3.bf16.msra.mxu0 %v14185_v42  ;;  %v12060_v36 = vpop.f32.mrf.mxu1 }
 0x9ec   : > { %v16091_v18 = vadd.f32 %v12060_v36, %v12059_v37  ;;  %v13715_v37 = vld [vmem:[%s17849_s3 + $0x760] ss:$16 sps:$4 sm:$0xff]  }
 0x9ed   : > { %v16087_v26 = vpop.f32.mrf.mxu1  ;;  %v10804_v36 = vld [vmem:[%s17849_s3 + $0x780] sm:$0x11] }
 0x9ee   : > { %5173 = vmatmul.mubr.bf16.gmra.mxu0 %v13684_v31 }
 0x9ef   : > { %10771 = vmatprep.mubr.msk.bf16.mxu0 %vm1062_vm2, %v10765_v33  ;;  %v16089_v47 = vpop.f32.mrf.mxu1 }
 0x9f1   : > { %v12065_v32 = vpop.f32.mrf.mxu1 }
 0x9f3   : > { %v12066_v31 = vpop.f32.mrf.mxu1 }
 0x9f4   : > { %v16093_v50 = vadd.f32 %v12066_v31, %v12065_v32  ;;  %v10827_v32 = vcombine.high %v10804_v36, %v10804_v36  ;;  %v10826_v31 = vcombine.low %v10804_v36, %v10804_v36 }
 0x9f5   : > { %v12068_v33 = vpop.f32.mrf.mxu1 }
 0x9f6   : > { %5181 = vmatmul.mubr.bf16.gmra.mxu0 %v10764_v56 }
 0x9f7   : > { %v12069_v56 = vpop.f32.mrf.mxu1  ;;  %5501 = vmatprep.mubr.bf16.mxu0 %v13693_v59 }
 0x9fe   : > { %5502 = vmatmul.mubr.bf16.vlgmr.msra.gmra.mxu0 %v13691_v8 }
 0x9ff   : > { %5509 = vmatprep.mubr.bf16.mxu0 %v13699_v41 }
 0xa06   : > { %5510 = vmatmul.mubr.bf16.gmra.mxu0 %v13697_v63 }
 0xa07   : > { %5517 = vmatprep.mubr.bf16.mxu0 %v13705_v19 }
 0xa0e   : > { %5518 = vmatmul.mubr.bf16.gmra.mxu0 %v13703_v55 }
 0xa0f   : > { %5525 = vmatprep.mubr.bf16.mxu0 %v13711_v48 }
 0xa16   : > { %5526 = vmatmul.mubr.bf16.gmra.mxu0 %v13709_v45 }
 0xa17   : > { %5533 = vmatprep.mubr.bf16.mxu0 %v13717_v7 }
 0xa1e   : > { %5534 = vmatmul.mubr.bf16.gmra.mxu0 %v13715_v37 }
 0xa1f   : > { %5541 = vmatprep.mubr.bf16.mxu0 %v10827_v32 }
 0xa26   : > { %5542 = vmatmul.mubr.bf16.gmra.mxu0 %v10826_v31  ;;  %v17914_v31 = vld [vmem:[#allocation7_spill] sm:$0xff] }
 0xa6a   : > { %v12843_v33 = vpop.f32.mrf.mxu0 }
 0xa6b   : > { %v16129_v56 = vadd.f32 %v12843_v33, %v15933_v35 }
 0xa6c   : > { %v4822_v59 = vpop.f32.mrf.mxu0 }
 0xa6d   : > { %v16132_v8 = vadd.f32 %v4822_v59, %v15936_v16 }
 0xa6e   : > { %v12844_v41 = vpop.f32.mrf.mxu0 }
 0xa6f   : > { %v16135_v63 = vadd.f32 %v12844_v41, %v15939_v28 }
 0xa70   : > { %v16137_v19 = vpop.f32.mrf.mxu0 }
 0xa71   : > { %17912 = vst [vmem:[#allocation27_spill] sm:$0xff] %v16137_v19 }
 0xa7a   : > { %v12847_v55 = vpop.f32.mrf.mxu0 }
 0xa7b   : > { %v16140_v48 = vadd.f32 %v12847_v55, %v15944_v2  ;;  %v12040_v55 = vadd.f32 %v16061_v4, %v16059_v15 }
 0xa7c   : > { %v4838_v45 = vpop.f32.mrf.mxu0 }
 0xa7d   : > { %v16143_v7 = vadd.f32 %v4838_v45, %v15947_v52 }
 0xa7e   : > { %v12848_v35 = vpop.f32.mrf.mxu0 }
 0xa7f   : > { %v16146_v37 = vadd.f32 %v12848_v35, %v15950_v13 }
 0xa80   : > { %v16148_v16 = vpop.f32.mrf.mxu0 }
 0xa81   : > { %17913 = vst [vmem:[#allocation28_spill] sm:$0xff] %v16148_v16 }
 0xa86   : > { %v12851_v36 = vpop.f32.mrf.mxu0 }
 0xa87   : > { %v16151_v28 = vadd.f32 %v12851_v36, %v15955_v10 }
 0xa88   : > { %v4854_v32 = vpop.f32.mrf.mxu0 }
 0xa89   : > { %v16154_v33 = vadd.f32 %v4854_v32, %v17914_v31  ;;  %v12046_v32 = vadd.f32 %v16067_v30, %v16065_v1 }
 0xa8a   : > { %v12852_v2 = vpop.f32.mrf.mxu0 }
 0xa8b   : > { %17915 = vst [vmem:[#allocation7_spill] sm:$0xff] %v16154_v33 }
 0xa8c   : > { %v16156_v59 = vpop.f32.mrf.mxu0 }
 0xa8d   : > { %17916 = vst [vmem:[#allocation29_spill] sm:$0xff] %v16156_v59 }
 0xa8e   : > { %v5142_v41 = vpop.f32.mrf.mxu0 }
 0xa8f   : > { %v5143_v45 = vadd.f32 %v16063_v25, %v5142_v41  ;;  %v12052_v25 = vadd.f32 %v16077_v43, %v16074_v40  ;;  %v12058_v40 = vadd.f32 %v16083_v11, %v16081_v61  ;;  %v12064_v61 = vadd.f32 %v16089_v47, %v16087_v26  ;;  %v13696_v47 = vld [vmem:[%s17849_s3 + $0x6ec] ss:$16 sps:$4 sm:$0xff]  }
 0xa90   : > { %v5144_v52 = vpop.f32.mrf.mxu0 }
 0xa92   : > { %v5145_v13 = vpop.f32.mrf.mxu0 }
 0xa93   : > { %v5146_v35 = vadd.f32 %v12040_v55, %v5145_v13 }
 0xa94   : > { %v5147_v16 = vpop.f32.mrf.mxu0 }
 0xa95   : > { %v5188_v19 = vpack.c.bf16 %v5146_v35, %v5143_v45 }
 0xa96   : > { %v5150_v10 = vpop.f32.mrf.mxu0 }
 0xa97   : > { %12857 = vmatprep.mubr.msk.bf16.mxu1 %vm1583_vm3, %v5188_v19  ;;  %v5151_v2 = vadd.f32 %v16069_v62, %v5150_v10 }
 0xa98   : > { %v5152_v36 = vpop.f32.mrf.mxu0 }
 0xa9a   : > { %v5153_v31 = vpop.f32.mrf.mxu0 }
 0xa9b   : > { %v5154_v52 = vadd.f32 %v12046_v32, %v5153_v31 }
 0xa9c   : > { %v5155_v59 = vpop.f32.mrf.mxu0 }
 0xa9d   : > { %v5189_v33 = vpack.c.bf16 %v5154_v52, %v5151_v2 }
 0xa9e   : > { %v5158_v15 = vpop.f32.mrf.mxu0 }
 0xa9f   : > { %12858 = vmatmul.mubr.msk.bf16.vlgmr.msra.gmra.mxu1 %vm1583_vm3, %v5189_v33  ;;  %v5159_v1 = vadd.f32 %v16079_v27, %v5158_v15 }
 0xaa0   : > { %5550 = vmatpush1.bf16.msra.mxu1 %v14322_v20  ;;  %v5160_v4 = vpop.f32.mrf.mxu0 }
 0xaa1   : > { %5551 = vmatprep.subr.bf16.mxu1 %v17862_v29  ;;  %v13700_v4 = vld [vmem:[%s17849_s3 + $0x70c] ss:$16 sps:$4 sm:$0xff]  }
 0xaa2   : > { %v5161_v19 = vpop.f32.mrf.mxu0 }
 0xaa3   : > { %v5162_v30 = vadd.f32 %v12052_v25, %v5161_v19  ;;  %v13702_v25 = vld [vmem:[%s17849_s3 + $0x708] ss:$16 sps:$4 sm:$0xff]   ;;  %v13706_v19 = vld [vmem:[%s17849_s3 + $0x72c] ss:$16 sps:$4 sm:$0xff]  }
 0xaa4   : > { %5552 = vmatpush1.bf16.msra.mxu1 %v14328_v38  ;;  %v5163_v62 = vpop.f32.mrf.mxu0 }
 0xaa5   : > { %v5190_v16 = vpack.c.bf16 %v5162_v30, %v5159_v1  ;;  %5553 = vmatprep.subr.bf16.mxu1 %v17862_v29  ;;  %v13708_v1 = vld [vmem:[%s17849_s3 + $0x728] ss:$16 sps:$4 sm:$0xff]   ;;  %v13712_v30 = vld [vmem:[%s17849_s3 + $0x74c] ss:$16 sps:$4 sm:$0xff]  }
 0xaa6   : > { %v5166_v59 = vpop.f32.mrf.mxu0  ;;  %v13714_v62 = vld [vmem:[%s17849_s3 + $0x748] ss:$16 sps:$4 sm:$0xff]  }
 0xaa7   : > { %12861 = vmatprep.mubr.msk.bf16.mxu1 %vm1583_vm3, %v5190_v16  ;;  %v5167_v27 = vadd.f32 %v16085_v39, %v5166_v59  ;;  %v13718_v16 = vld [vmem:[%s17849_s3 + $0x76c] ss:$16 sps:$4 sm:$0xff]  }
 0xaa8   : > { %5554 = vmatpush1.bf16.msra.mxu1 %v14335_v49  ;;  %v5168_v33 = vpop.f32.mrf.mxu0  ;;  %v10805_v59 = vld [vmem:[%s17849_s3 + $0x788] sm:$0x11] }
 0xaa9   : > { %5555 = vmatprep.subr.bf16.mxu1 %v17862_v29  ;;  %v13720_v33 = vld [vmem:[%s17849_s3 + $0x768] ss:$16 sps:$4 sm:$0xff]  }
 0xaaa   : > { %v5169_v43 = vpop.f32.mrf.mxu0 }
 0xaab   : > { %v5170_v41 = vadd.f32 %v12058_v40, %v5169_v43  ;;  %v10829_v40 = vcombine.high %v10805_v59, %v10805_v59  ;;  %v10828_v43 = vcombine.low %v10805_v59, %v10805_v59 }
 0xaac   : > { %5556 = vmatpush1.bf16.msra.mxu1 %v14346_v53  ;;  %v5171_v55 = vpop.f32.mrf.mxu0 }
 0xaad   : > { %v5191_v13 = vpack.c.bf16 %v5170_v41, %v5167_v27  ;;  %5557 = vmatprep.subr.bf16.mxu1 %v17862_v29  ;;  %v13725_v27 = vld [vmem:[%s17850_s4 + $0xa8] sm:$0xff]  }
 0xaae   : > { %v5174_v45 = vpop.f32.mrf.mxu0  ;;  %12869 = vmatprep.subr.bf16.mxu0 %v13725_v27 }
 0xaaf   : > { %12862 = vmatmul.mubr.msk.bf16.gmra.mxu1 %vm1583_vm3, %v5191_v13  ;;  %v5175_v39 = vadd.f32 %v16091_v18, %v5174_v45  ;;  %12870 = vmatpush3.bf16.msra.mxu0 %v13725_v27 }
 0xab0   : > { %5558 = vmatpush1.bf16.msra.mxu1 %v14353_v58  ;;  %v5176_v35 = vpop.f32.mrf.mxu0 }
 0xab1   : > { %5559 = vmatprep.subr.bf16.mxu1 %v17862_v29 }
 0xab2   : > { %v5177_v11 = vpop.f32.mrf.mxu0 }
 0xab3   : > { %v5178_v10 = vadd.f32 %v12064_v61, %v5177_v11 }
 0xab4   : > { %5560 = vmatpush1.bf16.msra.mxu1 %v14357_v23  ;;  %v5179_v36 = vpop.f32.mrf.mxu0 }
 0xab5   : > { %v5192_v32 = vpack.c.bf16 %v5178_v10, %v5175_v39  ;;  %5561 = vmatprep.subr.bf16.mxu1 %v17862_v29 }
 0xab6   : > { %v5182_v31 = vpop.f32.mrf.mxu0 }
 0xab7   : > { %v5183_v2 = vadd.f32 %v16093_v50, %v5182_v31  ;;  %12865 = vmatprep.mubr.msk.bf16.mxu1 %vm1583_vm3, %v5192_v32  ;;  %v13694_v50 = vld [vmem:[%s17849_s3 + $0x6e8] ss:$16 sps:$4 sm:$0xff]   ;;  %v13726_v32 = vld [vmem:[%s17850_s4 + $0xa0] sm:$0xff]  }
 0xab8   : > { %5562 = vmatpush1.bf16.msra.mxu1 %v14268_v21  ;;  %v5184_v26 = vpop.f32.mrf.mxu0  ;;  %12871 = vmatprep.subr.bf16.mxu0 %v13726_v32 }
 0xab9   : > { %v5193_v18 = vpack.c.bf16 %v5183_v2, %v5183_v2  ;;  %5563 = vmatprep.subr.bf16.mxu1 %v17862_v29  ;;  %12872 = vmatpush3.bf16.msra.mxu0 %v13726_v32  ;;  %v13741_v32 = vld [vmem:[%s17849_s3 + $0x7d4] ss:$16 sps:$4 sm:$0xff]  }
 0xaba   : > { %v5185_v52 = vpop.f32.mrf.mxu0  ;;  %5990 = vmatprep.subr.bf16.mxu0 %v17862_v29 }
 0xabb   : > { %12866 = vmatmul.mubr.msk.bf16.gmra.mxu1 %vm1583_vm3, %v5193_v18 }
 0xabc   : > { %5564 = vmatpush1.bf16.msra.mxu1 %v14251_v3  ;;  %v5186_v15 = vpop.f32.mrf.mxu0  ;;  %10830 = vmatprep.mubr.msk.bf16.mxu1 %vm1062_vm2, %v13696_v47 }
 0xabd   : > { %5579 = vmatprep.subr.bf16.mxu1 %v17862_v29 }
 0xabe   : > { %v12095_v41 = vpop.f32.mrf.mxu0 }
 0xac0   : > { %5580 = vmatpush2.bf16.msra.mxu1 %v14367_v6  ;;  %v12096_v55 = vpop.f32.mrf.mxu0 }
 0xac1   : > { %12139 = vmatprep.subr.bf16.mxu1 %v17874_v12  ;;  %v16259_v35 = vadd.f32 %v12096_v55, %v12095_v41  ;;  %v13729_v41 = vld [vmem:[%s17849_s3 + $0x794] ss:$16 sps:$4 sm:$0xff]   ;;  %v13727_v55 = vld [vmem:[%s17849_s3 + $0x790] ss:$16 sps:$4 sm:$0xff]  }
 0xac2   : > { %v16255_v13 = vpop.f32.mrf.mxu0 }
 0xac3   : > { %5582 = vmatmul.mubr.bf16.vlgmr.msra.gmra.mxu1 %v13694_v50 }
 0xac4   : > { %12140 = vmatpush3.bf16.msra.mxu1 %v14216_v44  ;;  %10831 = vmatprep.mubr.msk.bf16.mxu1 %vm1062_vm2, %v13700_v4  ;;  %v16257_v45 = vpop.f32.mrf.mxu0 }
 0xac5   : > { %12141 = vmatprep.subr.bf16.mxu1 %v14237_v46 }
 0xac6   : > { %v12101_v61 = vpop.f32.mrf.mxu0 }
 0xac8   : > { %12142 = vmatpush3.bf16.msra.mxu1 %v14212_v34  ;;  %v12102_v11 = vpop.f32.mrf.mxu0 }
 0xac9   : > { %12143 = vmatprep.subr.bf16.mxu1 %v14247_v57  ;;  %v16265_v36 = vadd.f32 %v12102_v11, %v12101_v61  ;;  %v13735_v61 = vld [vmem:[%s17849_s3 + $0x7b4] ss:$16 sps:$4 sm:$0xff]   ;;  %v13733_v11 = vld [vmem:[%s17849_s3 + $0x7b0] ss:$16 sps:$4 sm:$0xff]  }
 0xaca   : > { %v16261_v39 = vpop.f32.mrf.mxu0 }
 0xacb   : > { %5590 = vmatmul.mubr.bf16.gmra.mxu1 %v13702_v25 }
 0xacc   : > { %12144 = vmatpush3.bf16.msra.mxu1 %v14208_v24  ;;  %10832 = vmatprep.mubr.msk.bf16.mxu1 %vm1062_vm2, %v13706_v19  ;;  %v16263_v10 = vpop.f32.mrf.mxu0 }
 0xacd   : > { %12145 = vmatprep.subr.bf16.mxu1 %v14255_v9 }
 0xace   : > { %v12107_v31 = vpop.f32.mrf.mxu0 }
 0xad0   : > { %12146 = vmatpush3.bf16.msra.mxu1 %v14201_v14  ;;  %v12108_v2 = vpop.f32.mrf.mxu0 }
 0xad1   : > { %12147 = vmatprep.subr.bf16.mxu1 %v14263_v17  ;;  %v16275_v18 = vadd.f32 %v12108_v2, %v12107_v31  ;;  %v13739_v31 = vld [vmem:[%s17849_s3 + $0x7d0] ss:$16 sps:$4 sm:$0xff]   ;;  %v13747_v2 = vld [vmem:[%s17849_s3 + $0x7f4] ss:$16 sps:$4 sm:$0xff]  }
 0xad2   : > { %v16270_v26 = vpop.f32.mrf.mxu0 }
 0xad3   : > { %5598 = vmatmul.mubr.bf16.gmra.mxu1 %v13708_v1 }
 0xad4   : > { %12148 = vmatpush3.bf16.msra.mxu1 %v14197_v5  ;;  %10833 = vmatprep.mubr.msk.bf16.mxu1 %vm1062_vm2, %v13712_v30  ;;  %v16273_v47 = vpop.f32.mrf.mxu0 }
 0xad5   : > { %12149 = vmatprep.subr.bf16.mxu1 %v14271_v22 }
 0xad6   : > { %v12113_v52 = vpop.f32.mrf.mxu0 }
 0xad8   : > { %12150 = vmatpush3.bf16.msra.mxu1 %v14193_v60  ;;  %v12114_v15 = vpop.f32.mrf.mxu0 }
 0xad9   : > { %12151 = vmatprep.subr.bf16.mxu1 %v14226_v0  ;;  %v16281_v25 = vadd.f32 %v12114_v15, %v12113_v52  ;;  %v13745_v52 = vld [vmem:[%s17849_s3 + $0x7f0] ss:$16 sps:$4 sm:$0xff]   ;;  %v13753_v15 = vld [vmem:[%s17849_s3 + $0x814] ss:$16 sps:$4 sm:$0xff]  }
 0xada   : > { %v16277_v50 = vpop.f32.mrf.mxu0 }
 0xadb   : > { %5606 = vmatmul.mubr.bf16.gmra.mxu1 %v13714_v62 }
 0xadc   : > { %12152 = vmatpush3.bf16.msra.mxu1 %v14189_v51  ;;  %10834 = vmatprep.mubr.msk.bf16.mxu1 %vm1062_vm2, %v13718_v16  ;;  %v16279_v4 = vpop.f32.mrf.mxu0 }
 0xadd   : > { %12153 = vmatprep.subr.bf16.mxu1 %v14220_v54 }
 0xade   : > { %v12119_v19 = vpop.f32.mrf.mxu0 }
 0xae0   : > { %12154 = vmatpush3.bf16.msra.mxu1 %v14185_v42  ;;  %v12120_v1 = vpop.f32.mrf.mxu0 }
 0xae1   : > { %v16287_v16 = vadd.f32 %v12120_v1, %v12119_v19  ;;  %v13751_v19 = vld [vmem:[%s17849_s3 + $0x810] ss:$16 sps:$4 sm:$0xff]  }
 0xae2   : > { %v16283_v30 = vpop.f32.mrf.mxu0  ;;  %v10868_v1 = vld [vmem:[%s17849_s3 + $0x830] sm:$0x11] }
 0xae3   : > { %5614 = vmatmul.mubr.bf16.gmra.mxu1 %v13720_v33 }
 0xae4   : > { %10835 = vmatprep.mubr.msk.bf16.mxu1 %vm1062_vm2, %v10829_v40  ;;  %v16285_v62 = vpop.f32.mrf.mxu0 }
 0xae6   : > { %v12125_v59 = vpop.f32.mrf.mxu0 }
 0xae8   : > { %v12126_v33 = vpop.f32.mrf.mxu0 }
 0xae9   : > { %v16289_v27 = vadd.f32 %v12126_v33, %v12125_v59  ;;  %v10891_v59 = vcombine.high %v10868_v1, %v10868_v1  ;;  %v10890_v33 = vcombine.low %v10868_v1, %v10868_v1 }
 0xaea   : > { %v12128_v40 = vpop.f32.mrf.mxu0 }
 0xaeb   : > { %5622 = vmatmul.mubr.bf16.gmra.mxu1 %v10828_v43 }
 0xaec   : > { %v12129_v43 = vpop.f32.mrf.mxu0  ;;  %5942 = vmatprep.mubr.bf16.mxu1 %v13729_v41 }
 0xaf3   : > { %5943 = vmatmul.mubr.bf16.vlgmr.msra.gmra.mxu1 %v13727_v55 }
 0xaf4   : > { %5950 = vmatprep.mubr.bf16.mxu1 %v13735_v61 }
 0xafb   : > { %5951 = vmatmul.mubr.bf16.gmra.mxu1 %v13733_v11 }
 0xafc   : > { %5958 = vmatprep.mubr.bf16.mxu1 %v13741_v32 }
 0xb03   : > { %5959 = vmatmul.mubr.bf16.gmra.mxu1 %v13739_v31 }
 0xb04   : > { %5966 = vmatprep.mubr.bf16.mxu1 %v13747_v2 }
 0xb0b   : > { %5967 = vmatmul.mubr.bf16.gmra.mxu1 %v13745_v52 }
 0xb0c   : > { %5974 = vmatprep.mubr.bf16.mxu1 %v13753_v15 }
 0xb13   : > { %5975 = vmatmul.mubr.bf16.gmra.mxu1 %v13751_v19 }
 0xb14   : > { %5982 = vmatprep.mubr.bf16.mxu1 %v10891_v59 }
 0xb1b   : > { %5983 = vmatmul.mubr.bf16.gmra.mxu1 %v10890_v33  ;;  %v17919_v33 = vld [vmem:[#allocation7_spill] sm:$0xff] }
 0xb5f   : > { %v12859_v40 = vpop.f32.mrf.mxu1 }
 0xb60   : > { %v16325_v43 = vadd.f32 %v12859_v40, %v16129_v56 }
 0xb61   : > { %v5263_v41 = vpop.f32.mrf.mxu1 }
 0xb62   : > { %v16328_v55 = vadd.f32 %v5263_v41, %v16132_v8 }
 0xb63   : > { %v12860_v61 = vpop.f32.mrf.mxu1 }
 0xb64   : > { %v16331_v11 = vadd.f32 %v12860_v61, %v16135_v63 }
 0xb65   : > { %v16333_v32 = vpop.f32.mrf.mxu1 }
 0xb66   : > { %17917 = vst [vmem:[#allocation30_spill] sm:$0xff] %v16333_v32 }
 0xb6f   : > { %v12863_v31 = vpop.f32.mrf.mxu1 }
 0xb70   : > { %v16336_v2 = vadd.f32 %v12863_v31, %v16140_v48  ;;  %v12100_v31 = vadd.f32 %v16257_v45, %v16255_v13 }
 0xb71   : > { %v5279_v52 = vpop.f32.mrf.mxu1 }
 0xb72   : > { %v16339_v15 = vadd.f32 %v5279_v52, %v16143_v7 }
 0xb73   : > { %v12864_v56 = vpop.f32.mrf.mxu1 }
 0xb74   : > { %v16342_v19 = vadd.f32 %v12864_v56, %v16146_v37 }
 0xb75   : > { %v16344_v8 = vpop.f32.mrf.mxu1 }
 0xb76   : > { %17918 = vst [vmem:[#allocation31_spill] sm:$0xff] %v16344_v8 }
 0xb7b   : > { %v12867_v1 = vpop.f32.mrf.mxu1 }
 0xb7c   : > { %v16347_v63 = vadd.f32 %v12867_v1, %v16151_v28 }
 0xb7d   : > { %v5295_v59 = vpop.f32.mrf.mxu1 }
 0xb7e   : > { %v16350_v40 = vadd.f32 %v5295_v59, %v17919_v33  ;;  %v12106_v59 = vadd.f32 %v16263_v10, %v16261_v39 }
 0xb7f   : > { %v12868_v48 = vpop.f32.mrf.mxu1 }
 0xb80   : > { %17920 = vst [vmem:[#allocation7_spill] sm:$0xff] %v16350_v40 }
 0xb81   : > { %v16352_v41 = vpop.f32.mrf.mxu1 }
 0xb82   : > { %17921 = vst [vmem:[#allocation32_spill] sm:$0xff] %v16352_v41 }
 0xb83   : > { %v5583_v61 = vpop.f32.mrf.mxu1 }
 0xb84   : > { %v5584_v52 = vadd.f32 %v16259_v35, %v5583_v61  ;;  %v12112_v35 = vadd.f32 %v16273_v47, %v16270_v26  ;;  %v12118_v26 = vadd.f32 %v16279_v4, %v16277_v50  ;;  %v12124_v50 = vadd.f32 %v16285_v62, %v16283_v30  ;;  %v13732_v62 = vld [vmem:[%s17849_s3 + $0x79c] ss:$16 sps:$4 sm:$0xff]  }
 0xb85   : > { %v5585_v7 = vpop.f32.mrf.mxu1 }
 0xb87   : > { %v5586_v37 = vpop.f32.mrf.mxu1 }
 0xb88   : > { %v5587_v56 = vadd.f32 %v12100_v31, %v5586_v37 }
 0xb89   : > { %v5588_v8 = vpop.f32.mrf.mxu1 }
 0xb8a   : > { %v5629_v32 = vpack.c.bf16 %v5587_v56, %v5584_v52 }
 0xb8b   : > { %v5591_v28 = vpop.f32.mrf.mxu1 }
 0xb8c   : > { %12873 = vmatprep.mubr.msk.bf16.mxu0 %vm1583_vm3, %v5629_v32  ;;  %v5592_v48 = vadd.f32 %v16265_v36, %v5591_v28 }
 0xb8d   : > { %v5593_v1 = vpop.f32.mrf.mxu1 }
 0xb8f   : > { %v5594_v33 = vpop.f32.mrf.mxu1 }
 0xb90   : > { %v5595_v7 = vadd.f32 %v12106_v59, %v5594_v33 }
 0xb91   : > { %v5596_v41 = vpop.f32.mrf.mxu1 }
 0xb92   : > { %v5630_v40 = vpack.c.bf16 %v5595_v7, %v5592_v48 }
 0xb93   : > { %v5599_v13 = vpop.f32.mrf.mxu1 }
 0xb94   : > { %12874 = vmatmul.mubr.msk.bf16.vlgmr.msra.gmra.mxu0 %vm1583_vm3, %v5630_v40  ;;  %v5600_v39 = vadd.f32 %v16275_v18, %v5599_v13 }
 0xb95   : > { %5991 = vmatpush1.bf16.msra.mxu0 %v14322_v20  ;;  %v5601_v45 = vpop.f32.mrf.mxu1 }
 0xb96   : > { %5992 = vmatprep.subr.bf16.mxu0 %v17862_v29  ;;  %v13736_v45 = vld [vmem:[%s17849_s3 + $0x7bc] ss:$16 sps:$4 sm:$0xff]  }
 0xb97   : > { %v5602_v32 = vpop.f32.mrf.mxu1 }
 0xb98   : > { %v5603_v10 = vadd.f32 %v12112_v35, %v5602_v32  ;;  %v13738_v35 = vld [vmem:[%s17849_s3 + $0x7b8] ss:$16 sps:$4 sm:$0xff]   ;;  %v13742_v32 = vld [vmem:[%s17849_s3 + $0x7dc] ss:$16 sps:$4 sm:$0xff]  }
 0xb99   : > { %5993 = vmatpush1.bf16.msra.mxu0 %v14328_v38  ;;  %v5604_v36 = vpop.f32.mrf.mxu1 }
 0xb9a   : > { %v5631_v8 = vpack.c.bf16 %v5603_v10, %v5600_v39  ;;  %5994 = vmatprep.subr.bf16.mxu0 %v17862_v29  ;;  %v13744_v39 = vld [vmem:[%s17849_s3 + $0x7d8] ss:$16 sps:$4 sm:$0xff]   ;;  %v13748_v10 = vld [vmem:[%s17849_s3 + $0x7fc] ss:$16 sps:$4 sm:$0xff]  }
 0xb9b   : > { %v5607_v41 = vpop.f32.mrf.mxu1  ;;  %v13750_v36 = vld [vmem:[%s17849_s3 + $0x7f8] ss:$16 sps:$4 sm:$0xff]  }
 0xb9c   : > { %12877 = vmatprep.mubr.msk.bf16.mxu0 %vm1583_vm3, %v5631_v8  ;;  %v5608_v18 = vadd.f32 %v16281_v25, %v5607_v41  ;;  %v13754_v8 = vld [vmem:[%s17849_s3 + $0x81c] ss:$16 sps:$4 sm:$0xff]  }
 0xb9d   : > { %5995 = vmatpush1.bf16.msra.mxu0 %v14335_v49  ;;  %v5609_v40 = vpop.f32.mrf.mxu1  ;;  %v10869_v41 = vld [vmem:[%s17849_s3 + $0x838] sm:$0x11] }
 0xb9e   : > { %5996 = vmatprep.subr.bf16.mxu0 %v17862_v29  ;;  %v13756_v40 = vld [vmem:[%s17849_s3 + $0x818] ss:$16 sps:$4 sm:$0xff]  }
 0xb9f   : > { %v5610_v47 = vpop.f32.mrf.mxu1 }
 0xba0   : > { %v5611_v61 = vadd.f32 %v12118_v26, %v5610_v47  ;;  %v10893_v26 = vcombine.high %v10869_v41, %v10869_v41  ;;  %v10892_v47 = vcombine.low %v10869_v41, %v10869_v41 }
 0xba1   : > { %5997 = vmatpush1.bf16.msra.mxu0 %v14346_v53  ;;  %v5612_v31 = vpop.f32.mrf.mxu1 }
 0xba2   : > { %v5632_v37 = vpack.c.bf16 %v5611_v61, %v5608_v18  ;;  %5998 = vmatprep.subr.bf16.mxu0 %v17862_v29  ;;  %v13761_v18 = vld [vmem:[%s17850_s4 + $0xb8] sm:$0xff]  }
 0xba3   : > { %v5615_v52 = vpop.f32.mrf.mxu1  ;;  %12885 = vmatprep.subr.bf16.mxu1 %v13761_v18 }
 0xba4   : > { %12878 = vmatmul.mubr.msk.bf16.gmra.mxu0 %vm1583_vm3, %v5632_v37  ;;  %v5616_v25 = vadd.f32 %v16287_v16, %v5615_v52  ;;  %12886 = vmatpush3.bf16.msra.mxu1 %v13761_v18 }
 0xba5   : > { %5999 = vmatpush1.bf16.msra.mxu0 %v14353_v58  ;;  %v5617_v56 = vpop.f32.mrf.mxu1 }
 0xba6   : > { %6000 = vmatprep.subr.bf16.mxu0 %v17862_v29 }
 0xba7   : > { %v5618_v4 = vpop.f32.mrf.mxu1 }
 0xba8   : > { %v5619_v28 = vadd.f32 %v12124_v50, %v5618_v4 }
 0xba9   : > { %6001 = vmatpush1.bf16.msra.mxu0 %v14357_v23  ;;  %v5620_v1 = vpop.f32.mrf.mxu1 }
 0xbaa   : > { %v5633_v59 = vpack.c.bf16 %v5619_v28, %v5616_v25  ;;  %6002 = vmatprep.subr.bf16.mxu0 %v17862_v29 }
 0xbab   : > { %v5623_v33 = vpop.f32.mrf.mxu1 }
 0xbac   : > { %v5624_v48 = vadd.f32 %v16289_v27, %v5623_v33  ;;  %12881 = vmatprep.mubr.msk.bf16.mxu0 %vm1583_vm3, %v5633_v59  ;;  %v13730_v27 = vld [vmem:[%s17849_s3 + $0x798] ss:$16 sps:$4 sm:$0xff]   ;;  %v13762_v59 = vld [vmem:[%s17850_s4 + $0xb0] sm:$0xff]  }
 0xbad   : > { %6003 = vmatpush1.bf16.msra.mxu0 %v14268_v21  ;;  %v5625_v30 = vpop.f32.mrf.mxu1  ;;  %12887 = vmatprep.subr.bf16.mxu1 %v13762_v59 }
 0xbae   : > { %v5634_v16 = vpack.c.bf16 %v5624_v48, %v5624_v48  ;;  %6004 = vmatprep.subr.bf16.mxu0 %v17862_v29  ;;  %12888 = vmatpush3.bf16.msra.mxu1 %v13762_v59  ;;  %v13777_v59 = vld [vmem:[%s17849_s3 + $0x884] ss:$16 sps:$4 sm:$0xff]  }
 0xbaf   : > { %v5626_v7 = vpop.f32.mrf.mxu1  ;;  %6431 = vmatprep.subr.bf16.mxu1 %v17862_v29 }
 0xbb0   : > { %12882 = vmatmul.mubr.msk.bf16.gmra.mxu0 %vm1583_vm3, %v5634_v16 }
 0xbb1   : > { %6005 = vmatpush1.bf16.msra.mxu0 %v14251_v3  ;;  %v5627_v13 = vpop.f32.mrf.mxu1  ;;  %10894 = vmatprep.mubr.msk.bf16.mxu0 %vm1062_vm2, %v13732_v62 }
 0xbb2   : > { %6020 = vmatprep.subr.bf16.mxu0 %v17862_v29 }
 0xbb3   : > { %v12155_v61 = vpop.f32.mrf.mxu1 }
 0xbb5   : > { %6021 = vmatpush2.bf16.msra.mxu0 %v14367_v6  ;;  %v12156_v31 = vpop.f32.mrf.mxu1 }
 0xbb6   : > { %12199 = vmatprep.subr.bf16.mxu0 %v17874_v12  ;;  %v16455_v56 = vadd.f32 %v12156_v31, %v12155_v61  ;;  %v13765_v61 = vld [vmem:[%s17849_s3 + $0x844] ss:$16 sps:$4 sm:$0xff]   ;;  %v13763_v31 = vld [vmem:[%s17849_s3 + $0x840] ss:$16 sps:$4 sm:$0xff]  }
 0xbb7   : > { %v16451_v37 = vpop.f32.mrf.mxu1 }
 0xbb8   : > { %6023 = vmatmul.mubr.bf16.vlgmr.msra.gmra.mxu0 %v13730_v27 }
 0xbb9   : > { %12200 = vmatpush3.bf16.msra.mxu0 %v14216_v44  ;;  %10895 = vmatprep.mubr.msk.bf16.mxu0 %vm1062_vm2, %v13736_v45  ;;  %v16453_v52 = vpop.f32.mrf.mxu1 }
 0xbba   : > { %12201 = vmatprep.subr.bf16.mxu0 %v14237_v46 }
 0xbbb   : > { %v12161_v50 = vpop.f32.mrf.mxu1 }
 0xbbd   : > { %12202 = vmatpush3.bf16.msra.mxu0 %v14212_v34  ;;  %v12162_v4 = vpop.f32.mrf.mxu1 }
 0xbbe   : > { %12203 = vmatprep.subr.bf16.mxu0 %v14247_v57  ;;  %v16461_v1 = vadd.f32 %v12162_v4, %v12161_v50  ;;  %v13771_v50 = vld [vmem:[%s17849_s3 + $0x864] ss:$16 sps:$4 sm:$0xff]   ;;  %v13769_v4 = vld [vmem:[%s17849_s3 + $0x860] ss:$16 sps:$4 sm:$0xff]  }
 0xbbf   : > { %v16457_v25 = vpop.f32.mrf.mxu1 }
 0xbc0   : > { %6031 = vmatmul.mubr.bf16.gmra.mxu0 %v13738_v35 }
 0xbc1   : > { %12204 = vmatpush3.bf16.msra.mxu0 %v14208_v24  ;;  %10896 = vmatprep.mubr.msk.bf16.mxu0 %vm1062_vm2, %v13742_v32  ;;  %v16459_v28 = vpop.f32.mrf.mxu1 }
 0xbc2   : > { %12205 = vmatprep.subr.bf16.mxu0 %v14255_v9 }
 0xbc3   : > { %v12167_v33 = vpop.f32.mrf.mxu1 }
 0xbc5   : > { %12206 = vmatpush3.bf16.msra.mxu0 %v14201_v14  ;;  %v12168_v48 = vpop.f32.mrf.mxu1 }
 0xbc6   : > { %12207 = vmatprep.subr.bf16.mxu0 %v14263_v17  ;;  %v16471_v16 = vadd.f32 %v12168_v48, %v12167_v33  ;;  %v13775_v33 = vld [vmem:[%s17849_s3 + $0x880] ss:$16 sps:$4 sm:$0xff]   ;;  %v13783_v48 = vld [vmem:[%s17849_s3 + $0x8a4] ss:$16 sps:$4 sm:$0xff]  }
 0xbc7   : > { %v16466_v30 = vpop.f32.mrf.mxu1 }
 0xbc8   : > { %6039 = vmatmul.mubr.bf16.gmra.mxu0 %v13744_v39 }
 0xbc9   : > { %12208 = vmatpush3.bf16.msra.mxu0 %v14197_v5  ;;  %10897 = vmatprep.mubr.msk.bf16.mxu0 %vm1062_vm2, %v13748_v10  ;;  %v16469_v62 = vpop.f32.mrf.mxu1 }
 0xbca   : > { %12209 = vmatprep.subr.bf16.mxu0 %v14271_v22 }
 0xbcb   : > { %v12173_v7 = vpop.f32.mrf.mxu1 }
 0xbcd   : > { %12210 = vmatpush3.bf16.msra.mxu0 %v14193_v60  ;;  %v12174_v13 = vpop.f32.mrf.mxu1 }
 0xbce   : > { %12211 = vmatprep.subr.bf16.mxu0 %v14226_v0  ;;  %v16477_v35 = vadd.f32 %v12174_v13, %v12173_v7  ;;  %v13781_v7 = vld [vmem:[%s17849_s3 + $0x8a0] ss:$16 sps:$4 sm:$0xff]   ;;  %v13789_v13 = vld [vmem:[%s17849_s3 + $0x8c4] ss:$16 sps:$4 sm:$0xff]  }
 0xbcf   : > { %v16473_v27 = vpop.f32.mrf.mxu1 }
 0xbd0   : > { %6047 = vmatmul.mubr.bf16.gmra.mxu0 %v13750_v36 }
 0xbd1   : > { %12212 = vmatpush3.bf16.msra.mxu0 %v14189_v51  ;;  %10898 = vmatprep.mubr.msk.bf16.mxu0 %vm1062_vm2, %v13754_v8  ;;  %v16475_v45 = vpop.f32.mrf.mxu1 }
 0xbd2   : > { %12213 = vmatprep.subr.bf16.mxu0 %v14220_v54 }
 0xbd3   : > { %v12179_v32 = vpop.f32.mrf.mxu1 }
 0xbd5   : > { %12214 = vmatpush3.bf16.msra.mxu0 %v14185_v42  ;;  %v12180_v39 = vpop.f32.mrf.mxu1 }
 0xbd6   : > { %v16483_v8 = vadd.f32 %v12180_v39, %v12179_v32  ;;  %v13787_v32 = vld [vmem:[%s17849_s3 + $0x8c0] ss:$16 sps:$4 sm:$0xff]  }
 0xbd7   : > { %v16479_v10 = vpop.f32.mrf.mxu1  ;;  %v10932_v39 = vld [vmem:[%s17849_s3 + $0x8e0] sm:$0x11] }
 0xbd8   : > { %6055 = vmatmul.mubr.bf16.gmra.mxu0 %v13756_v40 }
 0xbd9   : > { %10899 = vmatprep.mubr.msk.bf16.mxu0 %vm1062_vm2, %v10893_v26  ;;  %v16481_v36 = vpop.f32.mrf.mxu1 }
 0xbdb   : > { %v12185_v41 = vpop.f32.mrf.mxu1 }
 0xbdd   : > { %v12186_v40 = vpop.f32.mrf.mxu1 }
 0xbde   : > { %v16485_v18 = vadd.f32 %v12186_v40, %v12185_v41  ;;  %v10955_v41 = vcombine.high %v10932_v39, %v10932_v39  ;;  %v10954_v40 = vcombine.low %v10932_v39, %v10932_v39 }
 0xbdf   : > { %v12188_v26 = vpop.f32.mrf.mxu1 }
 0xbe0   : > { %6063 = vmatmul.mubr.bf16.gmra.mxu0 %v10892_v47 }
 0xbe1   : > { %v12189_v47 = vpop.f32.mrf.mxu1  ;;  %6383 = vmatprep.mubr.bf16.mxu0 %v13765_v61 }
 0xbe8   : > { %6384 = vmatmul.mubr.bf16.vlgmr.msra.gmra.mxu0 %v13763_v31 }
 0xbe9   : > { %6391 = vmatprep.mubr.bf16.mxu0 %v13771_v50 }
 0xbf0   : > { %6392 = vmatmul.mubr.bf16.gmra.mxu0 %v13769_v4 }
 0xbf1   : > { %6399 = vmatprep.mubr.bf16.mxu0 %v13777_v59 }
 0xbf8   : > { %6400 = vmatmul.mubr.bf16.gmra.mxu0 %v13775_v33 }
 0xbf9   : > { %6407 = vmatprep.mubr.bf16.mxu0 %v13783_v48 }
 0xc00   : > { %6408 = vmatmul.mubr.bf16.gmra.mxu0 %v13781_v7 }
 0xc01   : > { %6415 = vmatprep.mubr.bf16.mxu0 %v13789_v13 }
 0xc08   : > { %6416 = vmatmul.mubr.bf16.gmra.mxu0 %v13787_v32 }
 0xc09   : > { %6423 = vmatprep.mubr.bf16.mxu0 %v10955_v41 }
 0xc10   : > { %6424 = vmatmul.mubr.bf16.gmra.mxu0 %v10954_v40  ;;  %v17924_v40 = vld [vmem:[#allocation7_spill] sm:$0xff] }
 0xc54   : > { %v12875_v26 = vpop.f32.mrf.mxu0 }
 0xc55   : > { %v16521_v47 = vadd.f32 %v12875_v26, %v16325_v43 }
 0xc56   : > { %v5704_v61 = vpop.f32.mrf.mxu0 }
 0xc57   : > { %v16524_v31 = vadd.f32 %v5704_v61, %v16328_v55 }
 0xc58   : > { %v12876_v50 = vpop.f32.mrf.mxu0 }
 0xc59   : > { %v16527_v4 = vadd.f32 %v12876_v50, %v16331_v11 }
 0xc5a   : > { %v16529_v59 = vpop.f32.mrf.mxu0 }
 0xc5b   : > { %17922 = vst [vmem:[#allocation33_spill] sm:$0xff] %v16529_v59 }
 0xc64   : > { %v12879_v33 = vpop.f32.mrf.mxu0 }
 0xc65   : > { %v16532_v48 = vadd.f32 %v12879_v33, %v16336_v2  ;;  %v12160_v33 = vadd.f32 %v16453_v52, %v16451_v37 }
 0xc66   : > { %v5720_v7 = vpop.f32.mrf.mxu0 }
 0xc67   : > { %v16535_v13 = vadd.f32 %v5720_v7, %v16339_v15 }
 0xc68   : > { %v12880_v43 = vpop.f32.mrf.mxu0 }
 0xc69   : > { %v16538_v32 = vadd.f32 %v12880_v43, %v16342_v19 }
 0xc6a   : > { %v16540_v55 = vpop.f32.mrf.mxu0 }
 0xc6b   : > { %17923 = vst [vmem:[#allocation34_spill] sm:$0xff] %v16540_v55 }
 0xc70   : > { %v12883_v39 = vpop.f32.mrf.mxu0 }
 0xc71   : > { %v16543_v11 = vadd.f32 %v12883_v39, %v16347_v63 }
 0xc72   : > { %v5736_v41 = vpop.f32.mrf.mxu0 }
 0xc73   : > { %v16546_v26 = vadd.f32 %v5736_v41, %v17924_v40  ;;  %v12166_v41 = vadd.f32 %v16459_v28, %v16457_v25 }
 0xc74   : > { %v12884_v2 = vpop.f32.mrf.mxu0 }
 0xc75   : > { %17925 = vst [vmem:[#allocation7_spill] sm:$0xff] %v16546_v26 }
 0xc76   : > { %v16548_v61 = vpop.f32.mrf.mxu0 }
 0xc77   : > { %17926 = vst [vmem:[#allocation35_spill] sm:$0xff] %v16548_v61 }
 0xc78   : > { %v6024_v50 = vpop.f32.mrf.mxu0 }
 0xc79   : > { %v6025_v7 = vadd.f32 %v16455_v56, %v6024_v50  ;;  %v12172_v56 = vadd.f32 %v16469_v62, %v16466_v30  ;;  %v12178_v30 = vadd.f32 %v16475_v45, %v16473_v27  ;;  %v12184_v27 = vadd.f32 %v16481_v36, %v16479_v10  ;;  %v13768_v36 = vld [vmem:[%s17849_s3 + $0x84c] ss:$16 sps:$4 sm:$0xff]  }
 0xc7a   : > { %v6026_v15 = vpop.f32.mrf.mxu0 }
 0xc7c   : > { %v6027_v19 = vpop.f32.mrf.mxu0 }
 0xc7d   : > { %v6028_v43 = vadd.f32 %v12160_v33, %v6027_v19 }
 0xc7e   : > { %v6029_v55 = vpop.f32.mrf.mxu0 }
 0xc7f   : > { %v6070_v59 = vpack.c.bf16 %v6028_v43, %v6025_v7 }
 0xc80   : > { %v6032_v63 = vpop.f32.mrf.mxu0 }
 0xc81   : > { %12889 = vmatprep.mubr.msk.bf16.mxu1 %vm1583_vm3, %v6070_v59  ;;  %v6033_v2 = vadd.f32 %v16461_v1, %v6032_v63 }
 0xc82   : > { %v6034_v39 = vpop.f32.mrf.mxu0 }
 0xc84   : > { %v6035_v40 = vpop.f32.mrf.mxu0 }
 0xc85   : > { %v6036_v15 = vadd.f32 %v12166_v41, %v6035_v40 }
 0xc86   : > { %v6037_v61 = vpop.f32.mrf.mxu0 }
 0xc87   : > { %v6071_v26 = vpack.c.bf16 %v6036_v15, %v6033_v2 }
 0xc88   : > { %v6040_v37 = vpop.f32.mrf.mxu0 }
 0xc89   : > { %12890 = vmatmul.mubr.msk.bf16.vlgmr.msra.gmra.mxu1 %vm1583_vm3, %v6071_v26  ;;  %v6041_v25 = vadd.f32 %v16471_v16, %v6040_v37 }
 0xc8a   : > { %6432 = vmatpush1.bf16.msra.mxu1 %v14322_v20  ;;  %v6042_v52 = vpop.f32.mrf.mxu0 }
 0xc8b   : > { %6433 = vmatprep.subr.bf16.mxu1 %v17862_v29  ;;  %v13772_v52 = vld [vmem:[%s17849_s3 + $0x86c] ss:$16 sps:$4 sm:$0xff]  }
 0xc8c   : > { %v6043_v59 = vpop.f32.mrf.mxu0 }
 0xc8d   : > { %v6044_v28 = vadd.f32 %v12172_v56, %v6043_v59  ;;  %v13774_v56 = vld [vmem:[%s17849_s3 + $0x868] ss:$16 sps:$4 sm:$0xff]   ;;  %v13778_v59 = vld [vmem:[%s17849_s3 + $0x88c] ss:$16 sps:$4 sm:$0xff]  }
 0xc8e   : > { %6434 = vmatpush1.bf16.msra.mxu1 %v14328_v38  ;;  %v6045_v1 = vpop.f32.mrf.mxu0 }
 0xc8f   : > { %v6072_v55 = vpack.c.bf16 %v6044_v28, %v6041_v25  ;;  %6435 = vmatprep.subr.bf16.mxu1 %v17862_v29  ;;  %v13780_v25 = vld [vmem:[%s17849_s3 + $0x888] ss:$16 sps:$4 sm:$0xff]   ;;  %v13784_v28 = vld [vmem:[%s17849_s3 + $0x8ac] ss:$16 sps:$4 sm:$0xff]  }
 0xc90   : > { %v6048_v61 = vpop.f32.mrf.mxu0  ;;  %v13786_v1 = vld [vmem:[%s17849_s3 + $0x8a8] ss:$16 sps:$4 sm:$0xff]  }
 0xc91   : > { %12893 = vmatprep.mubr.msk.bf16.mxu1 %vm1583_vm3, %v6072_v55  ;;  %v6049_v16 = vadd.f32 %v16477_v35, %v6048_v61  ;;  %v13790_v55 = vld [vmem:[%s17849_s3 + $0x8cc] ss:$16 sps:$4 sm:$0xff]  }
 0xc92   : > { %6436 = vmatpush1.bf16.msra.mxu1 %v14335_v49  ;;  %v6050_v26 = vpop.f32.mrf.mxu0  ;;  %v10933_v61 = vld [vmem:[%s17849_s3 + $0x8e8] sm:$0x11] }
 0xc93   : > { %6437 = vmatprep.subr.bf16.mxu1 %v17862_v29  ;;  %v13792_v26 = vld [vmem:[%s17849_s3 + $0x8c8] ss:$16 sps:$4 sm:$0xff]  }
 0xc94   : > { %v6051_v62 = vpop.f32.mrf.mxu0 }
 0xc95   : > { %v6052_v50 = vadd.f32 %v12178_v30, %v6051_v62  ;;  %v10957_v30 = vcombine.high %v10933_v61, %v10933_v61  ;;  %v10956_v62 = vcombine.low %v10933_v61, %v10933_v61 }
 0xc96   : > { %6438 = vmatpush1.bf16.msra.mxu1 %v14346_v53  ;;  %v6053_v33 = vpop.f32.mrf.mxu0 }
 0xc97   : > { %v6073_v19 = vpack.c.bf16 %v6052_v50, %v6049_v16  ;;  %6439 = vmatprep.subr.bf16.mxu1 %v17862_v29  ;;  %v13797_v16 = vld [vmem:[%s17850_s4 + $0xc8] sm:$0xff]  }
 0xc98   : > { %v6056_v7 = vpop.f32.mrf.mxu0  ;;  %12901 = vmatprep.subr.bf16.mxu0 %v13797_v16 }
 0xc99   : > { %12894 = vmatmul.mubr.msk.bf16.gmra.mxu1 %vm1583_vm3, %v6073_v19  ;;  %v6057_v35 = vadd.f32 %v16483_v8, %v6056_v7  ;;  %12902 = vmatpush3.bf16.msra.mxu0 %v13797_v16 }
 0xc9a   : > { %6440 = vmatpush1.bf16.msra.mxu1 %v14353_v58  ;;  %v6058_v43 = vpop.f32.mrf.mxu0 }
 0xc9b   : > { %6441 = vmatprep.subr.bf16.mxu1 %v17862_v29 }
 0xc9c   : > { %v6059_v45 = vpop.f32.mrf.mxu0 }
 0xc9d   : > { %v6060_v63 = vadd.f32 %v12184_v27, %v6059_v45 }
 0xc9e   : > { %6442 = vmatpush1.bf16.msra.mxu1 %v14357_v23  ;;  %v6061_v39 = vpop.f32.mrf.mxu0 }
 0xc9f   : > { %v6074_v41 = vpack.c.bf16 %v6060_v63, %v6057_v35  ;;  %6443 = vmatprep.subr.bf16.mxu1 %v17862_v29 }
 0xca0   : > { %v6064_v40 = vpop.f32.mrf.mxu0 }
 0xca1   : > { %v6065_v2 = vadd.f32 %v16485_v18, %v6064_v40  ;;  %12897 = vmatprep.mubr.msk.bf16.mxu1 %vm1583_vm3, %v6074_v41  ;;  %v13766_v18 = vld [vmem:[%s17849_s3 + $0x848] ss:$16 sps:$4 sm:$0xff]   ;;  %v13798_v41 = vld [vmem:[%s17850_s4 + $0xc0] sm:$0xff]  }
 0xca2   : > { %6444 = vmatpush1.bf16.msra.mxu1 %v14268_v21  ;;  %v6066_v10 = vpop.f32.mrf.mxu0  ;;  %12903 = vmatprep.subr.bf16.mxu0 %v13798_v41 }
 0xca3   : > { %v6075_v8 = vpack.c.bf16 %v6065_v2, %v6065_v2  ;;  %6445 = vmatprep.subr.bf16.mxu1 %v17862_v29  ;;  %12904 = vmatpush3.bf16.msra.mxu0 %v13798_v41  ;;  %v13813_v41 = vld [vmem:[%s17849_s3 + $0x934] ss:$16 sps:$4 sm:$0xff]  }
 0xca4   : > { %v6067_v15 = vpop.f32.mrf.mxu0  ;;  %6872 = vmatprep.subr.bf16.mxu0 %v17862_v29 }
 0xca5   : > { %12898 = vmatmul.mubr.msk.bf16.gmra.mxu1 %vm1583_vm3, %v6075_v8 }
 0xca6   : > { %6446 = vmatpush1.bf16.msra.mxu1 %v14251_v3  ;;  %v6068_v37 = vpop.f32.mrf.mxu0  ;;  %10958 = vmatprep.mubr.msk.bf16.mxu1 %vm1062_vm2, %v13768_v36 }
 0xca7   : > { %6461 = vmatprep.subr.bf16.mxu1 %v17862_v29 }
 0xca8   : > { %v12215_v50 = vpop.f32.mrf.mxu0 }
 0xcaa   : > { %6462 = vmatpush2.bf16.msra.mxu1 %v14367_v6  ;;  %v12216_v33 = vpop.f32.mrf.mxu0 }
 0xcab   : > { %12259 = vmatprep.subr.bf16.mxu1 %v17874_v12  ;;  %v16651_v43 = vadd.f32 %v12216_v33, %v12215_v50  ;;  %v13801_v50 = vld [vmem:[%s17849_s3 + $0x8f4] ss:$16 sps:$4 sm:$0xff]   ;;  %v13799_v33 = vld [vmem:[%s17849_s3 + $0x8f0] ss:$16 sps:$4 sm:$0xff]  }
 0xcac   : > { %v16647_v19 = vpop.f32.mrf.mxu0 }
 0xcad   : > { %6464 = vmatmul.mubr.bf16.vlgmr.msra.gmra.mxu1 %v13766_v18 }
 0xcae   : > { %12260 = vmatpush3.bf16.msra.mxu1 %v14216_v44  ;;  %10959 = vmatprep.mubr.msk.bf16.mxu1 %vm1062_vm2, %v13772_v52  ;;  %v16649_v7 = vpop.f32.mrf.mxu0 }
 0xcaf   : > { %12261 = vmatprep.subr.bf16.mxu1 %v14237_v46 }
 0xcb0   : > { %v12221_v27 = vpop.f32.mrf.mxu0 }
 0xcb2   : > { %12262 = vmatpush3.bf16.msra.mxu1 %v14212_v34  ;;  %v12222_v45 = vpop.f32.mrf.mxu0 }
 0xcb3   : > { %12263 = vmatprep.subr.bf16.mxu1 %v14247_v57  ;;  %v16657_v39 = vadd.f32 %v12222_v45, %v12221_v27  ;;  %v13807_v27 = vld [vmem:[%s17849_s3 + $0x914] ss:$16 sps:$4 sm:$0xff]   ;;  %v13805_v45 = vld [vmem:[%s17849_s3 + $0x910] ss:$16 sps:$4 sm:$0xff]  }
 0xcb4   : > { %v16653_v35 = vpop.f32.mrf.mxu0 }
 0xcb5   : > { %6472 = vmatmul.mubr.bf16.gmra.mxu1 %v13774_v56 }
 0xcb6   : > { %12264 = vmatpush3.bf16.msra.mxu1 %v14208_v24  ;;  %10960 = vmatprep.mubr.msk.bf16.mxu1 %vm1062_vm2, %v13778_v59  ;;  %v16655_v63 = vpop.f32.mrf.mxu0 }
 0xcb7   : > { %12265 = vmatprep.subr.bf16.mxu1 %v14255_v9 }
 0xcb8   : > { %v12227_v40 = vpop.f32.mrf.mxu0 }
 0xcba   : > { %12266 = vmatpush3.bf16.msra.mxu1 %v14201_v14  ;;  %v12228_v2 = vpop.f32.mrf.mxu0 }
 0xcbb   : > { %12267 = vmatprep.subr.bf16.mxu1 %v14263_v17  ;;  %v16667_v8 = vadd.f32 %v12228_v2, %v12227_v40  ;;  %v13811_v40 = vld [vmem:[%s17849_s3 + $0x930] ss:$16 sps:$4 sm:$0xff]   ;;  %v13819_v2 = vld [vmem:[%s17849_s3 + $0x954] ss:$16 sps:$4 sm:$0xff]  }
 0xcbc   : > { %v16662_v10 = vpop.f32.mrf.mxu0 }
 0xcbd   : > { %6480 = vmatmul.mubr.bf16.gmra.mxu1 %v13780_v25 }
 0xcbe   : > { %12268 = vmatpush3.bf16.msra.mxu1 %v14197_v5  ;;  %10961 = vmatprep.mubr.msk.bf16.mxu1 %vm1062_vm2, %v13784_v28  ;;  %v16665_v36 = vpop.f32.mrf.mxu0 }
 0xcbf   : > { %12269 = vmatprep.subr.bf16.mxu1 %v14271_v22 }
 0xcc0   : > { %v12233_v15 = vpop.f32.mrf.mxu0 }
 0xcc2   : > { %12270 = vmatpush3.bf16.msra.mxu1 %v14193_v60  ;;  %v12234_v37 = vpop.f32.mrf.mxu0 }
 0xcc3   : > { %12271 = vmatprep.subr.bf16.mxu1 %v14226_v0  ;;  %v16673_v56 = vadd.f32 %v12234_v37, %v12233_v15  ;;  %v13817_v15 = vld [vmem:[%s17849_s3 + $0x950] ss:$16 sps:$4 sm:$0xff]   ;;  %v13825_v37 = vld [vmem:[%s17849_s3 + $0x974] ss:$16 sps:$4 sm:$0xff]  }
 0xcc4   : > { %v16669_v18 = vpop.f32.mrf.mxu0 }
 0xcc5   : > { %6488 = vmatmul.mubr.bf16.gmra.mxu1 %v13786_v1 }
 0xcc6   : > { %12272 = vmatpush3.bf16.msra.mxu1 %v14189_v51  ;;  %10962 = vmatprep.mubr.msk.bf16.mxu1 %vm1062_vm2, %v13790_v55  ;;  %v16671_v52 = vpop.f32.mrf.mxu0 }
 0xcc7   : > { %12273 = vmatprep.subr.bf16.mxu1 %v14220_v54 }
 0xcc8   : > { %v12239_v59 = vpop.f32.mrf.mxu0 }
 0xcca   : > { %12274 = vmatpush3.bf16.msra.mxu1 %v14185_v42  ;;  %v12240_v25 = vpop.f32.mrf.mxu0 }
 0xccb   : > { %v16679_v55 = vadd.f32 %v12240_v25, %v12239_v59  ;;  %v13823_v59 = vld [vmem:[%s17849_s3 + $0x970] ss:$16 sps:$4 sm:$0xff]  }
 0xccc   : > { %v16675_v28 = vpop.f32.mrf.mxu0  ;;  %v10996_v25 = vld [vmem:[%s17849_s3 + $0x990] sm:$0x11] }
 0xccd   : > { %6496 = vmatmul.mubr.bf16.gmra.mxu1 %v13792_v26 }
 0xcce   : > { %10963 = vmatprep.mubr.msk.bf16.mxu1 %vm1062_vm2, %v10957_v30  ;;  %v16677_v1 = vpop.f32.mrf.mxu0 }
 0xcd0   : > { %v12245_v61 = vpop.f32.mrf.mxu0 }
 0xcd2   : > { %v12246_v26 = vpop.f32.mrf.mxu0 }
 0xcd3   : > { %v16681_v16 = vadd.f32 %v12246_v26, %v12245_v61  ;;  %v11019_v61 = vcombine.high %v10996_v25, %v10996_v25  ;;  %v11018_v26 = vcombine.low %v10996_v25, %v10996_v25 }
 0xcd4   : > { %v12248_v30 = vpop.f32.mrf.mxu0 }
 0xcd5   : > { %6504 = vmatmul.mubr.bf16.gmra.mxu1 %v10956_v62 }
 0xcd6   : > { %v12249_v62 = vpop.f32.mrf.mxu0  ;;  %6824 = vmatprep.mubr.bf16.mxu1 %v13801_v50 }
 0xcdd   : > { %6825 = vmatmul.mubr.bf16.vlgmr.msra.gmra.mxu1 %v13799_v33 }
 0xcde   : > { %6832 = vmatprep.mubr.bf16.mxu1 %v13807_v27 }
 0xce5   : > { %6833 = vmatmul.mubr.bf16.gmra.mxu1 %v13805_v45 }
 0xce6   : > { %6840 = vmatprep.mubr.bf16.mxu1 %v13813_v41 }
 0xced   : > { %6841 = vmatmul.mubr.bf16.gmra.mxu1 %v13811_v40 }
 0xcee   : > { %6848 = vmatprep.mubr.bf16.mxu1 %v13819_v2 }
 0xcf5   : > { %6849 = vmatmul.mubr.bf16.gmra.mxu1 %v13817_v15 }
 0xcf6   : > { %6856 = vmatprep.mubr.bf16.mxu1 %v13825_v37 }
 0xcfd   : > { %6857 = vmatmul.mubr.bf16.gmra.mxu1 %v13823_v59 }
 0xcfe   : > { %6864 = vmatprep.mubr.bf16.mxu1 %v11019_v61 }
 0xd05   : > { %6865 = vmatmul.mubr.bf16.gmra.mxu1 %v11018_v26  ;;  %v17929_v26 = vld [vmem:[#allocation7_spill] sm:$0xff] }
 0xd49   : > { %v12891_v30 = vpop.f32.mrf.mxu1 }
 0xd4a   : > { %v16717_v62 = vadd.f32 %v12891_v30, %v16521_v47 }
 0xd4b   : > { %v6145_v50 = vpop.f32.mrf.mxu1 }
 0xd4c   : > { %v16720_v33 = vadd.f32 %v6145_v50, %v16524_v31 }
 0xd4d   : > { %v12892_v27 = vpop.f32.mrf.mxu1 }
 0xd4e   : > { %v16723_v45 = vadd.f32 %v12892_v27, %v16527_v4 }
 0xd4f   : > { %v16725_v41 = vpop.f32.mrf.mxu1 }
 0xd50   : > { %17927 = vst [vmem:[#allocation36_spill] sm:$0xff] %v16725_v41 }
 0xd59   : > { %v12895_v40 = vpop.f32.mrf.mxu1 }
 0xd5a   : > { %v16728_v2 = vadd.f32 %v12895_v40, %v16532_v48  ;;  %v12220_v40 = vadd.f32 %v16649_v7, %v16647_v19 }
 0xd5b   : > { %v6161_v15 = vpop.f32.mrf.mxu1 }
 0xd5c   : > { %v16731_v37 = vadd.f32 %v6161_v15, %v16535_v13 }
 0xd5d   : > { %v12896_v47 = vpop.f32.mrf.mxu1 }
 0xd5e   : > { %v16734_v59 = vadd.f32 %v12896_v47, %v16538_v32 }
 0xd5f   : > { %v16736_v31 = vpop.f32.mrf.mxu1 }
 0xd60   : > { %17928 = vst [vmem:[#allocation37_spill] sm:$0xff] %v16736_v31 }
 0xd65   : > { %v12899_v25 = vpop.f32.mrf.mxu1 }
 0xd66   : > { %v16739_v4 = vadd.f32 %v12899_v25, %v16543_v11 }
 0xd67   : > { %v6177_v61 = vpop.f32.mrf.mxu1 }
 0xd68   : > { %v16742_v30 = vadd.f32 %v6177_v61, %v17929_v26  ;;  %v12226_v61 = vadd.f32 %v16655_v63, %v16653_v35 }
 0xd69   : > { %v12900_v48 = vpop.f32.mrf.mxu1 }
 0xd6a   : > { %17930 = vst [vmem:[#allocation7_spill] sm:$0xff] %v16742_v30 }
 0xd6b   : > { %v16744_v50 = vpop.f32.mrf.mxu1 }
 0xd6c   : > { %17931 = vst [vmem:[#allocation38_spill] sm:$0xff] %v16744_v50 }
 0xd6d   : > { %v6465_v27 = vpop.f32.mrf.mxu1 }
 0xd6e   : > { %v6466_v15 = vadd.f32 %v16651_v43, %v6465_v27  ;;  %v12232_v43 = vadd.f32 %v16665_v36, %v16662_v10  ;;  %v12238_v10 = vadd.f32 %v16671_v52, %v16669_v18  ;;  %v12244_v18 = vadd.f32 %v16677_v1, %v16675_v28  ;;  %v13804_v1 = vld [vmem:[%s17849_s3 + $0x8fc] ss:$16 sps:$4 sm:$0xff]  }
 0xd6f   : > { %v6467_v13 = vpop.f32.mrf.mxu1 }
 0xd71   : > { %v6468_v32 = vpop.f32.mrf.mxu1 }
 0xd72   : > { %v6469_v47 = vadd.f32 %v12220_v40, %v6468_v32 }
 0xd73   : > { %v6470_v31 = vpop.f32.mrf.mxu1 }
 0xd74   : > { %v6511_v41 = vpack.c.bf16 %v6469_v47, %v6466_v15 }
 0xd75   : > { %v6473_v11 = vpop.f32.mrf.mxu1 }
 0xd76   : > { %12905 = vmatprep.mubr.msk.bf16.mxu0 %vm1583_vm3, %v6511_v41  ;;  %v6474_v48 = vadd.f32 %v16657_v39, %v6473_v11 }
 0xd77   : > { %v6475_v25 = vpop.f32.mrf.mxu1 }
 0xd79   : > { %v6476_v26 = vpop.f32.mrf.mxu1 }
 0xd7a   : > { %v6477_v13 = vadd.f32 %v12226_v61, %v6476_v26 }
 0xd7b   : > { %v6478_v50 = vpop.f32.mrf.mxu1 }
 0xd7c   : > { %v6512_v30 = vpack.c.bf16 %v6477_v13, %v6474_v48 }
 0xd7d   : > { %v6481_v19 = vpop.f32.mrf.mxu1 }
 0xd7e   : > { %12906 = vmatmul.mubr.msk.bf16.vlgmr.msra.gmra.mxu0 %vm1583_vm3, %v6512_v30  ;;  %v6482_v35 = vadd.f32 %v16667_v8, %v6481_v19 }
 0xd7f   : > { %6873 = vmatpush1.bf16.msra.mxu0 %v14322_v20  ;;  %v6483_v7 = vpop.f32.mrf.mxu1 }
 0xd80   : > { %6874 = vmatprep.subr.bf16.mxu0 %v17862_v29  ;;  %v13808_v7 = vld [vmem:[%s17849_s3 + $0x91c] ss:$16 sps:$4 sm:$0xff]  }
 0xd81   : > { %v6484_v41 = vpop.f32.mrf.mxu1 }
 0xd82   : > { %v6485_v63 = vadd.f32 %v12232_v43, %v6484_v41  ;;  %v13810_v43 = vld [vmem:[%s17849_s3 + $0x918] ss:$16 sps:$4 sm:$0xff]   ;;  %v13814_v41 = vld [vmem:[%s17849_s3 + $0x93c] ss:$16 sps:$4 sm:$0xff]  }
 0xd83   : > { %6875 = vmatpush1.bf16.msra.mxu0 %v14328_v38  ;;  %v6486_v39 = vpop.f32.mrf.mxu1 }
 0xd84   : > { %v6513_v31 = vpack.c.bf16 %v6485_v63, %v6482_v35  ;;  %6876 = vmatprep.subr.bf16.mxu0 %v17862_v29  ;;  %v13816_v35 = vld [vmem:[%s17849_s3 + $0x938] ss:$16 sps:$4 sm:$0xff]   ;;  %v13820_v63 = vld [vmem:[%s17849_s3 + $0x95c] ss:$16 sps:$4 sm:$0xff]  }
 0xd85   : > { %v6489_v50 = vpop.f32.mrf.mxu1  ;;  %v13822_v39 = vld [vmem:[%s17849_s3 + $0x958] ss:$16 sps:$4 sm:$0xff]  }
 0xd86   : > { %12909 = vmatprep.mubr.msk.bf16.mxu0 %vm1583_vm3, %v6513_v31  ;;  %v6490_v8 = vadd.f32 %v16673_v56, %v6489_v50  ;;  %v13826_v31 = vld [vmem:[%s17849_s3 + $0x97c] ss:$16 sps:$4 sm:$0xff]  }
 0xd87   : > { %6877 = vmatpush1.bf16.msra.mxu0 %v14335_v49  ;;  %v6491_v30 = vpop.f32.mrf.mxu1  ;;  %v10997_v50 = vld [vmem:[%s17849_s3 + $0x998] sm:$0x11] }
 0xd88   : > { %6878 = vmatprep.subr.bf16.mxu0 %v17862_v29  ;;  %v13828_v30 = vld [vmem:[%s17849_s3 + $0x978] ss:$16 sps:$4 sm:$0xff]  }
 0xd89   : > { %v6492_v36 = vpop.f32.mrf.mxu1 }
 0xd8a   : > { %v6493_v27 = vadd.f32 %v12238_v10, %v6492_v36  ;;  %v11021_v10 = vcombine.high %v10997_v50, %v10997_v50  ;;  %v11020_v36 = vcombine.low %v10997_v50, %v10997_v50 }
 0xd8b   : > { %6879 = vmatpush1.bf16.msra.mxu0 %v14346_v53  ;;  %v6494_v40 = vpop.f32.mrf.mxu1 }
 0xd8c   : > { %v6514_v32 = vpack.c.bf16 %v6493_v27, %v6490_v8  ;;  %6880 = vmatprep.subr.bf16.mxu0 %v17862_v29  ;;  %v13833_v8 = vld [vmem:[%s17850_s4 + $0xd8] sm:$0xff]  }
 0xd8d   : > { %v6497_v15 = vpop.f32.mrf.mxu1  ;;  %12917 = vmatprep.subr.bf16.mxu1 %v13833_v8 }
 0xd8e   : > { %12910 = vmatmul.mubr.msk.bf16.gmra.mxu0 %vm1583_vm3, %v6514_v32  ;;  %v6498_v56 = vadd.f32 %v16679_v55, %v6497_v15  ;;  %12918 = vmatpush3.bf16.msra.mxu1 %v13833_v8 }
 0xd8f   : > { %6881 = vmatpush1.bf16.msra.mxu0 %v14353_v58  ;;  %v6499_v47 = vpop.f32.mrf.mxu1 }
 0xd90   : > { %6882 = vmatprep.subr.bf16.mxu0 %v17862_v29 }
 0xd91   : > { %v6500_v52 = vpop.f32.mrf.mxu1 }
 0xd92   : > { %v6501_v11 = vadd.f32 %v12244_v18, %v6500_v52 }
 0xd93   : > { %6883 = vmatpush1.bf16.msra.mxu0 %v14357_v23  ;;  %v6502_v25 = vpop.f32.mrf.mxu1 }
 0xd94   : > { %v6515_v61 = vpack.c.bf16 %v6501_v11, %v6498_v56  ;;  %6884 = vmatprep.subr.bf16.mxu0 %v17862_v29 }
 0xd95   : > { %v6505_v26 = vpop.f32.mrf.mxu1 }
 0xd96   : > { %v6506_v48 = vadd.f32 %v16681_v16, %v6505_v26  ;;  %12913 = vmatprep.mubr.msk.bf16.mxu0 %vm1583_vm3, %v6515_v61  ;;  %v13802_v16 = vld [vmem:[%s17849_s3 + $0x8f8] ss:$16 sps:$4 sm:$0xff]   ;;  %v13834_v61 = vld [vmem:[%s17850_s4 + $0xd0] sm:$0xff]  }
 0xd97   : > { %6885 = vmatpush1.bf16.msra.mxu0 %v14268_v21  ;;  %v6507_v28 = vpop.f32.mrf.mxu1  ;;  %12919 = vmatprep.subr.bf16.mxu1 %v13834_v61 }
 0xd98   : > { %v6516_v55 = vpack.c.bf16 %v6506_v48, %v6506_v48  ;;  %6886 = vmatprep.subr.bf16.mxu0 %v17862_v29  ;;  %12920 = vmatpush3.bf16.msra.mxu1 %v13834_v61  ;;  %v13849_v61 = vld [vmem:[%s17849_s3 + $0x9e4] ss:$16 sps:$4 sm:$0xff]  }
 0xd99   : > { %v6508_v13 = vpop.f32.mrf.mxu1  ;;  %7313 = vmatprep.subr.bf16.mxu1 %v17862_v29 }
 0xd9a   : > { %12914 = vmatmul.mubr.msk.bf16.gmra.mxu0 %vm1583_vm3, %v6516_v55 }
 0xd9b   : > { %6887 = vmatpush1.bf16.msra.mxu0 %v14251_v3  ;;  %v6509_v19 = vpop.f32.mrf.mxu1  ;;  %11022 = vmatprep.mubr.msk.bf16.mxu0 %vm1062_vm2, %v13804_v1 }
 0xd9c   : > { %6902 = vmatprep.subr.bf16.mxu0 %v17862_v29 }
 0xd9d   : > { %v12275_v27 = vpop.f32.mrf.mxu1 }
 0xd9f   : > { %6903 = vmatpush2.bf16.msra.mxu0 %v14367_v6  ;;  %v12276_v40 = vpop.f32.mrf.mxu1 }
 0xda0   : > { %12319 = vmatprep.subr.bf16.mxu0 %v17874_v12  ;;  %v16847_v47 = vadd.f32 %v12276_v40, %v12275_v27  ;;  %v13837_v27 = vld [vmem:[%s17849_s3 + $0x9a4] ss:$16 sps:$4 sm:$0xff]   ;;  %v13835_v40 = vld [vmem:[%s17849_s3 + $0x9a0] ss:$16 sps:$4 sm:$0xff]  }
 0xda1   : > { %v16843_v32 = vpop.f32.mrf.mxu1 }
 0xda2   : > { %6905 = vmatmul.mubr.bf16.vlgmr.msra.gmra.mxu0 %v13802_v16 }
 0xda3   : > { %12320 = vmatpush3.bf16.msra.mxu0 %v14216_v44  ;;  %11023 = vmatprep.mubr.msk.bf16.mxu0 %vm1062_vm2, %v13808_v7  ;;  %v16845_v15 = vpop.f32.mrf.mxu1 }
 0xda4   : > { %12321 = vmatprep.subr.bf16.mxu0 %v14237_v46 }
 0xda5   : > { %v12281_v18 = vpop.f32.mrf.mxu1 }
 0xda7   : > { %12322 = vmatpush3.bf16.msra.mxu0 %v14212_v34  ;;  %v12282_v52 = vpop.f32.mrf.mxu1 }
 0xda8   : > { %12323 = vmatprep.subr.bf16.mxu0 %v14247_v57  ;;  %v16853_v25 = vadd.f32 %v12282_v52, %v12281_v18  ;;  %v13843_v18 = vld [vmem:[%s17849_s3 + $0x9c4] ss:$16 sps:$4 sm:$0xff]   ;;  %v13841_v52 = vld [vmem:[%s17849_s3 + $0x9c0] ss:$16 sps:$4 sm:$0xff]  }
 0xda9   : > { %v16849_v56 = vpop.f32.mrf.mxu1 }
 0xdaa   : > { %6913 = vmatmul.mubr.bf16.gmra.mxu0 %v13810_v43 }
 0xdab   : > { %12324 = vmatpush3.bf16.msra.mxu0 %v14208_v24  ;;  %11024 = vmatprep.mubr.msk.bf16.mxu0 %vm1062_vm2, %v13814_v41  ;;  %v16851_v11 = vpop.f32.mrf.mxu1 }
 0xdac   : > { %12325 = vmatprep.subr.bf16.mxu0 %v14255_v9 }
 0xdad   : > { %v12287_v26 = vpop.f32.mrf.mxu1 }
 0xdaf   : > { %12326 = vmatpush3.bf16.msra.mxu0 %v14201_v14  ;;  %v12288_v48 = vpop.f32.mrf.mxu1 }
 0xdb0   : > { %12327 = vmatprep.subr.bf16.mxu0 %v14263_v17  ;;  %v16863_v55 = vadd.f32 %v12288_v48, %v12287_v26  ;;  %v13847_v26 = vld [vmem:[%s17849_s3 + $0x9e0] ss:$16 sps:$4 sm:$0xff]   ;;  %v13855_v48 = vld [vmem:[%s17849_s3 + $0xa04] ss:$16 sps:$4 sm:$0xff]  }
 0xdb1   : > { %v16858_v28 = vpop.f32.mrf.mxu1 }
 0xdb2   : > { %6921 = vmatmul.mubr.bf16.gmra.mxu0 %v13816_v35 }
 0xdb3   : > { %12328 = vmatpush3.bf16.msra.mxu0 %v14197_v5  ;;  %11025 = vmatprep.mubr.msk.bf16.mxu0 %vm1062_vm2, %v13820_v63  ;;  %v16861_v1 = vpop.f32.mrf.mxu1 }
 0xdb4   : > { %12329 = vmatprep.subr.bf16.mxu0 %v14271_v22 }
 0xdb5   : > { %v12293_v13 = vpop.f32.mrf.mxu1 }
 0xdb7   : > { %12330 = vmatpush3.bf16.msra.mxu0 %v14193_v60  ;;  %v12294_v19 = vpop.f32.mrf.mxu1 }
 0xdb8   : > { %12331 = vmatprep.subr.bf16.mxu0 %v14226_v0  ;;  %v16869_v43 = vadd.f32 %v12294_v19, %v12293_v13  ;;  %v13853_v13 = vld [vmem:[%s17849_s3 + $0xa00] ss:$16 sps:$4 sm:$0xff]   ;;  %v13861_v19 = vld [vmem:[%s17849_s3 + $0xa24] ss:$16 sps:$4 sm:$0xff]  }
 0xdb9   : > { %v16865_v16 = vpop.f32.mrf.mxu1 }
 0xdba   : > { %6929 = vmatmul.mubr.bf16.gmra.mxu0 %v13822_v39 }
 0xdbb   : > { %12332 = vmatpush3.bf16.msra.mxu0 %v14189_v51  ;;  %11026 = vmatprep.mubr.msk.bf16.mxu0 %vm1062_vm2, %v13826_v31  ;;  %v16867_v7 = vpop.f32.mrf.mxu1 }
 0xdbc   : > { %12333 = vmatprep.subr.bf16.mxu0 %v14220_v54 }
 0xdbd   : > { %v12299_v41 = vpop.f32.mrf.mxu1 }
 0xdbf   : > { %12334 = vmatpush3.bf16.msra.mxu0 %v14185_v42  ;;  %v12300_v35 = vpop.f32.mrf.mxu1 }
 0xdc0   : > { %v16875_v31 = vadd.f32 %v12300_v35, %v12299_v41  ;;  %v13859_v41 = vld [vmem:[%s17849_s3 + $0xa20] ss:$16 sps:$4 sm:$0xff]  }
 0xdc1   : > { %v16871_v63 = vpop.f32.mrf.mxu1  ;;  %v11060_v35 = vld [vmem:[%s17849_s3 + $0xa40] sm:$0x11] }
 0xdc2   : > { %6937 = vmatmul.mubr.bf16.gmra.mxu0 %v13828_v30 }
 0xdc3   : > { %11027 = vmatprep.mubr.msk.bf16.mxu0 %vm1062_vm2, %v11021_v10  ;;  %v16873_v39 = vpop.f32.mrf.mxu1 }
 0xdc5   : > { %v12305_v50 = vpop.f32.mrf.mxu1 }
 0xdc7   : > { %v12306_v30 = vpop.f32.mrf.mxu1 }
 0xdc8   : > { %v16877_v8 = vadd.f32 %v12306_v30, %v12305_v50  ;;  %v11083_v50 = vcombine.high %v11060_v35, %v11060_v35  ;;  %v11082_v30 = vcombine.low %v11060_v35, %v11060_v35 }
 0xdc9   : > { %v12308_v10 = vpop.f32.mrf.mxu1 }
 0xdca   : > { %6945 = vmatmul.mubr.bf16.gmra.mxu0 %v11020_v36 }
 0xdcb   : > { %v12309_v36 = vpop.f32.mrf.mxu1  ;;  %7265 = vmatprep.mubr.bf16.mxu0 %v13837_v27 }
 0xdd2   : > { %7266 = vmatmul.mubr.bf16.vlgmr.msra.gmra.mxu0 %v13835_v40 }
 0xdd3   : > { %7273 = vmatprep.mubr.bf16.mxu0 %v13843_v18 }
 0xdda   : > { %7274 = vmatmul.mubr.bf16.gmra.mxu0 %v13841_v52 }
 0xddb   : > { %7281 = vmatprep.mubr.bf16.mxu0 %v13849_v61 }
 0xde2   : > { %7282 = vmatmul.mubr.bf16.gmra.mxu0 %v13847_v26 }
 0xde3   : > { %7289 = vmatprep.mubr.bf16.mxu0 %v13855_v48 }
 0xdea   : > { %7290 = vmatmul.mubr.bf16.gmra.mxu0 %v13853_v13 }
 0xdeb   : > { %7297 = vmatprep.mubr.bf16.mxu0 %v13861_v19 }
 0xdf2   : > { %7298 = vmatmul.mubr.bf16.gmra.mxu0 %v13859_v41 }
 0xdf3   : > { %7305 = vmatprep.mubr.bf16.mxu0 %v11083_v50 }
 0xdfa   : > { %7306 = vmatmul.mubr.bf16.gmra.mxu0 %v11082_v30  ;;  %v17934_v30 = vld [vmem:[#allocation7_spill] sm:$0xff] }
 0xe3e   : > { %v12907_v10 = vpop.f32.mrf.mxu0 }
 0xe3f   : > { %v16913_v36 = vadd.f32 %v12907_v10, %v16717_v62 }
 0xe40   : > { %v6586_v27 = vpop.f32.mrf.mxu0 }
 0xe41   : > { %v16916_v40 = vadd.f32 %v6586_v27, %v16720_v33 }
 0xe42   : > { %v12908_v18 = vpop.f32.mrf.mxu0 }
 0xe43   : > { %v16919_v52 = vadd.f32 %v12908_v18, %v16723_v45 }
 0xe44   : > { %v16921_v61 = vpop.f32.mrf.mxu0 }
 0xe45   : > { %17932 = vst [vmem:[#allocation39_spill] sm:$0xff] %v16921_v61 }
 0xe4e   : > { %v12911_v26 = vpop.f32.mrf.mxu0 }
 0xe4f   : > { %v16924_v48 = vadd.f32 %v12911_v26, %v16728_v2  ;;  %v12280_v26 = vadd.f32 %v16845_v15, %v16843_v32 }
 0xe50   : > { %v6602_v13 = vpop.f32.mrf.mxu0 }
 0xe51   : > { %v16927_v19 = vadd.f32 %v6602_v13, %v16731_v37 }
 0xe52   : > { %v12912_v62 = vpop.f32.mrf.mxu0 }
 0xe53   : > { %v16930_v41 = vadd.f32 %v12912_v62, %v16734_v59 }
 0xe54   : > { %v16932_v33 = vpop.f32.mrf.mxu0 }
 0xe55   : > { %17933 = vst [vmem:[#allocation40_spill] sm:$0xff] %v16932_v33 }
 0xe5a   : > { %v12915_v35 = vpop.f32.mrf.mxu0 }
 0xe5b   : > { %v16935_v45 = vadd.f32 %v12915_v35, %v16739_v4 }
 0xe5c   : > { %v6618_v50 = vpop.f32.mrf.mxu0 }
 0xe5d   : > { %v16938_v10 = vadd.f32 %v6618_v50, %v17934_v30  ;;  %v12286_v50 = vadd.f32 %v16851_v11, %v16849_v56 }
 0xe5e   : > { %v12916_v2 = vpop.f32.mrf.mxu0 }
 0xe5f   : > { %17935 = vst [vmem:[#allocation7_spill] sm:$0xff] %v16938_v10 }
 0xe60   : > { %v16940_v27 = vpop.f32.mrf.mxu0 }
 0xe61   : > { %17936 = vst [vmem:[#allocation41_spill] sm:$0xff] %v16940_v27 }
 0xe62   : > { %v6906_v18 = vpop.f32.mrf.mxu0 }
 0xe63   : > { %v6907_v13 = vadd.f32 %v16847_v47, %v6906_v18  ;;  %v12292_v47 = vadd.f32 %v16861_v1, %v16858_v28  ;;  %v12298_v28 = vadd.f32 %v16867_v7, %v16865_v16  ;;  %v12304_v16 = vadd.f32 %v16873_v39, %v16871_v63  ;;  %v13840_v39 = vld [vmem:[%s17849_s3 + $0x9ac] ss:$16 sps:$4 sm:$0xff]  }
 0xe64   : > { %v6908_v37 = vpop.f32.mrf.mxu0 }
 0xe66   : > { %v6909_v59 = vpop.f32.mrf.mxu0 }
 0xe67   : > { %v6910_v62 = vadd.f32 %v12280_v26, %v6909_v59 }
 0xe68   : > { %v6911_v33 = vpop.f32.mrf.mxu0 }
 0xe69   : > { %v6952_v61 = vpack.c.bf16 %v6910_v62, %v6907_v13 }
 0xe6a   : > { %v6914_v4 = vpop.f32.mrf.mxu0 }
 0xe6b   : > { %12921 = vmatprep.mubr.msk.bf16.mxu1 %vm1583_vm3, %v6952_v61  ;;  %v6915_v2 = vadd.f32 %v16853_v25, %v6914_v4 }
 0xe6c   : > { %v6916_v35 = vpop.f32.mrf.mxu0 }
 0xe6e   : > { %v6917_v30 = vpop.f32.mrf.mxu0 }
 0xe6f   : > { %v6918_v37 = vadd.f32 %v12286_v50, %v6917_v30 }
 0xe70   : > { %v6919_v27 = vpop.f32.mrf.mxu0 }
 0xe71   : > { %v6953_v10 = vpack.c.bf16 %v6918_v37, %v6915_v2 }
 0xe72   : > { %v6922_v32 = vpop.f32.mrf.mxu0 }
 0xe73   : > { %12922 = vmatmul.mubr.msk.bf16.vlgmr.msra.gmra.mxu1 %vm1583_vm3, %v6953_v10  ;;  %v6923_v56 = vadd.f32 %v16863_v55, %v6922_v32 }
 0xe74   : > { %7314 = vmatpush1.bf16.msra.mxu1 %v14322_v20  ;;  %v6924_v15 = vpop.f32.mrf.mxu0 }
 0xe75   : > { %7315 = vmatprep.subr.bf16.mxu1 %v17862_v29  ;;  %v13844_v15 = vld [vmem:[%s17849_s3 + $0x9cc] ss:$16 sps:$4 sm:$0xff]  }
 0xe76   : > { %v6925_v61 = vpop.f32.mrf.mxu0 }
 0xe77   : > { %v6926_v11 = vadd.f32 %v12292_v47, %v6925_v61  ;;  %v13846_v47 = vld [vmem:[%s17849_s3 + $0x9c8] ss:$16 sps:$4 sm:$0xff]   ;;  %v13850_v61 = vld [vmem:[%s17849_s3 + $0x9ec] ss:$16 sps:$4 sm:$0xff]  }
 0xe78   : > { %7316 = vmatpush1.bf16.msra.mxu1 %v14328_v38  ;;  %v6927_v25 = vpop.f32.mrf.mxu0 }
 0xe79   : > { %v6954_v33 = vpack.c.bf16 %v6926_v11, %v6923_v56  ;;  %7317 = vmatprep.subr.bf16.mxu1 %v17862_v29 }
 0xe7a   : > { %v6930_v27 = vpop.f32.mrf.mxu0 }
 0xe7b   : > { %12925 = vmatprep.mubr.msk.bf16.mxu1 %vm1583_vm3, %v6954_v33  ;;  %v6931_v55 = vadd.f32 %v16869_v43, %v6930_v27  ;;  %v13870_v33 = vld [vmem:[%s17850_s4 + $0xe0] sm:$0xff]  }
 0xe7c   : > { %7318 = vmatpush1.bf16.msra.mxu1 %v14335_v49  ;;  %v6932_v10 = vpop.f32.mrf.mxu0 }
 0xe7d   : > { %7319 = vmatprep.subr.bf16.mxu1 %v17862_v29 }
 0xe7e   : > { %v6933_v1 = vpop.f32.mrf.mxu0 }
 0xe7f   : > { %v6934_v18 = vadd.f32 %v12298_v28, %v6933_v1 }
 0xe80   : > { %7320 = vmatpush1.bf16.msra.mxu1 %v14346_v53  ;;  %v6935_v26 = vpop.f32.mrf.mxu0 }
 0xe81   : > { %v6955_v59 = vpack.c.bf16 %v6934_v18, %v6931_v55  ;;  %7321 = vmatprep.subr.bf16.mxu1 %v17862_v29 }
 0xe82   : > { %v6938_v13 = vpop.f32.mrf.mxu0 }
 0xe83   : > { %12926 = vmatmul.mubr.msk.bf16.gmra.mxu1 %vm1583_vm3, %v6955_v59  ;;  %v6939_v43 = vadd.f32 %v16875_v31, %v6938_v13 }
 0xe84   : > { %7322 = vmatpush1.bf16.msra.mxu1 %v14353_v58  ;;  %v6940_v62 = vpop.f32.mrf.mxu0 }
 0xe85   : > { %7323 = vmatprep.subr.bf16.mxu1 %v17862_v29 }
 0xe86   : > { %v6941_v7 = vpop.f32.mrf.mxu0 }
 0xe87   : > { %v6942_v4 = vadd.f32 %v12304_v16, %v6941_v7 }
 0xe88   : > { %7324 = vmatpush1.bf16.msra.mxu1 %v14357_v23  ;;  %v6943_v35 = vpop.f32.mrf.mxu0 }
 0xe89   : > { %v6956_v50 = vpack.c.bf16 %v6942_v4, %v6939_v43  ;;  %7325 = vmatprep.subr.bf16.mxu1 %v17862_v29 }
 0xe8a   : > { %v6946_v30 = vpop.f32.mrf.mxu0 }
 0xe8b   : > { %v6947_v2 = vadd.f32 %v16877_v8, %v6946_v30  ;;  %12929 = vmatprep.mubr.msk.bf16.mxu1 %vm1583_vm3, %v6956_v50  ;;  %v13838_v8 = vld [vmem:[%s17849_s3 + $0x9a8] ss:$16 sps:$4 sm:$0xff]  }
 0xe8c   : > { %7326 = vmatpush1.bf16.msra.mxu1 %v14268_v21  ;;  %v6948_v63 = vpop.f32.mrf.mxu0 }
 0xe8d   : > { %v6957_v31 = vpack.c.bf16 %v6947_v2, %v6947_v2  ;;  %7327 = vmatprep.subr.bf16.mxu1 %v17862_v29 }
 0xe8e   : > { %v6949_v37 = vpop.f32.mrf.mxu0 }
 0xe8f   : > { %12930 = vmatmul.mubr.msk.bf16.gmra.mxu1 %vm1583_vm3, %v6957_v31  ;;  %v13873_v31 = vld [vmem:[%s17849_s3 + $0xa54] ss:$16 sps:$4 sm:$0xff]   ;;  %v13871_v37 = vld [vmem:[%s17849_s3 + $0xa50] ss:$16 sps:$4 sm:$0xff]  }
 0xe90   : > { %7328 = vmatpush1.bf16.msra.mxu1 %v14251_v3  ;;  %v6950_v32 = vpop.f32.mrf.mxu0  ;;  %11086 = vmatprep.mubr.msk.bf16.mxu1 %vm1062_vm2, %v13840_v39 }
 0xe91   : > { %7343 = vmatprep.subr.bf16.mxu1 %v17862_v29  ;;  %v13879_v32 = vld [vmem:[%s17849_s3 + $0xa74] ss:$16 sps:$4 sm:$0xff]  }
 0xe94   : > { %7344 = vmatpush2.bf16.msra.mxu1 %v14367_v6 }
 0xe95   : > { %12379 = vmatprep.subr.bf16.mxu1 %v17874_v12 }
 0xe97   : > { %7346 = vmatmul.mubr.bf16.vlgmr.msra.gmra.mxu1 %v13838_v8  ;;  %v13877_v8 = vld [vmem:[%s17849_s3 + $0xa70] ss:$16 sps:$4 sm:$0xff]  }
 0xe98   : > { %12380 = vmatpush3.bf16.msra.mxu1 %v14216_v44  ;;  %11087 = vmatprep.mubr.msk.bf16.mxu1 %vm1062_vm2, %v13844_v15  ;;  %v13852_v44 = vld [vmem:[%s17849_s3 + $0x9e8] ss:$16 sps:$4 sm:$0xff]   ;;  %v13885_v15 = vld [vmem:[%s17849_s3 + $0xa94] ss:$16 sps:$4 sm:$0xff]  }
 0xe99   : > { %12381 = vmatprep.subr.bf16.mxu1 %v14237_v46 }
 0xe9c   : > { %12382 = vmatpush3.bf16.msra.mxu1 %v14212_v34  ;;  %v13856_v34 = vld [vmem:[%s17849_s3 + $0xa0c] ss:$16 sps:$4 sm:$0xff]  }
 0xe9d   : > { %12383 = vmatprep.subr.bf16.mxu1 %v14247_v57 }
 0xe9f   : > { %7354 = vmatmul.mubr.bf16.gmra.mxu1 %v13846_v47  ;;  %v13883_v47 = vld [vmem:[%s17849_s3 + $0xa90] ss:$16 sps:$4 sm:$0xff]  }
 0xea0   : > { %12384 = vmatpush3.bf16.msra.mxu1 %v14208_v24  ;;  %11088 = vmatprep.mubr.msk.bf16.mxu1 %vm1062_vm2, %v13850_v61  ;;  %v13858_v24 = vld [vmem:[%s17849_s3 + $0xa08] ss:$16 sps:$4 sm:$0xff]   ;;  %v13891_v61 = vld [vmem:[%s17849_s3 + $0xab4] ss:$16 sps:$4 sm:$0xff]  }
 0xea1   : > { %12385 = vmatprep.subr.bf16.mxu1 %v14255_v9 }
 0xea4   : > { %12386 = vmatpush3.bf16.msra.mxu1 %v14201_v14  ;;  %v13862_v14 = vld [vmem:[%s17849_s3 + $0xa2c] ss:$16 sps:$4 sm:$0xff]  }
 0xea5   : > { %12387 = vmatprep.subr.bf16.mxu1 %v14263_v17 }
 0xea7   : > { %7362 = vmatmul.mubr.bf16.gmra.mxu1 %v13852_v44  ;;  %v13889_v44 = vld [vmem:[%s17849_s3 + $0xab0] ss:$16 sps:$4 sm:$0xff]  }
 0xea8   : > { %12388 = vmatpush3.bf16.msra.mxu1 %v14197_v5  ;;  %11089 = vmatprep.mubr.msk.bf16.mxu1 %vm1062_vm2, %v13856_v34  ;;  %v11061_v5 = vld [vmem:[%s17849_s3 + $0xa48] sm:$0x11]  ;;  %v13897_v34 = vld [vmem:[%s17849_s3 + $0xad4] ss:$16 sps:$4 sm:$0xff]  }
 0xea9   : > { %12389 = vmatprep.subr.bf16.mxu1 %v14271_v22  ;;  %v11085_v46 = vcombine.high %v11061_v5, %v11061_v5 }
 0xeac   : > { %12390 = vmatpush3.bf16.msra.mxu1 %v14193_v60  ;;  %v13864_v60 = vld [vmem:[%s17849_s3 + $0xa28] ss:$16 sps:$4 sm:$0xff]  }
 0xead   : > { %12391 = vmatprep.subr.bf16.mxu1 %v14226_v0  ;;  %v11084_v0 = vcombine.low %v11061_v5, %v11061_v5 }
 0xeaf   : > { %7370 = vmatmul.mubr.bf16.gmra.mxu1 %v13858_v24  ;;  %v13895_v24 = vld [vmem:[%s17849_s3 + $0xad0] ss:$16 sps:$4 sm:$0xff]  }
 0xeb0   : > { %12392 = vmatpush3.bf16.msra.mxu1 %v14189_v51  ;;  %11090 = vmatprep.mubr.msk.bf16.mxu1 %vm1062_vm2, %v13862_v14  ;;  %v13869_v51 = vld [vmem:[%s17850_s4 + $0xe8] sm:$0xff]   ;;  %v11124_v14 = vld [vmem:[%s17849_s3 + $0xaf0] sm:$0x11] }
 0xeb1   : > { %12393 = vmatprep.subr.bf16.mxu1 %v14220_v54  ;;  %12933 = vmatprep.subr.bf16.mxu0 %v13869_v51  ;;  %v12335_v54 = vpop.f32.mrf.mxu0  ;;  %v11147_v5 = vcombine.high %v11124_v14, %v11124_v14 }
 0xeb2   : > { %12934 = vmatpush3.bf16.msra.mxu0 %v13869_v51 }
 0xeb3   : > { %v12336_v57 = vpop.f32.mrf.mxu0  ;;  %12935 = vmatprep.subr.bf16.mxu0 %v13870_v33 }
 0xeb4   : > { %12394 = vmatpush3.bf16.msra.mxu1 %v14185_v42  ;;  %v17043_v22 = vadd.f32 %v12336_v57, %v12335_v54 }
 0xeb5   : > { %v17039_v9 = vpop.f32.mrf.mxu0 }
 0xeb6   : > { %12936 = vmatpush3.bf16.msra.mxu0 %v13870_v33 }
 0xeb7   : > { %7378 = vmatmul.mubr.bf16.gmra.mxu1 %v13864_v60  ;;  %v17041_v17 = vpop.f32.mrf.mxu0  ;;  %7754 = vmatprep.subr.bf16.mxu0 %v17862_v29  ;;  %v11146_v60 = vcombine.low %v11124_v14, %v11124_v14 }
 0xeb8   : > { %11091 = vmatprep.mubr.msk.bf16.mxu1 %vm1062_vm2, %v11085_v46 }
 0xeb9   : > { %v12341_v42 = vpop.f32.mrf.mxu0 }
 0xebb   : > { %v12342_v12 = vpop.f32.mrf.mxu0 }
 0xebc   : > { %v17049_v25 = vadd.f32 %v12342_v12, %v12341_v42 }
 0xebd   : > { %v17045_v56 = vpop.f32.mrf.mxu0 }
 0xebf   : > { %7386 = vmatmul.mubr.bf16.gmra.mxu1 %v11084_v0  ;;  %v17047_v11 = vpop.f32.mrf.mxu0 }
 0xec0   : > { %7706 = vmatprep.mubr.bf16.mxu1 %v13873_v31  ;;  %v12340_v31 = vadd.f32 %v17041_v17, %v17039_v9 }
 0xec1   : > { %v12347_v27 = vpop.f32.mrf.mxu0 }
 0xec3   : > { %v12348_v10 = vpop.f32.mrf.mxu0 }
 0xec4   : > { %v17059_v55 = vadd.f32 %v12348_v10, %v12347_v27 }
 0xec5   : > { %v17054_v28 = vpop.f32.mrf.mxu0 }
 0xec7   : > { %v17057_v1 = vpop.f32.mrf.mxu0  ;;  %7707 = vmatmul.mubr.bf16.vlgmr.msra.gmra.mxu1 %v13871_v37 }
 0xec8   : > { %7714 = vmatprep.mubr.bf16.mxu1 %v13879_v32 }
 0xec9   : > { %v12353_v18 = vpop.f32.mrf.mxu0 }
 0xecb   : > { %v12354_v26 = vpop.f32.mrf.mxu0 }
 0xecc   : > { %v17065_v62 = vadd.f32 %v12354_v26, %v12353_v18 }
 0xecd   : > { %v17061_v59 = vpop.f32.mrf.mxu0 }
 0xecf   : > { %v17063_v13 = vpop.f32.mrf.mxu0  ;;  %7715 = vmatmul.mubr.bf16.gmra.mxu1 %v13877_v8 }
 0xed0   : > { %7722 = vmatprep.mubr.bf16.mxu1 %v13885_v15 }
 0xed1   : > { %v12359_v16 = vpop.f32.mrf.mxu0 }
 0xed3   : > { %v12360_v7 = vpop.f32.mrf.mxu0 }
 0xed4   : > { %v17071_v35 = vadd.f32 %v12360_v7, %v12359_v16 }
 0xed5   : > { %v17067_v43 = vpop.f32.mrf.mxu0 }
 0xed7   : > { %v17069_v4 = vpop.f32.mrf.mxu0  ;;  %7723 = vmatmul.mubr.bf16.gmra.mxu1 %v13883_v47 }
 0xed8   : > { %7730 = vmatprep.mubr.bf16.mxu1 %v13891_v61  ;;  %v12346_v61 = vadd.f32 %v17047_v11, %v17045_v56 }
 0xed9   : > { %v12365_v50 = vpop.f32.mrf.mxu0 }
 0xedb   : > { %v12366_v30 = vpop.f32.mrf.mxu0 }
 0xedc   : > { %v17073_v39 = vadd.f32 %v12366_v30, %v12365_v50  ;;  %v17937_v50 = vld [vmem:[#allocation7_spill] sm:$0xff] }
 0xedd   : > { %v12368_v2 = vpop.f32.mrf.mxu0 }
 0xedf   : > { %v12369_v63 = vpop.f32.mrf.mxu0  ;;  %7731 = vmatmul.mubr.bf16.gmra.mxu1 %v13889_v44 }
 0xee0   : > { %7738 = vmatprep.mubr.bf16.mxu1 %v13897_v34 }
 0xee7   : > { %7739 = vmatmul.mubr.bf16.gmra.mxu1 %v13895_v24 }
 0xee8   : > { %7746 = vmatprep.mubr.bf16.mxu1 %v11147_v5 }
 0xeef   : > { %7747 = vmatmul.mubr.bf16.gmra.mxu1 %v11146_v60 }
 0xf33   : > { %v12923_v46 = vpop.f32.mrf.mxu1 }
 0xf34   : > { %v17109_v0 = vadd.f32 %v12923_v46, %v16913_v36 }
 0xf35   : > { %v7027_v51 = vpop.f32.mrf.mxu1 }
 0xf36   : > { %v17112_v54 = vadd.f32 %v7027_v51, %v16916_v40 }
 0xf37   : > { %v12924_v57 = vpop.f32.mrf.mxu1 }
 0xf38   : > { %v17115_v42 = vadd.f32 %v12924_v57, %v16919_v52 }
 0xf39   : > { %v17117_v12 = vpop.f32.mrf.mxu1 }
 0xf43   : > { %v12927_v33 = vpop.f32.mrf.mxu1 }
 0xf44   : > { %v17120_v27 = vadd.f32 %v12927_v33, %v16924_v48 }
 0xf45   : > { %v7043_v10 = vpop.f32.mrf.mxu1 }
 0xf46   : > { %v17123_v18 = vadd.f32 %v7043_v10, %v16927_v19 }
 0xf47   : > { %v12928_v36 = vpop.f32.mrf.mxu1 }
 0xf48   : > { %v17126_v26 = vadd.f32 %v12928_v36, %v16930_v41 }
 0xf49   : > { %v17128_v40 = vpop.f32.mrf.mxu1 }
 0xf4f   : > { %v12931_v16 = vpop.f32.mrf.mxu1 }
 0xf50   : > { %v17131_v52 = vadd.f32 %v12931_v16, %v16935_v45 }
 0xf51   : > { %v7059_v7 = vpop.f32.mrf.mxu1 }
 0xf52   : > { %v17134_v30 = vadd.f32 %v7059_v7, %v17937_v50 }
 0xf53   : > { %v12932_v48 = vpop.f32.mrf.mxu1 }
 0xf54   : > { %v13886_v48 = vld [vmem:[%s17849_s3 + $0xa9c] ss:$16 sps:$4 sm:$0xff]  }
 0xf55   : > { %v17136_v2 = vpop.f32.mrf.mxu1 }
 0xf57   : > { %v7347_v63 = vpop.f32.mrf.mxu1 }
 0xf58   : > { %v7348_v37 = vadd.f32 %v17043_v22, %v7347_v63  ;;  %v12352_v22 = vadd.f32 %v17057_v1, %v17054_v28  ;;  %v12358_v28 = vadd.f32 %v17063_v13, %v17061_v59  ;;  %v12364_v59 = vadd.f32 %v17069_v4, %v17067_v43  ;;  %v13876_v43 = vld [vmem:[%s17849_s3 + $0xa5c] ss:$16 sps:$4 sm:$0xff]  }
 0xf59   : > { %v7349_v19 = vpop.f32.mrf.mxu1  ;;  %v13892_v63 = vld [vmem:[%s17849_s3 + $0xabc] ss:$16 sps:$4 sm:$0xff]  }
 0xf5a   : > { %v13894_v19 = vld [vmem:[%s17849_s3 + $0xab8] ss:$16 sps:$4 sm:$0xff]  }
 0xf5b   : > { %v7350_v41 = vpop.f32.mrf.mxu1 }
 0xf5c   : > { %v7351_v32 = vadd.f32 %v12340_v31, %v7350_v41  ;;  %v13898_v31 = vld [vmem:[%s17849_s3 + $0xadc] ss:$16 sps:$4 sm:$0xff]  }
 0xf5d   : > { %v7352_v8 = vpop.f32.mrf.mxu1  ;;  %v11125_v41 = vld [vmem:[%s17849_s3 + $0xaf8] sm:$0x11] }
 0xf5e   : > { %v7393_v15 = vpack.c.bf16 %v7351_v32, %v7348_v37  ;;  %v13900_v37 = vld [vmem:[%s17849_s3 + $0xad8] ss:$16 sps:$4 sm:$0xff]   ;;  %v11149_v32 = vcombine.high %v11125_v41, %v11125_v41  ;;  %v11148_v8 = vcombine.low %v11125_v41, %v11125_v41 }
 0xf5f   : > { %v7355_v45 = vpop.f32.mrf.mxu1 }
 0xf60   : > { %12937 = vmatprep.mubr.msk.bf16.mxu0 %vm1583_vm3, %v7393_v15  ;;  %v7356_v34 = vadd.f32 %v17049_v25, %v7355_v45  ;;  %v13905_v45 = vld [vmem:[%s17850_s4 + $0xf8] sm:$0xff]  }
 0xf61   : > { %v7357_v47 = vpop.f32.mrf.mxu1  ;;  %12949 = vmatprep.subr.bf16.mxu1 %v13905_v45 }
 0xf62   : > { %12950 = vmatpush3.bf16.msra.mxu1 %v13905_v45 }
 0xf63   : > { %v7358_v44 = vpop.f32.mrf.mxu1 }
 0xf64   : > { %v7359_v24 = vadd.f32 %v12346_v61, %v7358_v44 }
 0xf65   : > { %v7360_v14 = vpop.f32.mrf.mxu1 }
 0xf66   : > { %v7394_v5 = vpack.c.bf16 %v7359_v24, %v7356_v34 }
 0xf67   : > { %v7363_v9 = vpop.f32.mrf.mxu1 }
 0xf68   : > { %12938 = vmatmul.mubr.msk.bf16.vlgmr.msra.gmra.mxu0 %vm1583_vm3, %v7394_v5  ;;  %v7364_v56 = vadd.f32 %v17059_v55, %v7363_v9 }
 0xf69   : > { %7755 = vmatpush1.bf16.msra.mxu0 %v14322_v20  ;;  %v7365_v17 = vpop.f32.mrf.mxu1 }
 0xf6a   : > { %7756 = vmatprep.subr.bf16.mxu0 %v17862_v29 }
 0xf6b   : > { %v7366_v60 = vpop.f32.mrf.mxu1 }
 0xf6c   : > { %v7367_v11 = vadd.f32 %v12352_v22, %v7366_v60 }
 0xf6d   : > { %7757 = vmatpush1.bf16.msra.mxu0 %v14328_v38  ;;  %v7368_v25 = vpop.f32.mrf.mxu1 }
 0xf6e   : > { %v7395_v46 = vpack.c.bf16 %v7367_v11, %v7364_v56  ;;  %7758 = vmatprep.subr.bf16.mxu0 %v17862_v29 }
 0xf6f   : > { %v7371_v51 = vpop.f32.mrf.mxu1 }
 0xf70   : > { %12941 = vmatprep.mubr.msk.bf16.mxu0 %vm1583_vm3, %v7395_v46  ;;  %v7372_v55 = vadd.f32 %v17065_v62, %v7371_v51  ;;  %v13906_v46 = vld [vmem:[%s17850_s4 + $0xf0] sm:$0xff]  }
 0xf71   : > { %7759 = vmatpush1.bf16.msra.mxu0 %v14335_v49  ;;  %v7373_v20 = vpop.f32.mrf.mxu1  ;;  %12951 = vmatprep.subr.bf16.mxu1 %v13906_v46 }
 0xf72   : > { %7760 = vmatprep.subr.bf16.mxu0 %v17862_v29  ;;  %12952 = vmatpush3.bf16.msra.mxu1 %v13906_v46 }
 0xf73   : > { %v7374_v1 = vpop.f32.mrf.mxu1 }
 0xf74   : > { %v7375_v57 = vadd.f32 %v12358_v28, %v7374_v1 }
 0xf75   : > { %7761 = vmatpush1.bf16.msra.mxu0 %v14346_v53  ;;  %v7376_v38 = vpop.f32.mrf.mxu1 }
 0xf76   : > { %v7396_v33 = vpack.c.bf16 %v7375_v57, %v7372_v55  ;;  %7762 = vmatprep.subr.bf16.mxu0 %v17862_v29 }
 0xf77   : > { %v7379_v10 = vpop.f32.mrf.mxu1 }
 0xf78   : > { %12942 = vmatmul.mubr.msk.bf16.gmra.mxu0 %vm1583_vm3, %v7396_v33  ;;  %v7380_v62 = vadd.f32 %v17071_v35, %v7379_v10 }
 0xf79   : > { %7763 = vmatpush1.bf16.msra.mxu0 %v14353_v58  ;;  %v7381_v49 = vpop.f32.mrf.mxu1 }
 0xf7a   : > { %7764 = vmatprep.subr.bf16.mxu0 %v17862_v29 }
 0xf7b   : > { %v7382_v13 = vpop.f32.mrf.mxu1 }
 0xf7c   : > { %v7383_v36 = vadd.f32 %v12364_v59, %v7382_v13 }
 0xf7d   : > { %7765 = vmatpush1.bf16.msra.mxu0 %v14357_v23  ;;  %v7384_v53 = vpop.f32.mrf.mxu1 }
 0xf7e   : > { %v7397_v16 = vpack.c.bf16 %v7383_v36, %v7380_v62  ;;  %7766 = vmatprep.subr.bf16.mxu0 %v17862_v29 }
 0xf7f   : > { %v7387_v7 = vpop.f32.mrf.mxu1 }
 0xf80   : > { %v7388_v50 = vadd.f32 %v17073_v39, %v7387_v7  ;;  %12945 = vmatprep.mubr.msk.bf16.mxu0 %vm1583_vm3, %v7397_v16  ;;  %v13880_v39 = vld [vmem:[%s17849_s3 + $0xa7c] ss:$16 sps:$4 sm:$0xff]  }
 0xf81   : > { %7767 = vmatpush1.bf16.msra.mxu0 %v14268_v21  ;;  %v7389_v58 = vpop.f32.mrf.mxu1  ;;  %v13874_v21 = vld [vmem:[%s17849_s3 + $0xa58] ss:$16 sps:$4 sm:$0xff]  }
 0xf82   : > { %v7398_v4 = vpack.c.bf16 %v7388_v50, %v7388_v50  ;;  %7768 = vmatprep.subr.bf16.mxu0 %v17862_v29 }
 0xf83   : > { %v7390_v23 = vpop.f32.mrf.mxu1 }
 0xf84   : > { %12946 = vmatmul.mubr.msk.bf16.gmra.mxu0 %vm1583_vm3, %v7398_v4 }
 0xf85   : > { %7769 = vmatpush1.bf16.msra.mxu0 %v14251_v3  ;;  %v7391_v35 = vpop.f32.mrf.mxu1  ;;  %11150 = vmatprep.mubr.msk.bf16.mxu0 %vm1062_vm2, %v13876_v43  ;;  %v13882_v3 = vld [vmem:[%s17849_s3 + $0xa78] ss:$16 sps:$4 sm:$0xff]  }
 0xf86   : > { %7784 = vmatprep.subr.bf16.mxu0 %v17862_v29 }
 0xf87   : > { %v12395_v15 = vpop.f32.mrf.mxu1 }
 0xf89   : > { %7785 = vmatpush2.bf16.msra.mxu0 %v14367_v6  ;;  %v13888_v6 = vld [vmem:[%s17849_s3 + $0xa98] ss:$16 sps:$4 sm:$0xff]   ;;  %v12396_v47 = vpop.f32.mrf.mxu1 }
 0xf8a   : > { %v12397_v34 = vadd.f32 %v12396_v47, %v12395_v15 }
 0xf8b   : > { %v12398_v61 = vpop.f32.mrf.mxu1 }
 0xf8c   : > { %7787 = vmatmul.mubr.bf16.vlgmr.msra.gmra.mxu0 %v13874_v21 }
 0xf8d   : > { %11151 = vmatprep.mubr.msk.bf16.mxu0 %vm1062_vm2, %v13880_v39  ;;  %v12399_v44 = vpop.f32.mrf.mxu1 }
 0xf8e   : > { %v12400_v24 = vadd.f32 %v12399_v44, %v12398_v61 }
 0xf8f   : > { %v12401_v14 = vpop.f32.mrf.mxu1 }
 0xf91   : > { %v12402_v5 = vpop.f32.mrf.mxu1 }
 0xf92   : > { %v12403_v22 = vadd.f32 %v12402_v5, %v12401_v14 }
 0xf93   : > { %v12404_v9 = vpop.f32.mrf.mxu1 }
 0xf94   : > { %7795 = vmatmul.mubr.bf16.gmra.mxu0 %v13882_v3 }
 0xf95   : > { %11152 = vmatprep.mubr.msk.bf16.mxu0 %vm1062_vm2, %v13886_v48  ;;  %v12405_v17 = vpop.f32.mrf.mxu1 }
 0xf96   : > { %v12406_v60 = vadd.f32 %v12405_v17, %v12404_v9 }
 0xf97   : > { %v12407_v56 = vpop.f32.mrf.mxu1 }
 0xf99   : > { %v12408_v11 = vpop.f32.mrf.mxu1 }
 0xf9a   : > { %v12409_v20 = vadd.f32 %v12408_v11, %v12407_v56 }
 0xf9b   : > { %v12410_v25 = vpop.f32.mrf.mxu1 }
 0xf9c   : > { %7803 = vmatmul.mubr.bf16.gmra.mxu0 %v13888_v6 }
 0xf9d   : > { %11153 = vmatprep.mubr.msk.bf16.mxu0 %vm1062_vm2, %v13892_v63  ;;  %v12411_v51 = vpop.f32.mrf.mxu1 }
 0xf9e   : > { %v12412_v28 = vadd.f32 %v12411_v51, %v12410_v25 }
 0xf9f   : > { %v12413_v1 = vpop.f32.mrf.mxu1 }
 0xfa1   : > { %v12414_v55 = vpop.f32.mrf.mxu1 }
 0xfa2   : > { %v12415_v33 = vadd.f32 %v12414_v55, %v12413_v1 }
 0xfa3   : > { %v12416_v57 = vpop.f32.mrf.mxu1 }
 0xfa4   : > { %7811 = vmatmul.mubr.bf16.gmra.mxu0 %v13894_v19 }
 0xfa5   : > { %11154 = vmatprep.mubr.msk.bf16.mxu0 %vm1062_vm2, %v13898_v31  ;;  %v12417_v38 = vpop.f32.mrf.mxu1 }
 0xfa6   : > { %v12418_v10 = vadd.f32 %v12417_v38, %v12416_v57 }
 0xfa7   : > { %v12419_v49 = vpop.f32.mrf.mxu1 }
 0xfa9   : > { %v12420_v59 = vpop.f32.mrf.mxu1 }
 0xfaa   : > { %v12421_v36 = vadd.f32 %v12420_v59, %v12419_v49 }
 0xfab   : > { %v12422_v13 = vpop.f32.mrf.mxu1 }
 0xfac   : > { %7819 = vmatmul.mubr.bf16.gmra.mxu0 %v13900_v37 }
 0xfad   : > { %11155 = vmatprep.mubr.msk.bf16.mxu0 %vm1062_vm2, %v11149_v32  ;;  %v12423_v62 = vpop.f32.mrf.mxu1 }
 0xfae   : > { %v12424_v53 = vadd.f32 %v12423_v62, %v12422_v13 }
 0xfaf   : > { %v12425_v16 = vpop.f32.mrf.mxu1 }
 0xfb1   : > { %v12426_v7 = vpop.f32.mrf.mxu1 }
 0xfb2   : > { %v12427_v43 = vadd.f32 %v12426_v7, %v12425_v16 }
 0xfb3   : > { %v12428_v50 = vpop.f32.mrf.mxu1 }
 0xfb4   : > { %7827 = vmatmul.mubr.bf16.gmra.mxu0 %v11148_v8 }
 0xfb5   : > { %v12429_v58 = vpop.f32.mrf.mxu1 }
0x1028   : > { %v12939_v4 = vpop.f32.mrf.mxu0 }
0x1029   : > { %v17223_v23 = vadd.f32 %v12939_v4, %v17109_v0 }
0x102a   : > { %v7468_v35 = vpop.f32.mrf.mxu0 }
0x102b   : > { %v17226_v21 = vadd.f32 %v7468_v35, %v17112_v54 }
0x102c   : > { %v12940_v39 = vpop.f32.mrf.mxu0 }
0x102d   : > { %v17229_v3 = vadd.f32 %v12940_v39, %v17115_v42 }
0x102e   : > { %v17231_v48 = vpop.f32.mrf.mxu0 }
0x1038   : > { %v12943_v6 = vpop.f32.mrf.mxu0 }
0x1039   : > { %v17234_v63 = vadd.f32 %v12943_v6, %v17120_v27 }
0x103a   : > { %v7484_v19 = vpop.f32.mrf.mxu0 }
0x103b   : > { %v17237_v31 = vadd.f32 %v7484_v19, %v17123_v18 }
0x103c   : > { %v12944_v0 = vpop.f32.mrf.mxu0 }
0x103d   : > { %v17240_v41 = vadd.f32 %v12944_v0, %v17126_v26 }
0x103e   : > { %v17242_v54 = vpop.f32.mrf.mxu0 }
0x1044   : > { %v12947_v37 = vpop.f32.mrf.mxu0 }
0x1045   : > { %v17245_v42 = vadd.f32 %v12947_v37, %v17131_v52  ;;  %v17940_v37 = vld [vmem:[#allocation15_spill] sm:$0xff] }
0x1046   : > { %v7500_v32 = vpop.f32.mrf.mxu0 }
0x1047   : > { %v17248_v8 = vadd.f32 %v7500_v32, %v17134_v30 }
0x1048   : > { %v12948_v27 = vpop.f32.mrf.mxu0 }
0x1049   : > { %v17941_v27 = vld [vmem:[#allocation6_spill] sm:$0xff] }
0x104a   : > { %v17250_v15 = vpop.f32.mrf.mxu0 }
0x104c   : > { %v7788_v45 = vpop.f32.mrf.mxu0 }
0x104d   : > { %v7789_v61 = vadd.f32 %v12397_v34, %v7788_v45 }
0x104e   : > { %v7790_v18 = vpop.f32.mrf.mxu0 }
0x104f   : > { %v17942_v18 = vld [vmem:[#allocation10_spill] sm:$0xff] }
0x1050   : > { %v7791_v47 = vpop.f32.mrf.mxu0 }
0x1051   : > { %v7792_v44 = vadd.f32 %v12400_v24, %v7791_v47 }
0x1052   : > { %v7793_v26 = vpop.f32.mrf.mxu0 }
0x1053   : > { %v7834_v14 = vpack.c.bf16 %v7792_v44, %v7789_v61  ;;  %v17943_v61 = vld [vmem:[#allocation18_spill] sm:$0xff]  ;;  %v17944_v26 = vld [vmem:[#allocation21_spill] sm:$0xff] }
0x1054   : > { %v7796_v5 = vpop.f32.mrf.mxu0 }
0x1055   : > { %12953 = vmatprep.mubr.msk.bf16.mxu1 %vm1583_vm3, %v7834_v14  ;;  %v7797_v17 = vadd.f32 %v12403_v22, %v7796_v5  ;;  %v17945_v5 = vld [vmem:[#allocation24_spill] sm:$0xff] }
0x1056   : > { %v7798_v9 = vpop.f32.mrf.mxu0 }
0x1058   : > { %v7799_v52 = vpop.f32.mrf.mxu0 }
0x1059   : > { %v7800_v56 = vadd.f32 %v12406_v60, %v7799_v52  ;;  %v17946_v52 = vld [vmem:[#allocation27_spill] sm:$0xff] }
0x105a   : > { %v7801_v11 = vpop.f32.mrf.mxu0 }
0x105b   : > { %v7835_v30 = vpack.c.bf16 %v7800_v56, %v7797_v17  ;;  %v17947_v56 = vld [vmem:[#allocation11_spill] sm:$0xff]  ;;  %v17948_v11 = vld [vmem:[#allocation5_spill] sm:$0xff] }
0x105c   : > { %v7804_v25 = vpop.f32.mrf.mxu0 }
0x105d   : > { %12954 = vmatmul.mubr.msk.bf16.vlgmr.msra.gmra.mxu1 %vm1583_vm3, %v7835_v30  ;;  %v7805_v1 = vadd.f32 %v12409_v20, %v7804_v25  ;;  %v1766_v30 = vadd.f32 %v17948_v11, %v17947_v56  ;;  %v17949_v25 = vld [vmem:[#allocation30_spill] sm:$0xff]  ;;  %v17965_v56 = vld [vmem:[#allocation17_spill] sm:$0xff] }
0x105e   : > { %v7806_v46 = vpop.f32.mrf.mxu0 }
0x1060   : > { %v7807_v51 = vpop.f32.mrf.mxu0 }
0x1061   : > { %v7808_v55 = vadd.f32 %v12412_v28, %v7807_v51  ;;  %v17950_v51 = vld [vmem:[#allocation4_spill] sm:$0xff] }
0x1062   : > { %v7809_v34 = vpop.f32.mrf.mxu0 }
0x1063   : > { %v7836_v24 = vpack.c.bf16 %v7808_v55, %v7805_v1  ;;  %v2227_v1 = vadd.f32 %v17950_v51, %v1766_v30  ;;  %v17951_v55 = vld [vmem:[#allocation33_spill] sm:$0xff]  ;;  %v17966_v30 = vld [vmem:[#allocation34_spill] sm:$0xff]  ;;  %v17967_v51 = vld [vmem:[#allocation20_spill] sm:$0xff] }
0x1064   : > { %v7812_v57 = vpop.f32.mrf.mxu0 }
0x1065   : > { %12957 = vmatprep.mubr.msk.bf16.mxu1 %vm1583_vm3, %v7836_v24  ;;  %v7813_v59 = vadd.f32 %v12415_v33, %v7812_v57  ;;  %v17952_v24 = vld [vmem:[#allocation13_spill] sm:$0xff] }
0x1066   : > { %v7814_v38 = vpop.f32.mrf.mxu0  ;;  %v2668_v57 = vadd.f32 %v17952_v24, %v2227_v1 }
0x1067   : > { %v17953_v38 = vld [vmem:[#allocation36_spill] sm:$0xff] }
0x1068   : > { %v7815_v49 = vpop.f32.mrf.mxu0 }
0x1069   : > { %v7816_v13 = vadd.f32 %v12418_v10, %v7815_v49  ;;  %v13907_v10 = vld [vmem:[%s17852_s6] sm:$0xff]  }
0x106a   : > { %v7817_v22 = vpop.f32.mrf.mxu0  ;;  %12977 = vmatprep.mubr.msk.bf16.mxu0 %vm8026_vm4, %v13907_v10  ;;  %v17958_v10 = vld [vmem:[#allocation14_spill] sm:$0xff] }
0x106b   : > { %v7837_v60 = vpack.c.bf16 %v7816_v13, %v7813_v59  ;;  %v17954_v13 = vld [vmem:[#allocation16_spill] sm:$0xff] }
0x106c   : > { %v7820_v62 = vpop.f32.mrf.mxu0  ;;  %v3109_v22 = vadd.f32 %v17954_v13, %v2668_v57  ;;  %v17969_v57 = vld [vmem:[#allocation23_spill] sm:$0xff] }
0x106d   : > { %12958 = vmatmul.mubr.msk.bf16.gmra.mxu1 %vm1583_vm3, %v7837_v60  ;;  %v7821_v50 = vadd.f32 %v12421_v36, %v7820_v62  ;;  %v13908_v36 = vld [vmem:[%s17852_s6 + $0x1c] sm:$0xff]   ;;  %v17955_v60 = vld [vmem:[#allocation39_spill] sm:$0xff] }
0x106e   : > { %v7822_v16 = vpop.f32.mrf.mxu0 }
0x1070   : > { %v7823_v7 = vpop.f32.mrf.mxu0 }
0x1071   : > { %v7824_v58 = vadd.f32 %v12424_v53, %v7823_v7  ;;  %v17938_v53 = vld [vmem:[#allocation9_spill] sm:$0xff]  ;;  %v17288_v7 = vld [vmem:[%s17851_s5] ss:$0 sm:$0xff] }
0x1072   : > { %v7825_v20 = vpop.f32.mrf.mxu0 }
0x1073   : > { %v7838_v28 = vpack.c.bf16 %v7824_v58, %v7821_v50  ;;  %v17956_v58 = vld [vmem:[#allocation19_spill] sm:$0xff] }
0x1074   : > { %v7828_v4 = vpop.f32.mrf.mxu0  ;;  %v3550_v20 = vadd.f32 %v17956_v58, %v3109_v22 }
0x1075   : > { %v7829_v35 = vadd.f32 %v12427_v43, %v7828_v4  ;;  %12961 = vmatprep.mubr.msk.bf16.mxu1 %vm1583_vm3, %v7838_v28  ;;  %v17939_v43 = vld [vmem:[#allocation3_spill] sm:$0xff] }
0x1076   : > { %v7830_v39 = vpop.f32.mrf.mxu0  ;;  %v1750_v0 = vadd.f32 %v17939_v43, %v17938_v53 }
0x1077   : > { %v7839_v6 = vpack.c.bf16 %v7829_v35, %v7829_v35  ;;  %v17957_v39 = vld [vmem:[#allocation22_spill] sm:$0xff] }
0x1078   : > { %v7831_v19 = vpop.f32.mrf.mxu0  ;;  %v2223_v32 = vadd.f32 %v17940_v37, %v1750_v0  ;;  %v17960_v0 = vld [vmem:[#allocation25_spill] sm:$0xff] }
0x1079   : > { %12962 = vmatmul.mubr.msk.bf16.gmra.mxu1 %vm1583_vm3, %v7839_v6  ;;  %v3991_v6 = vadd.f32 %v17957_v39, %v3550_v20  ;;  %v17972_v20 = vld [vmem:[#allocation29_spill] sm:$0xff] }
0x107a   : > { %v7832_v33 = vpop.f32.mrf.mxu0  ;;  %12997 = vmatprep.mubr.msk.bf16.mxu1 %vm8026_vm4, %v13908_v36  ;;  %v2664_v45 = vadd.f32 %v17941_v27, %v2223_v32  ;;  %v17959_v36 = vld [vmem:[#allocation8_spill] sm:$0xff] }
0x107b   : > { %v1782_v53 = vadd.f32 %v17959_v36, %v17958_v10  ;;  %v4432_v37 = vadd.f32 %v17960_v0, %v3991_v6  ;;  %v17961_v27 = vld [vmem:[#allocation12_spill] sm:$0xff]  ;;  %v17975_v0 = vld [vmem:[#allocation38_spill] sm:$0xff] }
0x107c   : > { %v3105_v47 = vadd.f32 %v17942_v18, %v2664_v45  ;;  %v17962_v18 = vld [vmem:[#allocation28_spill] sm:$0xff] }
0x107d   : > { %v2231_v45 = vadd.f32 %v17961_v27, %v1782_v53 }
0x107e   : > { %v3546_v44 = vadd.f32 %v17943_v61, %v3105_v47  ;;  %v4873_v47 = vadd.f32 %v17962_v18, %v4432_v37 }
0x1080   : > { %v3987_v14 = vadd.f32 %v17944_v26, %v3546_v44 }
0x1082   : > { %v4428_v9 = vadd.f32 %v17945_v5, %v3987_v14  ;;  %v17964_v14 = vld [vmem:[#allocation31_spill] sm:$0xff] }
0x1083   : > { %v5314_v5 = vadd.f32 %v17964_v14, %v4873_v47 }
0x1084   : > { %v4869_v17 = vadd.f32 %v17946_v52, %v4428_v9 }
0x1086   : > { %v5310_v46 = vadd.f32 %v17949_v25, %v4869_v17  ;;  %v5755_v25 = vadd.f32 %v17966_v30, %v5314_v5  ;;  %v8041_v5 = vsel %vm8039_vm5, 65535, %v17862_v29 }
0x1088   : > { %v5751_v34 = vadd.f32 %v17951_v55, %v5310_v46  ;;  %v17968_v55 = vld [vmem:[#allocation37_spill] sm:$0xff] }
0x108a   : > { %v6192_v49 = vadd.f32 %v17953_v38, %v5751_v34  ;;  %v6196_v34 = vadd.f32 %v17968_v55, %v5755_v25  ;;  %v13912_v55 = vld [vmem:[%s17853_s7 + $0x30] sm:$0xff]  }
0x108c   : > { %v6633_v62 = vadd.f32 %v17955_v60, %v6192_v49  ;;  %v17970_v49 = vld [vmem:[#allocation40_spill] sm:$0xff]  ;;  %v17971_v60 = vld [vmem:[#allocation26_spill] sm:$0xff] }
0x108e   : > { %v7074_v28 = vadd.f32 %v17117_v12, %v6633_v62 }
0x1090   : > { %v7515_v19 = vadd.f32 %v17231_v48, %v7074_v28 }
0x111d   : > { %v12955_v59 = vpop.f32.mrf.mxu1 }
0x111e   : > { %v7957_v16 = vadd.f32 %v12955_v59, %v17223_v23  ;;  %v6637_v59 = vadd.f32 %v17970_v49, %v6196_v34  ;;  %v13916_v34 = vld [vmem:[%s17852_s6 + $0x2c] sm:$0xff]   ;;  %v13918_v49 = vld [vmem:[%s17852_s6 + $0x34] ss:$0 sps:$4 sm:$0x11]  }
0x111f   : > { %v7909_v50 = vpop.f32.mrf.mxu1 }
0x1120   : > { %v7955_v4 = vadd.f32 %v7909_v50, %v17226_v21  ;;  %v7975_v33 = vadd.f32 %v17288_v7, %v7957_v16  ;;  %v7078_v16 = vadd.f32 %v17128_v40, %v6637_v59  ;;  %v17974_v40 = vld [vmem:[#allocation35_spill] sm:$0xff]  ;;  %v13914_v59 = vld [vmem:[%s17853_s7 + $0x20] sm:$0xff]  }
0x1121   : > { %v12956_v35 = vpop.f32.mrf.mxu1 }
0x1122   : > { %v7958_v23 = vadd.f32 %v12956_v35, %v17229_v3  ;;  %v7973_v32 = vadd.f32 %v17288_v7, %v7955_v4  ;;  %v7986_v48 = vmax.f32 %v7975_v33, 0.0  ;;  %v17963_v3 = vld [vmem:[#allocation2_spill] sm:$0xff]  ;;  %v7519_v4 = vadd.f32 %v17242_v54, %v7078_v16 }
0x1123   : > { %v7912_v43 = vpop.f32.mrf.mxu1  ;;  %v2672_v26 = vadd.f32 %v17963_v3, %v2231_v45 }
0x1124   : > { %v7976_v12 = vadd.f32 %v17288_v7, %v7958_v23  ;;  %v7956_v21 = vadd.f32 %v7912_v43, %v7515_v19  ;;  %v7984_v9 = vmax.f32 %v7973_v32, 0.0  ;;  %v17973_v19 = vld [vmem:[#allocation32_spill] sm:$0xff] }
0x1125   : > { %v3113_v11 = vadd.f32 %v17965_v56, %v2672_v26 }
0x1126   : > { %v7987_v61 = vmax.f32 %v7976_v12, 0.0  ;;  %v7974_v44 = vadd.f32 %v17288_v7, %v7956_v21  ;;  %v17976_v21 = vld [vmem:[#allocation41_spill] sm:$0xff] }
0x1127   : > { %v3554_v1 = vadd.f32 %v17967_v51, %v3113_v11  ;;  %v13910_v51 = vld [vmem:[%s17852_s6 + $0x24] sm:$0xff]  }
0x1128   : > { %v17307_v52 = vpack.c.bf16 %v7987_v61, %v7986_v48  ;;  %v7985_v17 = vmax.f32 %v7974_v44, 0.0 }
0x1129   : > { %v3995_v38 = vadd.f32 %v17969_v57, %v3554_v1  ;;  %v13915_v1 = vld [vmem:[%s17852_s6 + $0x10] sm:$0xff]   ;;  %v13913_v57 = vld [vmem:[%s17853_s7 + $0x28] sm:$0xff]  }
0x112a   : > { %v17311_v46 = vpack.c.bf16 %v7985_v17, %v7984_v9 }
0x112b   : > { %v4436_v62 = vadd.f32 %v17971_v60, %v3995_v38  ;;  %v13917_v38 = vld [vmem:[%s17852_s6 + $0x18] ss:$0 sps:$4 sm:$0x11]  }
0x112c   : > { %v13923_v60 = vld [vmem:[%s17853_s7 + $0x58] sm:$0xff]  }
0x112d   : > { %v12959_v24 = vpop.f32.mrf.mxu1  ;;  %v4877_v28 = vadd.f32 %v17972_v20, %v4436_v62 }
0x112e   : > { %v7961_v13 = vadd.f32 %v12959_v24, %v17234_v63  ;;  %v13920_v24 = vld [vmem:[%s17853_s7 + $0x10] sm:$0xff]  }
0x112f   : > { %v7925_v22 = vpop.f32.mrf.mxu1  ;;  %v5318_v33 = vadd.f32 %v17973_v19, %v4877_v28 }
0x1130   : > { %v7959_v50 = vadd.f32 %v7925_v22, %v17237_v31  ;;  %v7979_v35 = vadd.f32 %v17288_v7, %v7961_v13  ;;  %v13921_v13 = vld [vmem:[%s17853_s7 + $0x8] sm:$0xff]   ;;  %v13922_v22 = vld [vmem:[%s17853_s7] sm:$0xff]  }
0x1131   : > { %v12960_v58 = vpop.f32.mrf.mxu1  ;;  %v5759_v36 = vadd.f32 %v17974_v40, %v5318_v33 }
0x1132   : > { %v7962_v39 = vadd.f32 %v12960_v58, %v17240_v41  ;;  %v7977_v63 = vadd.f32 %v17288_v7, %v7959_v50  ;;  %v7990_v31 = vmax.f32 %v7979_v35, 0.0 }
0x1133   : > { %v7928_v6 = vpop.f32.mrf.mxu1  ;;  %v6200_v54 = vadd.f32 %v17975_v0, %v5759_v36 }
0x1134   : > { %v7980_v23 = vadd.f32 %v17288_v7, %v7962_v39  ;;  %v7960_v10 = vadd.f32 %v7928_v6, %v7519_v4  ;;  %v7988_v37 = vmax.f32 %v7977_v63, 0.0  ;;  %v13924_v63 = vld [vmem:[%s17853_s7 + $0x50] sm:$0xff]  }
0x1135   : > { %v6641_v27 = vadd.f32 %v17976_v21, %v6200_v54 }
0x1136   : > { %v7991_v53 = vmax.f32 %v7980_v23, 0.0  ;;  %v7978_v43 = vadd.f32 %v17288_v7, %v7960_v10 }
0x1137   : > { %v7082_v48 = vadd.f32 %v17136_v2, %v6641_v27  ;;  %v13926_v27 = vld [vmem:[%s17853_s7 + $0x40] sm:$0xff]  }
0x1138   : > { %v17331_v32 = vpack.c.bf16 %v7991_v53, %v7990_v31  ;;  %v7989_v41 = vmax.f32 %v7978_v43, 0.0  ;;  %v13925_v31 = vld [vmem:[%s17853_s7 + $0x48] sm:$0xff]  }
0x1139   : > { %v12963_v12 = vpop.f32.mrf.mxu1  ;;  %v7523_v26 = vadd.f32 %v17250_v15, %v7082_v48  ;;  %v13919_v15 = vld [vmem:[%s17853_s7 + $0x18] sm:$0xff]   ;;  %v13928_v48 = vld [vmem:[%s17852_s6 + $0x40] sm:$0xff]  }
0x113a   : > { %v17334_v45 = vpack.c.bf16 %v7989_v41, %v7988_v37  ;;  %v7965_v18 = vadd.f32 %v12963_v12, %v17245_v42 }
0x113b   : > { %v7941_v47 = vpop.f32.mrf.mxu1 }
0x113c   : > { %v7983_v61 = vadd.f32 %v17288_v7, %v7965_v18  ;;  %v7963_v44 = vadd.f32 %v7941_v47, %v17248_v8  ;;  %v13911_v8 = vld [vmem:[%s17853_s7 + $0x38] sm:$0xff]  }
0x113d   : > { %v12964_v3 = vpop.f32.mrf.mxu1  ;;  %v13927_v18 = vld [vmem:[%s17852_s6 + $0x38] sm:$0xff]  }
0x113e   : > { %v7994_v14 = vmax.f32 %v7983_v61, 0.0  ;;  %v7981_v56 = vadd.f32 %v17288_v7, %v7963_v44  ;;  %v13929_v47 = vld [vmem:[%s17853_s7 + $0x78] sm:$0xff]   ;;  %v13931_v61 = vld [vmem:[%s17852_s6 + $0x48] sm:$0xff]   ;;  %v13930_v44 = vld [vmem:[%s17853_s7 + $0x70] sm:$0xff]  }
0x113f   : > { %v7944_v9 = vpop.f32.mrf.mxu1  ;;  %v13933_v3 = vld [vmem:[%s17853_s7 + $0x68] sm:$0xff]  }
0x1140   : > { %v8000_v17 = vpack.c.bf16 %v7994_v14, %v7994_v14  ;;  %v7964_v11 = vadd.f32 %v7944_v9, %v7523_v26  ;;  %v7992_v30 = vmax.f32 %v7981_v56, 0.0  ;;  %v13932_v26 = vld [vmem:[%s17852_s6 + $0x50] ss:$0 sps:$4 sm:$0x11]   ;;  %v13934_v14 = vld [vmem:[%s17853_s7 + $0x60] sm:$0xff]  }
0x1142   : > { %v17343_v42 = vand.u32 %v8041_v5, %v8000_v17  ;;  %v7982_v2 = vadd.f32 %v17288_v7, %v7964_v11  ;;  %v13909_v7 = vld [vmem:[%s17852_s6 + $0x8] sm:$0xff]  }
0x1144   : > { %v7993_v25 = vmax.f32 %v7982_v2, 0.0  ;;  %12965 = vmatprep.subr.bf16.mxu0 %v17343_v42  ;;  %12985 = vmatprep.subr.bf16.mxu1 %v17343_v42 }
0x1145   : > { %12966 = vmatpush3.bf16.msra.mxu0 %v17343_v42  ;;  %12986 = vmatpush3.bf16.msra.mxu1 %v17343_v42 }
0x1146   : > { %v17350_v29 = vpack.c.bf16 %v7993_v25, %v7992_v30 }
0x1148   : > { %12967 = vmatprep.subr.bf16.mxu0 %v17350_v29  ;;  %12987 = vmatprep.subr.bf16.mxu1 %v17350_v29 }
0x1149   : > { %12968 = vmatpush3.bf16.msra.mxu0 %v17350_v29  ;;  %12988 = vmatpush3.bf16.msra.mxu1 %v17350_v29 }
0x114a   : > { %12969 = vmatprep.subr.bf16.mxu0 %v17331_v32  ;;  %12989 = vmatprep.subr.bf16.mxu1 %v17331_v32 }
0x114d   : > { %12970 = vmatpush3.bf16.msra.mxu0 %v17331_v32  ;;  %12990 = vmatpush3.bf16.msra.mxu1 %v17331_v32 }
0x114e   : > { %12971 = vmatprep.subr.bf16.mxu0 %v17334_v45  ;;  %12991 = vmatprep.subr.bf16.mxu1 %v17334_v45 }
0x1151   : > { %12972 = vmatpush3.bf16.msra.mxu0 %v17334_v45  ;;  %12992 = vmatpush3.bf16.msra.mxu1 %v17334_v45 }
0x1152   : > { %12973 = vmatprep.subr.bf16.mxu0 %v17307_v52  ;;  %12993 = vmatprep.subr.bf16.mxu1 %v17307_v52 }
0x1155   : > { %12974 = vmatpush3.bf16.msra.mxu0 %v17307_v52  ;;  %12994 = vmatpush3.bf16.msra.mxu1 %v17307_v52 }
0x1156   : > { %12975 = vmatprep.subr.bf16.mxu0 %v17311_v46  ;;  %12995 = vmatprep.subr.bf16.mxu1 %v17311_v46 }
0x1159   : > { %12976 = vmatpush3.bf16.msra.mxu0 %v17311_v46  ;;  %12996 = vmatpush3.bf16.msra.mxu1 %v17311_v46 }
0x115a   : > { %13005 = vmatprep.subr.bf16.mxu0 %v13911_v8  ;;  %13021 = vmatprep.subr.bf16.mxu1 %v13919_v15 }
0x115c   : > { %12978 = vmatmul.mubr.msk.bf16.vlgmr.msra.gmra.mxu0 %vm8026_vm4, %v13909_v7  ;;  %12998 = vmatmul.mubr.msk.bf16.vlgmr.msra.gmra.mxu1 %vm8026_vm4, %v13910_v51 }
0x115d   : > { %13006 = vmatpush3.bf16.msra.mxu0 %v13911_v8  ;;  %12981 = vmatprep.mubr.msk.bf16.mxu0 %vm8026_vm4, %v13915_v1 }
0x115e   : > { %13007 = vmatprep.subr.bf16.mxu0 %v13912_v55  ;;  %13001 = vmatprep.mubr.msk.bf16.mxu1 %vm8026_vm4, %v13916_v34 }
0x115f   : > { %13022 = vmatpush3.bf16.msra.mxu1 %v13919_v15 }
0x1160   : > { %13023 = vmatprep.subr.bf16.mxu1 %v13920_v24 }
0x1161   : > { %13008 = vmatpush3.bf16.msra.mxu0 %v13912_v55 }
0x1162   : > { %13009 = vmatprep.subr.bf16.mxu0 %v13913_v57 }
0x1163   : > { %13024 = vmatpush3.bf16.msra.mxu1 %v13920_v24 }
0x1164   : > { %12982 = vmatmul.mubr.msk.bf16.gmra.mxu0 %vm8026_vm4, %v13917_v38  ;;  %13002 = vmatmul.mubr.msk.bf16.gmra.mxu1 %vm8026_vm4, %v13918_v49 }
0x1165   : > { %13010 = vmatpush3.bf16.msra.mxu0 %v13913_v57  ;;  %13025 = vmatprep.subr.bf16.mxu1 %v13921_v13 }
0x1166   : > { %13011 = vmatprep.subr.bf16.mxu0 %v13914_v59 }
0x1167   : > { %13026 = vmatpush3.bf16.msra.mxu1 %v13921_v13 }
0x1168   : > { %13027 = vmatprep.subr.bf16.mxu1 %v13922_v22 }
0x1169   : > { %13012 = vmatpush3.bf16.msra.mxu0 %v13914_v59 }
0x116a   : > { %13037 = vmatprep.subr.bf16.mxu0 %v17343_v42 }
0x116b   : > { %13028 = vmatpush3.bf16.msra.mxu1 %v13922_v22 }
0x116c   : > { %13057 = vmatprep.subr.bf16.mxu1 %v13923_v60 }
0x121c   : > { %v12979_v62 = vpop.f32.mrf.mxu0  ;;  %v12999_v16 = vpop.f32.mrf.mxu1 }
0x121e   : > { %v8079_v50 = vpop.f32.mrf.mxu0  ;;  %v8193_v58 = vpop.f32.mrf.mxu1 }
0x1220   : > { %v12980_v20 = vpop.f32.mrf.mxu0  ;;  %v13000_v28 = vpop.f32.mrf.mxu1 }
0x1221   : > { %v8110_v4 = vpack.c.bf16 %v12980_v20, %v12979_v62  ;;  %v8224_v33 = vpack.c.bf16 %v13000_v28, %v12999_v16 }
0x1222   : > { %v8082_v35 = vpop.f32.mrf.mxu0  ;;  %v8196_v39 = vpop.f32.mrf.mxu1 }
0x1223   : > { %v8109_v6 = vpack.c.bf16 %v8082_v35, %v8079_v50  ;;  %v8223_v19 = vpack.c.bf16 %v8196_v39, %v8193_v58 }
0x1224   : > { %v12983_v23 = vpop.f32.mrf.mxu0  ;;  %v13003_v10 = vpop.f32.mrf.mxu1 }
0x1225   : > { %13013 = vmatprep.mubr.msk.bf16.mxu0 %vm548_vm1, %v8223_v19  ;;  %13029 = vmatprep.mubr.msk.bf16.mxu1 %vm548_vm1, %v8109_v6  ;;  %v8112_v0 = vpack.c.bf16 %v12983_v23, %v12983_v23  ;;  %v8226_v54 = vpack.c.bf16 %v13003_v10, %v13003_v10  ;;  %v13935_v19 = vld [vmem:[%s17852_s6 + $0x54] sm:$0xff]   ;;  %v13939_v23 = vld [vmem:[%s17852_s6 + $0x64] sm:$0xff]  }
0x1226   : > { %13014 = vmatmul.mubr.msk.bf16.vlgmr.msra.gmra.mxu0 %vm548_vm1, %v8224_v33  ;;  %13030 = vmatmul.mubr.msk.bf16.vlgmr.msra.gmra.mxu1 %vm548_vm1, %v8110_v4  ;;  %v8095_v40 = vpop.f32.mrf.mxu0  ;;  %v8209_v36 = vpop.f32.mrf.mxu1  ;;  %v13937_v33 = vld [vmem:[%s17853_s7 + $0x98] sm:$0xff]   ;;  %v13938_v10 = vld [vmem:[%s17853_s7 + $0x90] sm:$0xff]  }
0x1227   : > { %13038 = vmatpush3.bf16.msra.mxu0 %v17343_v42  ;;  %13058 = vmatpush3.bf16.msra.mxu1 %v13923_v60 }
0x1228   : > { %13039 = vmatprep.subr.bf16.mxu0 %v17350_v29  ;;  %13059 = vmatprep.subr.bf16.mxu1 %v13924_v63  ;;  %v12984_v53 = vpop.f32.mrf.mxu0  ;;  %v13004_v43 = vpop.f32.mrf.mxu1 }
0x122a   : > { %v8098_v37 = vpop.f32.mrf.mxu0  ;;  %v8212_v41 = vpop.f32.mrf.mxu1 }
0x122b   : > { %13040 = vmatpush3.bf16.msra.mxu0 %v17350_v29  ;;  %13060 = vmatpush3.bf16.msra.mxu1 %v13924_v63  ;;  %v8111_v12 = vpack.c.bf16 %v8098_v37, %v8095_v40  ;;  %v8225_v21 = vpack.c.bf16 %v8212_v41, %v8209_v36  ;;  %v13936_v63 = vld [vmem:[%s17852_s6 + $0x5c] sm:$0xff]   ;;  %v13941_v40 = vld [vmem:[%s17853_s7 + $0x88] sm:$0xff]  }
0x122c   : > { %13041 = vmatprep.subr.bf16.mxu0 %v17331_v32  ;;  %13061 = vmatprep.subr.bf16.mxu1 %v13925_v31  ;;  %v13940_v36 = vld [vmem:[%s17852_s6 + $0x6c] ss:$0 sps:$4 sm:$0x11]  }
0x122d   : > { %13017 = vmatprep.mubr.msk.bf16.mxu0 %vm548_vm1, %v8225_v21  ;;  %13033 = vmatprep.mubr.msk.bf16.mxu1 %vm548_vm1, %v8111_v12 }
0x122e   : > { %13018 = vmatmul.mubr.msk.bf16.gmra.mxu0 %vm548_vm1, %v8226_v54  ;;  %13034 = vmatmul.mubr.msk.bf16.gmra.mxu1 %vm548_vm1, %v8112_v0 }
0x122f   : > { %13042 = vmatpush3.bf16.msra.mxu0 %v17331_v32  ;;  %13062 = vmatpush3.bf16.msra.mxu1 %v13925_v31  ;;  %v13942_v31 = vld [vmem:[%s17853_s7 + $0x80] sm:$0xff]  }
0x1230   : > { %13043 = vmatprep.subr.bf16.mxu0 %v17334_v45  ;;  %13063 = vmatprep.subr.bf16.mxu1 %v13926_v27 }
0x1231   : > { %13049 = vmatprep.mubr.msk.bf16.mxu0 %vm8026_vm4, %v13927_v18 }
0x1233   : > { %13044 = vmatpush3.bf16.msra.mxu0 %v17334_v45  ;;  %13064 = vmatpush3.bf16.msra.mxu1 %v13926_v27 }
0x1234   : > { %13045 = vmatprep.subr.bf16.mxu0 %v17307_v52  ;;  %13073 = vmatprep.subr.bf16.mxu1 %v17343_v42 }
0x1237   : > { %13046 = vmatpush3.bf16.msra.mxu0 %v17307_v52 }
0x1238   : > { %13047 = vmatprep.subr.bf16.mxu0 %v17311_v46 }
0x123b   : > { %13048 = vmatpush3.bf16.msra.mxu0 %v17311_v46 }
0x123c   : > { %13093 = vmatprep.subr.bf16.mxu0 %v13929_v47 }
0x123e   : > { %13050 = vmatmul.mubr.msk.bf16.vlgmr.msra.gmra.mxu0 %vm8026_vm4, %v13928_v48 }
0x123f   : > { %13094 = vmatpush3.bf16.msra.mxu0 %v13929_v47  ;;  %13053 = vmatprep.mubr.msk.bf16.mxu0 %vm8026_vm4, %v13931_v61 }
0x1240   : > { %13095 = vmatprep.subr.bf16.mxu0 %v13930_v44 }
0x1243   : > { %13096 = vmatpush3.bf16.msra.mxu0 %v13930_v44 }
0x1244   : > { %13097 = vmatprep.subr.bf16.mxu0 %v13933_v3 }
0x1246   : > { %13054 = vmatmul.mubr.msk.bf16.gmra.mxu0 %vm8026_vm4, %v13932_v26 }
0x1247   : > { %13098 = vmatpush3.bf16.msra.mxu0 %v13933_v3 }
0x1248   : > { %13099 = vmatprep.subr.bf16.mxu0 %v13934_v14 }
0x124b   : > { %13100 = vmatpush3.bf16.msra.mxu0 %v13934_v14 }
0x124c   : > { %13109 = vmatprep.subr.bf16.mxu0 %v17343_v42 }
0x12e6   : > { %v13015_v5 = vpop.f32.mrf.mxu0  ;;  %v13031_v9 = vpop.f32.mrf.mxu1 }
0x12e7   : > { %v17482_v17 = vadd.f32 %v13031_v9, %v13015_v5 }
0x12e8   : > { %v8306_v56 = vpop.f32.mrf.mxu0  ;;  %v8406_v11 = vpop.f32.mrf.mxu1 }
0x12e9   : > { %v17484_v2 = vadd.f32 %v8406_v11, %v8306_v56 }
0x12ea   : > { %v13016_v30 = vpop.f32.mrf.mxu0  ;;  %v13032_v25 = vpop.f32.mrf.mxu1 }
0x12eb   : > { %v17486_v8 = vadd.f32 %v13032_v25, %v13016_v30 }
0x12ec   : > { %v8309_v15 = vpop.f32.mrf.mxu0  ;;  %v8409_v7 = vpop.f32.mrf.mxu1 }
0x12ed   : > { %v17488_v51 = vadd.f32 %v8409_v7, %v8309_v15 }
0x12ee   : > { %v13019_v1 = vpop.f32.mrf.mxu0  ;;  %v13035_v55 = vpop.f32.mrf.mxu1 }
0x12ef   : > { %v17490_v34 = vadd.f32 %v13035_v55, %v13019_v1  ;;  %v13943_v1 = vld [vmem:[%s17852_s6 + $0x70] sm:$0xff]   ;;  %v13945_v55 = vld [vmem:[%s17853_s7 + $0xb8] sm:$0xff]  }
0x12f0   : > { %v8322_v24 = vpop.f32.mrf.mxu0  ;;  %v8422_v57 = vpop.f32.mrf.mxu1 }
0x12f1   : > { %v17492_v38 = vadd.f32 %v8422_v57, %v8322_v24  ;;  %v13947_v24 = vld [vmem:[%s17852_s6 + $0x80] sm:$0xff]   ;;  %v13946_v57 = vld [vmem:[%s17853_s7 + $0xb0] sm:$0xff]  }
0x12f2   : > { %v13020_v49 = vpop.f32.mrf.mxu0  ;;  %v13036_v59 = vpop.f32.mrf.mxu1 }
0x12f3   : > { %v13948_v49 = vld [vmem:[%s17852_s6 + $0x88] ss:$0 sps:$4 sm:$0x11]   ;;  %v13950_v59 = vld [vmem:[%s17853_s7 + $0xa0] sm:$0xff]  }
0x12f4   : > { %v17494_v13 = vpop.f32.mrf.mxu0  ;;  %v8425_v53 = vpop.f32.mrf.mxu1 }
0x12f5   : > { %v8426_v3 = vadd.f32 %v8425_v53, %v17494_v13 }
0x12fe   : > { %v13051_v22 = vpop.f32.mrf.mxu0 }
0x1300   : > { %v8508_v60 = vpop.f32.mrf.mxu0 }
0x1302   : > { %v13052_v62 = vpop.f32.mrf.mxu0 }
0x1303   : > { %v8539_v58 = vpack.c.bf16 %v13052_v62, %v13051_v22 }
0x1304   : > { %v8511_v16 = vpop.f32.mrf.mxu0 }
0x1305   : > { %v8538_v50 = vpack.c.bf16 %v8511_v16, %v8508_v60 }
0x1306   : > { %v13055_v20 = vpop.f32.mrf.mxu0 }
0x1307   : > { %13065 = vmatprep.mubr.msk.bf16.mxu1 %vm548_vm1, %v8538_v50  ;;  %v8541_v35 = vpack.c.bf16 %v13055_v20, %v13055_v20 }
0x1308   : > { %v8524_v28 = vpop.f32.mrf.mxu0  ;;  %13066 = vmatmul.mubr.msk.bf16.vlgmr.msra.gmra.mxu1 %vm548_vm1, %v8539_v58 }
0x1309   : > { %13074 = vmatpush3.bf16.msra.mxu1 %v17343_v42 }
0x130a   : > { %13075 = vmatprep.subr.bf16.mxu1 %v17350_v29  ;;  %v13056_v4 = vpop.f32.mrf.mxu0 }
0x130c   : > { %v8527_v39 = vpop.f32.mrf.mxu0 }
0x130d   : > { %v8540_v6 = vpack.c.bf16 %v8527_v39, %v8524_v28  ;;  %13076 = vmatpush3.bf16.msra.mxu1 %v17350_v29 }
0x130e   : > { %13077 = vmatprep.subr.bf16.mxu1 %v17331_v32 }
0x130f   : > { %13069 = vmatprep.mubr.msk.bf16.mxu1 %vm548_vm1, %v8540_v6 }
0x1310   : > { %13070 = vmatmul.mubr.msk.bf16.gmra.mxu1 %vm548_vm1, %v8541_v35 }
0x1311   : > { %13078 = vmatpush3.bf16.msra.mxu1 %v17331_v32  ;;  %13085 = vmatprep.mubr.msk.bf16.mxu1 %vm8026_vm4, %v13935_v19 }
0x1312   : > { %13079 = vmatprep.subr.bf16.mxu1 %v17334_v45 }
0x1315   : > { %13080 = vmatpush3.bf16.msra.mxu1 %v17334_v45 }
0x1316   : > { %13081 = vmatprep.subr.bf16.mxu1 %v17307_v52 }
0x1319   : > { %13082 = vmatpush3.bf16.msra.mxu1 %v17307_v52 }
0x131a   : > { %13083 = vmatprep.subr.bf16.mxu1 %v17311_v46 }
0x131d   : > { %13084 = vmatpush3.bf16.msra.mxu1 %v17311_v46 }
0x131e   : > { %13129 = vmatprep.subr.bf16.mxu1 %v13937_v33 }
0x1320   : > { %13086 = vmatmul.mubr.msk.bf16.vlgmr.msra.gmra.mxu1 %vm8026_vm4, %v13936_v63 }
0x1321   : > { %13130 = vmatpush3.bf16.msra.mxu1 %v13937_v33  ;;  %13089 = vmatprep.mubr.msk.bf16.mxu1 %vm8026_vm4, %v13939_v23 }
0x1322   : > { %13131 = vmatprep.subr.bf16.mxu1 %v13938_v10 }
0x1325   : > { %13132 = vmatpush3.bf16.msra.mxu1 %v13938_v10 }
0x1326   : > { %13133 = vmatprep.subr.bf16.mxu1 %v13941_v40 }
0x1328   : > { %13090 = vmatmul.mubr.msk.bf16.gmra.mxu1 %vm8026_vm4, %v13940_v36 }
0x1329   : > { %13134 = vmatpush3.bf16.msra.mxu1 %v13941_v40 }
0x132a   : > { %13135 = vmatprep.subr.bf16.mxu1 %v13942_v31 }
0x132d   : > { %13136 = vmatpush3.bf16.msra.mxu1 %v13942_v31 }
0x132e   : > { %13145 = vmatprep.subr.bf16.mxu1 %v17343_v42 }
0x13c8   : > { %v13067_v43 = vpop.f32.mrf.mxu1 }
0x13c9   : > { %v17541_v0 = vadd.f32 %v13067_v43, %v17482_v17 }
0x13ca   : > { %v8621_v54 = vpop.f32.mrf.mxu1 }
0x13cb   : > { %v17544_v37 = vadd.f32 %v8621_v54, %v17484_v2 }
0x13cc   : > { %v13068_v41 = vpop.f32.mrf.mxu1 }
0x13cd   : > { %v17547_v12 = vadd.f32 %v13068_v41, %v17486_v8 }
0x13ce   : > { %v8624_v21 = vpop.f32.mrf.mxu1 }
0x13cf   : > { %v17550_v27 = vadd.f32 %v8624_v21, %v17488_v51  ;;  %v13953_v21 = vld [vmem:[%s17853_s7 + $0xd8] sm:$0xff]  }
0x13d0   : > { %v13071_v18 = vpop.f32.mrf.mxu1 }
0x13d1   : > { %v17553_v47 = vadd.f32 %v13071_v18, %v17490_v34  ;;  %v13944_v34 = vld [vmem:[%s17852_s6 + $0x78] sm:$0xff]  }
0x13d2   : > { %v8637_v48 = vpop.f32.mrf.mxu1  ;;  %v13955_v18 = vld [vmem:[%s17852_s6 + $0x9c] sm:$0xff]  }
0x13d3   : > { %v17556_v61 = vadd.f32 %v8637_v48, %v17492_v38  ;;  %v13949_v38 = vld [vmem:[%s17853_s7 + $0xa8] sm:$0xff]  }
0x13d4   : > { %v13072_v44 = vpop.f32.mrf.mxu1  ;;  %v13957_v48 = vld [vmem:[%s17853_s7 + $0xc8] sm:$0xff]  }
0x13d5   : > { %v13958_v44 = vld [vmem:[%s17853_s7 + $0xc0] sm:$0xff]  }
0x13d6   : > { %v8640_v26 = vpop.f32.mrf.mxu1 }
0x13d7   : > { %v17559_v14 = vadd.f32 %v8640_v26, %v8426_v3 }
0x13e0   : > { %v13087_v5 = vpop.f32.mrf.mxu1 }
0x13e2   : > { %v8730_v9 = vpop.f32.mrf.mxu1 }
0x13e4   : > { %v13088_v17 = vpop.f32.mrf.mxu1 }
0x13e5   : > { %v8761_v2 = vpack.c.bf16 %v13088_v17, %v13087_v5 }
0x13e6   : > { %v8733_v56 = vpop.f32.mrf.mxu1 }
0x13e7   : > { %v8760_v11 = vpack.c.bf16 %v8733_v56, %v8730_v9 }
0x13e8   : > { %v13091_v30 = vpop.f32.mrf.mxu1 }
0x13e9   : > { %13101 = vmatprep.mubr.msk.bf16.mxu0 %vm548_vm1, %v8760_v11  ;;  %v8763_v15 = vpack.c.bf16 %v13091_v30, %v13091_v30 }
0x13ea   : > { %v8746_v25 = vpop.f32.mrf.mxu1  ;;  %13102 = vmatmul.mubr.msk.bf16.vlgmr.msra.gmra.mxu0 %vm548_vm1, %v8761_v2 }
0x13eb   : > { %13110 = vmatpush3.bf16.msra.mxu0 %v17343_v42 }
0x13ec   : > { %13111 = vmatprep.subr.bf16.mxu0 %v17350_v29  ;;  %v13092_v8 = vpop.f32.mrf.mxu1 }
0x13ee   : > { %v8749_v7 = vpop.f32.mrf.mxu1 }
0x13ef   : > { %v8762_v51 = vpack.c.bf16 %v8749_v7, %v8746_v25  ;;  %13112 = vmatpush3.bf16.msra.mxu0 %v17350_v29 }
0x13f0   : > { %13113 = vmatprep.subr.bf16.mxu0 %v17331_v32 }
0x13f1   : > { %13105 = vmatprep.mubr.msk.bf16.mxu0 %vm548_vm1, %v8762_v51 }
0x13f2   : > { %13106 = vmatmul.mubr.msk.bf16.gmra.mxu0 %vm548_vm1, %v8763_v15 }
0x13f3   : > { %13114 = vmatpush3.bf16.msra.mxu0 %v17331_v32  ;;  %13121 = vmatprep.mubr.msk.bf16.mxu0 %vm8026_vm4, %v13943_v1 }
0x13f4   : > { %13115 = vmatprep.subr.bf16.mxu0 %v17334_v45 }
0x13f7   : > { %13116 = vmatpush3.bf16.msra.mxu0 %v17334_v45 }
0x13f8   : > { %13117 = vmatprep.subr.bf16.mxu0 %v17307_v52 }
0x13fb   : > { %13118 = vmatpush3.bf16.msra.mxu0 %v17307_v52 }
0x13fc   : > { %13119 = vmatprep.subr.bf16.mxu0 %v17311_v46 }
0x13ff   : > { %13120 = vmatpush3.bf16.msra.mxu0 %v17311_v46 }
0x1400   : > { %13165 = vmatprep.subr.bf16.mxu0 %v13945_v55 }
0x1402   : > { %13122 = vmatmul.mubr.msk.bf16.vlgmr.msra.gmra.mxu0 %vm8026_vm4, %v13944_v34 }
0x1403   : > { %13166 = vmatpush3.bf16.msra.mxu0 %v13945_v55  ;;  %13125 = vmatprep.mubr.msk.bf16.mxu0 %vm8026_vm4, %v13947_v24 }
0x1404   : > { %13167 = vmatprep.subr.bf16.mxu0 %v13946_v57 }
0x1407   : > { %13168 = vmatpush3.bf16.msra.mxu0 %v13946_v57 }
0x1408   : > { %13169 = vmatprep.subr.bf16.mxu0 %v13949_v38 }
0x140a   : > { %13126 = vmatmul.mubr.msk.bf16.gmra.mxu0 %vm8026_vm4, %v13948_v49 }
0x140b   : > { %13170 = vmatpush3.bf16.msra.mxu0 %v13949_v38 }
0x140c   : > { %13171 = vmatprep.subr.bf16.mxu0 %v13950_v59 }
0x140f   : > { %13172 = vmatpush3.bf16.msra.mxu0 %v13950_v59 }
0x1410   : > { %13181 = vmatprep.subr.bf16.mxu0 %v17343_v42 }
0x14aa   : > { %v13103_v13 = vpop.f32.mrf.mxu0 }
0x14ab   : > { %v17606_v22 = vadd.f32 %v13103_v13, %v17541_v0 }
0x14ac   : > { %v8843_v60 = vpop.f32.mrf.mxu0 }
0x14ad   : > { %v17609_v62 = vadd.f32 %v8843_v60, %v17544_v37 }
0x14ae   : > { %v13104_v16 = vpop.f32.mrf.mxu0 }
0x14af   : > { %v17612_v50 = vadd.f32 %v13104_v16, %v17547_v12  ;;  %v13951_v12 = vld [vmem:[%s17852_s6 + $0x8c] sm:$0xff]  }
0x14b0   : > { %v8846_v58 = vpop.f32.mrf.mxu0  ;;  %v13959_v16 = vld [vmem:[%s17852_s6 + $0xa8] sm:$0xff]  }
0x14b1   : > { %v17615_v20 = vadd.f32 %v8846_v58, %v17550_v27  ;;  %v13952_v27 = vld [vmem:[%s17852_s6 + $0x94] sm:$0xff]  }
0x14b2   : > { %v13107_v28 = vpop.f32.mrf.mxu0  ;;  %v13960_v58 = vld [vmem:[%s17852_s6 + $0xb0] sm:$0xff]  }
0x14b3   : > { %v17618_v4 = vadd.f32 %v13107_v28, %v17553_v47  ;;  %v13954_v47 = vld [vmem:[%s17853_s7 + $0xd0] sm:$0xff]  }
0x14b4   : > { %v8859_v35 = vpop.f32.mrf.mxu0  ;;  %v13962_v28 = vld [vmem:[%s17853_s7 + $0xf0] sm:$0xff]  }
0x14b5   : > { %v17621_v39 = vadd.f32 %v8859_v35, %v17556_v61  ;;  %v13956_v61 = vld [vmem:[%s17852_s6 + $0xa4] ss:$0 sps:$4 sm:$0x11]   ;;  %v13964_v35 = vld [vmem:[%s17852_s6 + $0xc0] ss:$0 sps:$4 sm:$0x11]  }
0x14b6   : > { %v13108_v6 = vpop.f32.mrf.mxu0 }
0x14b8   : > { %v8862_v19 = vpop.f32.mrf.mxu0 }
0x14b9   : > { %v17624_v33 = vadd.f32 %v8862_v19, %v17559_v14 }
0x14c2   : > { %v13123_v63 = vpop.f32.mrf.mxu0 }
0x14c4   : > { %v8952_v23 = vpop.f32.mrf.mxu0 }
0x14c6   : > { %v13124_v10 = vpop.f32.mrf.mxu0 }
0x14c7   : > { %v8983_v31 = vpack.c.bf16 %v13124_v10, %v13123_v63 }
0x14c8   : > { %v8955_v40 = vpop.f32.mrf.mxu0 }
0x14c9   : > { %v8982_v36 = vpack.c.bf16 %v8955_v40, %v8952_v23 }
0x14ca   : > { %v13127_v53 = vpop.f32.mrf.mxu0 }
0x14cb   : > { %13137 = vmatprep.mubr.msk.bf16.mxu1 %vm548_vm1, %v8982_v36  ;;  %v8985_v54 = vpack.c.bf16 %v13127_v53, %v13127_v53 }
0x14cc   : > { %v8968_v43 = vpop.f32.mrf.mxu0  ;;  %13138 = vmatmul.mubr.msk.bf16.vlgmr.msra.gmra.mxu1 %vm548_vm1, %v8983_v31 }
0x14cd   : > { %13146 = vmatpush3.bf16.msra.mxu1 %v17343_v42 }
0x14ce   : > { %13147 = vmatprep.subr.bf16.mxu1 %v17350_v29  ;;  %v13128_v0 = vpop.f32.mrf.mxu0 }
0x14d0   : > { %v8971_v37 = vpop.f32.mrf.mxu0 }
0x14d1   : > { %v8984_v41 = vpack.c.bf16 %v8971_v37, %v8968_v43  ;;  %13148 = vmatpush3.bf16.msra.mxu1 %v17350_v29 }
0x14d2   : > { %13149 = vmatprep.subr.bf16.mxu1 %v17331_v32 }
0x14d3   : > { %13141 = vmatprep.mubr.msk.bf16.mxu1 %vm548_vm1, %v8984_v41 }
0x14d4   : > { %13142 = vmatmul.mubr.msk.bf16.gmra.mxu1 %vm548_vm1, %v8985_v54 }
0x14d5   : > { %13150 = vmatpush3.bf16.msra.mxu1 %v17331_v32  ;;  %13157 = vmatprep.mubr.msk.bf16.mxu1 %vm8026_vm4, %v13951_v12 }
0x14d6   : > { %13151 = vmatprep.subr.bf16.mxu1 %v17334_v45 }
0x14d9   : > { %13152 = vmatpush3.bf16.msra.mxu1 %v17334_v45 }
0x14da   : > { %13153 = vmatprep.subr.bf16.mxu1 %v17307_v52 }
0x14dd   : > { %13154 = vmatpush3.bf16.msra.mxu1 %v17307_v52 }
0x14de   : > { %13155 = vmatprep.subr.bf16.mxu1 %v17311_v46 }
0x14e1   : > { %13156 = vmatpush3.bf16.msra.mxu1 %v17311_v46 }
0x14e2   : > { %13201 = vmatprep.subr.bf16.mxu1 %v13953_v21 }
0x14e4   : > { %13158 = vmatmul.mubr.msk.bf16.vlgmr.msra.gmra.mxu1 %vm8026_vm4, %v13952_v27 }
0x14e5   : > { %13202 = vmatpush3.bf16.msra.mxu1 %v13953_v21  ;;  %13161 = vmatprep.mubr.msk.bf16.mxu1 %vm8026_vm4, %v13955_v18 }
0x14e6   : > { %13203 = vmatprep.subr.bf16.mxu1 %v13954_v47 }
0x14e9   : > { %13204 = vmatpush3.bf16.msra.mxu1 %v13954_v47 }
0x14ea   : > { %13205 = vmatprep.subr.bf16.mxu1 %v13957_v48 }
0x14ec   : > { %13162 = vmatmul.mubr.msk.bf16.gmra.mxu1 %vm8026_vm4, %v13956_v61 }
0x14ed   : > { %13206 = vmatpush3.bf16.msra.mxu1 %v13957_v48 }
0x14ee   : > { %13207 = vmatprep.subr.bf16.mxu1 %v13958_v44 }
0x14f1   : > { %13208 = vmatpush3.bf16.msra.mxu1 %v13958_v44 }
0x14f2   : > { %13217 = vmatprep.subr.bf16.mxu1 %v17343_v42 }
0x158c   : > { %v13139_v3 = vpop.f32.mrf.mxu1 }
0x158d   : > { %v17671_v26 = vadd.f32 %v13139_v3, %v17606_v22 }
0x158e   : > { %v9065_v14 = vpop.f32.mrf.mxu1 }
0x158f   : > { %v17674_v5 = vadd.f32 %v9065_v14, %v17609_v62 }
0x1590   : > { %v13140_v9 = vpop.f32.mrf.mxu1 }
0x1591   : > { %v17677_v17 = vadd.f32 %v13140_v9, %v17612_v50  ;;  %v13961_v50 = vld [vmem:[%s17853_s7 + $0xf8] sm:$0xff]   ;;  %v13967_v9 = vld [vmem:[%s17852_s6 + $0xc4] sm:$0xff]  }
0x1592   : > { %v9068_v56 = vpop.f32.mrf.mxu1 }
0x1593   : > { %v17680_v11 = vadd.f32 %v9068_v56, %v17615_v20  ;;  %v13963_v20 = vld [vmem:[%s17852_s6 + $0xb8] sm:$0xff]  }
0x1594   : > { %v13143_v2 = vpop.f32.mrf.mxu1  ;;  %v13969_v56 = vld [vmem:[%s17852_s6 + $0xd4] sm:$0xff]  }
0x1595   : > { %v17683_v30 = vadd.f32 %v13143_v2, %v17618_v4  ;;  %v13965_v4 = vld [vmem:[%s17853_s7 + $0xe8] sm:$0xff]  }
0x1596   : > { %v9081_v25 = vpop.f32.mrf.mxu1 }
0x1597   : > { %v17686_v8 = vadd.f32 %v9081_v25, %v17621_v39  ;;  %v13966_v39 = vld [vmem:[%s17853_s7 + $0xe0] sm:$0xff]  }
0x1598   : > { %v13144_v15 = vpop.f32.mrf.mxu1 }
0x159a   : > { %v9084_v7 = vpop.f32.mrf.mxu1 }
0x159b   : > { %v17689_v51 = vadd.f32 %v9084_v7, %v17624_v33 }
0x15a4   : > { %v13159_v1 = vpop.f32.mrf.mxu1 }
0x15a6   : > { %v9174_v55 = vpop.f32.mrf.mxu1 }
0x15a8   : > { %v13160_v34 = vpop.f32.mrf.mxu1 }
0x15a9   : > { %v9205_v38 = vpack.c.bf16 %v13160_v34, %v13159_v1 }
0x15aa   : > { %v9177_v24 = vpop.f32.mrf.mxu1 }
0x15ab   : > { %v9204_v57 = vpack.c.bf16 %v9177_v24, %v9174_v55 }
0x15ac   : > { %v13163_v49 = vpop.f32.mrf.mxu1 }
0x15ad   : > { %13173 = vmatprep.mubr.msk.bf16.mxu0 %vm548_vm1, %v9204_v57  ;;  %v9207_v22 = vpack.c.bf16 %v13163_v49, %v13163_v49 }
0x15ae   : > { %v9190_v59 = vpop.f32.mrf.mxu1  ;;  %13174 = vmatmul.mubr.msk.bf16.vlgmr.msra.gmra.mxu0 %vm548_vm1, %v9205_v38 }
0x15af   : > { %13182 = vmatpush3.bf16.msra.mxu0 %v17343_v42 }
0x15b0   : > { %13183 = vmatprep.subr.bf16.mxu0 %v17350_v29  ;;  %v13164_v13 = vpop.f32.mrf.mxu1 }
0x15b2   : > { %v9193_v60 = vpop.f32.mrf.mxu1 }
0x15b3   : > { %v9206_v62 = vpack.c.bf16 %v9193_v60, %v9190_v59  ;;  %13184 = vmatpush3.bf16.msra.mxu0 %v17350_v29 }
0x15b4   : > { %13185 = vmatprep.subr.bf16.mxu0 %v17331_v32 }
0x15b5   : > { %13177 = vmatprep.mubr.msk.bf16.mxu0 %vm548_vm1, %v9206_v62 }
0x15b6   : > { %13178 = vmatmul.mubr.msk.bf16.gmra.mxu0 %vm548_vm1, %v9207_v22 }
0x15b7   : > { %13186 = vmatpush3.bf16.msra.mxu0 %v17331_v32  ;;  %13193 = vmatprep.mubr.msk.bf16.mxu0 %vm8026_vm4, %v13959_v16 }
0x15b8   : > { %13187 = vmatprep.subr.bf16.mxu0 %v17334_v45 }
0x15bb   : > { %13188 = vmatpush3.bf16.msra.mxu0 %v17334_v45 }
0x15bc   : > { %13189 = vmatprep.subr.bf16.mxu0 %v17307_v52 }
0x15bf   : > { %13190 = vmatpush3.bf16.msra.mxu0 %v17307_v52 }
0x15c0   : > { %13191 = vmatprep.subr.bf16.mxu0 %v17311_v46 }
0x15c3   : > { %13192 = vmatpush3.bf16.msra.mxu0 %v17311_v46 }
0x15c4   : > { %13237 = vmatprep.subr.bf16.mxu0 %v13961_v50 }
0x15c6   : > { %13194 = vmatmul.mubr.msk.bf16.vlgmr.msra.gmra.mxu0 %vm8026_vm4, %v13960_v58 }
0x15c7   : > { %13238 = vmatpush3.bf16.msra.mxu0 %v13961_v50  ;;  %13197 = vmatprep.mubr.msk.bf16.mxu0 %vm8026_vm4, %v13963_v20 }
0x15c8   : > { %13239 = vmatprep.subr.bf16.mxu0 %v13962_v28 }
0x15cb   : > { %13240 = vmatpush3.bf16.msra.mxu0 %v13962_v28 }
0x15cc   : > { %13241 = vmatprep.subr.bf16.mxu0 %v13965_v4 }
0x15ce   : > { %13198 = vmatmul.mubr.msk.bf16.gmra.mxu0 %vm8026_vm4, %v13964_v35 }
0x15cf   : > { %13242 = vmatpush3.bf16.msra.mxu0 %v13965_v4 }
0x15d0   : > { %13243 = vmatprep.subr.bf16.mxu0 %v13966_v39 }
0x15d3   : > { %13244 = vmatpush3.bf16.msra.mxu0 %v13966_v39 }
0x15d4   : > { %13253 = vmatprep.subr.bf16.mxu0 %v17343_v42 }
0x166e   : > { %v13175_v6 = vpop.f32.mrf.mxu0 }
0x166f   : > { %v9319_v19 = vadd.f32 %v13175_v6, %v17671_v26  ;;  %v13971_v6 = vld [vmem:[%s17852_s6 + $0xe0] sm:$0xff]  }
0x1670   : > { %v9287_v33 = vpop.f32.mrf.mxu0 }
0x1671   : > { %v9317_v63 = vadd.f32 %v9287_v33, %v17674_v5 }
0x1672   : > { %v13176_v23 = vpop.f32.mrf.mxu0 }
0x1673   : > { %v9320_v10 = vadd.f32 %v13176_v23, %v17677_v17  ;;  %v13968_v17 = vld [vmem:[%s17852_s6 + $0xcc] sm:$0xff]  }
0x1674   : > { %v9290_v40 = vpop.f32.mrf.mxu0 }
0x1675   : > { %v9318_v36 = vadd.f32 %v9290_v40, %v17680_v11  ;;  %v13970_v11 = vld [vmem:[%s17852_s6 + $0xdc] ss:$0 sps:$4 sm:$0x11]  }
0x1676   : > { %v13179_v31 = vpop.f32.mrf.mxu0 }
0x1677   : > { %v9323_v53 = vadd.f32 %v13179_v31, %v17683_v30 }
0x1678   : > { %v9303_v43 = vpop.f32.mrf.mxu0 }
0x1679   : > { %v9321_v0 = vadd.f32 %v9303_v43, %v17686_v8 }
0x167a   : > { %v13180_v54 = vpop.f32.mrf.mxu0 }
0x167c   : > { %v9306_v37 = vpop.f32.mrf.mxu0 }
0x167d   : > { %v9322_v41 = vadd.f32 %v9306_v37, %v17689_v51 }
0x1686   : > { %v13195_v12 = vpop.f32.mrf.mxu0 }
0x1688   : > { %v9396_v21 = vpop.f32.mrf.mxu0 }
0x168a   : > { %v13196_v27 = vpop.f32.mrf.mxu0 }
0x168b   : > { %v9427_v48 = vpack.c.bf16 %v13196_v27, %v13195_v12 }
0x168c   : > { %v9399_v18 = vpop.f32.mrf.mxu0 }
0x168d   : > { %v9426_v47 = vpack.c.bf16 %v9399_v18, %v9396_v21 }
0x168e   : > { %v13199_v61 = vpop.f32.mrf.mxu0 }
0x168f   : > { %13209 = vmatprep.mubr.msk.bf16.mxu1 %vm548_vm1, %v9426_v47  ;;  %v9429_v26 = vpack.c.bf16 %v13199_v61, %v13199_v61 }
0x1690   : > { %v9412_v44 = vpop.f32.mrf.mxu0  ;;  %13210 = vmatmul.mubr.msk.bf16.vlgmr.msra.gmra.mxu1 %vm548_vm1, %v9427_v48 }
0x1691   : > { %13218 = vmatpush3.bf16.msra.mxu1 %v17343_v42 }
0x1692   : > { %13219 = vmatprep.subr.bf16.mxu1 %v17350_v29  ;;  %v13200_v3 = vpop.f32.mrf.mxu0 }
0x1694   : > { %v9415_v14 = vpop.f32.mrf.mxu0 }
0x1695   : > { %v9428_v5 = vpack.c.bf16 %v9415_v14, %v9412_v44  ;;  %13220 = vmatpush3.bf16.msra.mxu1 %v17350_v29 }
0x1696   : > { %13221 = vmatprep.subr.bf16.mxu1 %v17331_v32 }
0x1697   : > { %13213 = vmatprep.mubr.msk.bf16.mxu1 %vm548_vm1, %v9428_v5 }
0x1698   : > { %13214 = vmatmul.mubr.msk.bf16.gmra.mxu1 %vm548_vm1, %v9429_v26 }
0x1699   : > { %13222 = vmatpush3.bf16.msra.mxu1 %v17331_v32  ;;  %13229 = vmatprep.mubr.msk.bf16.mxu1 %vm8026_vm4, %v13967_v9 }
0x169a   : > { %13223 = vmatprep.subr.bf16.mxu1 %v17334_v45 }
0x169d   : > { %13224 = vmatpush3.bf16.msra.mxu1 %v17334_v45 }
0x169e   : > { %13225 = vmatprep.subr.bf16.mxu1 %v17307_v52 }
0x16a1   : > { %13226 = vmatpush3.bf16.msra.mxu1 %v17307_v52 }
0x16a2   : > { %13227 = vmatprep.subr.bf16.mxu1 %v17311_v46 }
0x16a5   : > { %13228 = vmatpush3.bf16.msra.mxu1 %v17311_v46 }
0x16a8   : > { %13230 = vmatmul.mubr.msk.bf16.vlgmr.msra.gmra.mxu1 %vm8026_vm4, %v13968_v17 }
0x16a9   : > { %13233 = vmatprep.mubr.msk.bf16.mxu1 %vm8026_vm4, %v13969_v56 }
0x16b0   : > { %13234 = vmatmul.mubr.msk.bf16.gmra.mxu1 %vm8026_vm4, %v13970_v11  ;;  %v11433_v11 = vld [vmem:[%s17854_s8] ss:$0 sm:$0xff] }
0x1750   : > { %v13211_v2 = vpop.f32.mrf.mxu1 }
0x1751   : > { %v9541_v30 = vadd.f32 %v13211_v2, %v9319_v19  ;;  %v13978_v19 = vld [vmem:[%s17853_s7 + $0x100] sm:$0xff]  }
0x1752   : > { %v9509_v25 = vpop.f32.mrf.mxu1 }
0x1753   : > { %v9539_v8 = vadd.f32 %v9509_v25, %v9317_v63 }
0x1754   : > { %v13212_v15 = vpop.f32.mrf.mxu1 }
0x1755   : > { %v9542_v7 = vadd.f32 %v13212_v15, %v9320_v10 }
0x1756   : > { %v9512_v51 = vpop.f32.mrf.mxu1 }
0x1757   : > { %v9540_v1 = vadd.f32 %v9512_v51, %v9318_v36 }
0x1758   : > { %v13215_v55 = vpop.f32.mrf.mxu1 }
0x1759   : > { %v9545_v34 = vadd.f32 %v13215_v55, %v9323_v53 }
0x175a   : > { %v9525_v24 = vpop.f32.mrf.mxu1 }
0x175b   : > { %v9543_v57 = vadd.f32 %v9525_v24, %v9321_v0 }
0x175c   : > { %v13216_v38 = vpop.f32.mrf.mxu1 }
0x175e   : > { %v9528_v49 = vpop.f32.mrf.mxu1 }
0x175f   : > { %v9544_v59 = vadd.f32 %v9528_v49, %v9322_v41 }
0x1768   : > { %v13231_v13 = vpop.f32.mrf.mxu1 }
0x176a   : > { %v9618_v22 = vpop.f32.mrf.mxu1 }
0x176c   : > { %v13232_v60 = vpop.f32.mrf.mxu1 }
0x176d   : > { %v9649_v50 = vpack.c.bf16 %v13232_v60, %v13231_v13 }
0x176e   : > { %v9621_v62 = vpop.f32.mrf.mxu1 }
0x176f   : > { %v9648_v16 = vpack.c.bf16 %v9621_v62, %v9618_v22 }
0x1770   : > { %v13235_v58 = vpop.f32.mrf.mxu1 }
0x1771   : > { %13245 = vmatprep.mubr.msk.bf16.mxu0 %vm548_vm1, %v9648_v16  ;;  %v9651_v4 = vpack.c.bf16 %v13235_v58, %v13235_v58 }
0x1772   : > { %v9634_v20 = vpop.f32.mrf.mxu1  ;;  %13246 = vmatmul.mubr.msk.bf16.vlgmr.msra.gmra.mxu0 %vm548_vm1, %v9649_v50 }
0x1773   : > { %13254 = vmatpush3.bf16.msra.mxu0 %v17343_v42  ;;  %v13972_v42 = vld [vmem:[%s17852_s6 + $0xe8] sm:$0xff]  }
0x1774   : > { %13255 = vmatprep.subr.bf16.mxu0 %v17350_v29  ;;  %v13236_v28 = vpop.f32.mrf.mxu1 }
0x1776   : > { %v9637_v35 = vpop.f32.mrf.mxu1 }
0x1777   : > { %v9650_v39 = vpack.c.bf16 %v9637_v35, %v9634_v20  ;;  %13256 = vmatpush3.bf16.msra.mxu0 %v17350_v29  ;;  %v13977_v29 = vld [vmem:[%s17853_s7 + $0x108] sm:$0xff]  }
0x1778   : > { %13257 = vmatprep.subr.bf16.mxu0 %v17331_v32 }
0x1779   : > { %13249 = vmatprep.mubr.msk.bf16.mxu0 %vm548_vm1, %v9650_v39 }
0x177a   : > { %13250 = vmatmul.mubr.msk.bf16.gmra.mxu0 %vm548_vm1, %v9651_v4 }
0x177b   : > { %13258 = vmatpush3.bf16.msra.mxu0 %v17331_v32  ;;  %13265 = vmatprep.mubr.msk.bf16.mxu0 %vm8026_vm4, %v13971_v6  ;;  %v13973_v32 = vld [vmem:[%s17852_s6 + $0xf0] sm:$0xff]   ;;  %v10050_v6 = vld [vmem:[%s17827_s13 + $0x18] sm:$0x1] }
0x177c   : > { %13259 = vmatprep.subr.bf16.mxu0 %v17334_v45 }
0x177f   : > { %13260 = vmatpush3.bf16.msra.mxu0 %v17334_v45  ;;  %v13975_v45 = vld [vmem:[%s17853_s7 + $0x118] sm:$0xff]  }
0x1780   : > { %13261 = vmatprep.subr.bf16.mxu0 %v17307_v52  ;;  %13273 = vmatprep.subr.bf16.mxu1 %v13975_v45 }
0x1781   : > { %13274 = vmatpush3.bf16.msra.mxu1 %v13975_v45 }
0x1783   : > { %13262 = vmatpush3.bf16.msra.mxu0 %v17307_v52  ;;  %v13974_v52 = vld [vmem:[%s17852_s6 + $0xf8] ss:$0 sps:$4 sm:$0x11]  }
0x1784   : > { %13263 = vmatprep.subr.bf16.mxu0 %v17311_v46 }
0x1787   : > { %13264 = vmatpush3.bf16.msra.mxu0 %v17311_v46  ;;  %v13976_v46 = vld [vmem:[%s17853_s7 + $0x110] sm:$0xff]  }
0x1788   : > { %13275 = vmatprep.subr.bf16.mxu1 %v13976_v46 }
0x1789   : > { %13276 = vmatpush3.bf16.msra.mxu1 %v13976_v46 }
0x178a   : > { %13266 = vmatmul.mubr.msk.bf16.vlgmr.msra.gmra.mxu0 %vm8026_vm4, %v13972_v42  ;;  %13277 = vmatprep.subr.bf16.mxu1 %v13977_v29 }
0x178b   : > { %13269 = vmatprep.mubr.msk.bf16.mxu0 %vm8026_vm4, %v13973_v32 }
0x178d   : > { %13278 = vmatpush3.bf16.msra.mxu1 %v13977_v29 }
0x178e   : > { %13279 = vmatprep.subr.bf16.mxu1 %v13978_v19 }
0x1791   : > { %13280 = vmatpush3.bf16.msra.mxu1 %v13978_v19 }
0x1792   : > { %13270 = vmatmul.mubr.msk.bf16.gmra.mxu0 %vm8026_vm4, %v13974_v52 }
0x1832   : > { %v13247_v33 = vpop.f32.mrf.mxu0 }
0x1833   : > { %v9763_v63 = vadd.f32 %v13247_v33, %v9541_v30 }
0x1834   : > { %v9731_v23 = vpop.f32.mrf.mxu0 }
0x1835   : > { %v9761_v10 = vadd.f32 %v9731_v23, %v9539_v8 }
0x1836   : > { %v13248_v40 = vpop.f32.mrf.mxu0 }
0x1837   : > { %v9764_v36 = vadd.f32 %v13248_v40, %v9542_v7 }
0x1838   : > { %v9734_v31 = vpop.f32.mrf.mxu0 }
0x1839   : > { %v9762_v53 = vadd.f32 %v9734_v31, %v9540_v1 }
0x183a   : > { %v13251_v43 = vpop.f32.mrf.mxu0 }
0x183b   : > { %v9767_v0 = vadd.f32 %v13251_v43, %v9545_v34 }
0x183c   : > { %v9747_v54 = vpop.f32.mrf.mxu0 }
0x183d   : > { %v9765_v37 = vadd.f32 %v9747_v54, %v9543_v57 }
0x183e   : > { %v13252_v41 = vpop.f32.mrf.mxu0 }
0x1840   : > { %v9750_v12 = vpop.f32.mrf.mxu0 }
0x1841   : > { %v9766_v21 = vadd.f32 %v9750_v12, %v9544_v59 }
0x184a   : > { %v13267_v27 = vpop.f32.mrf.mxu0 }
0x184c   : > { %v9840_v18 = vpop.f32.mrf.mxu0 }
0x184e   : > { %v13268_v47 = vpop.f32.mrf.mxu0 }
0x184f   : > { %v9871_v44 = vpack.c.bf16 %v13268_v47, %v13267_v27 }
0x1850   : > { %v9843_v48 = vpop.f32.mrf.mxu0 }
0x1851   : > { %v9870_v61 = vpack.c.bf16 %v9843_v48, %v9840_v18 }
0x1852   : > { %v13271_v3 = vpop.f32.mrf.mxu0 }
0x1853   : > { %13281 = vmatprep.mubr.msk.bf16.mxu1 %vm548_vm1, %v9870_v61  ;;  %v9873_v17 = vpack.c.bf16 %v13271_v3, %v13271_v3 }
0x1854   : > { %v9856_v26 = vpop.f32.mrf.mxu0  ;;  %13282 = vmatmul.mubr.msk.bf16.vlgmr.msra.gmra.mxu1 %vm548_vm1, %v9871_v44 }
0x1856   : > { %v13272_v14 = vpop.f32.mrf.mxu0 }
0x1858   : > { %v9859_v5 = vpop.f32.mrf.mxu0 }
0x1859   : > { %v9872_v9 = vpack.c.bf16 %v9859_v5, %v9856_v26 }
0x185b   : > { %13285 = vmatprep.mubr.msk.bf16.mxu1 %vm548_vm1, %v9872_v9 }
0x185c   : > { %13286 = vmatmul.mubr.msk.bf16.gmra.mxu1 %vm548_vm1, %v9873_v17 }
0x1914   : > { %v13283_v56 = vpop.f32.mrf.mxu1 }
0x1915   : > { %v9985_v2 = vadd.f32 %v13283_v56, %v9763_v63 }
0x1916   : > { %v9953_v30 = vpop.f32.mrf.mxu1 }
0x1917   : > { %v9999_v25 = vadd.f32 %v11433_v11, %v9985_v2  ;;  %v9983_v8 = vadd.f32 %v9953_v30, %v9761_v10 }
0x1918   : > { %v13284_v15 = vpop.f32.mrf.mxu1 }
0x1919   : > { %v10006_v7 = vmax.f32 %v9999_v25, 0.0  ;;  %v9997_v51 = vadd.f32 %v11433_v11, %v9983_v8  ;;  %v9986_v1 = vadd.f32 %v13284_v15, %v9764_v36 }
0x191a   : > { %v9956_v55 = vpop.f32.mrf.mxu1 }
0x191b   : > { %v11445_v34 = vpack.c.bf16 %v10006_v7, %v10006_v7  ;;  %v10004_v24 = vmax.f32 %v9997_v51, 0.0  ;;  %v10000_v57 = vadd.f32 %v11433_v11, %v9986_v1  ;;  %v9984_v38 = vadd.f32 %v9956_v55, %v9762_v53 }
0x191c   : > { %v13287_v49 = vpop.f32.mrf.mxu1 }
0x191d   : > { %10043 = vst.msk [vmem:[%s17827_s13 + $0x8] sm:$0xf] %vm10040_vm6, %v11445_v34  ;;  %v11443_v59 = vpack.c.bf16 %v10004_v24, %v10004_v24  ;;  %v10007_v13 = vmax.f32 %v10000_v57, 0.0  ;;  %v9998_v22 = vadd.f32 %v11433_v11, %v9984_v38  ;;  %v9989_v60 = vadd.f32 %v13287_v49, %v9767_v0 }
0x191e   : > { %v9969_v62 = vpop.f32.mrf.mxu1 }
0x191f   : > { %10041 = vst.msk [vmem:[%s17827_s13] sm:$0xf] %vm10040_vm6, %v11443_v59  ;;  %v11446_v16 = vpack.c.bf16 %v10007_v13, %v10007_v13  ;;  %v10005_v50 = vmax.f32 %v9998_v22, 0.0  ;;  %v10003_v58 = vadd.f32 %v11433_v11, %v9989_v60  ;;  %v9987_v20 = vadd.f32 %v9969_v62, %v9765_v37 }
0x1920   : > { %v13288_v28 = vpop.f32.mrf.mxu1 }
0x1921   : > { %10044 = vst.msk [vmem:[%s17827_s13 + $0xc] sm:$0xf] %vm10040_vm6, %v11446_v16  ;;  %v11444_v4 = vpack.c.bf16 %v10005_v50, %v10005_v50  ;;  %v10010_v35 = vmax.f32 %v10003_v58, 0.0  ;;  %v10001_v39 = vadd.f32 %v11433_v11, %v9987_v20 }
0x1922   : > { %v9972_v42 = vpop.f32.mrf.mxu1 }
0x1923   : > { %10042 = vst.msk [vmem:[%s17827_s13 + $0x4] sm:$0xf] %vm10040_vm6, %v11444_v4  ;;  %v11449_v32 = vpack.c.bf16 %v10010_v35, %v10010_v35  ;;  %v10008_v52 = vmax.f32 %v10001_v39, 0.0  ;;  %v9988_v45 = vadd.f32 %v9972_v42, %v9766_v21 }
0x1925   : > { %v10051_v46 = vsel %vm10049_vm9, %v11449_v32, %v10050_v6  ;;  %v11447_v29 = vpack.c.bf16 %v10008_v52, %v10008_v52  ;;  %v10002_v19 = vadd.f32 %v11433_v11, %v9988_v45 }
0x1926   : > { %10052 = vst [vmem:[%s17827_s13 + $0x18] sm:$0x1] %v10051_v46 }
0x1927   : > { %10045 = vst.msk [vmem:[%s17827_s13 + $0x10] sm:$0xf] %vm10040_vm6, %v11447_v29  ;;  %v10009_v33 = vmax.f32 %v10002_v19, 0.0 }
0x1929   : > { %v11448_v63 = vpack.c.bf16 %v10009_v33, %v10009_v33 }
0x192b   : > { %10046 = vst.msk [vmem:[%s17827_s13 + $0x14] sm:$0xf] %vm10040_vm6, %v11448_v63 }
0x192c PF: > { %s19_s30 = sadd.s32 1, %s13985_s30  }
0x192d   : > { %p16_p4 = scmp.ge.s32.totalorder %s19_s30, 4  }
0x192f   :  { %18 = sbr.rel (!%p16_p4) target bundleno = 1 (0x1), region = 132 }

</bundles_post_ra>
